<compile_context>
chip_gen: v6e
topology: v6e:2x2x1
jax: 0.10.0
libtpu: 0.0.40
codegen_flags: <defaults>
</compile_context>

<pallas_src>
import functools

import jax
import jax.numpy as jnp
from jax.experimental import pallas as pl
from jax.experimental.pallas import tpu as pltpu


def _round_up(x, m):
    return (x + m - 1) // m * m


# -------- Pallas kernel 1: in-kernel im2col + single big-K 3x3 conv (+bias, +BN stats) -------

def _conv3x3_kernel(x_ref, w_ref, b_ref, o_ref, stats_ref, *, th, Wp, W):
    # x_ref:     (H+2, Wp+2, Cin) f32   -- one batch element, halo + width padded (resident)
    # w_ref:     (9*Cin, Cout_pad) bf16 -- resident
    # b_ref:     (1, Cout_pad) f32
    # o_ref:     (th*Wp, Cout_pad) f32  -- one row strip of the output
    # stats_ref: (2, Cout_pad) f32      -- per-block [sum, sumsq] over valid columns
    cin = x_ref.shape[-1]
    row0 = pl.program_id(1) * th

    parts = []
    for k in range(9):
        dh, dw = divmod(k, 3)
        xs = x_ref[pl.ds(row0 + dh, th), pl.ds(dw, Wp), :]        # shifted halo view, VMEM only
        parts.append(xs.reshape(th * Wp, cin))                    # im2col tap, never hits HBM
    patches = jnp.concatenate(parts, axis=1)                      # (th*Wp, 9*Cin)

    # Single big-K MXU matmul (one bf16 cast of the lhs, f32 accumulate), bias folded
    # into the only store of the output tile.
    acc = jnp.dot(patches.astype(jnp.bfloat16), w_ref[...],
                  preferred_element_type=jnp.float32)
    acc = acc + b_ref[...]
    o_ref[...] = acc

    # Partial BatchNorm statistics so the activation is not re-read from HBM for stats.
    if W == Wp:
        acc_m = acc
    else:
        col = jax.lax.broadcasted_iota(jnp.int32, (th * Wp, 1), 0) % Wp
        acc_m = jnp.where(col < W, acc, 0.0)                      # mask padded W columns
    stats_ref[0:1, :] = jnp.sum(acc_m, axis=0, keepdims=True)
    stats_ref[1:2, :] = jnp.sum(acc_m * acc_m, axis=0, keepdims=True)


def conv3x3_bias(x_nhwc, w, b, cout_pad, row_block_bytes=2 * 1024 * 1024):
    """3x3 conv, stride 1, SAME padding. x: (B,H,W,Cin_x) f32 (Cin_x may be channel-padded),
    w: (Cout,Cin,3,3). Returns (y, chan_sum, chan_sumsq): y is (B,H,W,cout_pad) f32 with
    zero-padded output channels; sums are (cout_pad,) over the B*H*W valid positions."""
    B, H, W, cin_x = x_nhwc.shape
    cout, cin = w.shape[0], w.shape[1]
    assert cin_x >= cin
    # Pad W up to a multiple of 8 so the in-kernel (th,Wp,Cin)->(th*Wp,Cin) collapse is
    # sublane-tile aligned; extra columns are garbage and are sliced off / masked.
    Wp = max(8, _round_up(W, 8))
    # Strip channel padding from the previous layer before the matmul (K stays 9*Cin real).
    xp = jnp.pad(x_nhwc[..., :cin].astype(jnp.float32),
                 ((0, 0), (1, 1), (1, Wp - W + 1), (0, 0)))       # (B, H+2, Wp+2, Cin)
    wk = jnp.transpose(w, (2, 3, 1, 0)).reshape(9, cin, cout)     # tap-major, matches concat
    wk = jnp.pad(wk, ((0, 0), (0, 0), (0, cout_pad - cout)))
    wk = wk.reshape(9 * cin, cout_pad).astype(jnp.bfloat16)
    bk = jnp.pad(b, (0, cout_pad - cout)).reshape(1, cout_pad).astype(jnp.float32)

    # Row-strip tiling: bound the f32 output block; halo input stays resident per batch.
    th = H
    while th % 2 == 0 and th * Wp * cout_pad * 4 > row_block_bytes:
        th //= 2
    nrt = H // th

    y, stats = pl.pallas_call(
        functools.partial(_conv3x3_kernel, th=th, Wp=Wp, W=W),
        out_shape=(jax.ShapeDtypeStruct((B, H * Wp, cout_pad), jnp.float32),
                   jax.ShapeDtypeStruct((B, nrt, 2, cout_pad), jnp.float32)),
        grid=(B, nrt),
        in_specs=[pl.BlockSpec((None, H + 2, Wp + 2, cin), lambda bi, ri: (bi, 0, 0, 0)),
                  pl.BlockSpec((9 * cin, cout_pad), lambda bi, ri: (0, 0)),
                  pl.BlockSpec((1, cout_pad), lambda bi, ri: (0, 0))],
        out_specs=(pl.BlockSpec((None, th * Wp, cout_pad), lambda bi, ri: (bi, ri, 0)),
                   pl.BlockSpec((None, None, 2, cout_pad), lambda bi, ri: (bi, ri, 0, 0))),
        compiler_params=pltpu.CompilerParams(
            dimension_semantics=("parallel", "parallel")),
    )(xp, wk, bk)

    y = y.reshape(B, H, Wp, cout_pad)[:, :, :W, :]
    sums = jnp.sum(stats, axis=(0, 1))                            # (2, cout_pad)
    return y, sums[0], sums[1]


# -------- Pallas kernel 2: fused BatchNorm-affine + ReLU (capped, lane-dense tiles) ----------

def _scale_shift_relu_kernel(x_ref, scale_ref, shift_ref, o_ref):
    o_ref[...] = jnp.maximum(x_ref[...] * scale_ref[...] + shift_ref[...], 0.0)


def bn_relu(x_bhwc, gamma, beta, chan_sum, chan_sumsq, count, eps=1e-5):
    """BatchNorm2d (train-mode batch stats, biased variance) + ReLU, using per-channel
    sums emitted by the conv kernel (channels already padded to the lane width)."""
    B, H, W, Cp = x_bhwc.shape
    mean = chan_sum / count
    var = jnp.maximum(chan_sumsq / count - mean * mean, 0.0)
    g = jnp.pad(gamma.astype(jnp.float32), (0, Cp - gamma.shape[0]), constant_values=1.0)
    bt = jnp.pad(beta.astype(jnp.float32), (0, Cp - beta.shape[0]))
    scale = g * jax.lax.rsqrt(var + eps)
    shift = bt - mean * scale

    rows = B * H * W
    tm = min(512, _round_up(rows, 8))
    rows_pad = _round_up(rows, tm)
    x2 = x_bhwc.reshape(rows, Cp)
    if rows_pad != rows:
        x2 = jnp.pad(x2, ((0, rows_pad - rows), (0, 0)))

    y = pl.pallas_call(
        _scale_shift_relu_kernel,
        out_shape=jax.ShapeDtypeStruct((rows_pad, Cp), jnp.float32),
        grid=(rows_pad // tm,),
        in_specs=[pl.BlockSpec((tm, Cp), lambda i: (i, 0)),
                  pl.BlockSpec((1, Cp), lambda i: (0, 0)),
                  pl.BlockSpec((1, Cp), lambda i: (0, 0))],
        out_specs=pl.BlockSpec((tm, Cp), lambda i: (i, 0)),
        compiler_params=pltpu.CompilerParams(dimension_semantics=("parallel",)),
    )(x2, scale.reshape(1, Cp), shift.reshape(1, Cp))
    return y[:rows].reshape(B, H, W, Cp)


def maxpool2x2(x_bhwc):
    # TODO(synk): could be fused into the scale-shift-ReLU kernel (2x2 window max) to save
    # one HBM round-trip; kept as reduce_window for robustness.
    return jax.lax.reduce_window(x_bhwc, -jnp.inf, jax.lax.max,
                                 window_dimensions=(1, 2, 2, 1),
                                 window_strides=(1, 2, 2, 1), padding="VALID")


# ---------------- LocalizationNetwork ----------------

def localization_network(image_nchw, params, F):
    B = image_nchw.shape[0]
    x = jnp.transpose(image_nchw, (0, 2, 3, 1)).astype(jnp.float32)   # NCHW -> NHWC
    n_blocks = len(params["convs"])
    feat = None
    for i, cp in enumerate(params["convs"]):
        cout = cp["w"].shape[0]
        cpad = _round_up(cout, 128)
        Bc, Hc, Wc = x.shape[0], x.shape[1], x.shape[2]
        y, s1, s2 = conv3x3_bias(x, cp["w"], cp["b"], cpad)
        x = bn_relu(y, cp["gamma"], cp["beta"], s1, s2, count=Bc * Hc * Wc)
        if i == n_blocks - 1:
            feat = jnp.mean(x, axis=(1, 2))[:, :cout]                 # AdaptiveAvgPool2d(1)
        else:
            x = maxpool2x2(x)
    # Sub-vreg FC layers stay in XLA (pallas_call overhead > work at these shapes).
    h = jnp.maximum(feat @ params["fc1_w"].T + params["fc1_b"], 0.0)
    out = h @ params["fc2_w"].T + params["fc2_b"]
    return out.reshape(B, F, 2)


# ---------------- GridGenerator (tiny TPS algebra, kept in XLA) ----------------

def build_C(F):
    x = jnp.linspace(-1.0, 1.0, F // 2)
    top = jnp.stack([x, -jnp.ones(F // 2)], axis=1)
    bot = jnp.stack([x, jnp.ones(F // 2)], axis=1)
    return jnp.concatenate([top, bot], axis=0)                        # (F, 2)


def build_P(H, W):
    gx = (jnp.arange(-W, W, 2) + 1.0) / float(W)
    gy = (jnp.arange(-H, H, 2) + 1.0) / float(H)
    X, Y = jnp.meshgrid(gx, gy, indexing="ij")                        # (W, H)
    P = jnp.stack([X, Y], axis=2)
    P = jnp.transpose(P, (1, 0, 2))                                   # (H, W, 2)
    return P.reshape(-1, 2)                                           # (H*W, 2)


def build_inv_delta_C(C, F):
    d = jnp.linalg.norm(C[:, None, :] - C[None, :, :], axis=2)
    hat_C = d + jnp.eye(F)
    hat_C = jnp.square(hat_C) * jnp.log(hat_C)
    delta_C = jnp.concatenate([
        jnp.concatenate([jnp.ones((F, 1)), C, hat_C], axis=1),
        jnp.concatenate([jnp.zeros((2, 3)), C.T], axis=1),
        jnp.concatenate([jnp.zeros((1, 3)), jnp.ones((1, F))], axis=1),
    ], axis=0)
    # TODO(synk): matrix inverse has no Pallas primitive; tiny (F+3)x(F+3) solve kept in XLA.
    return jnp.linalg.inv(delta_C)


def build_P_hat(C, P, eps):
    n = P.shape[0]
    diff = P[:, None, :] - C[None, :, :]
    rbf_norm = jnp.linalg.norm(diff, axis=2)
    rbf = jnp.square(rbf_norm) * jnp.log(rbf_norm + eps)
    return jnp.concatenate([jnp.ones((n, 1)), P, rbf], axis=1)        # (H*W, F+3)


def grid_generator(batch_C_prime, I_r_size, fc_w, fc_b, F, eps=1e-6):
    H, W = I_r_size
    B = batch_C_prime.shape[0]
    C = build_C(F)
    P = build_P(H, W)
    inv_delta_C = build_inv_delta_C(C, F)                             # (F+3, F+3)
    P_hat = build_P_hat(C, P, eps)                                    # (H*W, F+3)
    ex = (batch_C_prime.reshape(B, F * 2) @ fc_w.T + fc_b).reshape(B, 3, 2)
    Cz = jnp.concatenate([batch_C_prime, ex], axis=1)                 # (B, F+3, 2)
    batch_T = jnp.einsum("ij,bjk->bik", inv_delta_C, Cz)              # (B, F+3, 2)
    return jnp.einsum("pj,bjk->bpk", P_hat, batch_T)                  # (B, H*W, 2)


# ---------------- grid_sample: 4-tap bilinear (zeros padding, align_corners=True) -------------

def _bilinear_blend_kernel(v00_ref, v10_ref, v01_ref, v11_ref, w_ref, o_ref):
    # vXY_ref: (C, HWo) f32 corner values; w_ref: (4, HWo) f32 valid-masked corner weights.
    o_ref[...] = (v00_ref[...] * w_ref[0:1, :] + v10_ref[...] * w_ref[1:2, :]
                  + v01_ref[...] * w_ref[2:3, :] + v11_ref[...] * w_ref[3:4, :])


def grid_sample_bilinear(image_nchw, grid_xy):
    B, C, H, W = image_nchw.shape
    HWo = grid_xy.shape[1]                                            # grid_xy: (B, HWo, 2)
    gx, gy = grid_xy[..., 0], grid_xy[..., 1]
    ix = (gx + 1.0) * (W - 1) * 0.5                                   # align_corners=True
    iy = (gy + 1.0) * (H - 1) * 0.5
    x0 = jnp.floor(ix)
    y0 = jnp.floor(iy)
    x1, y1 = x0 + 1.0, y0 + 1.0
    wx1 = ix - x0
    wx0 = 1.0 - wx1
    wy1 = iy - y0
    wy0 = 1.0 - wy1

    img_flat = image_nchw.reshape(B, C, H * W).astype(jnp.float32)

    def corner(xc, yc, wgt):
        valid = (xc >= 0) & (xc <= W - 1) & (yc >= 0) & (yc <= H - 1)
        lin = jnp.where(valid, yc * W + xc, 0.0).astype(jnp.int32)    # (B, HWo)
        # TODO(synk): the row gather stays in XLA -- Mosaic has no general cross-vreg
        # vector-gather primitive; the masked 4-tap blend runs in the Pallas kernel below.
        vals = jax.vmap(lambda im, li: jnp.take(im, li, axis=1))(img_flat, lin)  # (B,C,HWo)
        return vals, wgt * valid.astype(jnp.float32)

    v00, w00 = corner(x0, y0, wx0 * wy0)
    v10, w10 = corner(x1, y0, wx1 * wy0)
    v01, w01 = corner(x0, y1, wx0 * wy1)
    v11, w11 = corner(x1, y1, wx1 * wy1)
    wts = jnp.stack([w00, w10, w01, w11], axis=1)                     # (B, 4, HWo), small

    vspec = pl.BlockSpec((None, C, HWo), lambda b: (b, 0, 0))
    out = pl.pallas_call(
        _bilinear_blend_kernel,
        out_shape=jax.ShapeDtypeStruct((B, C, HWo), jnp.float32),
        grid=(B,),
        in_specs=[vspec, vspec, vspec, vspec,
                  pl.BlockSpec((None, 4, HWo), lambda b: (b, 0, 0))],
        out_specs=pl.BlockSpec((None, C, HWo), lambda b: (b, 0, 0)),
        compiler_params=pltpu.CompilerParams(dimension_semantics=("parallel",)),
    )(v00, v10, v01, v11, wts)
    return out.reshape(B, C, H, W)


# ---------------- TPS forward ----------------

def tps_forward(image, params, num_fiducial):
    B, Cin, H, W = image.shape
    F = num_fiducial
    batch_C_prime = localization_network(image, params, F)            # (B, F, 2)
    batch_P_prime = grid_generator(batch_C_prime, (H, W),
                                   params["gg_fc_w"], params["gg_fc_b"], F)  # (B, H*W, 2)
    return grid_sample_bilinear(image, batch_P_prime)                 # (B, Cin, H, W)


# ---------------- deterministic parameter init ----------------

def init_tps_params(key, in_channels, num_fiducial, model_name):
    if model_name == "large":
        filters, fc_dim = [64, 128, 256, 512], 256
    else:
        filters, fc_dim = [16, 32, 64, 128], 64
    F = num_fiducial
    convs = []
    cin = in_channels
    for cout in filters:
        key, k1, k2 = jax.random.split(key, 3)
        convs.append(dict(
            w=jax.random.normal(k1, (cout, cin, 3, 3), jnp.float32) * 0.1,
            b=jax.random.normal(k2, (cout,), jnp.float32) * 0.01,
            gamma=jnp.ones((cout,), jnp.float32),
            beta=jnp.zeros((cout,), jnp.float32)))
        cin = cout
    key, k1, k2, k3, k4, k5, k6 = jax.random.split(key, 7)
    return dict(
        convs=convs,
        fc1_w=jax.random.normal(k1, (fc_dim, filters[-1]), jnp.float32) * 0.05,
        fc1_b=jax.random.normal(k2, (fc_dim,), jnp.float32) * 0.01,
        fc2_w=jax.random.normal(k3, (F * 2, fc_dim), jnp.float32) * 0.05,
        fc2_b=jax.random.normal(k4, (F * 2,), jnp.float32) * 0.01,
        gg_fc_w=jax.random.normal(k5, (6, F * 2), jnp.float32) * 0.05,
        gg_fc_b=jax.random.normal(k6, (6,), jnp.float32) * 0.01,
    )


# ---------------- main ----------------

if __name__ == "__main__":
    B, Cin, H, W = 2, 4, 16, 16          # H, W divisible by 8 (three 2x2 maxpools)
    num_fiducial = 20
    model_name = "small"

    key = jax.random.PRNGKey(0)
    key_img, key_params = jax.random.split(key)
    image = jax.random.normal(key_img, (B, Cin, H, W), jnp.float32)
    params = init_tps_params(key_params, Cin, num_fiducial, model_name)

    fwd = jax.jit(functools.partial(tps_forward, num_fiducial=num_fiducial))
    out = jax.block_until_ready(fwd(image, params))
    assert out.shape == (B, Cin, H, W), out.shape
    assert bool(jnp.all(jnp.isfinite(out)))
    print("KERNEL_OK")
</pallas_src>

<mosaic_0001>
module attributes {stable_mosaic.version = 11 : i64} {
  func.func @_conv3x3_kernel(%arg0: i32, %arg1: i32, %arg2: memref<1x18x18x4xf32, #tpu.memory_space<vmem>>, %arg3: memref<36x128xbf16, #tpu.memory_space<vmem>>, %arg4: memref<1x128xf32, #tpu.memory_space<vmem>>, %arg5: memref<1x256x128xf32, #tpu.memory_space<vmem>>, %arg6: memref<1x1x2x128xf32, #tpu.memory_space<vmem>>) attributes {dimension_semantics = [#tpu.dimension_semantics<parallel>, #tpu.dimension_semantics<parallel>], iteration_bounds = array<i64: 2, 1>, scalar_prefetch = 0 : i64, scratch_operands = 0 : i64, tpu.core_type = #tpu.core_type<tc>, window_params = [{transform_indices = @transform_0, window_bounds = array<i64: 1, 18, 18, 4>}, {pipeline_mode = #tpu.pipeline_mode<synchronous>, transform_indices = @transform_1, window_bounds = array<i64: 36, 128>}, {pipeline_mode = #tpu.pipeline_mode<synchronous>, transform_indices = @transform_2, window_bounds = array<i64: 1, 128>}, {transform_indices = @transform_3, window_bounds = array<i64: 1, 256, 128>}, {transform_indices = @transform_4, window_bounds = array<i64: 1, 1, 2, 128>}]} {
    %c16_i32 = arith.constant 16 : i32
    %0 = arith.muli %arg1, %c16_i32 : i32
    %c0_i32 = arith.constant 0 : i32
    %1 = arith.addi %0, %c0_i32 : i32
    %c0 = arith.constant 0 : index
    %2 = arith.index_cast %1 : i32 to index
    %c0_0 = arith.constant 0 : index
    %c0_1 = arith.constant 0 : index
    %3 = vector.load %arg2[%c0, %2, %c0_0, %c0_1] : memref<1x18x18x4xf32, #tpu.memory_space<vmem>>, vector<1x16x16x4xf32>
    %4 = vector.shape_cast %3 : vector<1x16x16x4xf32> to vector<16x16x4xf32>
    %5 = vector.shape_cast %4 : vector<16x16x4xf32> to vector<256x4xf32>
    %c0_i32_2 = arith.constant 0 : i32
    %6 = arith.addi %0, %c0_i32_2 : i32
    %c0_3 = arith.constant 0 : index
    %7 = arith.index_cast %6 : i32 to index
    %c1 = arith.constant 1 : index
    %c0_4 = arith.constant 0 : index
    %8 = vector.load %arg2[%c0_3, %7, %c1, %c0_4] : memref<1x18x18x4xf32, #tpu.memory_space<vmem>>, vector<1x16x16x4xf32>
    %9 = vector.shape_cast %8 : vector<1x16x16x4xf32> to vector<16x16x4xf32>
    %10 = vector.shape_cast %9 : vector<16x16x4xf32> to vector<256x4xf32>
    %c0_i32_5 = arith.constant 0 : i32
    %11 = arith.addi %0, %c0_i32_5 : i32
    %c0_6 = arith.constant 0 : index
    %12 = arith.index_cast %11 : i32 to index
    %c2 = arith.constant 2 : index
    %c0_7 = arith.constant 0 : index
    %13 = vector.load %arg2[%c0_6, %12, %c2, %c0_7] : memref<1x18x18x4xf32, #tpu.memory_space<vmem>>, vector<1x16x16x4xf32>
    %14 = vector.shape_cast %13 : vector<1x16x16x4xf32> to vector<16x16x4xf32>
    %15 = vector.shape_cast %14 : vector<16x16x4xf32> to vector<256x4xf32>
    %c1_i32 = arith.constant 1 : i32
    %16 = arith.addi %0, %c1_i32 : i32
    %c0_8 = arith.constant 0 : index
    %17 = arith.index_cast %16 : i32 to index
    %c0_9 = arith.constant 0 : index
    %c0_10 = arith.constant 0 : index
    %18 = vector.load %arg2[%c0_8, %17, %c0_9, %c0_10] : memref<1x18x18x4xf32, #tpu.memory_space<vmem>>, vector<1x16x16x4xf32>
    %19 = vector.shape_cast %18 : vector<1x16x16x4xf32> to vector<16x16x4xf32>
    %20 = vector.shape_cast %19 : vector<16x16x4xf32> to vector<256x4xf32>
    %c1_i32_11 = arith.constant 1 : i32
    %21 = arith.addi %0, %c1_i32_11 : i32
    %c0_12 = arith.constant 0 : index
    %22 = arith.index_cast %21 : i32 to index
    %c1_13 = arith.constant 1 : index
    %c0_14 = arith.constant 0 : index
    %23 = vector.load %arg2[%c0_12, %22, %c1_13, %c0_14] : memref<1x18x18x4xf32, #tpu.memory_space<vmem>>, vector<1x16x16x4xf32>
    %24 = vector.shape_cast %23 : vector<1x16x16x4xf32> to vector<16x16x4xf32>
    %25 = vector.shape_cast %24 : vector<16x16x4xf32> to vector<256x4xf32>
    %c1_i32_15 = arith.constant 1 : i32
    %26 = arith.addi %0, %c1_i32_15 : i32
    %c0_16 = arith.constant 0 : index
    %27 = arith.index_cast %26 : i32 to index
    %c2_17 = arith.constant 2 : index
    %c0_18 = arith.constant 0 : index
    %28 = vector.load %arg2[%c0_16, %27, %c2_17, %c0_18] : memref<1x18x18x4xf32, #tpu.memory_space<vmem>>, vector<1x16x16x4xf32>
    %29 = vector.shape_cast %28 : vector<1x16x16x4xf32> to vector<16x16x4xf32>
    %30 = vector.shape_cast %29 : vector<16x16x4xf32> to vector<256x4xf32>
    %c2_i32 = arith.constant 2 : i32
    %31 = arith.addi %0, %c2_i32 : i32
    %c0_19 = arith.constant 0 : index
    %32 = arith.index_cast %31 : i32 to index
    %c0_20 = arith.constant 0 : index
    %c0_21 = arith.constant 0 : index
    %33 = vector.load %arg2[%c0_19, %32, %c0_20, %c0_21] : memref<1x18x18x4xf32, #tpu.memory_space<vmem>>, vector<1x16x16x4xf32>
    %34 = vector.shape_cast %33 : vector<1x16x16x4xf32> to vector<16x16x4xf32>
    %35 = vector.shape_cast %34 : vector<16x16x4xf32> to vector<256x4xf32>
    %c2_i32_22 = arith.constant 2 : i32
    %36 = arith.addi %0, %c2_i32_22 : i32
    %c0_23 = arith.constant 0 : index
    %37 = arith.index_cast %36 : i32 to index
    %c1_24 = arith.constant 1 : index
    %c0_25 = arith.constant 0 : index
    %38 = vector.load %arg2[%c0_23, %37, %c1_24, %c0_25] : memref<1x18x18x4xf32, #tpu.memory_space<vmem>>, vector<1x16x16x4xf32>
    %39 = vector.shape_cast %38 : vector<1x16x16x4xf32> to vector<16x16x4xf32>
    %40 = vector.shape_cast %39 : vector<16x16x4xf32> to vector<256x4xf32>
    %c2_i32_26 = arith.constant 2 : i32
    %41 = arith.addi %0, %c2_i32_26 : i32
    %c0_27 = arith.constant 0 : index
    %42 = arith.index_cast %41 : i32 to index
    %c2_28 = arith.constant 2 : index
    %c0_29 = arith.constant 0 : index
    %43 = vector.load %arg2[%c0_27, %42, %c2_28, %c0_29] : memref<1x18x18x4xf32, #tpu.memory_space<vmem>>, vector<1x16x16x4xf32>
    %44 = vector.shape_cast %43 : vector<1x16x16x4xf32> to vector<16x16x4xf32>
    %45 = vector.shape_cast %44 : vector<16x16x4xf32> to vector<256x4xf32>
    %46 = tpu.concatenate %5, %10, %15, %20, %25, %30, %35, %40, %45 in 1 : vector<256x4xf32>, vector<256x4xf32>, vector<256x4xf32>, vector<256x4xf32>, vector<256x4xf32>, vector<256x4xf32>, vector<256x4xf32>, vector<256x4xf32>, vector<256x4xf32> -> vector<256x36xf32>
    %47 = arith.truncf %46 : vector<256x36xf32> to vector<256x36xbf16>
    %c0_30 = arith.constant 0 : index
    %c0_31 = arith.constant 0 : index
    %48 = vector.load %arg3[%c0_30, %c0_31] : memref<36x128xbf16, #tpu.memory_space<vmem>>, vector<36x128xbf16>
    %cst = arith.constant dense<0.000000e+00> : vector<256x128xf32>
    %49 = tpu.matmul %47, %48, %cst {dimension_numbers = #tpu.dot_dimension_numbers<[1], [0], [0], [1], [0, 0, 1, 1], [], []>} : vector<256x36xbf16>, vector<36x128xbf16>, vector<256x128xf32> -> vector<256x128xf32>
    %c0_32 = arith.constant 0 : index
    %c0_33 = arith.constant 0 : index
    %50 = vector.load %arg4[%c0_32, %c0_33] : memref<1x128xf32, #tpu.memory_space<vmem>>, vector<1x128xf32>
    %51 = vector.broadcast %50 : vector<1x128xf32> to vector<256x128xf32>
    %52 = arith.addf %49, %51 : vector<256x128xf32>
    %c0_34 = arith.constant 0 : index
    %c0_35 = arith.constant 0 : index
    %c0_36 = arith.constant 0 : index
    %53 = vector.load %arg5[%c0_34, %c0_35, %c0_36] : memref<1x256x128xf32, #tpu.memory_space<vmem>>, vector<1x256x128xf32>
    %54 = vector.shape_cast %53 : vector<1x256x128xf32> to vector<256x128xf32>
    %55 = vector.shape_cast %52 : vector<256x128xf32> to vector<1x256x128xf32>
    tpu.vector_store %arg5[%c0_34, %c0_35, %c0_36], %55 {strides = array<i32>} : memref<1x256x128xf32, #tpu.memory_space<vmem>>, vector<1x256x128xf32>,
    %cst_37 = arith.constant dense<0.000000e+00> : vector<128xf32>
    %56 = vector.multi_reduction <add>, %52, %cst_37 [0] : vector<256x128xf32> to vector<128xf32>
    %57 = vector.shape_cast %56 : vector<128xf32> to vector<1x128xf32>
    %c0_38 = arith.constant 0 : index
    %c0_39 = arith.constant 0 : index
    %c0_40 = arith.constant 0 : index
    %c0_41 = arith.constant 0 : index
    %58 = vector.load %arg6[%c0_38, %c0_39, %c0_40, %c0_41] : memref<1x1x2x128xf32, #tpu.memory_space<vmem>>, vector<1x1x1x128xf32>
    %59 = vector.shape_cast %58 : vector<1x1x1x128xf32> to vector<1x128xf32>
    %60 = vector.shape_cast %57 : vector<1x128xf32> to vector<1x1x1x128xf32>
    tpu.vector_store %arg6[%c0_38, %c0_39, %c0_40, %c0_41], %60 {strides = array<i32>} : memref<1x1x2x128xf32, #tpu.memory_space<vmem>>, vector<1x1x1x128xf32>,
    %61 = arith.mulf %52, %52 : vector<256x128xf32>
    %cst_42 = arith.constant dense<0.000000e+00> : vector<128xf32>
    %62 = vector.multi_reduction <add>, %61, %cst_42 [0] : vector<256x128xf32> to vector<128xf32>
    %63 = vector.shape_cast %62 : vector<128xf32> to vector<1x128xf32>
    %c0_43 = arith.constant 0 : index
    %c0_44 = arith.constant 0 : index
    %c1_45 = arith.constant 1 : index
    %c0_46 = arith.constant 0 : index
    %64 = vector.load %arg6[%c0_43, %c0_44, %c1_45, %c0_46] : memref<1x1x2x128xf32, #tpu.memory_space<vmem>>, vector<1x1x1x128xf32>
    %65 = vector.shape_cast %64 : vector<1x1x1x128xf32> to vector<1x128xf32>
    %66 = vector.shape_cast %63 : vector<1x128xf32> to vector<1x1x1x128xf32>
    tpu.vector_store %arg6[%c0_43, %c0_44, %c1_45, %c0_46], %66 {strides = array<i32>} : memref<1x1x2x128xf32, #tpu.memory_space<vmem>>, vector<1x1x1x128xf32>,
    return
  }
  func.func @transform_0(%arg0: i32, %arg1: i32) -> (i32, i32, i32, i32) {
    %c0_i32 = arith.constant 0 : i32
    %c0_i32_0 = arith.constant 0 : i32
    %c0_i32_1 = arith.constant 0 : i32
    %c0_i32_2 = arith.constant 0 : i32
    return %arg0, %c0_i32, %c0_i32_0, %c0_i32_1 : i32, i32, i32, i32
  }
  func.func @transform_1(%arg0: i32, %arg1: i32) -> (i32, i32) {
    %c0_i32 = arith.constant 0 : i32
    %c0_i32_0 = arith.constant 0 : i32
    %c0_i32_1 = arith.constant 0 : i32
    return %c0_i32, %c0_i32_0 : i32, i32
  }
  func.func @transform_2(%arg0: i32, %arg1: i32) -> (i32, i32) {
    %c0_i32 = arith.constant 0 : i32
    %c0_i32_0 = arith.constant 0 : i32
    %c0_i32_1 = arith.constant 0 : i32
    return %c0_i32, %c0_i32_0 : i32, i32
  }
  func.func @transform_3(%arg0: i32, %arg1: i32) -> (i32, i32, i32) {
    %c0_i32 = arith.constant 0 : i32
    %c0_i32_0 = arith.constant 0 : i32
    return %arg0, %arg1, %c0_i32 : i32, i32, i32
  }
  func.func @transform_4(%arg0: i32, %arg1: i32) -> (i32, i32, i32, i32) {
    %c0_i32 = arith.constant 0 : i32
    %c0_i32_0 = arith.constant 0 : i32
    %c0_i32_1 = arith.constant 0 : i32
    return %arg0, %arg1, %c0_i32, %c0_i32_0 : i32, i32, i32, i32
  }
}

module attributes {stable_mosaic.version = 11 : i64} {
  func.func @_scale_shift_relu_kernel(%arg0: i32, %arg1: memref<512x128xf32, #tpu.memory_space<vmem>>, %arg2: memref<1x128xf32, #tpu.memory_space<vmem>>, %arg3: memref<1x128xf32, #tpu.memory_space<vmem>>, %arg4: memref<512x128xf32, #tpu.memory_space<vmem>>) attributes {dimension_semantics = [#tpu.dimension_semantics<parallel>], iteration_bounds = array<i64: 1>, scalar_prefetch = 0 : i64, scratch_operands = 0 : i64, tpu.core_type = #tpu.core_type<tc>, window_params = [{transform_indices = @transform_0, window_bounds = array<i64: 512, 128>}, {pipeline_mode = #tpu.pipeline_mode<synchronous>, transform_indices = @transform_1, window_bounds = array<i64: 1, 128>}, {pipeline_mode = #tpu.pipeline_mode<synchronous>, transform_indices = @transform_2, window_bounds = array<i64: 1, 128>}, {transform_indices = @transform_3, window_bounds = array<i64: 512, 128>}]} {
    %c0 = arith.constant 0 : index
    %c0_0 = arith.constant 0 : index
    %0 = vector.load %arg1[%c0, %c0_0] : memref<512x128xf32, #tpu.memory_space<vmem>>, vector<512x128xf32>
    %c0_1 = arith.constant 0 : index
    %c0_2 = arith.constant 0 : index
    %1 = vector.load %arg2[%c0_1, %c0_2] : memref<1x128xf32, #tpu.memory_space<vmem>>, vector<1x128xf32>
    %2 = vector.broadcast %1 : vector<1x128xf32> to vector<512x128xf32>
    %3 = arith.mulf %0, %2 : vector<512x128xf32>
    %c0_3 = arith.constant 0 : index
    %c0_4 = arith.constant 0 : index
    %4 = vector.load %arg3[%c0_3, %c0_4] : memref<1x128xf32, #tpu.memory_space<vmem>>, vector<1x128xf32>
    %5 = vector.broadcast %4 : vector<1x128xf32> to vector<512x128xf32>
    %6 = arith.addf %3, %5 : vector<512x128xf32>
    %cst = arith.constant 0.000000e+00 : f32
    %7 = vector.broadcast %cst : f32 to vector<512x128xf32>
    %8 = arith.maximumf %6, %7 : vector<512x128xf32>
    %c0_5 = arith.constant 0 : index
    %c0_6 = arith.constant 0 : index
    %9 = vector.load %arg4[%c0_5, %c0_6] : memref<512x128xf32, #tpu.memory_space<vmem>>, vector<512x128xf32>
    tpu.vector_store %arg4[%c0_5, %c0_6], %8 {strides = array<i32>} : memref<512x128xf32, #tpu.memory_space<vmem>>, vector<512x128xf32>,
    return
  }
  func.func @transform_0(%arg0: i32) -> (i32, i32) {
    %c0_i32 = arith.constant 0 : i32
    %c0_i32_0 = arith.constant 0 : i32
    return %arg0, %c0_i32 : i32, i32
  }
  func.func @transform_1(%arg0: i32) -> (i32, i32) {
    %c0_i32 = arith.constant 0 : i32
    %c0_i32_0 = arith.constant 0 : i32
    %c0_i32_1 = arith.constant 0 : i32
    return %c0_i32, %c0_i32_0 : i32, i32
  }
  func.func @transform_2(%arg0: i32) -> (i32, i32) {
    %c0_i32 = arith.constant 0 : i32
    %c0_i32_0 = arith.constant 0 : i32
    %c0_i32_1 = arith.constant 0 : i32
    return %c0_i32, %c0_i32_0 : i32, i32
  }
  func.func @transform_3(%arg0: i32) -> (i32, i32) {
    %c0_i32 = arith.constant 0 : i32
    %c0_i32_0 = arith.constant 0 : i32
    return %arg0, %c0_i32 : i32, i32
  }
}

module attributes {stable_mosaic.version = 11 : i64} {
  func.func @_scale_shift_relu_kernel(%arg0: i32, %arg1: memref<128x128xf32, #tpu.memory_space<vmem>>, %arg2: memref<1x128xf32, #tpu.memory_space<vmem>>, %arg3: memref<1x128xf32, #tpu.memory_space<vmem>>, %arg4: memref<128x128xf32, #tpu.memory_space<vmem>>) attributes {dimension_semantics = [#tpu.dimension_semantics<parallel>], iteration_bounds = array<i64: 1>, scalar_prefetch = 0 : i64, scratch_operands = 0 : i64, tpu.core_type = #tpu.core_type<tc>, window_params = [{transform_indices = @transform_0, window_bounds = array<i64: 128, 128>}, {pipeline_mode = #tpu.pipeline_mode<synchronous>, transform_indices = @transform_1, window_bounds = array<i64: 1, 128>}, {pipeline_mode = #tpu.pipeline_mode<synchronous>, transform_indices = @transform_2, window_bounds = array<i64: 1, 128>}, {transform_indices = @transform_3, window_bounds = array<i64: 128, 128>}]} {
    %c0 = arith.constant 0 : index
    %c0_0 = arith.constant 0 : index
    %0 = vector.load %arg1[%c0, %c0_0] : memref<128x128xf32, #tpu.memory_space<vmem>>, vector<128x128xf32>
    %c0_1 = arith.constant 0 : index
    %c0_2 = arith.constant 0 : index
    %1 = vector.load %arg2[%c0_1, %c0_2] : memref<1x128xf32, #tpu.memory_space<vmem>>, vector<1x128xf32>
    %2 = vector.broadcast %1 : vector<1x128xf32> to vector<128x128xf32>
    %3 = arith.mulf %0, %2 : vector<128x128xf32>
    %c0_3 = arith.constant 0 : index
    %c0_4 = arith.constant 0 : index
    %4 = vector.load %arg3[%c0_3, %c0_4] : memref<1x128xf32, #tpu.memory_space<vmem>>, vector<1x128xf32>
    %5 = vector.broadcast %4 : vector<1x128xf32> to vector<128x128xf32>
    %6 = arith.addf %3, %5 : vector<128x128xf32>
    %cst = arith.constant 0.000000e+00 : f32
    %7 = vector.broadcast %cst : f32 to vector<128x128xf32>
    %8 = arith.maximumf %6, %7 : vector<128x128xf32>
    %c0_5 = arith.constant 0 : index
    %c0_6 = arith.constant 0 : index
    %9 = vector.load %arg4[%c0_5, %c0_6] : memref<128x128xf32, #tpu.memory_space<vmem>>, vector<128x128xf32>
    tpu.vector_store %arg4[%c0_5, %c0_6], %8 {strides = array<i32>} : memref<128x128xf32, #tpu.memory_space<vmem>>, vector<128x128xf32>,
    return
  }
  func.func @transform_0(%arg0: i32) -> (i32, i32) {
    %c0_i32 = arith.constant 0 : i32
    %c0_i32_0 = arith.constant 0 : i32
    return %arg0, %c0_i32 : i32, i32
  }
  func.func @transform_1(%arg0: i32) -> (i32, i32) {
    %c0_i32 = arith.constant 0 : i32
    %c0_i32_0 = arith.constant 0 : i32
    %c0_i32_1 = arith.constant 0 : i32
    return %c0_i32, %c0_i32_0 : i32, i32
  }
  func.func @transform_2(%arg0: i32) -> (i32, i32) {
    %c0_i32 = arith.constant 0 : i32
    %c0_i32_0 = arith.constant 0 : i32
    %c0_i32_1 = arith.constant 0 : i32
    return %c0_i32, %c0_i32_0 : i32, i32
  }
  func.func @transform_3(%arg0: i32) -> (i32, i32) {
    %c0_i32 = arith.constant 0 : i32
    %c0_i32_0 = arith.constant 0 : i32
    return %arg0, %c0_i32 : i32, i32
  }
}

module attributes {stable_mosaic.version = 11 : i64} {
  func.func @_conv3x3_kernel(%arg0: i32, %arg1: i32, %arg2: memref<1x10x10x16xf32, #tpu.memory_space<vmem>>, %arg3: memref<144x128xbf16, #tpu.memory_space<vmem>>, %arg4: memref<1x128xf32, #tpu.memory_space<vmem>>, %arg5: memref<1x64x128xf32, #tpu.memory_space<vmem>>, %arg6: memref<1x1x2x128xf32, #tpu.memory_space<vmem>>) attributes {dimension_semantics = [#tpu.dimension_semantics<parallel>, #tpu.dimension_semantics<parallel>], iteration_bounds = array<i64: 2, 1>, scalar_prefetch = 0 : i64, scratch_operands = 0 : i64, tpu.core_type = #tpu.core_type<tc>, window_params = [{transform_indices = @transform_0, window_bounds = array<i64: 1, 10, 10, 16>}, {pipeline_mode = #tpu.pipeline_mode<synchronous>, transform_indices = @transform_1, window_bounds = array<i64: 144, 128>}, {pipeline_mode = #tpu.pipeline_mode<synchronous>, transform_indices = @transform_2, window_bounds = array<i64: 1, 128>}, {transform_indices = @transform_3, window_bounds = array<i64: 1, 64, 128>}, {transform_indices = @transform_4, window_bounds = array<i64: 1, 1, 2, 128>}]} {
    %c8_i32 = arith.constant 8 : i32
    %0 = arith.muli %arg1, %c8_i32 : i32
    %c0_i32 = arith.constant 0 : i32
    %1 = arith.addi %0, %c0_i32 : i32
    %c0 = arith.constant 0 : index
    %2 = arith.index_cast %1 : i32 to index
    %c0_0 = arith.constant 0 : index
    %c0_1 = arith.constant 0 : index
    %3 = vector.load %arg2[%c0, %2, %c0_0, %c0_1] : memref<1x10x10x16xf32, #tpu.memory_space<vmem>>, vector<1x8x8x16xf32>
    %4 = vector.shape_cast %3 : vector<1x8x8x16xf32> to vector<8x8x16xf32>
    %5 = vector.shape_cast %4 : vector<8x8x16xf32> to vector<64x16xf32>
    %c0_i32_2 = arith.constant 0 : i32
    %6 = arith.addi %0, %c0_i32_2 : i32
    %c0_3 = arith.constant 0 : index
    %7 = arith.index_cast %6 : i32 to index
    %c1 = arith.constant 1 : index
    %c0_4 = arith.constant 0 : index
    %8 = vector.load %arg2[%c0_3, %7, %c1, %c0_4] : memref<1x10x10x16xf32, #tpu.memory_space<vmem>>, vector<1x8x8x16xf32>
    %9 = vector.shape_cast %8 : vector<1x8x8x16xf32> to vector<8x8x16xf32>
    %10 = vector.shape_cast %9 : vector<8x8x16xf32> to vector<64x16xf32>
    %c0_i32_5 = arith.constant 0 : i32
    %11 = arith.addi %0, %c0_i32_5 : i32
    %c0_6 = arith.constant 0 : index
    %12 = arith.index_cast %11 : i32 to index
    %c2 = arith.constant 2 : index
    %c0_7 = arith.constant 0 : index
    %13 = vector.load %arg2[%c0_6, %12, %c2, %c0_7] : memref<1x10x10x16xf32, #tpu.memory_space<vmem>>, vector<1x8x8x16xf32>
    %14 = vector.shape_cast %13 : vector<1x8x8x16xf32> to vector<8x8x16xf32>
    %15 = vector.shape_cast %14 : vector<8x8x16xf32> to vector<64x16xf32>
    %c1_i32 = arith.constant 1 : i32
    %16 = arith.addi %0, %c1_i32 : i32
    %c0_8 = arith.constant 0 : index
    %17 = arith.index_cast %16 : i32 to index
    %c0_9 = arith.constant 0 : index
    %c0_10 = arith.constant 0 : index
    %18 = vector.load %arg2[%c0_8, %17, %c0_9, %c0_10] : memref<1x10x10x16xf32, #tpu.memory_space<vmem>>, vector<1x8x8x16xf32>
    %19 = vector.shape_cast %18 : vector<1x8x8x16xf32> to vector<8x8x16xf32>
    %20 = vector.shape_cast %19 : vector<8x8x16xf32> to vector<64x16xf32>
    %c1_i32_11 = arith.constant 1 : i32
    %21 = arith.addi %0, %c1_i32_11 : i32
    %c0_12 = arith.constant 0 : index
    %22 = arith.index_cast %21 : i32 to index
    %c1_13 = arith.constant 1 : index
    %c0_14 = arith.constant 0 : index
    %23 = vector.load %arg2[%c0_12, %22, %c1_13, %c0_14] : memref<1x10x10x16xf32, #tpu.memory_space<vmem>>, vector<1x8x8x16xf32>
    %24 = vector.shape_cast %23 : vector<1x8x8x16xf32> to vector<8x8x16xf32>
    %25 = vector.shape_cast %24 : vector<8x8x16xf32> to vector<64x16xf32>
    %c1_i32_15 = arith.constant 1 : i32
    %26 = arith.addi %0, %c1_i32_15 : i32
    %c0_16 = arith.constant 0 : index
    %27 = arith.index_cast %26 : i32 to index
    %c2_17 = arith.constant 2 : index
    %c0_18 = arith.constant 0 : index
    %28 = vector.load %arg2[%c0_16, %27, %c2_17, %c0_18] : memref<1x10x10x16xf32, #tpu.memory_space<vmem>>, vector<1x8x8x16xf32>
    %29 = vector.shape_cast %28 : vector<1x8x8x16xf32> to vector<8x8x16xf32>
    %30 = vector.shape_cast %29 : vector<8x8x16xf32> to vector<64x16xf32>
    %c2_i32 = arith.constant 2 : i32
    %31 = arith.addi %0, %c2_i32 : i32
    %c0_19 = arith.constant 0 : index
    %32 = arith.index_cast %31 : i32 to index
    %c0_20 = arith.constant 0 : index
    %c0_21 = arith.constant 0 : index
    %33 = vector.load %arg2[%c0_19, %32, %c0_20, %c0_21] : memref<1x10x10x16xf32, #tpu.memory_space<vmem>>, vector<1x8x8x16xf32>
    %34 = vector.shape_cast %33 : vector<1x8x8x16xf32> to vector<8x8x16xf32>
    %35 = vector.shape_cast %34 : vector<8x8x16xf32> to vector<64x16xf32>
    %c2_i32_22 = arith.constant 2 : i32
    %36 = arith.addi %0, %c2_i32_22 : i32
    %c0_23 = arith.constant 0 : index
    %37 = arith.index_cast %36 : i32 to index
    %c1_24 = arith.constant 1 : index
    %c0_25 = arith.constant 0 : index
    %38 = vector.load %arg2[%c0_23, %37, %c1_24, %c0_25] : memref<1x10x10x16xf32, #tpu.memory_space<vmem>>, vector<1x8x8x16xf32>
    %39 = vector.shape_cast %38 : vector<1x8x8x16xf32> to vector<8x8x16xf32>
    %40 = vector.shape_cast %39 : vector<8x8x16xf32> to vector<64x16xf32>
    %c2_i32_26 = arith.constant 2 : i32
    %41 = arith.addi %0, %c2_i32_26 : i32
    %c0_27 = arith.constant 0 : index
    %42 = arith.index_cast %41 : i32 to index
    %c2_28 = arith.constant 2 : index
    %c0_29 = arith.constant 0 : index
    %43 = vector.load %arg2[%c0_27, %42, %c2_28, %c0_29] : memref<1x10x10x16xf32, #tpu.memory_space<vmem>>, vector<1x8x8x16xf32>
    %44 = vector.shape_cast %43 : vector<1x8x8x16xf32> to vector<8x8x16xf32>
    %45 = vector.shape_cast %44 : vector<8x8x16xf32> to vector<64x16xf32>
    %46 = tpu.concatenate %5, %10, %15, %20, %25, %30, %35, %40, %45 in 1 : vector<64x16xf32>, vector<64x16xf32>, vector<64x16xf32>, vector<64x16xf32>, vector<64x16xf32>, vector<64x16xf32>, vector<64x16xf32>, vector<64x16xf32>, vector<64x16xf32> -> vector<64x144xf32>
    %47 = arith.truncf %46 : vector<64x144xf32> to vector<64x144xbf16>
    %c0_30 = arith.constant 0 : index
    %c0_31 = arith.constant 0 : index
    %48 = vector.load %arg3[%c0_30, %c0_31] : memref<144x128xbf16, #tpu.memory_space<vmem>>, vector<144x128xbf16>
    %cst = arith.constant dense<0.000000e+00> : vector<64x128xf32>
    %49 = tpu.matmul %47, %48, %cst {dimension_numbers = #tpu.dot_dimension_numbers<[1], [0], [0], [1], [0, 0, 1, 1], [], []>} : vector<64x144xbf16>, vector<144x128xbf16>, vector<64x128xf32> -> vector<64x128xf32>
    %c0_32 = arith.constant 0 : index
    %c0_33 = arith.constant 0 : index
    %50 = vector.load %arg4[%c0_32, %c0_33] : memref<1x128xf32, #tpu.memory_space<vmem>>, vector<1x128xf32>
    %51 = vector.broadcast %50 : vector<1x128xf32> to vector<64x128xf32>
    %52 = arith.addf %49, %51 : vector<64x128xf32>
    %c0_34 = arith.constant 0 : index
    %c0_35 = arith.constant 0 : index
    %c0_36 = arith.constant 0 : index
    %53 = vector.load %arg5[%c0_34, %c0_35, %c0_36] : memref<1x64x128xf32, #tpu.memory_space<vmem>>, vector<1x64x128xf32>
    %54 = vector.shape_cast %53 : vector<1x64x128xf32> to vector<64x128xf32>
    %55 = vector.shape_cast %52 : vector<64x128xf32> to vector<1x64x128xf32>
    tpu.vector_store %arg5[%c0_34, %c0_35, %c0_36], %55 {strides = array<i32>} : memref<1x64x128xf32, #tpu.memory_space<vmem>>, vector<1x64x128xf32>,
    %cst_37 = arith.constant dense<0.000000e+00> : vector<128xf32>
    %56 = vector.multi_reduction <add>, %52, %cst_37 [0] : vector<64x128xf32> to vector<128xf32>
    %57 = vector.shape_cast %56 : vector<128xf32> to vector<1x128xf32>
    %c0_38 = arith.constant 0 : index
    %c0_39 = arith.constant 0 : index
    %c0_40 = arith.constant 0 : index
    %c0_41 = arith.constant 0 : index
    %58 = vector.load %arg6[%c0_38, %c0_39, %c0_40, %c0_41] : memref<1x1x2x128xf32, #tpu.memory_space<vmem>>, vector<1x1x1x128xf32>
    %59 = vector.shape_cast %58 : vector<1x1x1x128xf32> to vector<1x128xf32>
    %60 = vector.shape_cast %57 : vector<1x128xf32> to vector<1x1x1x128xf32>
    tpu.vector_store %arg6[%c0_38, %c0_39, %c0_40, %c0_41], %60 {strides = array<i32>} : memref<1x1x2x128xf32, #tpu.memory_space<vmem>>, vector<1x1x1x128xf32>,
    %61 = arith.mulf %52, %52 : vector<64x128xf32>
    %cst_42 = arith.constant dense<0.000000e+00> : vector<128xf32>
    %62 = vector.multi_reduction <add>, %61, %cst_42 [0] : vector<64x128xf32> to vector<128xf32>
    %63 = vector.shape_cast %62 : vector<128xf32> to vector<1x128xf32>
    %c0_43 = arith.constant 0 : index
    %c0_44 = arith.constant 0 : index
    %c1_45 = arith.constant 1 : index
    %c0_46 = arith.constant 0 : index
    %64 = vector.load %arg6[%c0_43, %c0_44, %c1_45, %c0_46] : memref<1x1x2x128xf32, #tpu.memory_space<vmem>>, vector<1x1x1x128xf32>
    %65 = vector.shape_cast %64 : vector<1x1x1x128xf32> to vector<1x128xf32>
    %66 = vector.shape_cast %63 : vector<1x128xf32> to vector<1x1x1x128xf32>
    tpu.vector_store %arg6[%c0_43, %c0_44, %c1_45, %c0_46], %66 {strides = array<i32>} : memref<1x1x2x128xf32, #tpu.memory_space<vmem>>, vector<1x1x1x128xf32>,
    return
  }
  func.func @transform_0(%arg0: i32, %arg1: i32) -> (i32, i32, i32, i32) {
    %c0_i32 = arith.constant 0 : i32
    %c0_i32_0 = arith.constant 0 : i32
    %c0_i32_1 = arith.constant 0 : i32
    %c0_i32_2 = arith.constant 0 : i32
    return %arg0, %c0_i32, %c0_i32_0, %c0_i32_1 : i32, i32, i32, i32
  }
  func.func @transform_1(%arg0: i32, %arg1: i32) -> (i32, i32) {
    %c0_i32 = arith.constant 0 : i32
    %c0_i32_0 = arith.constant 0 : i32
    %c0_i32_1 = arith.constant 0 : i32
    return %c0_i32, %c0_i32_0 : i32, i32
  }
  func.func @transform_2(%arg0: i32, %arg1: i32) -> (i32, i32) {
    %c0_i32 = arith.constant 0 : i32
    %c0_i32_0 = arith.constant 0 : i32
    %c0_i32_1 = arith.constant 0 : i32
    return %c0_i32, %c0_i32_0 : i32, i32
  }
  func.func @transform_3(%arg0: i32, %arg1: i32) -> (i32, i32, i32) {
    %c0_i32 = arith.constant 0 : i32
    %c0_i32_0 = arith.constant 0 : i32
    return %arg0, %arg1, %c0_i32 : i32, i32, i32
  }
  func.func @transform_4(%arg0: i32, %arg1: i32) -> (i32, i32, i32, i32) {
    %c0_i32 = arith.constant 0 : i32
    %c0_i32_0 = arith.constant 0 : i32
    %c0_i32_1 = arith.constant 0 : i32
    return %arg0, %arg1, %c0_i32, %c0_i32_0 : i32, i32, i32, i32
  }
}

module attributes {stable_mosaic.version = 11 : i64} {
  func.func @_conv3x3_kernel(%arg0: i32, %arg1: i32, %arg2: memref<1x6x10x32xf32, #tpu.memory_space<vmem>>, %arg3: memref<288x128xbf16, #tpu.memory_space<vmem>>, %arg4: memref<1x128xf32, #tpu.memory_space<vmem>>, %arg5: memref<1x32x128xf32, #tpu.memory_space<vmem>>, %arg6: memref<1x1x2x128xf32, #tpu.memory_space<vmem>>) attributes {dimension_semantics = [#tpu.dimension_semantics<parallel>, #tpu.dimension_semantics<parallel>], iteration_bounds = array<i64: 2, 1>, scalar_prefetch = 0 : i64, scratch_operands = 0 : i64, tpu.core_type = #tpu.core_type<tc>, window_params = [{transform_indices = @transform_0, window_bounds = array<i64: 1, 6, 10, 32>}, {pipeline_mode = #tpu.pipeline_mode<synchronous>, transform_indices = @transform_1, window_bounds = array<i64: 288, 128>}, {pipeline_mode = #tpu.pipeline_mode<synchronous>, transform_indices = @transform_2, window_bounds = array<i64: 1, 128>}, {transform_indices = @transform_3, window_bounds = array<i64: 1, 32, 128>}, {transform_indices = @transform_4, window_bounds = array<i64: 1, 1, 2, 128>}]} {
    %c4_i32 = arith.constant 4 : i32
    %0 = arith.muli %arg1, %c4_i32 : i32
    %c0_i32 = arith.constant 0 : i32
    %1 = arith.addi %0, %c0_i32 : i32
    %c0 = arith.constant 0 : index
    %2 = arith.index_cast %1 : i32 to index
    %c0_0 = arith.constant 0 : index
    %c0_1 = arith.constant 0 : index
    %3 = vector.load %arg2[%c0, %2, %c0_0, %c0_1] : memref<1x6x10x32xf32, #tpu.memory_space<vmem>>, vector<1x4x8x32xf32>
    %4 = vector.shape_cast %3 : vector<1x4x8x32xf32> to vector<4x8x32xf32>
    %5 = vector.shape_cast %4 : vector<4x8x32xf32> to vector<32x32xf32>
    %c0_i32_2 = arith.constant 0 : i32
    %6 = arith.addi %0, %c0_i32_2 : i32
    %c0_3 = arith.constant 0 : index
    %7 = arith.index_cast %6 : i32 to index
    %c1 = arith.constant 1 : index
    %c0_4 = arith.constant 0 : index
    %8 = vector.load %arg2[%c0_3, %7, %c1, %c0_4] : memref<1x6x10x32xf32, #tpu.memory_space<vmem>>, vector<1x4x8x32xf32>
    %9 = vector.shape_cast %8 : vector<1x4x8x32xf32> to vector<4x8x32xf32>
    %10 = vector.shape_cast %9 : vector<4x8x32xf32> to vector<32x32xf32>
    %c0_i32_5 = arith.constant 0 : i32
    %11 = arith.addi %0, %c0_i32_5 : i32
    %c0_6 = arith.constant 0 : index
    %12 = arith.index_cast %11 : i32 to index
    %c2 = arith.constant 2 : index
    %c0_7 = arith.constant 0 : index
    %13 = vector.load %arg2[%c0_6, %12, %c2, %c0_7] : memref<1x6x10x32xf32, #tpu.memory_space<vmem>>, vector<1x4x8x32xf32>
    %14 = vector.shape_cast %13 : vector<1x4x8x32xf32> to vector<4x8x32xf32>
    %15 = vector.shape_cast %14 : vector<4x8x32xf32> to vector<32x32xf32>
    %c1_i32 = arith.constant 1 : i32
    %16 = arith.addi %0, %c1_i32 : i32
    %c0_8 = arith.constant 0 : index
    %17 = arith.index_cast %16 : i32 to index
    %c0_9 = arith.constant 0 : index
    %c0_10 = arith.constant 0 : index
    %18 = vector.load %arg2[%c0_8, %17, %c0_9, %c0_10] : memref<1x6x10x32xf32, #tpu.memory_space<vmem>>, vector<1x4x8x32xf32>
    %19 = vector.shape_cast %18 : vector<1x4x8x32xf32> to vector<4x8x32xf32>
    %20 = vector.shape_cast %19 : vector<4x8x32xf32> to vector<32x32xf32>
    %c1_i32_11 = arith.constant 1 : i32
    %21 = arith.addi %0, %c1_i32_11 : i32
    %c0_12 = arith.constant 0 : index
    %22 = arith.index_cast %21 : i32 to index
    %c1_13 = arith.constant 1 : index
    %c0_14 = arith.constant 0 : index
    %23 = vector.load %arg2[%c0_12, %22, %c1_13, %c0_14] : memref<1x6x10x32xf32, #tpu.memory_space<vmem>>, vector<1x4x8x32xf32>
    %24 = vector.shape_cast %23 : vector<1x4x8x32xf32> to vector<4x8x32xf32>
    %25 = vector.shape_cast %24 : vector<4x8x32xf32> to vector<32x32xf32>
    %c1_i32_15 = arith.constant 1 : i32
    %26 = arith.addi %0, %c1_i32_15 : i32
    %c0_16 = arith.constant 0 : index
    %27 = arith.index_cast %26 : i32 to index
    %c2_17 = arith.constant 2 : index
    %c0_18 = arith.constant 0 : index
    %28 = vector.load %arg2[%c0_16, %27, %c2_17, %c0_18] : memref<1x6x10x32xf32, #tpu.memory_space<vmem>>, vector<1x4x8x32xf32>
    %29 = vector.shape_cast %28 : vector<1x4x8x32xf32> to vector<4x8x32xf32>
    %30 = vector.shape_cast %29 : vector<4x8x32xf32> to vector<32x32xf32>
    %c2_i32 = arith.constant 2 : i32
    %31 = arith.addi %0, %c2_i32 : i32
    %c0_19 = arith.constant 0 : index
    %32 = arith.index_cast %31 : i32 to index
    %c0_20 = arith.constant 0 : index
    %c0_21 = arith.constant 0 : index
    %33 = vector.load %arg2[%c0_19, %32, %c0_20, %c0_21] : memref<1x6x10x32xf32, #tpu.memory_space<vmem>>, vector<1x4x8x32xf32>
    %34 = vector.shape_cast %33 : vector<1x4x8x32xf32> to vector<4x8x32xf32>
    %35 = vector.shape_cast %34 : vector<4x8x32xf32> to vector<32x32xf32>
    %c2_i32_22 = arith.constant 2 : i32
    %36 = arith.addi %0, %c2_i32_22 : i32
    %c0_23 = arith.constant 0 : index
    %37 = arith.index_cast %36 : i32 to index
    %c1_24 = arith.constant 1 : index
    %c0_25 = arith.constant 0 : index
    %38 = vector.load %arg2[%c0_23, %37, %c1_24, %c0_25] : memref<1x6x10x32xf32, #tpu.memory_space<vmem>>, vector<1x4x8x32xf32>
    %39 = vector.shape_cast %38 : vector<1x4x8x32xf32> to vector<4x8x32xf32>
    %40 = vector.shape_cast %39 : vector<4x8x32xf32> to vector<32x32xf32>
    %c2_i32_26 = arith.constant 2 : i32
    %41 = arith.addi %0, %c2_i32_26 : i32
    %c0_27 = arith.constant 0 : index
    %42 = arith.index_cast %41 : i32 to index
    %c2_28 = arith.constant 2 : index
    %c0_29 = arith.constant 0 : index
    %43 = vector.load %arg2[%c0_27, %42, %c2_28, %c0_29] : memref<1x6x10x32xf32, #tpu.memory_space<vmem>>, vector<1x4x8x32xf32>
    %44 = vector.shape_cast %43 : vector<1x4x8x32xf32> to vector<4x8x32xf32>
    %45 = vector.shape_cast %44 : vector<4x8x32xf32> to vector<32x32xf32>
    %46 = tpu.concatenate %5, %10, %15, %20, %25, %30, %35, %40, %45 in 1 : vector<32x32xf32>, vector<32x32xf32>, vector<32x32xf32>, vector<32x32xf32>, vector<32x32xf32>, vector<32x32xf32>, vector<32x32xf32>, vector<32x32xf32>, vector<32x32xf32> -> vector<32x288xf32>
    %47 = arith.truncf %46 : vector<32x288xf32> to vector<32x288xbf16>
    %c0_30 = arith.constant 0 : index
    %c0_31 = arith.constant 0 : index
    %48 = vector.load %arg3[%c0_30, %c0_31] : memref<288x128xbf16, #tpu.memory_space<vmem>>, vector<288x128xbf16>
    %cst = arith.constant dense<0.000000e+00> : vector<32x128xf32>
    %49 = tpu.matmul %47, %48, %cst {dimension_numbers = #tpu.dot_dimension_numbers<[1], [0], [0], [1], [0, 0, 1, 1], [], []>} : vector<32x288xbf16>, vector<288x128xbf16>, vector<32x128xf32> -> vector<32x128xf32>
    %c0_32 = arith.constant 0 : index
    %c0_33 = arith.constant 0 : index
    %50 = vector.load %arg4[%c0_32, %c0_33] : memref<1x128xf32, #tpu.memory_space<vmem>>, vector<1x128xf32>
    %51 = vector.broadcast %50 : vector<1x128xf32> to vector<32x128xf32>
    %52 = arith.addf %49, %51 : vector<32x128xf32>
    %c0_34 = arith.constant 0 : index
    %c0_35 = arith.constant 0 : index
    %c0_36 = arith.constant 0 : index
    %53 = vector.load %arg5[%c0_34, %c0_35, %c0_36] : memref<1x32x128xf32, #tpu.memory_space<vmem>>, vector<1x32x128xf32>
    %54 = vector.shape_cast %53 : vector<1x32x128xf32> to vector<32x128xf32>
    %55 = vector.shape_cast %52 : vector<32x128xf32> to vector<1x32x128xf32>
    tpu.vector_store %arg5[%c0_34, %c0_35, %c0_36], %55 {strides = array<i32>} : memref<1x32x128xf32, #tpu.memory_space<vmem>>, vector<1x32x128xf32>,
    %56 = tpu.iota {dimensions = array<i32: 0>} : vector<32x1xi32>
    %c8_i32 = arith.constant 8 : i32
    %c0_i32_37 = arith.constant 0 : i32
    %57 = arith.cmpi eq, %c8_i32, %c0_i32_37 : i32
    %c1_i32_38 = arith.constant 1 : i32
    %58 = arith.select %57, %c1_i32_38, %c8_i32 : i32
    %59 = vector.broadcast %58 : i32 to vector<32x1xi32>
    %60 = arith.remsi %56, %59 : vector<32x1xi32>
    %c0_i32_39 = arith.constant 0 : i32
    %61 = vector.broadcast %c0_i32_39 : i32 to vector<32x1xi32>
    %62 = arith.cmpi ne, %60, %61 : vector<32x1xi32>
    %c0_i32_40 = arith.constant 0 : i32
    %63 = vector.broadcast %c0_i32_40 : i32 to vector<32x1xi32>
    %64 = arith.cmpi slt, %60, %63 : vector<32x1xi32>
    %c0_i32_41 = arith.constant 0 : i32
    %65 = arith.cmpi slt, %58, %c0_i32_41 : i32
    %66 = vector.broadcast %65 : i1 to vector<32x1xi1>
    %67 = vector.broadcast %66 : vector<32x1xi1> to vector<32x1xi1>
    %68 = arith.xori %64, %67 : vector<32x1xi1>
    %69 = arith.andi %68, %62 : vector<32x1xi1>
    %70 = vector.broadcast %58 : i32 to vector<32x1xi32>
    %71 = arith.addi %60, %70 : vector<32x1xi32>
    %72 = arith.select %69, %71, %60 : vector<32x1xi1>, vector<32x1xi32>
    %c4_i32_42 = arith.constant 4 : i32
    %73 = vector.broadcast %c4_i32_42 : i32 to vector<32x1xi32>
    %74 = arith.cmpi slt, %72, %73 : vector<32x1xi32>
    %cst_43 = arith.constant 0.000000e+00 : f32
    %75 = vector.shape_cast %74 : vector<32x1xi1> to vector<32x1xi1>
    %76 = vector.broadcast %75 : vector<32x1xi1> to vector<32x128xi1>
    %77 = vector.broadcast %cst_43 : f32 to vector<32x128xf32>
    %78 = arith.select %76, %52, %77 : vector<32x128xi1>, vector<32x128xf32>
    %cst_44 = arith.constant dense<0.000000e+00> : vector<128xf32>
    %79 = vector.multi_reduction <add>, %78, %cst_44 [0] : vector<32x128xf32> to vector<128xf32>
    %80 = vector.shape_cast %79 : vector<128xf32> to vector<1x128xf32>
    %c0_45 = arith.constant 0 : index
    %c0_46 = arith.constant 0 : index
    %c0_47 = arith.constant 0 : index
    %c0_48 = arith.constant 0 : index
    %81 = vector.load %arg6[%c0_45, %c0_46, %c0_47, %c0_48] : memref<1x1x2x128xf32, #tpu.memory_space<vmem>>, vector<1x1x1x128xf32>
    %82 = vector.shape_cast %81 : vector<1x1x1x128xf32> to vector<1x128xf32>
    %83 = vector.shape_cast %80 : vector<1x128xf32> to vector<1x1x1x128xf32>
    tpu.vector_store %arg6[%c0_45, %c0_46, %c0_47, %c0_48], %83 {strides = array<i32>} : memref<1x1x2x128xf32, #tpu.memory_space<vmem>>, vector<1x1x1x128xf32>,
    %84 = arith.mulf %78, %78 : vector<32x128xf32>
    %cst_49 = arith.constant dense<0.000000e+00> : vector<128xf32>
    %85 = vector.multi_reduction <add>, %84, %cst_49 [0] : vector<32x128xf32> to vector<128xf32>
    %86 = vector.shape_cast %85 : vector<128xf32> to vector<1x128xf32>
    %c0_50 = arith.constant 0 : index
    %c0_51 = arith.constant 0 : index
    %c1_52 = arith.constant 1 : index
    %c0_53 = arith.constant 0 : index
    %87 = vector.load %arg6[%c0_50, %c0_51, %c1_52, %c0_53] : memref<1x1x2x128xf32, #tpu.memory_space<vmem>>, vector<1x1x1x128xf32>
    %88 = vector.shape_cast %87 : vector<1x1x1x128xf32> to vector<1x128xf32>
    %89 = vector.shape_cast %86 : vector<1x128xf32> to vector<1x1x1x128xf32>
    tpu.vector_store %arg6[%c0_50, %c0_51, %c1_52, %c0_53], %89 {strides = array<i32>} : memref<1x1x2x128xf32, #tpu.memory_space<vmem>>, vector<1x1x1x128xf32>,
    return
  }
  func.func @transform_0(%arg0: i32, %arg1: i32) -> (i32, i32, i32, i32) {
    %c0_i32 = arith.constant 0 : i32
    %c0_i32_0 = arith.constant 0 : i32
    %c0_i32_1 = arith.constant 0 : i32
    %c0_i32_2 = arith.constant 0 : i32
    return %arg0, %c0_i32, %c0_i32_0, %c0_i32_1 : i32, i32, i32, i32
  }
  func.func @transform_1(%arg0: i32, %arg1: i32) -> (i32, i32) {
    %c0_i32 = arith.constant 0 : i32
    %c0_i32_0 = arith.constant 0 : i32
    %c0_i32_1 = arith.constant 0 : i32
    return %c0_i32, %c0_i32_0 : i32, i32
  }
  func.func @transform_2(%arg0: i32, %arg1: i32) -> (i32, i32) {
    %c0_i32 = arith.constant 0 : i32
    %c0_i32_0 = arith.constant 0 : i32
    %c0_i32_1 = arith.constant 0 : i32
    return %c0_i32, %c0_i32_0 : i32, i32
  }
  func.func @transform_3(%arg0: i32, %arg1: i32) -> (i32, i32, i32) {
    %c0_i32 = arith.constant 0 : i32
    %c0_i32_0 = arith.constant 0 : i32
    return %arg0, %arg1, %c0_i32 : i32, i32, i32
  }
  func.func @transform_4(%arg0: i32, %arg1: i32) -> (i32, i32, i32, i32) {
    %c0_i32 = arith.constant 0 : i32
    %c0_i32_0 = arith.constant 0 : i32
    %c0_i32_1 = arith.constant 0 : i32
    return %arg0, %arg1, %c0_i32, %c0_i32_0 : i32, i32, i32, i32
  }
}

module attributes {stable_mosaic.version = 11 : i64} {
  func.func @_scale_shift_relu_kernel(%arg0: i32, %arg1: memref<32x128xf32, #tpu.memory_space<vmem>>, %arg2: memref<1x128xf32, #tpu.memory_space<vmem>>, %arg3: memref<1x128xf32, #tpu.memory_space<vmem>>, %arg4: memref<32x128xf32, #tpu.memory_space<vmem>>) attributes {dimension_semantics = [#tpu.dimension_semantics<parallel>], iteration_bounds = array<i64: 1>, scalar_prefetch = 0 : i64, scratch_operands = 0 : i64, tpu.core_type = #tpu.core_type<tc>, window_params = [{transform_indices = @transform_0, window_bounds = array<i64: 32, 128>}, {pipeline_mode = #tpu.pipeline_mode<synchronous>, transform_indices = @transform_1, window_bounds = array<i64: 1, 128>}, {pipeline_mode = #tpu.pipeline_mode<synchronous>, transform_indices = @transform_2, window_bounds = array<i64: 1, 128>}, {transform_indices = @transform_3, window_bounds = array<i64: 32, 128>}]} {
    %c0 = arith.constant 0 : index
    %c0_0 = arith.constant 0 : index
    %0 = vector.load %arg1[%c0, %c0_0] : memref<32x128xf32, #tpu.memory_space<vmem>>, vector<32x128xf32>
    %c0_1 = arith.constant 0 : index
    %c0_2 = arith.constant 0 : index
    %1 = vector.load %arg2[%c0_1, %c0_2] : memref<1x128xf32, #tpu.memory_space<vmem>>, vector<1x128xf32>
    %2 = vector.broadcast %1 : vector<1x128xf32> to vector<32x128xf32>
    %3 = arith.mulf %0, %2 : vector<32x128xf32>
    %c0_3 = arith.constant 0 : index
    %c0_4 = arith.constant 0 : index
    %4 = vector.load %arg3[%c0_3, %c0_4] : memref<1x128xf32, #tpu.memory_space<vmem>>, vector<1x128xf32>
    %5 = vector.broadcast %4 : vector<1x128xf32> to vector<32x128xf32>
    %6 = arith.addf %3, %5 : vector<32x128xf32>
    %cst = arith.constant 0.000000e+00 : f32
    %7 = vector.broadcast %cst : f32 to vector<32x128xf32>
    %8 = arith.maximumf %6, %7 : vector<32x128xf32>
    %c0_5 = arith.constant 0 : index
    %c0_6 = arith.constant 0 : index
    %9 = vector.load %arg4[%c0_5, %c0_6] : memref<32x128xf32, #tpu.memory_space<vmem>>, vector<32x128xf32>
    tpu.vector_store %arg4[%c0_5, %c0_6], %8 {strides = array<i32>} : memref<32x128xf32, #tpu.memory_space<vmem>>, vector<32x128xf32>,
    return
  }
  func.func @transform_0(%arg0: i32) -> (i32, i32) {
    %c0_i32 = arith.constant 0 : i32
    %c0_i32_0 = arith.constant 0 : i32
    return %arg0, %c0_i32 : i32, i32
  }
  func.func @transform_1(%arg0: i32) -> (i32, i32) {
    %c0_i32 = arith.constant 0 : i32
    %c0_i32_0 = arith.constant 0 : i32
    %c0_i32_1 = arith.constant 0 : i32
    return %c0_i32, %c0_i32_0 : i32, i32
  }
  func.func @transform_2(%arg0: i32) -> (i32, i32) {
    %c0_i32 = arith.constant 0 : i32
    %c0_i32_0 = arith.constant 0 : i32
    %c0_i32_1 = arith.constant 0 : i32
    return %c0_i32, %c0_i32_0 : i32, i32
  }
  func.func @transform_3(%arg0: i32) -> (i32, i32) {
    %c0_i32 = arith.constant 0 : i32
    %c0_i32_0 = arith.constant 0 : i32
    return %arg0, %c0_i32 : i32, i32
  }
}

module attributes {stable_mosaic.version = 11 : i64} {
  func.func @_conv3x3_kernel(%arg0: i32, %arg1: i32, %arg2: memref<1x4x10x64xf32, #tpu.memory_space<vmem>>, %arg3: memref<576x128xbf16, #tpu.memory_space<vmem>>, %arg4: memref<1x128xf32, #tpu.memory_space<vmem>>, %arg5: memref<1x16x128xf32, #tpu.memory_space<vmem>>, %arg6: memref<1x1x2x128xf32, #tpu.memory_space<vmem>>) attributes {dimension_semantics = [#tpu.dimension_semantics<parallel>, #tpu.dimension_semantics<parallel>], iteration_bounds = array<i64: 2, 1>, scalar_prefetch = 0 : i64, scratch_operands = 0 : i64, tpu.core_type = #tpu.core_type<tc>, window_params = [{transform_indices = @transform_0, window_bounds = array<i64: 1, 4, 10, 64>}, {pipeline_mode = #tpu.pipeline_mode<synchronous>, transform_indices = @transform_1, window_bounds = array<i64: 576, 128>}, {pipeline_mode = #tpu.pipeline_mode<synchronous>, transform_indices = @transform_2, window_bounds = array<i64: 1, 128>}, {transform_indices = @transform_3, window_bounds = array<i64: 1, 16, 128>}, {transform_indices = @transform_4, window_bounds = array<i64: 1, 1, 2, 128>}]} {
    %c2_i32 = arith.constant 2 : i32
    %0 = arith.muli %arg1, %c2_i32 : i32
    %c0_i32 = arith.constant 0 : i32
    %1 = arith.addi %0, %c0_i32 : i32
    %c0 = arith.constant 0 : index
    %2 = arith.index_cast %1 : i32 to index
    %c0_0 = arith.constant 0 : index
    %c0_1 = arith.constant 0 : index
    %3 = vector.load %arg2[%c0, %2, %c0_0, %c0_1] : memref<1x4x10x64xf32, #tpu.memory_space<vmem>>, vector<1x2x8x64xf32>
    %4 = vector.shape_cast %3 : vector<1x2x8x64xf32> to vector<2x8x64xf32>
    %5 = vector.shape_cast %4 : vector<2x8x64xf32> to vector<16x64xf32>
    %c0_i32_2 = arith.constant 0 : i32
    %6 = arith.addi %0, %c0_i32_2 : i32
    %c0_3 = arith.constant 0 : index
    %7 = arith.index_cast %6 : i32 to index
    %c1 = arith.constant 1 : index
    %c0_4 = arith.constant 0 : index
    %8 = vector.load %arg2[%c0_3, %7, %c1, %c0_4] : memref<1x4x10x64xf32, #tpu.memory_space<vmem>>, vector<1x2x8x64xf32>
    %9 = vector.shape_cast %8 : vector<1x2x8x64xf32> to vector<2x8x64xf32>
    %10 = vector.shape_cast %9 : vector<2x8x64xf32> to vector<16x64xf32>
    %c0_i32_5 = arith.constant 0 : i32
    %11 = arith.addi %0, %c0_i32_5 : i32
    %c0_6 = arith.constant 0 : index
    %12 = arith.index_cast %11 : i32 to index
    %c2 = arith.constant 2 : index
    %c0_7 = arith.constant 0 : index
    %13 = vector.load %arg2[%c0_6, %12, %c2, %c0_7] : memref<1x4x10x64xf32, #tpu.memory_space<vmem>>, vector<1x2x8x64xf32>
    %14 = vector.shape_cast %13 : vector<1x2x8x64xf32> to vector<2x8x64xf32>
    %15 = vector.shape_cast %14 : vector<2x8x64xf32> to vector<16x64xf32>
    %c1_i32 = arith.constant 1 : i32
    %16 = arith.addi %0, %c1_i32 : i32
    %c0_8 = arith.constant 0 : index
    %17 = arith.index_cast %16 : i32 to index
    %c0_9 = arith.constant 0 : index
    %c0_10 = arith.constant 0 : index
    %18 = vector.load %arg2[%c0_8, %17, %c0_9, %c0_10] : memref<1x4x10x64xf32, #tpu.memory_space<vmem>>, vector<1x2x8x64xf32>
    %19 = vector.shape_cast %18 : vector<1x2x8x64xf32> to vector<2x8x64xf32>
    %20 = vector.shape_cast %19 : vector<2x8x64xf32> to vector<16x64xf32>
    %c1_i32_11 = arith.constant 1 : i32
    %21 = arith.addi %0, %c1_i32_11 : i32
    %c0_12 = arith.constant 0 : index
    %22 = arith.index_cast %21 : i32 to index
    %c1_13 = arith.constant 1 : index
    %c0_14 = arith.constant 0 : index
    %23 = vector.load %arg2[%c0_12, %22, %c1_13, %c0_14] : memref<1x4x10x64xf32, #tpu.memory_space<vmem>>, vector<1x2x8x64xf32>
    %24 = vector.shape_cast %23 : vector<1x2x8x64xf32> to vector<2x8x64xf32>
    %25 = vector.shape_cast %24 : vector<2x8x64xf32> to vector<16x64xf32>
    %c1_i32_15 = arith.constant 1 : i32
    %26 = arith.addi %0, %c1_i32_15 : i32
    %c0_16 = arith.constant 0 : index
    %27 = arith.index_cast %26 : i32 to index
    %c2_17 = arith.constant 2 : index
    %c0_18 = arith.constant 0 : index
    %28 = vector.load %arg2[%c0_16, %27, %c2_17, %c0_18] : memref<1x4x10x64xf32, #tpu.memory_space<vmem>>, vector<1x2x8x64xf32>
    %29 = vector.shape_cast %28 : vector<1x2x8x64xf32> to vector<2x8x64xf32>
    %30 = vector.shape_cast %29 : vector<2x8x64xf32> to vector<16x64xf32>
    %c2_i32_19 = arith.constant 2 : i32
    %31 = arith.addi %0, %c2_i32_19 : i32
    %c0_20 = arith.constant 0 : index
    %32 = arith.index_cast %31 : i32 to index
    %c0_21 = arith.constant 0 : index
    %c0_22 = arith.constant 0 : index
    %33 = vector.load %arg2[%c0_20, %32, %c0_21, %c0_22] : memref<1x4x10x64xf32, #tpu.memory_space<vmem>>, vector<1x2x8x64xf32>
    %34 = vector.shape_cast %33 : vector<1x2x8x64xf32> to vector<2x8x64xf32>
    %35 = vector.shape_cast %34 : vector<2x8x64xf32> to vector<16x64xf32>
    %c2_i32_23 = arith.constant 2 : i32
    %36 = arith.addi %0, %c2_i32_23 : i32
    %c0_24 = arith.constant 0 : index
    %37 = arith.index_cast %36 : i32 to index
    %c1_25 = arith.constant 1 : index
    %c0_26 = arith.constant 0 : index
    %38 = vector.load %arg2[%c0_24, %37, %c1_25, %c0_26] : memref<1x4x10x64xf32, #tpu.memory_space<vmem>>, vector<1x2x8x64xf32>
    %39 = vector.shape_cast %38 : vector<1x2x8x64xf32> to vector<2x8x64xf32>
    %40 = vector.shape_cast %39 : vector<2x8x64xf32> to vector<16x64xf32>
    %c2_i32_27 = arith.constant 2 : i32
    %41 = arith.addi %0, %c2_i32_27 : i32
    %c0_28 = arith.constant 0 : index
    %42 = arith.index_cast %41 : i32 to index
    %c2_29 = arith.constant 2 : index
    %c0_30 = arith.constant 0 : index
    %43 = vector.load %arg2[%c0_28, %42, %c2_29, %c0_30] : memref<1x4x10x64xf32, #tpu.memory_space<vmem>>, vector<1x2x8x64xf32>
    %44 = vector.shape_cast %43 : vector<1x2x8x64xf32> to vector<2x8x64xf32>
    %45 = vector.shape_cast %44 : vector<2x8x64xf32> to vector<16x64xf32>
    %46 = tpu.concatenate %5, %10, %15, %20, %25, %30, %35, %40, %45 in 1 : vector<16x64xf32>, vector<16x64xf32>, vector<16x64xf32>, vector<16x64xf32>, vector<16x64xf32>, vector<16x64xf32>, vector<16x64xf32>, vector<16x64xf32>, vector<16x64xf32> -> vector<16x576xf32>
    %47 = arith.truncf %46 : vector<16x576xf32> to vector<16x576xbf16>
    %c0_31 = arith.constant 0 : index
    %c0_32 = arith.constant 0 : index
    %48 = vector.load %arg3[%c0_31, %c0_32] : memref<576x128xbf16, #tpu.memory_space<vmem>>, vector<576x128xbf16>
    %cst = arith.constant dense<0.000000e+00> : vector<16x128xf32>
    %49 = tpu.matmul %47, %48, %cst {dimension_numbers = #tpu.dot_dimension_numbers<[1], [0], [0], [1], [0, 0, 1, 1], [], []>} : vector<16x576xbf16>, vector<576x128xbf16>, vector<16x128xf32> -> vector<16x128xf32>
    %c0_33 = arith.constant 0 : index
    %c0_34 = arith.constant 0 : index
    %50 = vector.load %arg4[%c0_33, %c0_34] : memref<1x128xf32, #tpu.memory_space<vmem>>, vector<1x128xf32>
    %51 = vector.broadcast %50 : vector<1x128xf32> to vector<16x128xf32>
    %52 = arith.addf %49, %51 : vector<16x128xf32>
    %c0_35 = arith.constant 0 : index
    %c0_36 = arith.constant 0 : index
    %c0_37 = arith.constant 0 : index
    %53 = vector.load %arg5[%c0_35, %c0_36, %c0_37] : memref<1x16x128xf32, #tpu.memory_space<vmem>>, vector<1x16x128xf32>
    %54 = vector.shape_cast %53 : vector<1x16x128xf32> to vector<16x128xf32>
    %55 = vector.shape_cast %52 : vector<16x128xf32> to vector<1x16x128xf32>
    tpu.vector_store %arg5[%c0_35, %c0_36, %c0_37], %55 {strides = array<i32>} : memref<1x16x128xf32, #tpu.memory_space<vmem>>, vector<1x16x128xf32>,
    %56 = tpu.iota {dimensions = array<i32: 0>} : vector<16x1xi32>
    %c8_i32 = arith.constant 8 : i32
    %c0_i32_38 = arith.constant 0 : i32
    %57 = arith.cmpi eq, %c8_i32, %c0_i32_38 : i32
    %c1_i32_39 = arith.constant 1 : i32
    %58 = arith.select %57, %c1_i32_39, %c8_i32 : i32
    %59 = vector.broadcast %58 : i32 to vector<16x1xi32>
    %60 = arith.remsi %56, %59 : vector<16x1xi32>
    %c0_i32_40 = arith.constant 0 : i32
    %61 = vector.broadcast %c0_i32_40 : i32 to vector<16x1xi32>
    %62 = arith.cmpi ne, %60, %61 : vector<16x1xi32>
    %c0_i32_41 = arith.constant 0 : i32
    %63 = vector.broadcast %c0_i32_41 : i32 to vector<16x1xi32>
    %64 = arith.cmpi slt, %60, %63 : vector<16x1xi32>
    %c0_i32_42 = arith.constant 0 : i32
    %65 = arith.cmpi slt, %58, %c0_i32_42 : i32
    %66 = vector.broadcast %65 : i1 to vector<16x1xi1>
    %67 = vector.broadcast %66 : vector<16x1xi1> to vector<16x1xi1>
    %68 = arith.xori %64, %67 : vector<16x1xi1>
    %69 = arith.andi %68, %62 : vector<16x1xi1>
    %70 = vector.broadcast %58 : i32 to vector<16x1xi32>
    %71 = arith.addi %60, %70 : vector<16x1xi32>
    %72 = arith.select %69, %71, %60 : vector<16x1xi1>, vector<16x1xi32>
    %c2_i32_43 = arith.constant 2 : i32
    %73 = vector.broadcast %c2_i32_43 : i32 to vector<16x1xi32>
    %74 = arith.cmpi slt, %72, %73 : vector<16x1xi32>
    %cst_44 = arith.constant 0.000000e+00 : f32
    %75 = vector.shape_cast %74 : vector<16x1xi1> to vector<16x1xi1>
    %76 = vector.broadcast %75 : vector<16x1xi1> to vector<16x128xi1>
    %77 = vector.broadcast %cst_44 : f32 to vector<16x128xf32>
    %78 = arith.select %76, %52, %77 : vector<16x128xi1>, vector<16x128xf32>
    %cst_45 = arith.constant dense<0.000000e+00> : vector<128xf32>
    %79 = vector.multi_reduction <add>, %78, %cst_45 [0] : vector<16x128xf32> to vector<128xf32>
    %80 = vector.shape_cast %79 : vector<128xf32> to vector<1x128xf32>
    %c0_46 = arith.constant 0 : index
    %c0_47 = arith.constant 0 : index
    %c0_48 = arith.constant 0 : index
    %c0_49 = arith.constant 0 : index
    %81 = vector.load %arg6[%c0_46, %c0_47, %c0_48, %c0_49] : memref<1x1x2x128xf32, #tpu.memory_space<vmem>>, vector<1x1x1x128xf32>
    %82 = vector.shape_cast %81 : vector<1x1x1x128xf32> to vector<1x128xf32>
    %83 = vector.shape_cast %80 : vector<1x128xf32> to vector<1x1x1x128xf32>
    tpu.vector_store %arg6[%c0_46, %c0_47, %c0_48, %c0_49], %83 {strides = array<i32>} : memref<1x1x2x128xf32, #tpu.memory_space<vmem>>, vector<1x1x1x128xf32>,
    %84 = arith.mulf %78, %78 : vector<16x128xf32>
    %cst_50 = arith.constant dense<0.000000e+00> : vector<128xf32>
    %85 = vector.multi_reduction <add>, %84, %cst_50 [0] : vector<16x128xf32> to vector<128xf32>
    %86 = vector.shape_cast %85 : vector<128xf32> to vector<1x128xf32>
    %c0_51 = arith.constant 0 : index
    %c0_52 = arith.constant 0 : index
    %c1_53 = arith.constant 1 : index
    %c0_54 = arith.constant 0 : index
    %87 = vector.load %arg6[%c0_51, %c0_52, %c1_53, %c0_54] : memref<1x1x2x128xf32, #tpu.memory_space<vmem>>, vector<1x1x1x128xf32>
    %88 = vector.shape_cast %87 : vector<1x1x1x128xf32> to vector<1x128xf32>
    %89 = vector.shape_cast %86 : vector<1x128xf32> to vector<1x1x1x128xf32>
    tpu.vector_store %arg6[%c0_51, %c0_52, %c1_53, %c0_54], %89 {strides = array<i32>} : memref<1x1x2x128xf32, #tpu.memory_space<vmem>>, vector<1x1x1x128xf32>,
    return
  }
  func.func @transform_0(%arg0: i32, %arg1: i32) -> (i32, i32, i32, i32) {
    %c0_i32 = arith.constant 0 : i32
    %c0_i32_0 = arith.constant 0 : i32
    %c0_i32_1 = arith.constant 0 : i32
    %c0_i32_2 = arith.constant 0 : i32
    return %arg0, %c0_i32, %c0_i32_0, %c0_i32_1 : i32, i32, i32, i32
  }
  func.func @transform_1(%arg0: i32, %arg1: i32) -> (i32, i32) {
    %c0_i32 = arith.constant 0 : i32
    %c0_i32_0 = arith.constant 0 : i32
    %c0_i32_1 = arith.constant 0 : i32
    return %c0_i32, %c0_i32_0 : i32, i32
  }
  func.func @transform_2(%arg0: i32, %arg1: i32) -> (i32, i32) {
    %c0_i32 = arith.constant 0 : i32
    %c0_i32_0 = arith.constant 0 : i32
    %c0_i32_1 = arith.constant 0 : i32
    return %c0_i32, %c0_i32_0 : i32, i32
  }
  func.func @transform_3(%arg0: i32, %arg1: i32) -> (i32, i32, i32) {
    %c0_i32 = arith.constant 0 : i32
    %c0_i32_0 = arith.constant 0 : i32
    return %arg0, %arg1, %c0_i32 : i32, i32, i32
  }
  func.func @transform_4(%arg0: i32, %arg1: i32) -> (i32, i32, i32, i32) {
    %c0_i32 = arith.constant 0 : i32
    %c0_i32_0 = arith.constant 0 : i32
    %c0_i32_1 = arith.constant 0 : i32
    return %arg0, %arg1, %c0_i32, %c0_i32_0 : i32, i32, i32, i32
  }
}

module attributes {stable_mosaic.version = 11 : i64} {
  func.func @_scale_shift_relu_kernel(%arg0: i32, %arg1: memref<8x128xf32, #tpu.memory_space<vmem>>, %arg2: memref<1x128xf32, #tpu.memory_space<vmem>>, %arg3: memref<1x128xf32, #tpu.memory_space<vmem>>, %arg4: memref<8x128xf32, #tpu.memory_space<vmem>>) attributes {dimension_semantics = [#tpu.dimension_semantics<parallel>], iteration_bounds = array<i64: 1>, scalar_prefetch = 0 : i64, scratch_operands = 0 : i64, tpu.core_type = #tpu.core_type<tc>, window_params = [{transform_indices = @transform_0, window_bounds = array<i64: 8, 128>}, {pipeline_mode = #tpu.pipeline_mode<synchronous>, transform_indices = @transform_1, window_bounds = array<i64: 1, 128>}, {pipeline_mode = #tpu.pipeline_mode<synchronous>, transform_indices = @transform_2, window_bounds = array<i64: 1, 128>}, {transform_indices = @transform_3, window_bounds = array<i64: 8, 128>}]} {
    %c0 = arith.constant 0 : index
    %c0_0 = arith.constant 0 : index
    %0 = vector.load %arg1[%c0, %c0_0] : memref<8x128xf32, #tpu.memory_space<vmem>>, vector<8x128xf32>
    %c0_1 = arith.constant 0 : index
    %c0_2 = arith.constant 0 : index
    %1 = vector.load %arg2[%c0_1, %c0_2] : memref<1x128xf32, #tpu.memory_space<vmem>>, vector<1x128xf32>
    %2 = vector.broadcast %1 : vector<1x128xf32> to vector<8x128xf32>
    %3 = arith.mulf %0, %2 : vector<8x128xf32>
    %c0_3 = arith.constant 0 : index
    %c0_4 = arith.constant 0 : index
    %4 = vector.load %arg3[%c0_3, %c0_4] : memref<1x128xf32, #tpu.memory_space<vmem>>, vector<1x128xf32>
    %5 = vector.broadcast %4 : vector<1x128xf32> to vector<8x128xf32>
    %6 = arith.addf %3, %5 : vector<8x128xf32>
    %cst = arith.constant 0.000000e+00 : f32
    %7 = vector.broadcast %cst : f32 to vector<8x128xf32>
    %8 = arith.maximumf %6, %7 : vector<8x128xf32>
    %c0_5 = arith.constant 0 : index
    %c0_6 = arith.constant 0 : index
    %9 = vector.load %arg4[%c0_5, %c0_6] : memref<8x128xf32, #tpu.memory_space<vmem>>, vector<8x128xf32>
    tpu.vector_store %arg4[%c0_5, %c0_6], %8 {strides = array<i32>} : memref<8x128xf32, #tpu.memory_space<vmem>>, vector<8x128xf32>,
    return
  }
  func.func @transform_0(%arg0: i32) -> (i32, i32) {
    %c0_i32 = arith.constant 0 : i32
    %c0_i32_0 = arith.constant 0 : i32
    return %arg0, %c0_i32 : i32, i32
  }
  func.func @transform_1(%arg0: i32) -> (i32, i32) {
    %c0_i32 = arith.constant 0 : i32
    %c0_i32_0 = arith.constant 0 : i32
    %c0_i32_1 = arith.constant 0 : i32
    return %c0_i32, %c0_i32_0 : i32, i32
  }
  func.func @transform_2(%arg0: i32) -> (i32, i32) {
    %c0_i32 = arith.constant 0 : i32
    %c0_i32_0 = arith.constant 0 : i32
    %c0_i32_1 = arith.constant 0 : i32
    return %c0_i32, %c0_i32_0 : i32, i32
  }
  func.func @transform_3(%arg0: i32) -> (i32, i32) {
    %c0_i32 = arith.constant 0 : i32
    %c0_i32_0 = arith.constant 0 : i32
    return %arg0, %c0_i32 : i32, i32
  }
}

module attributes {stable_mosaic.version = 11 : i64} {
  func.func @_bilinear_blend_kernel(%arg0: i32, %arg1: memref<1x4x256xf32, #tpu.memory_space<vmem>>, %arg2: memref<1x4x256xf32, #tpu.memory_space<vmem>>, %arg3: memref<1x4x256xf32, #tpu.memory_space<vmem>>, %arg4: memref<1x4x256xf32, #tpu.memory_space<vmem>>, %arg5: memref<1x4x256xf32, #tpu.memory_space<vmem>>, %arg6: memref<1x4x256xf32, #tpu.memory_space<vmem>>) attributes {dimension_semantics = [#tpu.dimension_semantics<parallel>], iteration_bounds = array<i64: 2>, scalar_prefetch = 0 : i64, scratch_operands = 0 : i64, tpu.core_type = #tpu.core_type<tc>, window_params = [{transform_indices = @transform_0, window_bounds = array<i64: 1, 4, 256>}, {transform_indices = @transform_1, window_bounds = array<i64: 1, 4, 256>}, {transform_indices = @transform_2, window_bounds = array<i64: 1, 4, 256>}, {transform_indices = @transform_3, window_bounds = array<i64: 1, 4, 256>}, {transform_indices = @transform_4, window_bounds = array<i64: 1, 4, 256>}, {transform_indices = @transform_5, window_bounds = array<i64: 1, 4, 256>}]} {
    %c0 = arith.constant 0 : index
    %c0_0 = arith.constant 0 : index
    %c0_1 = arith.constant 0 : index
    %0 = vector.load %arg1[%c0, %c0_0, %c0_1] : memref<1x4x256xf32, #tpu.memory_space<vmem>>, vector<1x4x256xf32>
    %1 = vector.shape_cast %0 : vector<1x4x256xf32> to vector<4x256xf32>
    %c0_2 = arith.constant 0 : index
    %c0_3 = arith.constant 0 : index
    %c0_4 = arith.constant 0 : index
    %2 = vector.load %arg5[%c0_2, %c0_3, %c0_4] : memref<1x4x256xf32, #tpu.memory_space<vmem>>, vector<1x1x256xf32>
    %3 = vector.shape_cast %2 : vector<1x1x256xf32> to vector<1x256xf32>
    %4 = vector.broadcast %3 : vector<1x256xf32> to vector<4x256xf32>
    %5 = arith.mulf %1, %4 : vector<4x256xf32>
    %c0_5 = arith.constant 0 : index
    %c0_6 = arith.constant 0 : index
    %c0_7 = arith.constant 0 : index
    %6 = vector.load %arg2[%c0_5, %c0_6, %c0_7] : memref<1x4x256xf32, #tpu.memory_space<vmem>>, vector<1x4x256xf32>
    %7 = vector.shape_cast %6 : vector<1x4x256xf32> to vector<4x256xf32>
    %c0_8 = arith.constant 0 : index
    %c1 = arith.constant 1 : index
    %c0_9 = arith.constant 0 : index
    %8 = vector.load %arg5[%c0_8, %c1, %c0_9] : memref<1x4x256xf32, #tpu.memory_space<vmem>>, vector<1x1x256xf32>
    %9 = vector.shape_cast %8 : vector<1x1x256xf32> to vector<1x256xf32>
    %10 = vector.broadcast %9 : vector<1x256xf32> to vector<4x256xf32>
    %11 = arith.mulf %7, %10 : vector<4x256xf32>
    %12 = arith.addf %5, %11 : vector<4x256xf32>
    %c0_10 = arith.constant 0 : index
    %c0_11 = arith.constant 0 : index
    %c0_12 = arith.constant 0 : index
    %13 = vector.load %arg3[%c0_10, %c0_11, %c0_12] : memref<1x4x256xf32, #tpu.memory_space<vmem>>, vector<1x4x256xf32>
    %14 = vector.shape_cast %13 : vector<1x4x256xf32> to vector<4x256xf32>
    %c0_13 = arith.constant 0 : index
    %c2 = arith.constant 2 : index
    %c0_14 = arith.constant 0 : index
    %15 = vector.load %arg5[%c0_13, %c2, %c0_14] : memref<1x4x256xf32, #tpu.memory_space<vmem>>, vector<1x1x256xf32>
    %16 = vector.shape_cast %15 : vector<1x1x256xf32> to vector<1x256xf32>
    %17 = vector.broadcast %16 : vector<1x256xf32> to vector<4x256xf32>
    %18 = arith.mulf %14, %17 : vector<4x256xf32>
    %19 = arith.addf %12, %18 : vector<4x256xf32>
    %c0_15 = arith.constant 0 : index
    %c0_16 = arith.constant 0 : index
    %c0_17 = arith.constant 0 : index
    %20 = vector.load %arg4[%c0_15, %c0_16, %c0_17] : memref<1x4x256xf32, #tpu.memory_space<vmem>>, vector<1x4x256xf32>
    %21 = vector.shape_cast %20 : vector<1x4x256xf32> to vector<4x256xf32>
    %c0_18 = arith.constant 0 : index
    %c3 = arith.constant 3 : index
    %c0_19 = arith.constant 0 : index
    %22 = vector.load %arg5[%c0_18, %c3, %c0_19] : memref<1x4x256xf32, #tpu.memory_space<vmem>>, vector<1x1x256xf32>
    %23 = vector.shape_cast %22 : vector<1x1x256xf32> to vector<1x256xf32>
    %24 = vector.broadcast %23 : vector<1x256xf32> to vector<4x256xf32>
    %25 = arith.mulf %21, %24 : vector<4x256xf32>
    %26 = arith.addf %19, %25 : vector<4x256xf32>
    %c0_20 = arith.constant 0 : index
    %c0_21 = arith.constant 0 : index
    %c0_22 = arith.constant 0 : index
    %27 = vector.load %arg6[%c0_20, %c0_21, %c0_22] : memref<1x4x256xf32, #tpu.memory_space<vmem>>, vector<1x4x256xf32>
    %28 = vector.shape_cast %27 : vector<1x4x256xf32> to vector<4x256xf32>
    %29 = vector.shape_cast %26 : vector<4x256xf32> to vector<1x4x256xf32>
    tpu.vector_store %arg6[%c0_20, %c0_21, %c0_22], %29 {strides = array<i32>} : memref<1x4x256xf32, #tpu.memory_space<vmem>>, vector<1x4x256xf32>,
    return
  }
  func.func @transform_0(%arg0: i32) -> (i32, i32, i32) {
    %c0_i32 = arith.constant 0 : i32
    %c0_i32_0 = arith.constant 0 : i32
    %c0_i32_1 = arith.constant 0 : i32
    return %arg0, %c0_i32, %c0_i32_0 : i32, i32, i32
  }
  func.func @transform_1(%arg0: i32) -> (i32, i32, i32) {
    %c0_i32 = arith.constant 0 : i32
    %c0_i32_0 = arith.constant 0 : i32
    %c0_i32_1 = arith.constant 0 : i32
    return %arg0, %c0_i32, %c0_i32_0 : i32, i32, i32
  }
  func.func @transform_2(%arg0: i32) -> (i32, i32, i32) {
    %c0_i32 = arith.constant 0 : i32
    %c0_i32_0 = arith.constant 0 : i32
    %c0_i32_1 = arith.constant 0 : i32
    return %arg0, %c0_i32, %c0_i32_0 : i32, i32, i32
  }
  func.func @transform_3(%arg0: i32) -> (i32, i32, i32) {
    %c0_i32 = arith.constant 0 : i32
    %c0_i32_0 = arith.constant 0 : i32
    %c0_i32_1 = arith.constant 0 : i32
    return %arg0, %c0_i32, %c0_i32_0 : i32, i32, i32
  }
  func.func @transform_4(%arg0: i32) -> (i32, i32, i32) {
    %c0_i32 = arith.constant 0 : i32
    %c0_i32_0 = arith.constant 0 : i32
    %c0_i32_1 = arith.constant 0 : i32
    return %arg0, %c0_i32, %c0_i32_0 : i32, i32, i32
  }
  func.func @transform_5(%arg0: i32) -> (i32, i32, i32) {
    %c0_i32 = arith.constant 0 : i32
    %c0_i32_0 = arith.constant 0 : i32
    %c0_i32_1 = arith.constant 0 : i32
    return %arg0, %c0_i32, %c0_i32_0 : i32, i32, i32
  }
}

</mosaic_0001>

<bundles_post_ra>
// kernel: tps_forward.10
= control target key start
LH: loop header
LB: loop body
LE: loop exit
PB: predicated region body
PF: predicated region fallthrough
CT: control target
= control target key end

     0   :  { %s896_s0 = inlined_call_operand.vmem [shape: f32[512,128], index: 0, kind: input, shape index: {}]   ;;  %s897_s1 = inlined_call_operand.vmem [shape: f32[1,128], index: 1, kind: input, shape index: {}]   ;;  %s898_s2 = inlined_call_operand.vmem [shape: f32[1,128], index: 2, kind: input, shape index: {}]   ;;  %s899_s3 = inlined_call_operand.vmem [shape: f32[512,128], index: 3, kind: output, shape index: {}]  }
   0x1   :  { %v14_v0 = vld [vmem:[%s896_s0] sm:$0xff]  ;;  %v15_v4 = vld [vmem:[%s896_s0 + $0x8] sm:$0xff]  ;;  %v16_v5 = vld [vmem:[%s896_s0 + $0x10] sm:$0xff] }
   0x2   :  { %v380_v1 = vld [vmem:[%s897_s1] ss:$0 sm:$0xff]  ;;  %v17_v6 = vld [vmem:[%s896_s0 + $0x18] sm:$0xff]  ;;  %v19_v11 = vld [vmem:[%s896_s0 + $0x28] sm:$0xff] }
   0x3   :  { %v385_v2 = vld [vmem:[%s898_s2] ss:$0 sm:$0xff]  ;;  %v85_v3 = vmul.f32 %v380_v1, %v14_v0  ;;  %v86_v7 = vmul.f32 %v380_v1, %v15_v4  ;;  %v87_v8 = vmul.f32 %v380_v1, %v16_v5  ;;  %v88_v9 = vmul.f32 %v380_v1, %v17_v6  ;;  %v20_v12 = vld [vmem:[%s896_s0 + $0x30] sm:$0xff]  ;;  %v21_v17 = vld [vmem:[%s896_s0 + $0x38] sm:$0xff] }
   0x4   :  { %v18_v10 = vld [vmem:[%s896_s0 + $0x20] sm:$0xff]  ;;  %v90_v15 = vmul.f32 %v380_v1, %v19_v11  ;;  %v91_v16 = vmul.f32 %v380_v1, %v20_v12  ;;  %v92_v21 = vmul.f32 %v380_v1, %v21_v17  ;;  %v23_v27 = vld [vmem:[%s896_s0 + $0x48] sm:$0xff]  ;;  %v24_v28 = vld [vmem:[%s896_s0 + $0x50] sm:$0xff] }
   0x5   :  { %v156_v13 = vadd.f32 %v385_v2, %v85_v3  ;;  %v89_v14 = vmul.f32 %v380_v1, %v18_v10  ;;  %v157_v18 = vadd.f32 %v385_v2, %v86_v7  ;;  %v158_v19 = vadd.f32 %v385_v2, %v87_v8  ;;  %v22_v22 = vld [vmem:[%s896_s0 + $0x40] sm:$0xff]  ;;  %v25_v29 = vld [vmem:[%s896_s0 + $0x58] sm:$0xff]  ;;  %v27_v35 = vld [vmem:[%s896_s0 + $0x68] sm:$0xff] }
   0x6   :  { %v159_v20 = vadd.f32 %v385_v2, %v88_v9  ;;  %v161_v25 = vadd.f32 %v385_v2, %v90_v15  ;;  %v162_v26 = vadd.f32 %v385_v2, %v91_v16  ;;  %v163_v33 = vadd.f32 %v385_v2, %v92_v21  ;;  %v26_v34 = vld [vmem:[%s896_s0 + $0x60] sm:$0xff]  ;;  %v28_v36 = vld [vmem:[%s896_s0 + $0x70] sm:$0xff]  ;;  %v29_v41 = vld [vmem:[%s896_s0 + $0x78] sm:$0xff] }
   0x7   :  { %v220_v23 = vmax.f32 %v156_v13, 0.0  ;;  %v160_v24 = vadd.f32 %v385_v2, %v89_v14  ;;  %v221_v30 = vmax.f32 %v157_v18, 0.0  ;;  %v222_v31 = vmax.f32 %v158_v19, 0.0  ;;  %v30_v54 = vld [vmem:[%s896_s0 + $0x80] sm:$0xff]  ;;  %v31_v59 = vld [vmem:[%s896_s0 + $0x88] sm:$0xff]  ;;  %v32_v60 = vld [vmem:[%s896_s0 + $0x90] sm:$0xff] }
   0x8   :  { %v223_v32 = vmax.f32 %v159_v20, 0.0  ;;  %v225_v38 = vmax.f32 %v161_v25, 0.0  ;;  %v226_v39 = vmax.f32 %v162_v26, 0.0  ;;  %v93_v40 = vmul.f32 %v380_v1, %v22_v22  ;;  %v33_v61 = vld [vmem:[%s896_s0 + $0x98] sm:$0xff]  ;;  %v34_v4 = vld [vmem:[%s896_s0 + $0xa0] sm:$0xff]  ;;  %v35_v5 = vld [vmem:[%s896_s0 + $0xa8] sm:$0xff] }
   0x9   :  { %284 = vst [vmem:[%s899_s3] sm:$0xff] %v220_v23  ;;  %v224_v37 = vmax.f32 %v160_v24, 0.0  ;;  %285 = vst [vmem:[%s899_s3 + $0x8] sm:$0xff] %v221_v30  ;;  %v227_v42 = vmax.f32 %v163_v33, 0.0  ;;  %v94_v43 = vmul.f32 %v380_v1, %v23_v27  ;;  %v95_v44 = vmul.f32 %v380_v1, %v24_v28  ;;  %v36_v6 = vld [vmem:[%s896_s0 + $0xb0] sm:$0xff]  ;;  %v37_v11 = vld [vmem:[%s896_s0 + $0xb8] sm:$0xff] }
   0xa   :  { %286 = vst [vmem:[%s899_s3 + $0x10] sm:$0xff] %v222_v31  ;;  %287 = vst [vmem:[%s899_s3 + $0x18] sm:$0xff] %v223_v32  ;;  %v96_v45 = vmul.f32 %v380_v1, %v25_v29  ;;  %v164_v46 = vadd.f32 %v385_v2, %v93_v40  ;;  %v97_v47 = vmul.f32 %v380_v1, %v26_v34  ;;  %v38_v24 = vld [vmem:[%s896_s0 + $0xc0] sm:$0xff]  ;;  %v39_v29 = vld [vmem:[%s896_s0 + $0xc8] sm:$0xff] }
   0xb   :  { %288 = vst [vmem:[%s899_s3 + $0x20] sm:$0xff] %v224_v37  ;;  %289 = vst [vmem:[%s899_s3 + $0x28] sm:$0xff] %v225_v38  ;;  %v98_v48 = vmul.f32 %v380_v1, %v27_v35  ;;  %v99_v49 = vmul.f32 %v380_v1, %v28_v36  ;;  %v165_v50 = vadd.f32 %v385_v2, %v94_v43  ;;  %v40_v30 = vld [vmem:[%s896_s0 + $0xd0] sm:$0xff]  ;;  %v41_v31 = vld [vmem:[%s896_s0 + $0xd8] sm:$0xff] }
   0xc   :  { %290 = vst [vmem:[%s899_s3 + $0x30] sm:$0xff] %v226_v39  ;;  %291 = vst [vmem:[%s899_s3 + $0x38] sm:$0xff] %v227_v42  ;;  %v166_v51 = vadd.f32 %v385_v2, %v95_v44  ;;  %v167_v52 = vadd.f32 %v385_v2, %v96_v45  ;;  %v100_v53 = vmul.f32 %v380_v1, %v29_v41  ;;  %v228_v55 = vmax.f32 %v164_v46, 0.0  ;;  %v42_v36 = vld [vmem:[%s896_s0 + $0xe0] sm:$0xff]  ;;  %v43_v37 = vld [vmem:[%s896_s0 + $0xe8] sm:$0xff] }
   0xd   :  { %v168_v56 = vadd.f32 %v385_v2, %v97_v47  ;;  %v169_v57 = vadd.f32 %v385_v2, %v98_v48  ;;  %v170_v58 = vadd.f32 %v385_v2, %v99_v49  ;;  %v229_v62 = vmax.f32 %v165_v50, 0.0  ;;  %v44_v38 = vld [vmem:[%s896_s0 + $0xf0] sm:$0xff]  ;;  %v45_v43 = vld [vmem:[%s896_s0 + $0xf8] sm:$0xff] }
   0xe   :  { %v230_v63 = vmax.f32 %v166_v51, 0.0  ;;  %v231_v0 = vmax.f32 %v167_v52, 0.0  ;;  %v171_v3 = vadd.f32 %v385_v2, %v100_v53  ;;  %292 = vst [vmem:[%s899_s3 + $0x40] sm:$0xff] %v228_v55  ;;  %v101_v10 = vmul.f32 %v380_v1, %v30_v54 }
   0xf   :  { %v232_v7 = vmax.f32 %v168_v56, 0.0  ;;  %v233_v8 = vmax.f32 %v169_v57, 0.0  ;;  %v234_v9 = vmax.f32 %v170_v58, 0.0  ;;  %293 = vst [vmem:[%s899_s3 + $0x48] sm:$0xff] %v229_v62  ;;  %v102_v13 = vmul.f32 %v380_v1, %v31_v59  ;;  %v46_v56 = vld [vmem:[%s896_s0 + $0x100] sm:$0xff]  ;;  %v48_v62 = vld [vmem:[%s896_s0 + $0x110] sm:$0xff] }
  0x10   :  { %294 = vst [vmem:[%s899_s3 + $0x50] sm:$0xff] %v230_v63  ;;  %295 = vst [vmem:[%s899_s3 + $0x58] sm:$0xff] %v231_v0  ;;  %v235_v12 = vmax.f32 %v171_v3, 0.0  ;;  %v103_v14 = vmul.f32 %v380_v1, %v32_v60  ;;  %v104_v15 = vmul.f32 %v380_v1, %v33_v61  ;;  %v172_v16 = vadd.f32 %v385_v2, %v101_v10  ;;  %v47_v61 = vld [vmem:[%s896_s0 + $0x108] sm:$0xff]  ;;  %v49_v63 = vld [vmem:[%s896_s0 + $0x118] sm:$0xff] }
  0x11   :  { %296 = vst [vmem:[%s899_s3 + $0x60] sm:$0xff] %v232_v7  ;;  %297 = vst [vmem:[%s899_s3 + $0x68] sm:$0xff] %v233_v8  ;;  %v105_v17 = vmul.f32 %v380_v1, %v34_v4  ;;  %v106_v18 = vmul.f32 %v380_v1, %v35_v5  ;;  %v107_v19 = vmul.f32 %v380_v1, %v36_v6  ;;  %v50_v6 = vld [vmem:[%s896_s0 + $0x120] sm:$0xff]  ;;  %v51_v7 = vld [vmem:[%s896_s0 + $0x128] sm:$0xff] }
  0x12   :  { %298 = vst [vmem:[%s899_s3 + $0x70] sm:$0xff] %v234_v9  ;;  %299 = vst [vmem:[%s899_s3 + $0x78] sm:$0xff] %v235_v12  ;;  %v173_v20 = vadd.f32 %v385_v2, %v102_v13  ;;  %v174_v21 = vadd.f32 %v385_v2, %v103_v14  ;;  %v175_v22 = vadd.f32 %v385_v2, %v104_v15  ;;  %v236_v25 = vmax.f32 %v172_v16, 0.0  ;;  %v52_v8 = vld [vmem:[%s896_s0 + $0x130] sm:$0xff]  ;;  %v53_v13 = vld [vmem:[%s896_s0 + $0x138] sm:$0xff] }
  0x13   :  { %v108_v23 = vmul.f32 %v380_v1, %v37_v11  ;;  %v176_v26 = vadd.f32 %v385_v2, %v105_v17  ;;  %v177_v27 = vadd.f32 %v385_v2, %v106_v18  ;;  %v178_v28 = vadd.f32 %v385_v2, %v107_v19 }
  0x14   :  { %v237_v32 = vmax.f32 %v173_v20, 0.0  ;;  %v238_v33 = vmax.f32 %v174_v21, 0.0  ;;  %v239_v34 = vmax.f32 %v175_v22, 0.0  ;;  %300 = vst [vmem:[%s899_s3 + $0x80] sm:$0xff] %v236_v25  ;;  %v109_v42 = vmul.f32 %v380_v1, %v38_v24 }
  0x15   :  { %v179_v35 = vadd.f32 %v385_v2, %v108_v23  ;;  %v240_v39 = vmax.f32 %v176_v26, 0.0  ;;  %v241_v40 = vmax.f32 %v177_v27, 0.0  ;;  %v242_v41 = vmax.f32 %v178_v28, 0.0  ;;  %v54_v26 = vld [vmem:[%s896_s0 + $0x140] sm:$0xff] }
  0x16   :  { %301 = vst [vmem:[%s899_s3 + $0x88] sm:$0xff] %v237_v32  ;;  %302 = vst [vmem:[%s899_s3 + $0x90] sm:$0xff] %v238_v33  ;;  %v110_v45 = vmul.f32 %v380_v1, %v39_v29  ;;  %v111_v46 = vmul.f32 %v380_v1, %v40_v30  ;;  %v112_v47 = vmul.f32 %v380_v1, %v41_v31  ;;  %v55_v31 = vld [vmem:[%s896_s0 + $0x148] sm:$0xff]  ;;  %v56_v32 = vld [vmem:[%s896_s0 + $0x150] sm:$0xff] }
  0x17   :  { %303 = vst [vmem:[%s899_s3 + $0x98] sm:$0xff] %v239_v34  ;;  %v243_v44 = vmax.f32 %v179_v35, 0.0  ;;  %304 = vst [vmem:[%s899_s3 + $0xa0] sm:$0xff] %v240_v39  ;;  %v180_v48 = vadd.f32 %v385_v2, %v109_v42  ;;  %v113_v49 = vmul.f32 %v380_v1, %v42_v36  ;;  %v114_v50 = vmul.f32 %v380_v1, %v43_v37  ;;  %v57_v33 = vld [vmem:[%s896_s0 + $0x158] sm:$0xff]  ;;  %v59_v39 = vld [vmem:[%s896_s0 + $0x168] sm:$0xff] }
  0x18   :  { %305 = vst [vmem:[%s899_s3 + $0xa8] sm:$0xff] %v241_v40  ;;  %306 = vst [vmem:[%s899_s3 + $0xb0] sm:$0xff] %v242_v41  ;;  %v115_v51 = vmul.f32 %v380_v1, %v44_v38  ;;  %v181_v52 = vadd.f32 %v385_v2, %v110_v45  ;;  %v182_v53 = vadd.f32 %v385_v2, %v111_v46  ;;  %v58_v38 = vld [vmem:[%s896_s0 + $0x160] sm:$0xff]  ;;  %v60_v40 = vld [vmem:[%s896_s0 + $0x170] sm:$0xff] }
  0x19   :  { %307 = vst [vmem:[%s899_s3 + $0xb8] sm:$0xff] %v243_v44  ;;  %v183_v54 = vadd.f32 %v385_v2, %v112_v47  ;;  %v116_v55 = vmul.f32 %v380_v1, %v45_v43  ;;  %v244_v57 = vmax.f32 %v180_v48, 0.0  ;;  %v184_v58 = vadd.f32 %v385_v2, %v113_v49  ;;  %v61_v45 = vld [vmem:[%s896_s0 + $0x178] sm:$0xff] }
  0x1a   :  { %v185_v59 = vadd.f32 %v385_v2, %v114_v50  ;;  %v186_v60 = vadd.f32 %v385_v2, %v115_v51  ;;  %v245_v0 = vmax.f32 %v181_v52, 0.0  ;;  %v246_v3 = vmax.f32 %v182_v53, 0.0 }
  0x1b   :  { %v247_v4 = vmax.f32 %v183_v54, 0.0  ;;  %v187_v5 = vadd.f32 %v385_v2, %v116_v55  ;;  %308 = vst [vmem:[%s899_s3 + $0xc0] sm:$0xff] %v244_v57  ;;  %v248_v9 = vmax.f32 %v184_v58, 0.0  ;;  %v117_v12 = vmul.f32 %v380_v1, %v46_v56  ;;  %v62_v58 = vld [vmem:[%s896_s0 + $0x180] sm:$0xff] }
  0x1c   :  { %v249_v10 = vmax.f32 %v185_v59, 0.0  ;;  %v250_v11 = vmax.f32 %v186_v60, 0.0  ;;  %309 = vst [vmem:[%s899_s3 + $0xc8] sm:$0xff] %v245_v0  ;;  %310 = vst [vmem:[%s899_s3 + $0xd0] sm:$0xff] %v246_v3  ;;  %v118_v15 = vmul.f32 %v380_v1, %v47_v61  ;;  %v119_v16 = vmul.f32 %v380_v1, %v48_v62  ;;  %v64_v0 = vld [vmem:[%s896_s0 + $0x190] sm:$0xff]  ;;  %v65_v3 = vld [vmem:[%s896_s0 + $0x198] sm:$0xff] }
  0x1d   :  { %311 = vst [vmem:[%s899_s3 + $0xd8] sm:$0xff] %v247_v4  ;;  %v251_v14 = vmax.f32 %v187_v5, 0.0  ;;  %v120_v17 = vmul.f32 %v380_v1, %v49_v63  ;;  %312 = vst [vmem:[%s899_s3 + $0xe0] sm:$0xff] %v248_v9  ;;  %v188_v18 = vadd.f32 %v385_v2, %v117_v12  ;;  %v121_v19 = vmul.f32 %v380_v1, %v50_v6  ;;  %v63_v63 = vld [vmem:[%s896_s0 + $0x188] sm:$0xff] }
  0x1e   :  { %313 = vst [vmem:[%s899_s3 + $0xe8] sm:$0xff] %v249_v10  ;;  %314 = vst [vmem:[%s899_s3 + $0xf0] sm:$0xff] %v250_v11  ;;  %v122_v20 = vmul.f32 %v380_v1, %v51_v7  ;;  %v123_v21 = vmul.f32 %v380_v1, %v52_v8  ;;  %v189_v22 = vadd.f32 %v385_v2, %v118_v15  ;;  %v66_v8 = vld [vmem:[%s896_s0 + $0x1a0] sm:$0xff]  ;;  %v67_v9 = vld [vmem:[%s896_s0 + $0x1a8] sm:$0xff] }
  0x1f   :  { %315 = vst [vmem:[%s899_s3 + $0xf8] sm:$0xff] %v251_v14  ;;  %v190_v23 = vadd.f32 %v385_v2, %v119_v16  ;;  %v191_v24 = vadd.f32 %v385_v2, %v120_v17  ;;  %v124_v25 = vmul.f32 %v380_v1, %v53_v13  ;;  %v252_v27 = vmax.f32 %v188_v18, 0.0  ;;  %v68_v10 = vld [vmem:[%s896_s0 + $0x1b0] sm:$0xff]  ;;  %v69_v15 = vld [vmem:[%s896_s0 + $0x1b8] sm:$0xff] }
  0x20   :  { %v192_v28 = vadd.f32 %v385_v2, %v121_v19  ;;  %v193_v29 = vadd.f32 %v385_v2, %v122_v20  ;;  %v194_v30 = vadd.f32 %v385_v2, %v123_v21  ;;  %v253_v34 = vmax.f32 %v189_v22, 0.0 }
  0x21   :  { %v254_v35 = vmax.f32 %v190_v23, 0.0  ;;  %v255_v36 = vmax.f32 %v191_v24, 0.0  ;;  %v195_v37 = vadd.f32 %v385_v2, %v124_v25  ;;  %316 = vst [vmem:[%s899_s3 + $0x100] sm:$0xff] %v252_v27  ;;  %v125_v44 = vmul.f32 %v380_v1, %v54_v26 }
  0x22   :  { %v256_v41 = vmax.f32 %v192_v28, 0.0  ;;  %v257_v42 = vmax.f32 %v193_v29, 0.0  ;;  %v258_v43 = vmax.f32 %v194_v30, 0.0  ;;  %317 = vst [vmem:[%s899_s3 + $0x108] sm:$0xff] %v253_v34  ;;  %v126_v47 = vmul.f32 %v380_v1, %v55_v31  ;;  %v70_v28 = vld [vmem:[%s896_s0 + $0x1c0] sm:$0xff]  ;;  %v72_v34 = vld [vmem:[%s896_s0 + $0x1d0] sm:$0xff] }
  0x23   :  { %318 = vst [vmem:[%s899_s3 + $0x110] sm:$0xff] %v254_v35  ;;  %319 = vst [vmem:[%s899_s3 + $0x118] sm:$0xff] %v255_v36  ;;  %v259_v46 = vmax.f32 %v195_v37, 0.0  ;;  %v127_v48 = vmul.f32 %v380_v1, %v56_v32  ;;  %v128_v49 = vmul.f32 %v380_v1, %v57_v33  ;;  %v196_v50 = vadd.f32 %v385_v2, %v125_v44  ;;  %v71_v33 = vld [vmem:[%s896_s0 + $0x1c8] sm:$0xff]  ;;  %v73_v35 = vld [vmem:[%s896_s0 + $0x1d8] sm:$0xff] }
  0x24   :  { %320 = vst [vmem:[%s899_s3 + $0x120] sm:$0xff] %v256_v41  ;;  %321 = vst [vmem:[%s899_s3 + $0x128] sm:$0xff] %v257_v42  ;;  %v129_v51 = vmul.f32 %v380_v1, %v58_v38  ;;  %v130_v52 = vmul.f32 %v380_v1, %v59_v39  ;;  %v131_v53 = vmul.f32 %v380_v1, %v60_v40  ;;  %v74_v40 = vld [vmem:[%s896_s0 + $0x1e0] sm:$0xff]  ;;  %v75_v41 = vld [vmem:[%s896_s0 + $0x1e8] sm:$0xff] }
  0x25   :  { %322 = vst [vmem:[%s899_s3 + $0x130] sm:$0xff] %v258_v43  ;;  %323 = vst [vmem:[%s899_s3 + $0x138] sm:$0xff] %v259_v46  ;;  %v197_v54 = vadd.f32 %v385_v2, %v126_v47  ;;  %v198_v55 = vadd.f32 %v385_v2, %v127_v48  ;;  %v199_v56 = vadd.f32 %v385_v2, %v128_v49  ;;  %v260_v59 = vmax.f32 %v196_v50, 0.0  ;;  %v76_v42 = vld [vmem:[%s896_s0 + $0x1f0] sm:$0xff]  ;;  %v77_v47 = vld [vmem:[%s896_s0 + $0x1f8] sm:$0xff] }
  0x26   :  { %v132_v57 = vmul.f32 %v380_v1, %v61_v45  ;;  %v200_v60 = vadd.f32 %v385_v2, %v129_v51  ;;  %v201_v61 = vadd.f32 %v385_v2, %v130_v52  ;;  %v202_v62 = vadd.f32 %v385_v2, %v131_v53 }
  0x27   :  { %v261_v4 = vmax.f32 %v197_v54, 0.0  ;;  %v262_v5 = vmax.f32 %v198_v55, 0.0  ;;  %v263_v6 = vmax.f32 %v199_v56, 0.0  ;;  %324 = vst [vmem:[%s899_s3 + $0x140] sm:$0xff] %v260_v59  ;;  %v133_v14 = vmul.f32 %v380_v1, %v62_v58 }
  0x28   :  { %v203_v7 = vadd.f32 %v385_v2, %v132_v57  ;;  %v264_v11 = vmax.f32 %v200_v60, 0.0  ;;  %v265_v12 = vmax.f32 %v201_v61, 0.0  ;;  %v266_v13 = vmax.f32 %v202_v62, 0.0 }
  0x29   :  { %325 = vst [vmem:[%s899_s3 + $0x148] sm:$0xff] %v261_v4  ;;  %326 = vst [vmem:[%s899_s3 + $0x150] sm:$0xff] %v262_v5  ;;  %v134_v17 = vmul.f32 %v380_v1, %v63_v63  ;;  %v135_v18 = vmul.f32 %v380_v1, %v64_v0  ;;  %v136_v19 = vmul.f32 %v380_v1, %v65_v3 }
  0x2a   :  { %327 = vst [vmem:[%s899_s3 + $0x158] sm:$0xff] %v263_v6  ;;  %v267_v16 = vmax.f32 %v203_v7, 0.0  ;;  %328 = vst [vmem:[%s899_s3 + $0x160] sm:$0xff] %v264_v11  ;;  %v204_v20 = vadd.f32 %v385_v2, %v133_v14  ;;  %v137_v21 = vmul.f32 %v380_v1, %v66_v8  ;;  %v138_v22 = vmul.f32 %v380_v1, %v67_v9 }
  0x2b   :  { %329 = vst [vmem:[%s899_s3 + $0x168] sm:$0xff] %v265_v12  ;;  %330 = vst [vmem:[%s899_s3 + $0x170] sm:$0xff] %v266_v13  ;;  %v139_v23 = vmul.f32 %v380_v1, %v68_v10  ;;  %v205_v24 = vadd.f32 %v385_v2, %v134_v17  ;;  %v206_v25 = vadd.f32 %v385_v2, %v135_v18 }
  0x2c   :  { %331 = vst [vmem:[%s899_s3 + $0x178] sm:$0xff] %v267_v16  ;;  %v207_v26 = vadd.f32 %v385_v2, %v136_v19  ;;  %v140_v27 = vmul.f32 %v380_v1, %v69_v15  ;;  %v268_v29 = vmax.f32 %v204_v20, 0.0  ;;  %v208_v30 = vadd.f32 %v385_v2, %v137_v21 }
  0x2d   :  { %v209_v31 = vadd.f32 %v385_v2, %v138_v22  ;;  %v210_v32 = vadd.f32 %v385_v2, %v139_v23  ;;  %v269_v36 = vmax.f32 %v205_v24, 0.0  ;;  %v270_v37 = vmax.f32 %v206_v25, 0.0 }
  0x2e   :  { %v271_v38 = vmax.f32 %v207_v26, 0.0  ;;  %v211_v39 = vadd.f32 %v385_v2, %v140_v27  ;;  %332 = vst [vmem:[%s899_s3 + $0x180] sm:$0xff] %v268_v29  ;;  %v272_v43 = vmax.f32 %v208_v30, 0.0  ;;  %v141_v46 = vmul.f32 %v380_v1, %v70_v28 }
  0x2f   :  { %v273_v44 = vmax.f32 %v209_v31, 0.0  ;;  %v274_v45 = vmax.f32 %v210_v32, 0.0  ;;  %333 = vst [vmem:[%s899_s3 + $0x188] sm:$0xff] %v269_v36  ;;  %334 = vst [vmem:[%s899_s3 + $0x190] sm:$0xff] %v270_v37  ;;  %v142_v49 = vmul.f32 %v380_v1, %v71_v33  ;;  %v143_v50 = vmul.f32 %v380_v1, %v72_v34 }
  0x30   :  { %335 = vst [vmem:[%s899_s3 + $0x198] sm:$0xff] %v271_v38  ;;  %v275_v48 = vmax.f32 %v211_v39, 0.0  ;;  %v144_v51 = vmul.f32 %v380_v1, %v73_v35  ;;  %336 = vst [vmem:[%s899_s3 + $0x1a0] sm:$0xff] %v272_v43  ;;  %v212_v52 = vadd.f32 %v385_v2, %v141_v46  ;;  %v145_v53 = vmul.f32 %v380_v1, %v74_v40 }
  0x31   :  { %337 = vst [vmem:[%s899_s3 + $0x1a8] sm:$0xff] %v273_v44  ;;  %338 = vst [vmem:[%s899_s3 + $0x1b0] sm:$0xff] %v274_v45  ;;  %v146_v54 = vmul.f32 %v380_v1, %v75_v41  ;;  %v147_v55 = vmul.f32 %v380_v1, %v76_v42  ;;  %v213_v56 = vadd.f32 %v385_v2, %v142_v49 }
  0x32   :  { %339 = vst [vmem:[%s899_s3 + $0x1b8] sm:$0xff] %v275_v48  ;;  %v214_v57 = vadd.f32 %v385_v2, %v143_v50  ;;  %v215_v58 = vadd.f32 %v385_v2, %v144_v51  ;;  %v148_v59 = vmul.f32 %v380_v1, %v77_v47  ;;  %v276_v60 = vmax.f32 %v212_v52, 0.0 }
  0x33   :  { %v216_v61 = vadd.f32 %v385_v2, %v145_v53  ;;  %v217_v62 = vadd.f32 %v385_v2, %v146_v54  ;;  %v218_v63 = vadd.f32 %v385_v2, %v147_v55  ;;  %v277_v0 = vmax.f32 %v213_v56, 0.0 }
  0x34   :  { %v278_v3 = vmax.f32 %v214_v57, 0.0  ;;  %v279_v4 = vmax.f32 %v215_v58, 0.0  ;;  %v219_v5 = vadd.f32 %v385_v2, %v148_v59  ;;  %340 = vst [vmem:[%s899_s3 + $0x1c0] sm:$0xff] %v276_v60 }
  0x35   :  { %v280_v6 = vmax.f32 %v216_v61, 0.0  ;;  %v281_v7 = vmax.f32 %v217_v62, 0.0  ;;  %v282_v8 = vmax.f32 %v218_v63, 0.0  ;;  %341 = vst [vmem:[%s899_s3 + $0x1c8] sm:$0xff] %v277_v0 }
  0x36   :  { %342 = vst [vmem:[%s899_s3 + $0x1d0] sm:$0xff] %v278_v3  ;;  %343 = vst [vmem:[%s899_s3 + $0x1d8] sm:$0xff] %v279_v4  ;;  %v283_v1 = vmax.f32 %v219_v5, 0.0 }
  0x37   :  { %344 = vst [vmem:[%s899_s3 + $0x1e0] sm:$0xff] %v280_v6  ;;  %345 = vst [vmem:[%s899_s3 + $0x1e8] sm:$0xff] %v281_v7 }
  0x38   :  { %346 = vst [vmem:[%s899_s3 + $0x1f0] sm:$0xff] %v282_v8  ;;  %347 = vst [vmem:[%s899_s3 + $0x1f8] sm:$0xff] %v283_v1 }

// kernel: tps_forward.12
= control target key start
LH: loop header
LB: loop body
LE: loop exit
PB: predicated region body
PF: predicated region fallthrough
CT: control target
= control target key end

     0   :  { %s254_s0 = inlined_call_operand.vmem [shape: f32[128,128], index: 0, kind: input, shape index: {}]   ;;  %s255_s1 = inlined_call_operand.vmem [shape: f32[1,128], index: 1, kind: input, shape index: {}]   ;;  %s256_s2 = inlined_call_operand.vmem [shape: f32[1,128], index: 2, kind: input, shape index: {}]   ;;  %s257_s3 = inlined_call_operand.vmem [shape: f32[128,128], index: 3, kind: output, shape index: {}]  }
   0x1   :  { %v14_v0 = vld [vmem:[%s254_s0] sm:$0xff]  ;;  %v15_v4 = vld [vmem:[%s254_s0 + $0x8] sm:$0xff]  ;;  %v16_v5 = vld [vmem:[%s254_s0 + $0x10] sm:$0xff] }
   0x2   :  { %v112_v1 = vld [vmem:[%s255_s1] ss:$0 sm:$0xff]  ;;  %v17_v6 = vld [vmem:[%s254_s0 + $0x18] sm:$0xff]  ;;  %v19_v11 = vld [vmem:[%s254_s0 + $0x28] sm:$0xff] }
   0x3   :  { %v143_v2 = vld [vmem:[%s256_s2] ss:$0 sm:$0xff]  ;;  %v37_v3 = vmul.f32 %v112_v1, %v14_v0  ;;  %v38_v7 = vmul.f32 %v112_v1, %v15_v4  ;;  %v39_v8 = vmul.f32 %v112_v1, %v16_v5  ;;  %v40_v9 = vmul.f32 %v112_v1, %v17_v6  ;;  %v20_v12 = vld [vmem:[%s254_s0 + $0x30] sm:$0xff]  ;;  %v21_v17 = vld [vmem:[%s254_s0 + $0x38] sm:$0xff] }
   0x4   :  { %v18_v10 = vld [vmem:[%s254_s0 + $0x20] sm:$0xff]  ;;  %v42_v15 = vmul.f32 %v112_v1, %v19_v11  ;;  %v43_v16 = vmul.f32 %v112_v1, %v20_v12  ;;  %v44_v21 = vmul.f32 %v112_v1, %v21_v17  ;;  %v23_v27 = vld [vmem:[%s254_s0 + $0x48] sm:$0xff]  ;;  %v24_v28 = vld [vmem:[%s254_s0 + $0x50] sm:$0xff] }
   0x5   :  { %v60_v13 = vadd.f32 %v143_v2, %v37_v3  ;;  %v41_v14 = vmul.f32 %v112_v1, %v18_v10  ;;  %v61_v18 = vadd.f32 %v143_v2, %v38_v7  ;;  %v62_v19 = vadd.f32 %v143_v2, %v39_v8  ;;  %v22_v22 = vld [vmem:[%s254_s0 + $0x40] sm:$0xff]  ;;  %v25_v29 = vld [vmem:[%s254_s0 + $0x58] sm:$0xff]  ;;  %v27_v35 = vld [vmem:[%s254_s0 + $0x68] sm:$0xff] }
   0x6   :  { %v63_v20 = vadd.f32 %v143_v2, %v40_v9  ;;  %v65_v25 = vadd.f32 %v143_v2, %v42_v15  ;;  %v66_v26 = vadd.f32 %v143_v2, %v43_v16  ;;  %v67_v33 = vadd.f32 %v143_v2, %v44_v21  ;;  %v26_v34 = vld [vmem:[%s254_s0 + $0x60] sm:$0xff]  ;;  %v28_v36 = vld [vmem:[%s254_s0 + $0x70] sm:$0xff]  ;;  %v29_v41 = vld [vmem:[%s254_s0 + $0x78] sm:$0xff] }
   0x7   :  { %v76_v23 = vmax.f32 %v60_v13, 0.0  ;;  %v64_v24 = vadd.f32 %v143_v2, %v41_v14  ;;  %v77_v30 = vmax.f32 %v61_v18, 0.0  ;;  %v78_v31 = vmax.f32 %v62_v19, 0.0 }
   0x8   :  { %v79_v32 = vmax.f32 %v63_v20, 0.0  ;;  %v81_v38 = vmax.f32 %v65_v25, 0.0  ;;  %v82_v39 = vmax.f32 %v66_v26, 0.0  ;;  %v45_v40 = vmul.f32 %v112_v1, %v22_v22 }
   0x9   :  { %92 = vst [vmem:[%s257_s3] sm:$0xff] %v76_v23  ;;  %v80_v37 = vmax.f32 %v64_v24, 0.0  ;;  %93 = vst [vmem:[%s257_s3 + $0x8] sm:$0xff] %v77_v30  ;;  %v83_v42 = vmax.f32 %v67_v33, 0.0  ;;  %v46_v43 = vmul.f32 %v112_v1, %v23_v27  ;;  %v47_v44 = vmul.f32 %v112_v1, %v24_v28 }
   0xa   :  { %94 = vst [vmem:[%s257_s3 + $0x10] sm:$0xff] %v78_v31  ;;  %95 = vst [vmem:[%s257_s3 + $0x18] sm:$0xff] %v79_v32  ;;  %v48_v45 = vmul.f32 %v112_v1, %v25_v29  ;;  %v68_v46 = vadd.f32 %v143_v2, %v45_v40  ;;  %v49_v47 = vmul.f32 %v112_v1, %v26_v34 }
   0xb   :  { %96 = vst [vmem:[%s257_s3 + $0x20] sm:$0xff] %v80_v37  ;;  %97 = vst [vmem:[%s257_s3 + $0x28] sm:$0xff] %v81_v38  ;;  %v50_v48 = vmul.f32 %v112_v1, %v27_v35  ;;  %v51_v49 = vmul.f32 %v112_v1, %v28_v36  ;;  %v69_v50 = vadd.f32 %v143_v2, %v46_v43 }
   0xc   :  { %98 = vst [vmem:[%s257_s3 + $0x30] sm:$0xff] %v82_v39  ;;  %99 = vst [vmem:[%s257_s3 + $0x38] sm:$0xff] %v83_v42  ;;  %v70_v51 = vadd.f32 %v143_v2, %v47_v44  ;;  %v71_v52 = vadd.f32 %v143_v2, %v48_v45  ;;  %v52_v53 = vmul.f32 %v112_v1, %v29_v41  ;;  %v84_v54 = vmax.f32 %v68_v46, 0.0 }
   0xd   :  { %v72_v55 = vadd.f32 %v143_v2, %v49_v47  ;;  %v73_v56 = vadd.f32 %v143_v2, %v50_v48  ;;  %v74_v57 = vadd.f32 %v143_v2, %v51_v49  ;;  %v85_v58 = vmax.f32 %v69_v50, 0.0 }
   0xe   :  { %v86_v59 = vmax.f32 %v70_v51, 0.0  ;;  %v87_v60 = vmax.f32 %v71_v52, 0.0  ;;  %v75_v61 = vadd.f32 %v143_v2, %v52_v53  ;;  %100 = vst [vmem:[%s257_s3 + $0x40] sm:$0xff] %v84_v54 }
   0xf   :  { %v88_v62 = vmax.f32 %v72_v55, 0.0  ;;  %v89_v63 = vmax.f32 %v73_v56, 0.0  ;;  %v90_v0 = vmax.f32 %v74_v57, 0.0  ;;  %101 = vst [vmem:[%s257_s3 + $0x48] sm:$0xff] %v85_v58 }
  0x10   :  { %102 = vst [vmem:[%s257_s3 + $0x50] sm:$0xff] %v86_v59  ;;  %103 = vst [vmem:[%s257_s3 + $0x58] sm:$0xff] %v87_v60  ;;  %v91_v1 = vmax.f32 %v75_v61, 0.0 }
  0x11   :  { %104 = vst [vmem:[%s257_s3 + $0x60] sm:$0xff] %v88_v62  ;;  %105 = vst [vmem:[%s257_s3 + $0x68] sm:$0xff] %v89_v63 }
  0x12   :  { %106 = vst [vmem:[%s257_s3 + $0x70] sm:$0xff] %v90_v0  ;;  %107 = vst [vmem:[%s257_s3 + $0x78] sm:$0xff] %v91_v1 }

// kernel: tps_forward.11
= control target key start
LH: loop header
LB: loop body
LE: loop exit
PB: predicated region body
PF: predicated region fallthrough
CT: control target
= control target key end

     0   :  { %s1280_s15 = smov 0   ;;  %s1282_s16 = smov 0   ;;  %s1561_s0 = inlined_call_operand.vmem [shape: f32[2,10,10,16], index: 0, kind: input, shape index: {}]   ;;  %s1562_s1 = inlined_call_operand.vmem [shape: bf16[144,128], index: 1, kind: input, shape index: {}]   ;;  %s1563_s2 = inlined_call_operand.vmem [shape: f32[1,128], index: 2, kind: input, shape index: {}]   ;;  %s1564_s3 = inlined_call_operand.vmem [shape: f32[2,64,128], index: 3, kind: output, shape index: {0}]   ;;  %s1565_s4 = inlined_call_operand.vmem [shape: f32[2,1,2,128], index: 4, kind: output, shape index: {1}]  }
   0x1   :  { %s1284_s17 = smov 0  }
   0x2 LB: > { %s27_s18 = sadd.s32 1, %s1241_s16  ;;  %p953_p0 = scmp.ge.s32.totalorder %s1245_s17, 1  ;;  %s1245_s17 = sphi %s1284_s17, %s15_s17   ;;  %s1241_s16 = sphi %s1282_s16, %s1567_s16   ;;  %s1237_s15 = sphi %s1280_s15, %s1566_s15  }
   0x3   : > { %p29_p1 = scmp.ge.s32.totalorder %s27_s18, 2  ;;  %p181_p2 = scmp.lt.s32.totalorder %s1245_s17, 3 }
   0x5   : > { %s1569_s18 = smov (%p29_p1, %s27_s18), 0  ;;  %p182_p3 = pnand %p953_p0, %p181_p2 }
   0x6   : > { %p218_p4 = scmp.lt.s32.totalorder (!%p182_p3), %s1237_s15, 1  ;;  %s1248_s29 = smov (!%p182_p3), 48  }
   0x7   : > { %185 = sbr.rel (%p182_p3) target bundleno = 409 (0x199), region = 32  ;;  %s1249_s6 = smov (!%p182_p3), 16  }
   0x8   : > { %s1250_s7 = smov (!%p182_p3), 64   ;;  %s1251_s10 = smov (!%p182_p3), 32  }
   0x9   : > { %s1252_s11 = smov (!%p182_p3), 96   ;;  %s1253_s14 = smov (!%p182_p3), 80  }
   0xa   : > { %s1254_s21 = smov (!%p182_p3), 112  }
   0xc   : > { %v1214_v0 = vld [vmem:[%s1562_s1 + $0x38] sm:$0xff]   ;;  %v1247_v1 = vmov 0   ;;  %s1571_s15 = smov (!%p218_p4, %s1237_s15), 1  ;;  %v1215_v2 = vld [vmem:[%s1562_s1 + $0x30] sm:$0xff]   ;;  %v1216_v3 = vld [vmem:[%s1562_s1 + $0x28] sm:$0xff]   ;;  %vm546_vm0 = vcmask 130048  }
   0xd   : > { %708 = vmatprep.subr.bf16.mxu0 %v1247_v1  ;;  %1023 = vmatprep.subr.bf16.mxu1 %v1247_v1  ;;  %s1041_s23 = smul.u32 160, %s1571_s15  ;;  %v1217_v14 = vld [vmem:[%s1562_s1 + $0x20] sm:$0xff]   ;;  %v1218_v21 = vld [vmem:[%s1562_s1 + $0x18] sm:$0xff]   ;;  %v1219_v25 = vld [vmem:[%s1562_s1 + $0x10] sm:$0xff]   ;;  %vm555_vm1 = vcmask 261120   ;;  %vm564_vm2 = vcmask 392192  }
   0xe   : > { %709 = vmatpush1.bf16.msra.mxu0 %v1214_v0  ;;  %1032 = vmatpush1.bf16.msra.mxu1 %v1214_v0  ;;  %v1220_v29 = vld [vmem:[%s1562_s1 + $0x8] sm:$0xff]   ;;  %v1221_v35 = vld [vmem:[%s1562_s1] sm:$0xff]   ;;  %vm573_vm3 = vcmask 523264   ;;  %vm582_vm4 = vcmask 654336   ;;  %vm591_vm5 = vcmask 785408   ;;  %vm600_vm6 = vcmask 916480  }
   0xf   : > { %710 = vmatprep.subr.bf16.mxu0 %v1247_v1  ;;  %1024 = vmatprep.subr.bf16.mxu1 %v1247_v1  ;;  %s1314_s26 = scalar_lea.vmem %s1561_s0, %s1041_s23  ;;  %v1222_v40 = vld [vmem:[%s1562_s1 + $0x40] sm:$0xff]  }
  0x10   : > { %v1320_v4 = vld [vmem:[%s1314_s26 + $0x10] sm:$0xff]  ;;  %v1323_v5 = vld [vmem:[%s1314_s26 + $0x20] sm:$0xff] }
  0x11   : > { %v252_v6 = vld [vmem:[%s1314_s26 + $0x1] sm:$0xff]  ;;  %v1084_v7 = vpack.i.bf16 %v1323_v5, %v1320_v4  ;;  %v253_v8 = vld [vmem:[%s1314_s26 + $0x11] sm:$0xff] }
  0x12   : > { %711 = vmatpush1.bf16.msra.mxu0 %v1215_v2  ;;  %1033 = vmatpush1.bf16.msra.mxu1 %v1215_v2  ;;  %v967_v9 = vld [vmem:[%s1314_s26 + $0x21] sm:$0xff]  ;;  %v1074_v11 = vpack.i.bf16 %v253_v8, %v252_v6  ;;  %v261_v12 = vld [vmem:[%s1314_s26 + $0x12] sm:$0xff] }
  0x13   : > { %712 = vmatprep.subr.bf16.mxu0 %v1247_v1  ;;  %1025 = vmatprep.subr.bf16.mxu1 %v1247_v1  ;;  %v260_v10 = vld [vmem:[%s1314_s26 + $0x2] sm:$0xff]  ;;  %v1089_v13 = vpack.i.bf16 %v967_v9, %v253_v8  ;;  %v1340_v16 = vld [vmem:[%s1314_s26 + $0x30] sm:$0xff] }
  0x14   : > { %1085 = vrot.lane.b32.xlu1 %v1084_v7, %s1248_s29  ;;  %1075 = vrot.lane.b32.xlu0 %v1074_v11, %s1249_s6  ;;  %v1079_v15 = vpack.i.bf16 %v261_v12, %v260_v10  ;;  %v975_v17 = vld [vmem:[%s1314_s26 + $0x22] sm:$0xff]  ;;  %v1344_v18 = vld [vmem:[%s1314_s26 + $0x32] sm:$0xff]  ;;  %v1099_v20 = vpack.i.bf16 %v1340_v16, %v1323_v5 }
  0x15   : > { %v610_v19 = vpack.c.bf16 %v1344_v18, %v975_v17  ;;  %v1094_v22 = vpack.i.bf16 %v975_v17, %v261_v12  ;;  %v255_v23 = vld [vmem:[%s1314_s26 + $0x31] sm:$0xff]  ;;  %v256_v26 = vld [vmem:[%s1314_s26 + $0x41] sm:$0xff]  ;;  %v1119_v28 = vpack.i.bf16 %v1344_v18, %v975_v17 }
  0x16   : > { %713 = vmatpush1.bf16.msra.mxu0 %v1216_v3  ;;  %1034 = vmatpush1.bf16.msra.mxu1 %v1216_v3  ;;  %v1109_v24 = vpack.i.bf16 %v255_v23, %v967_v9  ;;  %v257_v27 = vld [vmem:[%s1314_s26 + $0x51] sm:$0xff]  ;;  %v1376_v31 = vld [vmem:[%s1314_s26 + $0x40] sm:$0xff]  ;;  %v1139_v39 = vpack.i.bf16 %v256_v26, %v255_v23 }
  0x17   : > { %714 = vmatprep.subr.bf16.mxu0 %v1247_v1  ;;  %1026 = vmatprep.subr.bf16.mxu1 %v1247_v1  ;;  %v1114_v30 = vpack.i.bf16 %v257_v27, %v256_v26  ;;  %v1380_v32 = vld [vmem:[%s1314_s26 + $0x42] sm:$0xff]  ;;  %v1383_v33 = vld [vmem:[%s1314_s26 + $0x52] sm:$0xff]  ;;  %v1129_v34 = vpack.i.bf16 %v1376_v31, %v1340_v16 }
  0x18   : > { %1090 = vrot.lane.b32.xlu1 %v1089_v13, %s1250_s7  ;;  %1080 = vrot.lane.b32.xlu0 %v1079_v15, %s1251_s10  ;;  %v1124_v36 = vpack.i.bf16 %v1383_v33, %v1380_v32  ;;  %v1397_v37 = vld [vmem:[%s1314_s26 + $0x50] sm:$0xff]  ;;  %v1400_v38 = vld [vmem:[%s1314_s26 + $0x60] sm:$0xff]  ;;  %v1149_v43 = vpack.i.bf16 %v1380_v32, %v1344_v18  ;;  %v612_v46 = vpack.c.bf16 %v1383_v33, %v1380_v32 }
  0x19   : > { %1016 = vmatprep.mubr.msk.bf16.mxu0 %vm546_vm0, %v610_v19  ;;  %v1134_v41 = vpack.i.bf16 %v1400_v38, %v1397_v37  ;;  %v971_v42 = vld [vmem:[%s1314_s26 + $0x61] sm:$0xff]  ;;  %v1159_v47 = vpack.i.bf16 %v1397_v37, %v1376_v31  ;;  %v267_v49 = vld [vmem:[%s1314_s26 + $0x72] sm:$0xff] }
  0x1a   : > { %715 = vmatpush1.bf16.msra.mxu0 %v1217_v14  ;;  %1035 = vmatpush1.bf16.msra.mxu1 %v1217_v14  ;;  %v1144_v44 = vpack.i.bf16 %v971_v42, %v257_v27  ;;  %v979_v45 = vld [vmem:[%s1314_s26 + $0x62] sm:$0xff]  ;;  %v1427_v50 = vld [vmem:[%s1314_s26 + $0x70] sm:$0xff] }
  0x1b   : > { %716 = vmatprep.subr.bf16.mxu0 %v1247_v1  ;;  %1027 = vmatprep.subr.bf16.mxu1 %v1247_v1  ;;  %v1154_v48 = vpack.i.bf16 %v979_v45, %v1383_v33  ;;  %v614_v51 = vpack.c.bf16 %v267_v49, %v979_v45  ;;  %v1164_v52 = vpack.i.bf16 %v1427_v50, %v1400_v38  ;;  %v995_v53 = vld [vmem:[%s1314_s26 + $0x71] sm:$0xff]  ;;  %v965_v55 = vld [vmem:[%s1314_s26 + $0x80] sm:$0xff] }
  0x1c   : > { %1100 = vrot.lane.b32.xlu1 %v1099_v20, %s1252_s11  ;;  %1095 = vrot.lane.b32.xlu0 %v1094_v22, %s1253_s14  ;;  %v1174_v54 = vpack.i.bf16 %v995_v53, %v971_v42  ;;  %v1189_v56 = vpack.i.bf16 %v965_v55, %v1427_v50  ;;  %v1184_v57 = vpack.i.bf16 %v267_v49, %v979_v45  ;;  %v1442_v58 = vld [vmem:[%s1314_s26 + $0x82] sm:$0xff]  ;;  %v1446_v60 = vld [vmem:[%s1314_s26 + $0x92] sm:$0xff] }
  0x1d   : > { %1018 = vmatprep.mubr.msk.bf16.mxu1 %vm546_vm0, %v614_v51  ;;  %v973_v59 = vld [vmem:[%s1314_s26 + $0x81] sm:$0xff]  ;;  %v616_v61 = vpack.c.bf16 %v1446_v60, %v1442_v58  ;;  %v1199_v62 = vpack.i.bf16 %v1442_v58, %v267_v49  ;;  %v997_v0 = vld [vmem:[%s1314_s26 + $0x91] sm:$0xff] }
  0x1e   : > { %717 = vmatpush1.bf16.msra.mxu0 %v1218_v21  ;;  %1036 = vmatpush1.bf16.msra.mxu1 %v1218_v21  ;;  %v1194_v63 = vpack.i.bf16 %v973_v59, %v995_v53  ;;  %v1209_v2 = vpack.i.bf16 %v997_v0, %v973_v59  ;;  %v244_v10 = vld [vmem:[%s1314_s26] sm:$0xff] }
  0x1f   : > { %718 = vmatprep.subr.bf16.mxu0 %v1247_v1  ;;  %1028 = vmatprep.subr.bf16.mxu1 %v1247_v1 }
  0x20   : > { %1110 = vrot.lane.b32.xlu1 %v1109_v24, %s1249_s6  ;;  %1105 = vrot.lane.b32.xlu0 %v1109_v24, %s1254_s21 }
  0x22   : > { %719 = vmatpush1.bf16.msra.mxu0 %v1219_v25  ;;  %1037 = vmatpush1.bf16.msra.mxu1 %v1219_v25 }
  0x23   : > { %720 = vmatprep.subr.bf16.mxu0 %v1247_v1  ;;  %1029 = vmatprep.subr.bf16.mxu1 %v1247_v1 }
  0x24   : > { %1120 = vrot.lane.b32.xlu1 %v1119_v28, %s1251_s10  ;;  %1115 = vrot.lane.b32.xlu0 %v1114_v30, %s1249_s6 }
  0x26   : > { %721 = vmatpush1.bf16.msra.mxu0 %v1220_v29  ;;  %1038 = vmatpush1.bf16.msra.mxu1 %v1220_v29 }
  0x27   : > { %722 = vmatprep.subr.bf16.mxu0 %v1247_v1  ;;  %1030 = vmatprep.subr.bf16.mxu1 %v1247_v1 }
  0x28   : > { %1130 = vrot.lane.b32.xlu1 %v1129_v34, %s1248_s29  ;;  %1125 = vrot.lane.b32.xlu0 %v1124_v36, %s1251_s10 }
  0x2a   : > { %723 = vmatpush1.bf16.msra.mxu0 %v1221_v35  ;;  %1039 = vmatpush1.bf16.msra.mxu1 %v1221_v35 }
  0x2b   : > { %738 = vmatprep.subr.bf16.mxu0 %v1247_v1  ;;  %1031 = vmatprep.subr.bf16.mxu1 %v1247_v1  ;;  %v989_v1 = vld [vmem:[%s1314_s26 + $0x90] sm:$0xff]  ;;  %s1022_s26 = sshll.u32 %s1571_s15, 6 }
  0x2c   : > { %1140 = vrot.lane.b32.xlu1 %v1139_v39, %s1250_s7  ;;  %1135 = vrot.lane.b32.xlu0 %v1134_v41, %s1248_s29  ;;  %v1204_v3 = vpack.i.bf16 %v989_v1, %v965_v55  ;;  %s1538_s5 = scalar_lea.vmem %s1564_s3, %s1022_s26 }
  0x2e   : > { %739 = vmatpush2.bf16.msra.mxu0 %v1222_v40  ;;  %1040 = vmatpush2.bf16.msra.mxu1 %v1222_v40 }
  0x30   : > { %1150 = vrot.lane.b32.xlu1 %v1149_v43, %s1253_s14  ;;  %1145 = vrot.lane.b32.xlu0 %v1144_v44, %s1250_s7 }
  0x34   : > { %1160 = vrot.lane.b32.xlu1 %v1159_v47, %s1252_s11  ;;  %1155 = vrot.lane.b32.xlu0 %v1154_v48, %s1253_s14 }
  0x38   : > { %1170 = vrot.lane.b32.xlu1 %v1114_v30, %s1254_s21  ;;  %1165 = vrot.lane.b32.xlu0 %v1164_v52, %s1252_s11 }
  0x3c   : > { %1180 = vrot.lane.b32.xlu1 %v1174_v54, %s1249_s6  ;;  %1175 = vrot.lane.b32.xlu0 %v1174_v54, %s1254_s21  ;;  %s957_s6 = sshll.u32 %s1571_s15, 1 }
  0x3d   : > { %s239_s9 = scalar_lea.vmem %s1565_s4, %s957_s6 }
  0x40   : > { %1190 = vrot.lane.b32.xlu1 %v1189_v56, %s1248_s29  ;;  %1185 = vrot.lane.b32.xlu0 %v1184_v57, %s1251_s10 }
  0x44   : > { %1200 = vrot.lane.b32.xlu1 %v1199_v62, %s1253_s14  ;;  %1195 = vrot.lane.b32.xlu0 %v1194_v63, %s1250_s7 }
  0x48   : > { %1210 = vrot.lane.b32.xlu1 %v1209_v2, %s1254_s21  ;;  %1205 = vrot.lane.b32.xlu0 %v1204_v3, %s1252_s11 }
  0x86   : > { %v1086_v6 = vpop.permute.xlu1 %1085  ;;  %v1076_v7 = vpop.permute.xlu0 %1075 }
  0x87   : > { %v1078_v8 = vunpack.i.h.bf16 %v1076_v7  ;;  %v1077_v9 = vunpack.i.l.bf16 %v1076_v7  ;;  %v1088_v18 = vunpack.i.h.bf16 %v1086_v6  ;;  %v1087_v19 = vunpack.i.l.bf16 %v1086_v6 }
  0x89   : > { %v547_v20 = vsel %vm546_vm0, %v244_v10, %v1077_v9  ;;  %v548_v21 = vsel %vm546_vm0, %v1320_v4, %v1078_v8 }
  0x8a   : > { %v1091_v11 = vpop.permute.xlu1 %1090  ;;  %v1081_v12 = vpop.permute.xlu0 %1080 }
  0x8b   : > { %v1093_v13 = vunpack.i.h.bf16 %v1091_v11  ;;  %v1092_v14 = vunpack.i.l.bf16 %v1091_v11  ;;  %v1083_v15 = vunpack.i.h.bf16 %v1081_v12  ;;  %v1082_v17 = vunpack.i.l.bf16 %v1081_v12 }
  0x8d   : > { %v556_v22 = vsel %vm555_vm1, %v547_v20, %v1082_v17  ;;  %v557_v23 = vsel %vm555_vm1, %v548_v21, %v1083_v15 }
  0x8e   : > { %v1101_v24 = vpop.permute.xlu1 %1100  ;;  %v565_v25 = vsel %vm564_vm2, %v556_v22, %v1087_v19  ;;  %v566_v26 = vsel %vm564_vm2, %v557_v23, %v1088_v18  ;;  %v1096_v27 = vpop.permute.xlu0 %1095 }
  0x8f   : > { %v1098_v28 = vunpack.i.h.bf16 %v1096_v27  ;;  %v1097_v29 = vunpack.i.l.bf16 %v1096_v27  ;;  %v574_v30 = vsel %vm573_vm3, %v565_v25, %v1092_v14  ;;  %v575_v34 = vsel %vm573_vm3, %v566_v26, %v1093_v13 }
  0x90   : > { %v1103_v35 = vunpack.i.h.bf16 %v1101_v24  ;;  %v1102_v36 = vunpack.i.l.bf16 %v1101_v24 }
  0x91   : > { %v583_v4 = vsel %vm582_vm4, %v574_v30, %v1097_v29  ;;  %v584_v39 = vsel %vm582_vm4, %v575_v34, %v1098_v28 }
  0x92   : > { %v1111_v40 = vpop.permute.xlu1 %1110  ;;  %v1106_v41 = vpop.permute.xlu0 %1105  ;;  %v592_v44 = vsel %vm591_vm5, %v583_v4, %v1102_v36  ;;  %v593_v45 = vsel %vm591_vm5, %v584_v39, %v1103_v35 }
  0x93   : > { %v1108_v42 = vunpack.i.h.bf16 %v1106_v41  ;;  %v1107_v43 = vunpack.i.l.bf16 %v1106_v41  ;;  %v1113_v57 = vunpack.i.h.bf16 %v1111_v40  ;;  %v1112_v59 = vunpack.i.l.bf16 %v1111_v40 }
  0x95   : > { %v601_v48 = vsel %vm600_vm6, %v592_v44, %v1107_v43  ;;  %v602_v49 = vsel %vm600_vm6, %v593_v45, %v1108_v42  ;;  %v549_v8 = vsel %vm546_vm0, %v1323_v5, %v1112_v59  ;;  %v550_v32 = vsel %vm546_vm0, %v1340_v16, %v1113_v57 }
  0x96   : > { %v1121_v47 = vpop.permute.xlu1 %1120  ;;  %v1116_v51 = vpop.permute.xlu0 %1115  ;;  %v609_v52 = vpack.c.bf16 %v602_v49, %v601_v48 }
  0x97   : > { %v1123_v62 = vunpack.i.h.bf16 %v1121_v47  ;;  %v1122_v63 = vunpack.i.l.bf16 %v1121_v47  ;;  %v1118_v1 = vunpack.i.h.bf16 %v1116_v51  ;;  %v1117_v2 = vunpack.i.l.bf16 %v1116_v51 }
  0x98   : > { %741 = vmatmul.mubr.bf16.vlgmr.msra.gmra.mxu0 %v609_v52 }
  0x99   : > { %1017 = vmatprep.mubr.msk.bf16.mxu0 %vm546_vm0, %v612_v46  ;;  %v558_v9 = vsel %vm555_vm1, %v549_v8, %v1122_v63  ;;  %v559_v10 = vsel %vm555_vm1, %v550_v32, %v1123_v62  ;;  %v551_v14 = vsel %vm546_vm0, %v1376_v31, %v1117_v2  ;;  %v552_v15 = vsel %vm546_vm0, %v1397_v37, %v1118_v1 }
  0x9a   : > { %v1131_v53 = vpop.permute.xlu1 %1130  ;;  %v1126_v54 = vpop.permute.xlu0 %1125 }
  0x9b   : > { %v1133_v6 = vunpack.i.h.bf16 %v1131_v53  ;;  %v1132_v7 = vunpack.i.l.bf16 %v1131_v53  ;;  %v1128_v33 = vunpack.i.h.bf16 %v1126_v54  ;;  %v1127_v46 = vunpack.i.l.bf16 %v1126_v54 }
  0x9d   : > { %v567_v16 = vsel %vm564_vm2, %v558_v9, %v1132_v7  ;;  %v568_v19 = vsel %vm564_vm2, %v559_v10, %v1133_v6  ;;  %v560_v22 = vsel %vm555_vm1, %v551_v14, %v1127_v46  ;;  %v561_v23 = vsel %vm555_vm1, %v552_v15, %v1128_v33 }
  0x9e   : > { %v1141_v55 = vpop.permute.xlu1 %1140  ;;  %v1136_v56 = vpop.permute.xlu0 %1135 }
  0x9f   : > { %v1143_v11 = vunpack.i.h.bf16 %v1141_v55  ;;  %v1142_v12 = vunpack.i.l.bf16 %v1141_v55  ;;  %v1138_v24 = vunpack.i.h.bf16 %v1136_v56  ;;  %v1137_v25 = vunpack.i.l.bf16 %v1136_v56 }
  0xa1   : > { %v576_v31 = vsel %vm573_vm3, %v567_v16, %v1142_v12  ;;  %v577_v26 = vsel %vm573_vm3, %v568_v19, %v1143_v11  ;;  %v569_v47 = vsel %vm564_vm2, %v560_v22, %v1137_v25  ;;  %v570_v48 = vsel %vm564_vm2, %v561_v23, %v1138_v24 }
  0xa2   : > { %v1151_v0 = vpop.permute.xlu1 %1150  ;;  %v1146_v3 = vpop.permute.xlu0 %1145 }
  0xa3   : > { %v1153_v17 = vunpack.i.h.bf16 %v1151_v0  ;;  %v1152_v5 = vunpack.i.l.bf16 %v1151_v0  ;;  %v1148_v37 = vunpack.i.h.bf16 %v1146_v3  ;;  %v1147_v27 = vunpack.i.l.bf16 %v1146_v3 }
  0xa5   : > { %v585_v29 = vsel %vm582_vm4, %v576_v31, %v1152_v5  ;;  %v586_v30 = vsel %vm582_vm4, %v577_v26, %v1153_v17  ;;  %v578_v52 = vsel %vm573_vm3, %v569_v47, %v1147_v27  ;;  %v579_v53 = vsel %vm573_vm3, %v570_v48, %v1148_v37 }
  0xa6   : > { %v1161_v13 = vpop.permute.xlu1 %1160  ;;  %v1156_v18 = vpop.permute.xlu0 %1155 }
  0xa7   : > { %v1163_v20 = vunpack.i.h.bf16 %v1161_v13  ;;  %v1162_v21 = vunpack.i.l.bf16 %v1161_v13  ;;  %v1158_v40 = vunpack.i.h.bf16 %v1156_v18  ;;  %v1157_v41 = vunpack.i.l.bf16 %v1156_v18 }
  0xa9   : > { %v594_v4 = vsel %vm591_vm5, %v585_v29, %v1162_v21  ;;  %v595_v39 = vsel %vm591_vm5, %v586_v30, %v1163_v20  ;;  %v587_v55 = vsel %vm582_vm4, %v578_v52, %v1157_v41  ;;  %v588_v56 = vsel %vm582_vm4, %v579_v53, %v1158_v40  ;;  %v1006_v29 = vld [vmem:[%s1563_s2] ss:$0 sm:$0xff] }
  0xaa   : > { %v1171_v28 = vpop.permute.xlu1 %1170  ;;  %v1166_v36 = vpop.permute.xlu0 %1165 }
  0xab   : > { %v1173_v34 = vunpack.i.h.bf16 %v1171_v28  ;;  %v1172_v35 = vunpack.i.l.bf16 %v1171_v28  ;;  %v1168_v42 = vunpack.i.h.bf16 %v1166_v36  ;;  %v1167_v43 = vunpack.i.l.bf16 %v1166_v36 }
  0xad   : > { %v603_v44 = vsel %vm600_vm6, %v594_v4, %v1172_v35  ;;  %v604_v45 = vsel %vm600_vm6, %v595_v39, %v1173_v34  ;;  %v596_v62 = vsel %vm591_vm5, %v587_v55, %v1167_v43  ;;  %v597_v63 = vsel %vm591_vm5, %v588_v56, %v1168_v42 }
  0xae   : > { %v1181_v49 = vpop.permute.xlu1 %1180  ;;  %v611_v51 = vpack.c.bf16 %v604_v45, %v603_v44  ;;  %v1176_v54 = vpop.permute.xlu0 %1175 }
  0xaf   : > { %v1178_v57 = vunpack.i.h.bf16 %v1176_v54  ;;  %v1177_v59 = vunpack.i.l.bf16 %v1176_v54  ;;  %v1183_v0 = vunpack.i.h.bf16 %v1181_v49  ;;  %v1182_v1 = vunpack.i.l.bf16 %v1181_v49 }
  0xb0   : > { %749 = vmatmul.mubr.bf16.gmra.mxu0 %v611_v51 }
  0xb1   : > { %v605_v3 = vsel %vm600_vm6, %v596_v62, %v1177_v59  ;;  %v606_v6 = vsel %vm600_vm6, %v597_v63, %v1178_v57  ;;  %v553_v46 = vsel %vm546_vm0, %v1400_v38, %v1182_v1  ;;  %v554_v9 = vsel %vm546_vm0, %v1427_v50, %v1183_v0 }
  0xb2   : > { %v1191_v2 = vpop.permute.xlu1 %1190  ;;  %v1186_v7 = vpop.permute.xlu0 %1185  ;;  %v613_v8 = vpack.c.bf16 %v606_v6, %v605_v3 }
  0xb3   : > { %v1188_v32 = vunpack.i.h.bf16 %v1186_v7  ;;  %v1187_v33 = vunpack.i.l.bf16 %v1186_v7  ;;  %v1193_v10 = vunpack.i.h.bf16 %v1191_v2  ;;  %v1192_v11 = vunpack.i.l.bf16 %v1191_v2 }
  0xb4   : > { %757 = vmatmul.mubr.bf16.vlgmr.msra.gmra.mxu1 %v613_v8 }
  0xb5   : > { %v562_v12 = vsel %vm555_vm1, %v553_v46, %v1187_v33  ;;  %v563_v13 = vsel %vm555_vm1, %v554_v9, %v1188_v32  ;;  %1019 = vmatprep.mubr.msk.bf16.mxu1 %vm546_vm0, %v616_v61 }
  0xb6   : > { %v1201_v14 = vpop.permute.xlu1 %1200  ;;  %v1196_v15 = vpop.permute.xlu0 %1195  ;;  %v571_v38 = vsel %vm564_vm2, %v562_v12, %v1192_v11  ;;  %v572_v50 = vsel %vm564_vm2, %v563_v13, %v1193_v10 }
  0xb7   : > { %v1198_v17 = vunpack.i.h.bf16 %v1196_v15  ;;  %v1197_v5 = vunpack.i.l.bf16 %v1196_v15  ;;  %v1203_v18 = vunpack.i.h.bf16 %v1201_v14  ;;  %v1202_v16 = vunpack.i.l.bf16 %v1201_v14 }
  0xb9   : > { %v580_v19 = vsel %vm573_vm3, %v571_v38, %v1197_v5  ;;  %v581_v20 = vsel %vm573_vm3, %v572_v50, %v1198_v17 }
  0xba   : > { %v1211_v21 = vpop.permute.xlu1 %1210  ;;  %v1206_v22 = vpop.permute.xlu0 %1205  ;;  %v589_v24 = vsel %vm582_vm4, %v580_v19, %v1202_v16  ;;  %v590_v25 = vsel %vm582_vm4, %v581_v20, %v1203_v18 }
  0xbb   : > { %v1213_v23 = vunpack.i.h.bf16 %v1211_v21  ;;  %v1212_v58 = vunpack.i.l.bf16 %v1211_v21  ;;  %v1208_v60 = vunpack.i.h.bf16 %v1206_v22  ;;  %v1207_v61 = vunpack.i.l.bf16 %v1206_v22 }
  0xbd   : > { %v598_v31 = vsel %vm591_vm5, %v589_v24, %v1207_v61  ;;  %v599_v26 = vsel %vm591_vm5, %v590_v25, %v1208_v60 }
  0xbe   : > { %v607_v37 = vsel %vm600_vm6, %v598_v31, %v1212_v58  ;;  %v608_v27 = vsel %vm600_vm6, %v599_v26, %v1213_v23 }
  0xbf   : > { %v615_v28 = vpack.c.bf16 %v608_v27, %v607_v37 }
  0xc1   : > { %765 = vmatmul.mubr.bf16.gmra.mxu1 %v615_v28 }
 0x158   : > { %v742_v30 = vpop.f32.mrf.mxu0 }
 0x159   : > { %v743_v34 = vadd.f32 %v1006_v29, %v742_v30 }
 0x15a   : > { %v744_v35 = vpop.f32.mrf.mxu0 }
 0x15b   : > { %773 = vst [vmem:[%s1538_s5] sm:$0xff] %v743_v34  ;;  %v795_v52 = vmul.f32 %v743_v34, %v743_v34 }
 0x15c   : > { %v745_v36 = vpop.f32.mrf.mxu0 }
 0x15d   : > { %v746_v4 = vadd.f32 %v1006_v29, %v745_v36 }
 0x15e   : > { %v747_v39 = vpop.f32.mrf.mxu0 }
 0x15f   : > { %774 = vst [vmem:[%s1538_s5 + $0x8] sm:$0xff] %v746_v4  ;;  %v796_v49 = vmul.f32 %v746_v4, %v746_v4  ;;  %v781_v53 = vadd.f32 %v746_v4, %v743_v34 }
 0x161   : > { %v803_v57 = vadd.f32 %v796_v49, %v795_v52 }
 0x170   : > { %v750_v40 = vpop.f32.mrf.mxu0 }
 0x171   : > { %v751_v41 = vadd.f32 %v1006_v29, %v750_v40 }
 0x172   : > { %v752_v42 = vpop.f32.mrf.mxu0 }
 0x173   : > { %775 = vst [vmem:[%s1538_s5 + $0x10] sm:$0xff] %v751_v41  ;;  %v797_v54 = vmul.f32 %v751_v41, %v751_v41  ;;  %v782_v59 = vadd.f32 %v781_v53, %v751_v41 }
 0x174   : > { %v753_v43 = vpop.f32.mrf.mxu0  ;;  %v758_v45 = vpop.f32.mrf.mxu1 }
 0x175   : > { %v754_v44 = vadd.f32 %v1006_v29, %v753_v43  ;;  %v759_v47 = vadd.f32 %v1006_v29, %v758_v45  ;;  %v804_v0 = vadd.f32 %v803_v57, %v797_v54 }
 0x176   : > { %v755_v48 = vpop.f32.mrf.mxu0  ;;  %v760_v51 = vpop.f32.mrf.mxu1 }
 0x177   : > { %776 = vst [vmem:[%s1538_s5 + $0x18] sm:$0xff] %v754_v44  ;;  %777 = vst [vmem:[%s1538_s5 + $0x20] sm:$0xff] %v759_v47  ;;  %v798_v62 = vmul.f32 %v754_v44, %v754_v44  ;;  %v783_v1 = vadd.f32 %v782_v59, %v754_v44  ;;  %v799_v6 = vmul.f32 %v759_v47, %v759_v47 }
 0x178   : > { %v761_v55 = vpop.f32.mrf.mxu1 }
 0x179   : > { %v762_v56 = vadd.f32 %v1006_v29, %v761_v55  ;;  %v805_v2 = vadd.f32 %v804_v0, %v798_v62  ;;  %v784_v3 = vadd.f32 %v783_v1, %v759_v47 }
 0x17a   : > { %v763_v63 = vpop.f32.mrf.mxu1 }
 0x17b   : > { %778 = vst [vmem:[%s1538_s5 + $0x28] sm:$0xff] %v762_v56  ;;  %v806_v8 = vadd.f32 %v805_v2, %v799_v6  ;;  %v800_v32 = vmul.f32 %v762_v56, %v762_v56  ;;  %v785_v9 = vadd.f32 %v784_v3, %v762_v56 }
 0x17d   : > { %v807_v12 = vadd.f32 %v806_v8, %v800_v32 }
 0x181   : > { %v766_v7 = vpop.f32.mrf.mxu1 }
 0x182   : > { %v767_v33 = vadd.f32 %v1006_v29, %v766_v7 }
 0x183   : > { %v768_v46 = vpop.f32.mrf.mxu1 }
 0x184   : > { %779 = vst [vmem:[%s1538_s5 + $0x30] sm:$0xff] %v767_v33  ;;  %v801_v10 = vmul.f32 %v767_v33, %v767_v33  ;;  %v786_v13 = vadd.f32 %v785_v9, %v767_v33 }
 0x185   : > { %v769_v11 = vpop.f32.mrf.mxu1 }
 0x186   : > { %v770_v14 = vadd.f32 %v1006_v29, %v769_v11  ;;  %v808_v17 = vadd.f32 %v807_v12, %v801_v10 }
 0x187   : > { %v771_v15 = vpop.f32.mrf.mxu1 }
 0x188   : > { %780 = vst [vmem:[%s1538_s5 + $0x38] sm:$0xff] %v770_v14  ;;  %v787_v5 = vadd.f32 %v786_v13, %v770_v14  ;;  %v802_v38 = vmul.f32 %v770_v14, %v770_v14 }
 0x18a   : > { %v788_v50 = vrot.slane %v787_v5, 4  ;;  %v809_v18 = vadd.f32 %v808_v17, %v802_v38 }
 0x18c   : > { %v789_v16 = vadd.f32 %v788_v50, %v787_v5  ;;  %v810_v19 = vrot.slane %v809_v18, 4 }
 0x18e   : > { %v790_v20 = vrot.slane %v789_v16, 2  ;;  %v811_v21 = vadd.f32 %v810_v19, %v809_v18 }
 0x190   : > { %v791_v22 = vadd.f32 %v790_v20, %v789_v16  ;;  %v812_v23 = vrot.slane %v811_v21, 2 }
 0x192   : > { %v792_v58 = vrot.slane %v791_v22, 1  ;;  %v813_v60 = vadd.f32 %v812_v23, %v811_v21 }
 0x194   : > { %v793_v61 = vadd.f32 %v792_v58, %v791_v22  ;;  %v814_v24 = vrot.slane %v813_v60, 1 }
 0x196   : > { %794 = vst [vmem:[%s239_s9] sm:$0x1] %v793_v61  ;;  %v815_v25 = vadd.f32 %v814_v24, %v813_v60 }
 0x198   : > { %816 = vst [vmem:[%s239_s9 + $0x1] sm:$0x1] %v815_v25 }
 0x199 PF: > { %s15_s17 = sadd.s32 1, %s1245_s17   ;;  %s1566_s15 = smov %s1241_s16 }
 0x19a   : > { %p12_p5 = scmp.ge.s32.totalorder %s15_s17, 4   ;;  %s1567_s16 = smov %s1569_s18 }
 0x19c   :  { %14 = sbr.rel (!%p12_p5) target bundleno = 2 (0x2), region = 77 }

// kernel: tps_forward.9
= control target key start
LH: loop header
LB: loop body
LE: loop exit
PB: predicated region body
PF: predicated region fallthrough
CT: control target
= control target key end

     0   :  { %s3381_s15 = smov 0   ;;  %s3383_s16 = smov 0   ;;  %s4534_s0 = inlined_call_operand.vmem [shape: f32[2,18,18,4], index: 0, kind: input, shape index: {}]   ;;  %s4535_s1 = inlined_call_operand.vmem [shape: bf16[36,128], index: 1, kind: input, shape index: {}]   ;;  %s4536_s2 = inlined_call_operand.vmem [shape: f32[1,128], index: 2, kind: input, shape index: {}]   ;;  %s4537_s3 = inlined_call_operand.vmem [shape: f32[2,256,128], index: 3, kind: output, shape index: {0}]   ;;  %s4538_s4 = inlined_call_operand.vmem [shape: f32[2,1,2,128], index: 4, kind: output, shape index: {1}]  }
   0x1   :  { %s3385_s17 = smov 0  }
   0x2 LB: > { %s27_s18 = sadd.s32 1, %s3342_s16  ;;  %p2359_p0 = scmp.ge.s32.totalorder %s3346_s17, 1  ;;  %s3346_s17 = sphi %s3385_s17, %s15_s17   ;;  %s3342_s16 = sphi %s3383_s16, %s4561_s16   ;;  %s3338_s15 = sphi %s3381_s15, %s4560_s15  }
   0x3   : > { %p29_p1 = scmp.ge.s32.totalorder %s27_s18, 2  ;;  %p181_p2 = scmp.lt.s32.totalorder %s3346_s17, 3 }
   0x5   : > { %s4563_s18 = smov (%p29_p1, %s27_s18), 0  ;;  %p182_p3 = pnand %p2359_p0, %p181_p2 }
   0x7   : > { %185 = sbr.rel (%p182_p3) target bundleno = 617 (0x269), region = 32 }
   0xc   : > { %p218_p4 = scmp.lt.s32.totalorder %s3338_s15, 1  ;;  %s3348_s23 = smov 4   ;;  %vm1918_vm0 = vcmask 1041408   ;;  %vm1562_vm1 = vcmask 31744   ;;  %vm1595_vm2 = vcmask 64512   ;;  %vm1628_vm3 = vcmask 97280  }
   0xd   : > { %s3349_s24 = smov 8   ;;  %s3350_s25 = smov 12   ;;  %vm1661_vm4 = vcmask 130048   ;;  %vm1694_vm5 = vcmask 162816   ;;  %vm1727_vm6 = vcmask 195584   ;;  %vm1760_vm7 = vcmask 228352  }
   0xe   : > { %s4565_s15 = smov (!%p218_p4, %s3338_s15), 1  ;;  %s3351_s28 = smov 16   ;;  %vm1793_vm8 = vcmask 261120   ;;  %vm1869_vm9 = vcmask 293888  }
   0xf   : > { %s2644_s19 = smul.u32 432, %s4565_s15  ;;  %s3352_s5 = smov 20  }
  0x10   : > { %s3353_s8 = smov 24   ;;  %s3354_s9 = smov 28  }
  0x11   : > { %s3405_s22 = scalar_lea.vmem %s4534_s0, %s2644_s19  ;;  %s3355_s10 = smov 32  }
  0x12   : > { %v280_v0 = vld [vmem:[%s3405_s22 + $0x31] sm:$0xff]  ;;  %v281_v1 = vld [vmem:[%s3405_s22 + $0x39] sm:$0xff]  ;;  %v276_v2 = vld [vmem:[%s3405_s22 + $0x1] sm:$0xff]  ;;  %s2578_s11 = sshll.u32 %s4565_s15, 8  ;;  %s2363_s21 = sshll.u32 %s4565_s15, 1 }
  0x13   : > { %v3410_v3 = vpack.i.bf16 %v281_v1, %v280_v0  ;;  %v277_v4 = vld [vmem:[%s3405_s22 + $0x9] sm:$0xff]  ;;  %v283_v6 = vld [vmem:[%s3405_s22 + $0x51] sm:$0xff]  ;;  %v278_v8 = vld [vmem:[%s3405_s22 + $0x19] sm:$0xff]  ;;  %s4455_s20 = scalar_lea.vmem %s4537_s3, %s2578_s11 }
  0x14   : > { %v282_v5 = vld [vmem:[%s3405_s22 + $0x49] sm:$0xff]  ;;  %v2677_v7 = vpack.i.bf16 %v277_v4, %v276_v2  ;;  %v279_v9 = vld [vmem:[%s3405_s22 + $0x21] sm:$0xff]  ;;  %v286_v12 = vld [vmem:[%s3405_s22 + $0x79] sm:$0xff] }
  0x15   : > { %2688 = vrot.lane.b32.xlu1 %v3410_v3, %s3348_s23  ;;  %v3419_v10 = vpack.i.bf16 %v283_v6, %v282_v5  ;;  %v3422_v11 = vpack.i.bf16 %v279_v9, %v278_v8  ;;  %v287_v13 = vld [vmem:[%s3405_s22 + $0x81] sm:$0xff]  ;;  %v285_v15 = vld [vmem:[%s3405_s22 + $0x69] sm:$0xff]  ;;  %v291_v19 = vld [vmem:[%s3405_s22 + $0xb1] sm:$0xff] }
  0x16   : > { %2678 = vrot.lane.b32.xlu0 %v2677_v7, %s3348_s23  ;;  %v284_v14 = vld [vmem:[%s3405_s22 + $0x61] sm:$0xff]  ;;  %v3430_v16 = vpack.i.bf16 %v287_v13, %v286_v12  ;;  %v290_v18 = vld [vmem:[%s3405_s22 + $0xa9] sm:$0xff]  ;;  %v288_v20 = vld [vmem:[%s3405_s22 + $0x91] sm:$0xff] }
  0x17   : > { %v3434_v17 = vpack.i.bf16 %v285_v15, %v284_v14  ;;  %v289_v21 = vld [vmem:[%s3405_s22 + $0x99] sm:$0xff]  ;;  %v3442_v22 = vpack.i.bf16 %v291_v19, %v290_v18  ;;  %v295_v25 = vld [vmem:[%s3405_s22 + $0xe1] sm:$0xff]  ;;  %v293_v27 = vld [vmem:[%s3405_s22 + $0xc9] sm:$0xff] }
  0x18   : > { %v3446_v23 = vpack.i.bf16 %v289_v21, %v288_v20  ;;  %v294_v24 = vld [vmem:[%s3405_s22 + $0xd9] sm:$0xff]  ;;  %v292_v26 = vld [vmem:[%s3405_s22 + $0xc1] sm:$0xff]  ;;  %v298_v30 = vld [vmem:[%s3405_s22 + $0x109] sm:$0xff] }
  0x19   : > { %2693 = vrot.lane.b32.xlu1 %v3419_v10, %s3348_s23  ;;  %v3454_v28 = vpack.i.bf16 %v295_v25, %v294_v24  ;;  %v3458_v29 = vpack.i.bf16 %v293_v27, %v292_v26  ;;  %v299_v31 = vld [vmem:[%s3405_s22 + $0x111] sm:$0xff]  ;;  %v297_v33 = vld [vmem:[%s3405_s22 + $0xf9] sm:$0xff]  ;;  %v303_v37 = vld [vmem:[%s3405_s22 + $0x141] sm:$0xff] }
  0x1a   : > { %2683 = vrot.lane.b32.xlu0 %v3422_v11, %s3348_s23  ;;  %v296_v32 = vld [vmem:[%s3405_s22 + $0xf1] sm:$0xff]  ;;  %v2732_v34 = vpack.i.bf16 %v299_v31, %v298_v30  ;;  %v302_v36 = vld [vmem:[%s3405_s22 + $0x139] sm:$0xff]  ;;  %v300_v38 = vld [vmem:[%s3405_s22 + $0x121] sm:$0xff] }
  0x1b   : > { %v3468_v35 = vpack.i.bf16 %v297_v33, %v296_v32  ;;  %v301_v39 = vld [vmem:[%s3405_s22 + $0x129] sm:$0xff]  ;;  %v2742_v40 = vpack.i.bf16 %v303_v37, %v302_v36  ;;  %v307_v43 = vld [vmem:[%s3405_s22 + $0x171] sm:$0xff]  ;;  %v305_v45 = vld [vmem:[%s3405_s22 + $0x159] sm:$0xff] }
  0x1c   : > { %v2737_v41 = vpack.i.bf16 %v301_v39, %v300_v38  ;;  %v306_v42 = vld [vmem:[%s3405_s22 + $0x169] sm:$0xff]  ;;  %v304_v44 = vld [vmem:[%s3405_s22 + $0x151] sm:$0xff]  ;;  %v310_v48 = vld [vmem:[%s3405_s22 + $0x1a] sm:$0xff] }
  0x1d   : > { %2703 = vrot.lane.b32.xlu1 %v3430_v16, %s3348_s23  ;;  %v2752_v46 = vpack.i.bf16 %v307_v43, %v306_v42  ;;  %v2747_v47 = vpack.i.bf16 %v305_v45, %v304_v44  ;;  %v311_v49 = vld [vmem:[%s3405_s22 + $0x22] sm:$0xff]  ;;  %v309_v51 = vld [vmem:[%s3405_s22 + $0xa] sm:$0xff]  ;;  %v315_v55 = vld [vmem:[%s3405_s22 + $0x52] sm:$0xff] }
  0x1e   : > { %2698 = vrot.lane.b32.xlu0 %v3434_v17, %s3348_s23  ;;  %v308_v50 = vld [vmem:[%s3405_s22 + $0x2] sm:$0xff]  ;;  %v3488_v52 = vpack.i.bf16 %v311_v49, %v310_v48  ;;  %v314_v54 = vld [vmem:[%s3405_s22 + $0x4a] sm:$0xff]  ;;  %v312_v56 = vld [vmem:[%s3405_s22 + $0x32] sm:$0xff] }
  0x1f   : > { %v2757_v53 = vpack.i.bf16 %v309_v51, %v308_v50  ;;  %v313_v57 = vld [vmem:[%s3405_s22 + $0x3a] sm:$0xff]  ;;  %v3497_v58 = vpack.i.bf16 %v315_v55, %v314_v54  ;;  %v319_v61 = vld [vmem:[%s3405_s22 + $0x82] sm:$0xff]  ;;  %v317_v63 = vld [vmem:[%s3405_s22 + $0x6a] sm:$0xff] }
  0x20   : > { %v3500_v59 = vpack.i.bf16 %v313_v57, %v312_v56  ;;  %v318_v60 = vld [vmem:[%s3405_s22 + $0x7a] sm:$0xff]  ;;  %v316_v62 = vld [vmem:[%s3405_s22 + $0x62] sm:$0xff]  ;;  %v322_v2 = vld [vmem:[%s3405_s22 + $0xaa] sm:$0xff] }
  0x21   : > { %2713 = vrot.lane.b32.xlu1 %v3442_v22, %s3348_s23  ;;  %v3508_v0 = vpack.i.bf16 %v319_v61, %v318_v60  ;;  %v3512_v1 = vpack.i.bf16 %v317_v63, %v316_v62  ;;  %v323_v4 = vld [vmem:[%s3405_s22 + $0xb2] sm:$0xff]  ;;  %v321_v6 = vld [vmem:[%s3405_s22 + $0x9a] sm:$0xff]  ;;  %v327_v12 = vld [vmem:[%s3405_s22 + $0xe2] sm:$0xff] }
  0x22   : > { %2708 = vrot.lane.b32.xlu0 %v3446_v23, %s3348_s23  ;;  %v320_v5 = vld [vmem:[%s3405_s22 + $0x92] sm:$0xff]  ;;  %v3520_v7 = vpack.i.bf16 %v323_v4, %v322_v2  ;;  %v326_v9 = vld [vmem:[%s3405_s22 + $0xda] sm:$0xff]  ;;  %v324_v13 = vld [vmem:[%s3405_s22 + $0xc2] sm:$0xff] }
  0x23   : > { %v3524_v8 = vpack.i.bf16 %v321_v6, %v320_v5  ;;  %v325_v14 = vld [vmem:[%s3405_s22 + $0xca] sm:$0xff]  ;;  %v3532_v15 = vpack.i.bf16 %v327_v12, %v326_v9  ;;  %v331_v20 = vld [vmem:[%s3405_s22 + $0x112] sm:$0xff]  ;;  %v329_v24 = vld [vmem:[%s3405_s22 + $0xfa] sm:$0xff] }
  0x24   : > { %v3536_v18 = vpack.i.bf16 %v325_v14, %v324_v13  ;;  %v330_v19 = vld [vmem:[%s3405_s22 + $0x10a] sm:$0xff]  ;;  %v328_v21 = vld [vmem:[%s3405_s22 + $0xf2] sm:$0xff]  ;;  %v334_v27 = vld [vmem:[%s3405_s22 + $0x13a] sm:$0xff] }
  0x25   : > { %2723 = vrot.lane.b32.xlu1 %v3454_v28, %s3348_s23  ;;  %v3544_v25 = vpack.i.bf16 %v331_v20, %v330_v19  ;;  %v3548_v26 = vpack.i.bf16 %v329_v24, %v328_v21  ;;  %v335_v30 = vld [vmem:[%s3405_s22 + $0x142] sm:$0xff]  ;;  %v333_v32 = vld [vmem:[%s3405_s22 + $0x12a] sm:$0xff]  ;;  %v339_v37 = vld [vmem:[%s3405_s22 + $0x172] sm:$0xff] }
  0x26   : > { %2718 = vrot.lane.b32.xlu0 %v3458_v29, %s3348_s23  ;;  %v332_v31 = vld [vmem:[%s3405_s22 + $0x122] sm:$0xff]  ;;  %v2822_v33 = vpack.i.bf16 %v335_v30, %v334_v27  ;;  %v338_v36 = vld [vmem:[%s3405_s22 + $0x16a] sm:$0xff]  ;;  %v336_v38 = vld [vmem:[%s3405_s22 + $0x152] sm:$0xff] }
  0x27   : > { %v337_v39 = vld [vmem:[%s3405_s22 + $0x15a] sm:$0xff]  ;;  %v3568_v42 = vld [vmem:[%s3405_s22 + $0x30] sm:$0xff]  ;;  %v2371_v49 = vld [vmem:[%s3405_s22 + $0x68] sm:$0xff] }
  0x28   : > { %v3571_v43 = vld [vmem:[%s3405_s22 + $0x38] sm:$0xff]  ;;  %v3577_v45 = vld [vmem:[%s3405_s22 + $0x20] sm:$0xff]  ;;  %v3588_v50 = vld [vmem:[%s3405_s22 + $0x48] sm:$0xff] }
  0x29   : > { %2733 = vrot.lane.b32.xlu1 %v2732_v34, %s3348_s23  ;;  %v3558_v34 = vpack.i.bf16 %v333_v32, %v332_v31  ;;  %v3574_v44 = vld [vmem:[%s3405_s22 + $0x18] sm:$0xff]  ;;  %v2370_v48 = vld [vmem:[%s3405_s22 + $0x60] sm:$0xff]  ;;  %v3591_v51 = vld [vmem:[%s3405_s22 + $0x50] sm:$0xff] }
  0x2a   : > { %2728 = vrot.lane.b32.xlu0 %v3468_v35, %s3348_s23  ;;  %v2847_v54 = vpack.i.bf16 %v3591_v51, %v3588_v50  ;;  %v2374_v55 = vld [vmem:[%s3405_s22 + $0x90] sm:$0xff]  ;;  %v2375_v56 = vld [vmem:[%s3405_s22 + $0x98] sm:$0xff]  ;;  %v3605_v60 = vld [vmem:[%s3405_s22 + $0x80] sm:$0xff] }
  0x2b   : > { %v3602_v57 = vld [vmem:[%s3405_s22 + $0x78] sm:$0xff]  ;;  %v3609_v61 = vpack.i.bf16 %v2375_v56, %v2374_v55  ;;  %v3615_v63 = vld [vmem:[%s3405_s22 + $0xc0] sm:$0xff]  ;;  %v3618_v2 = vld [vmem:[%s3405_s22 + $0xc8] sm:$0xff] }
  0x2c   : > { %v2857_v62 = vpack.i.bf16 %v3605_v60, %v3602_v57  ;;  %v3621_v4 = vld [vmem:[%s3405_s22 + $0xa8] sm:$0xff]  ;;  %v3624_v5 = vld [vmem:[%s3405_s22 + $0xb0] sm:$0xff]  ;;  %v3630_v6 = vpack.i.bf16 %v3618_v2, %v3615_v63  ;;  %v3641_v13 = vld [vmem:[%s3405_s22 + $0xf8] sm:$0xff] }
  0x2d   : > { %2743 = vrot.lane.b32.xlu1 %v2742_v40, %s3348_s23  ;;  %v2832_v40 = vpack.i.bf16 %v339_v37, %v338_v36  ;;  %v3635_v9 = vpack.i.bf16 %v3624_v5, %v3621_v4  ;;  %v3638_v12 = vld [vmem:[%s3405_s22 + $0xf0] sm:$0xff]  ;;  %v3644_v14 = vld [vmem:[%s3405_s22 + $0xd8] sm:$0xff]  ;;  %v3647_v19 = vld [vmem:[%s3405_s22 + $0xe0] sm:$0xff] }
  0x2e   : > { %2738 = vrot.lane.b32.xlu0 %v2737_v41, %s3348_s23  ;;  %v2827_v41 = vpack.i.bf16 %v337_v39, %v336_v38  ;;  %v3653_v20 = vpack.i.bf16 %v3641_v13, %v3638_v12  ;;  %v3659_v21 = vpack.i.bf16 %v3647_v19, %v3644_v14  ;;  %v3662_v24 = vld [vmem:[%s3405_s22 + $0x108] sm:$0xff]  ;;  %v3665_v27 = vld [vmem:[%s3405_s22 + $0x110] sm:$0xff] }
  0x2f   : > { %v3673_v30 = vpack.i.bf16 %v3665_v27, %v3662_v24  ;;  %v3317_v31 = vld [vmem:[%s4535_s1 + $0x10] ss:$0 sps:$4 sm:$0x33]  }
  0x30   : > { %2642 = vmatprep.subr.msk.bf16.mxu0 %vm1918_vm0, %v3317_v31  ;;  %v1920_v32 = vsel %vm1918_vm0, %v3317_v31, 0  ;;  %2643 = vmatprep.subr.msk.bf16.mxu1 %vm1918_vm0, %v3317_v31 }
  0x31   : > { %2753 = vrot.lane.b32.xlu1 %v2752_v46, %s3348_s23  ;;  %v2842_v46 = vpack.i.bf16 %v3571_v43, %v3568_v42  ;;  %2599 = vmatpush3.bf16.msra.mxu0 %v1920_v32 }
  0x32   : > { %2748 = vrot.lane.b32.xlu0 %v2747_v47, %s3348_s23  ;;  %v2837_v47 = vpack.i.bf16 %v3577_v45, %v3574_v44  ;;  %2639 = vmatpush3.bf16.msra.mxu1 %v1920_v32 }
  0x35   : > { %2763 = vrot.lane.b32.xlu1 %v3488_v52, %s3349_s24 }
  0x36   : > { %2758 = vrot.lane.b32.xlu0 %v2757_v53, %s3349_s24  ;;  %v3594_v53 = vpack.i.bf16 %v2371_v49, %v2370_v48 }
  0x39   : > { %2773 = vrot.lane.b32.xlu1 %v3497_v58, %s3349_s24 }
  0x3a   : > { %2768 = vrot.lane.b32.xlu0 %v3500_v59, %s3349_s24 }
  0x3d   : > { %2783 = vrot.lane.b32.xlu1 %v3508_v0, %s3349_s24 }
  0x3e   : > { %2778 = vrot.lane.b32.xlu0 %v3512_v1, %s3349_s24 }
  0x41   : > { %2793 = vrot.lane.b32.xlu1 %v3520_v7, %s3349_s24 }
  0x42   : > { %2788 = vrot.lane.b32.xlu0 %v3524_v8, %s3349_s24 }
  0x45   : > { %2803 = vrot.lane.b32.xlu1 %v3532_v15, %s3349_s24 }
  0x46   : > { %2798 = vrot.lane.b32.xlu0 %v3536_v18, %s3349_s24 }
  0x49   : > { %2813 = vrot.lane.b32.xlu1 %v3544_v25, %s3349_s24 }
  0x4a   : > { %2808 = vrot.lane.b32.xlu0 %v3548_v26, %s3349_s24 }
  0x4d   : > { %2823 = vrot.lane.b32.xlu1 %v2822_v33, %s3349_s24  ;;  %v3318_v33 = vld [vmem:[%s4535_s1 + $0x8] sm:$0xff]  }
  0x4e   : > { %2818 = vrot.lane.b32.xlu0 %v3558_v34, %s3349_s24  ;;  %2600 = vmatprep.subr.bf16.mxu0 %v3318_v33 }
  0x4f   : > { %2601 = vmatpush3.bf16.msra.mxu0 %v3318_v33  ;;  %2637 = vmatprep.subr.bf16.mxu1 %v3318_v33 }
  0x50   : > { %2640 = vmatpush3.bf16.msra.mxu1 %v3318_v33 }
  0x51   : > { %2833 = vrot.lane.b32.xlu1 %v2832_v40, %s3349_s24 }
  0x52   : > { %2828 = vrot.lane.b32.xlu0 %v2827_v41, %s3349_s24  ;;  %s239_s24 = scalar_lea.vmem %s4538_s4, %s2363_s21 }
  0x55   : > { %2843 = vrot.lane.b32.xlu1 %v2842_v46, %s3350_s25 }
  0x56   : > { %2838 = vrot.lane.b32.xlu0 %v2837_v47, %s3350_s25  ;;  %v3767_v47 = vld [vmem:[%s3405_s22 + $0x170] sm:$0xff] }
  0x59   : > { %2853 = vrot.lane.b32.xlu1 %v3594_v53, %s3350_s25 }
  0x5a   : > { %2848 = vrot.lane.b32.xlu0 %v2847_v54, %s3350_s25 }
  0x5d   : > { %2863 = vrot.lane.b32.xlu1 %v3609_v61, %s3350_s25 }
  0x5e   : > { %2858 = vrot.lane.b32.xlu0 %v2857_v62, %s3350_s25 }
  0x61   : > { %2873 = vrot.lane.b32.xlu1 %v3630_v6, %s3350_s25 }
  0x62   : > { %2868 = vrot.lane.b32.xlu0 %v3635_v9, %s3350_s25 }
  0x65   : > { %2883 = vrot.lane.b32.xlu1 %v3653_v20, %s3350_s25 }
  0x66   : > { %2878 = vrot.lane.b32.xlu0 %v3659_v21, %s3350_s25 }
  0x69   : > { %2893 = vrot.lane.b32.xlu1 %v3422_v11, %s3351_s28  ;;  %v3319_v11 = vld [vmem:[%s4535_s1] sm:$0xff]  }
  0x6a   : > { %2888 = vrot.lane.b32.xlu0 %v3673_v30, %s3350_s25  ;;  %2602 = vmatprep.subr.bf16.mxu0 %v3319_v11 }
  0x6b   : > { %2603 = vmatpush3.bf16.msra.mxu0 %v3319_v11  ;;  %2638 = vmatprep.subr.bf16.mxu1 %v3319_v11 }
  0x6c   : > { %2641 = vmatpush3.bf16.msra.mxu1 %v3319_v11 }
  0x6d   : > { %2903 = vrot.lane.b32.xlu1 %v3488_v52, %s3352_s5 }
  0x6e   : > { %2898 = vrot.lane.b32.xlu0 %v3410_v3, %s3351_s28 }
  0x71   : > { %2913 = vrot.lane.b32.xlu1 %v2842_v46, %s3353_s8  ;;  %v3764_v46 = vld [vmem:[%s3405_s22 + $0x168] sm:$0xff] }
  0x72   : > { %2908 = vrot.lane.b32.xlu0 %v3500_v59, %s3352_s5 }
  0x75   : > { %2923 = vrot.lane.b32.xlu1 %v3410_v3, %s3354_s9 }
  0x76   : > { %2918 = vrot.lane.b32.xlu0 %v2847_v54, %s3353_s8 }
  0x79   : > { %2933 = vrot.lane.b32.xlu1 %v3500_v59, %s3355_s10 }
  0x7a   : > { %2928 = vrot.lane.b32.xlu0 %v3419_v10, %s3354_s9 }
  0x7d   : > { %2943 = vrot.lane.b32.xlu1 %v3419_v10, %s3351_s28 }
  0x7e   : > { %2938 = vrot.lane.b32.xlu0 %v3497_v58, %s3355_s10 }
  0x81   : > { %2953 = vrot.lane.b32.xlu1 %v3497_v58, %s3352_s5 }
  0x82   : > { %2948 = vrot.lane.b32.xlu0 %v3434_v17, %s3351_s28 }
  0x85   : > { %2963 = vrot.lane.b32.xlu1 %v3594_v53, %s3353_s8 }
  0x86   : > { %2958 = vrot.lane.b32.xlu0 %v3512_v1, %s3352_s5 }
  0x87   : > { %v3714_v3 = vpop.permute.xlu1 %2688 }
  0x88   : > { %v3716_v52 = vpop.permute.xlu0 %2678 }
  0x89   : > { %2973 = vrot.lane.b32.xlu1 %v3434_v17, %s3354_s9 }
  0x8a   : > { %2968 = vrot.lane.b32.xlu0 %v2857_v62, %s3353_s8 }
  0x8b   : > { %v3721_v10 = vpop.permute.xlu1 %2693 }
  0x8c   : > { %v3723_v58 = vpop.permute.xlu0 %2683 }
  0x8d   : > { %2983 = vrot.lane.b32.xlu1 %v3512_v1, %s3355_s10 }
  0x8e   : > { %2978 = vrot.lane.b32.xlu0 %v3430_v16, %s3354_s9 }
  0x8f   : > { %v3729_v59 = vpop.permute.xlu1 %2703 }
  0x90   : > { %v3731_v36 = vpop.permute.xlu0 %2698 }
  0x91   : > { %2993 = vrot.lane.b32.xlu1 %v3430_v16, %s3351_s28 }
  0x92   : > { %2988 = vrot.lane.b32.xlu0 %v3508_v0, %s3355_s10 }
  0x93   : > { %v2714_v17 = vpop.permute.xlu1 %2713 }
  0x94   : > { %v3737_v37 = vpop.permute.xlu0 %2708  ;;  %v2715_v31 = vunpack.i.l.bf16 %v2714_v17 }
  0x95   : > { %4540 = vst [vmem:[#allocation2_spill] sm:$0xff] %v3737_v37  ;;  %3003 = vrot.lane.b32.xlu1 %v3508_v0, %s3352_s5 }
  0x96   : > { %2998 = vrot.lane.b32.xlu0 %v3446_v23, %s3351_s28 }
  0x97   : > { %v2724_v1 = vpop.permute.xlu1 %2723 }
  0x98   : > { %v2719_v38 = vpop.permute.xlu0 %2718  ;;  %v2726_v32 = vunpack.i.h.bf16 %v2724_v1  ;;  %v2725_v33 = vunpack.i.l.bf16 %v2724_v1 }
  0x99   : > { %3013 = vrot.lane.b32.xlu1 %v3609_v61, %s3353_s8  ;;  %v2720_v37 = vunpack.i.l.bf16 %v2719_v38 }
  0x9a   : > { %3008 = vrot.lane.b32.xlu0 %v3524_v8, %s3352_s5 }
  0x9b   : > { %v3747_v16 = vpop.permute.xlu1 %2733 }
  0x9c   : > { %v3749_v39 = vpop.permute.xlu0 %2728  ;;  %v2736_v1 = vunpack.i.h.bf16 %v3747_v16 }
  0x9d   : > { %3023 = vrot.lane.b32.xlu1 %v3446_v23, %s3354_s9 }
  0x9e   : > { %3018 = vrot.lane.b32.xlu0 %v3635_v9, %s3353_s8  ;;  %v2716_v9 = vunpack.i.h.bf16 %v2714_v17 }
  0x9f   : > { %v3755_v0 = vpop.permute.xlu1 %2743 }
  0xa0   : > { %v3757_v40 = vpop.permute.xlu0 %2738  ;;  %v1578_v17 = vsel %vm1562_vm1, %v3624_v5, %v2716_v9  ;;  %v1581_v5 = vsel %vm1562_vm1, %v3644_v14, %v2725_v33  ;;  %v2731_v14 = vunpack.i.h.bf16 %v3749_v39  ;;  %v2746_v33 = vunpack.i.h.bf16 %v3755_v0 }
  0xa1   : > { %3033 = vrot.lane.b32.xlu1 %v3524_v8, %s3355_s10 }
  0xa2   : > { %3028 = vrot.lane.b32.xlu0 %v3442_v22, %s3354_s9 }
  0xa3   : > { %v2754_v41 = vpop.permute.xlu1 %2753 }
  0xa4   : > { %v2756_v48 = vunpack.i.h.bf16 %v2754_v41  ;;  %v2755_v23 = vunpack.i.l.bf16 %v2754_v41  ;;  %v3769_v49 = vpop.permute.xlu0 %2748 }
  0xa5   : > { %3043 = vrot.lane.b32.xlu1 %v3442_v22, %s3351_s28 }
  0xa6   : > { %v3775_v53 = vsel %vm1562_vm1, %v3764_v46, %v2755_v23  ;;  %v3779_v8 = vsel %vm1562_vm1, %v3767_v47, %v2756_v48  ;;  %3038 = vrot.lane.b32.xlu0 %v3520_v7, %s3355_s10  ;;  %v1577_v48 = vsel %vm1562_vm1, %v3621_v4, %v2715_v31  ;;  %v2721_v23 = vunpack.i.h.bf16 %v2719_v38 }
  0xa7   : > { %v3783_v54 = vpop.permute.xlu1 %2763  ;;  %v2735_v4 = vunpack.i.l.bf16 %v3747_v16 }
  0xa8   : > { %v3785_v55 = vpop.permute.xlu0 %2758 }
  0xa9   : > { %3053 = vrot.lane.b32.xlu1 %v3520_v7, %s3352_s5 }
  0xaa   : > { %3048 = vrot.lane.b32.xlu0 %v3458_v29, %s3351_s28 }
  0xab   : > { %v3791_v22 = vpop.permute.xlu1 %2773 }
  0xac   : > { %v3793_v56 = vpop.permute.xlu0 %2768 }
  0xad   : > { %3063 = vrot.lane.b32.xlu1 %v3630_v6, %s3353_s8 }
  0xae   : > { %3058 = vrot.lane.b32.xlu0 %v3536_v18, %s3352_s5 }
  0xaf   : > { %v3799_v61 = vpop.permute.xlu1 %2783 }
  0xb0   : > { %v3801_v62 = vpop.permute.xlu0 %2778 }
  0xb1   : > { %3073 = vrot.lane.b32.xlu1 %v3458_v29, %s3354_s9 }
  0xb2   : > { %3068 = vrot.lane.b32.xlu0 %v3659_v21, %s3353_s8 }
  0xb3   : > { %v2794_v7 = vpop.permute.xlu1 %2793 }
  0xb4   : > { %v2796_v6 = vunpack.i.h.bf16 %v2794_v7  ;;  %v2795_v11 = vunpack.i.l.bf16 %v2794_v7  ;;  %v3807_v41 = vpop.permute.xlu0 %2788 }
  0xb5   : > { %3083 = vrot.lane.b32.xlu1 %v3536_v18, %s3355_s10  ;;  %v1582_v18 = vsel %vm1562_vm1, %v3647_v19, %v2726_v32  ;;  %v2730_v19 = vunpack.i.l.bf16 %v3749_v39 }
  0xb6   : > { %v3816_v29 = vsel %vm1595_vm2, %v1577_v48, %v2795_v11  ;;  %v3819_v21 = vsel %vm1595_vm2, %v1578_v17, %v2796_v6  ;;  %3078 = vrot.lane.b32.xlu0 %v3454_v28, %s3354_s9  ;;  %v1579_v6 = vsel %vm1562_vm1, %v3615_v63, %v2720_v37  ;;  %v1580_v11 = vsel %vm1562_vm1, %v3618_v2, %v2721_v23 }
  0xb7   : > { %v2804_v31 = vpop.permute.xlu1 %2803  ;;  %v1585_v63 = vsel %vm1562_vm1, %v3662_v24, %v2735_v4  ;;  %v2745_v23 = vunpack.i.l.bf16 %v3755_v0  ;;  %v3858_v24 = vld [vmem:[%s3405_s22 + $0x138] sm:$0xff]  ;;  %v3861_v4 = vld [vmem:[%s3405_s22 + $0x140] sm:$0xff]  ;;  %v1584_v0 = vsel %vm1562_vm1, %v3641_v13, %v2731_v14 }
  0xb8   : > { %v2806_v38 = vunpack.i.h.bf16 %v2804_v31  ;;  %v2805_v9 = vunpack.i.l.bf16 %v2804_v31  ;;  %v2799_v7 = vpop.permute.xlu0 %2798  ;;  %v1590_v14 = vsel %vm1562_vm1, %v3861_v4, %v2746_v33 }
  0xb9   : > { %v2801_v48 = vunpack.i.h.bf16 %v2799_v7  ;;  %v2800_v17 = vunpack.i.l.bf16 %v2799_v7  ;;  %3093 = vrot.lane.b32.xlu1 %v3454_v28, %s3351_s28  ;;  %v1586_v28 = vsel %vm1562_vm1, %v3665_v27, %v2736_v1  ;;  %v2741_v27 = vunpack.i.h.bf16 %v3757_v40 }
  0xba   : > { %v3838_v16 = vsel %vm1595_vm2, %v1581_v5, %v2805_v9  ;;  %v3841_v32 = vsel %vm1595_vm2, %v1582_v18, %v2806_v38  ;;  %3088 = vrot.lane.b32.xlu0 %v3532_v15, %s3355_s10  ;;  %v2740_v1 = vunpack.i.l.bf16 %v3757_v40  ;;  %v1583_v7 = vsel %vm1562_vm1, %v3638_v12, %v2730_v19 }
  0xbb   : > { %v3850_v2 = vsel %vm1595_vm2, %v1579_v6, %v2800_v17  ;;  %v3853_v37 = vsel %vm1595_vm2, %v1580_v11, %v2801_v48  ;;  %v2814_v39 = vpop.permute.xlu1 %2813  ;;  %v268_v6 = vld [vmem:[%s3405_s22 + $0x120] sm:$0xff]  ;;  %v269_v11 = vld [vmem:[%s3405_s22 + $0x128] sm:$0xff]  ;;  %v1589_v13 = vsel %vm1562_vm1, %v3858_v24, %v2745_v23  ;;  %v2751_v23 = vunpack.i.h.bf16 %v3769_v49 }
  0xbc   : > { %v2816_v31 = vunpack.i.h.bf16 %v2814_v39  ;;  %v2815_v5 = vunpack.i.l.bf16 %v2814_v39  ;;  %v2809_v18 = vpop.permute.xlu0 %2808  ;;  %v1587_v39 = vsel %vm1562_vm1, %v268_v6, %v2740_v1  ;;  %v2510_v1 = vld [vmem:[%s3405_s22 + $0x109] sm:$0xff] }
  0xbd   : > { %v2811_v38 = vunpack.i.h.bf16 %v2809_v18  ;;  %v2810_v9 = vunpack.i.l.bf16 %v2809_v18  ;;  %3103 = vrot.lane.b32.xlu1 %v3532_v15, %s3352_s5 }
  0xbe   : > { %v3874_v48 = vsel %vm1595_vm2, %v1585_v63, %v2815_v5  ;;  %v3877_v17 = vsel %vm1595_vm2, %v1586_v28, %v2816_v31  ;;  %3098 = vrot.lane.b32.xlu0 %v3468_v35, %s3351_s28  ;;  %v1588_v31 = vsel %vm1562_vm1, %v269_v11, %v2741_v27  ;;  %v2511_v27 = vld [vmem:[%s3405_s22 + $0x111] sm:$0xff] }
  0xbf   : > { %v3882_v40 = vsel %vm1595_vm2, %v1583_v7, %v2810_v9  ;;  %v3885_v15 = vsel %vm1595_vm2, %v1584_v0, %v2811_v38  ;;  %v2824_v12 = vpop.permute.xlu1 %2823  ;;  %v2750_v38 = vunpack.i.l.bf16 %v3769_v49  ;;  %v3908_v7 = vld [vmem:[%s3405_s22 + $0x150] sm:$0xff]  ;;  %v3911_v0 = vld [vmem:[%s3405_s22 + $0x158] sm:$0xff] }
  0xc0   : > { %v2826_v19 = vunpack.i.h.bf16 %v2824_v12  ;;  %v2825_v63 = vunpack.i.l.bf16 %v2824_v12  ;;  %v2819_v28 = vpop.permute.xlu0 %2818 }
  0xc1   : > { %v2821_v5 = vunpack.i.h.bf16 %v2819_v28  ;;  %v2820_v18 = vunpack.i.l.bf16 %v2819_v28  ;;  %3113 = vrot.lane.b32.xlu1 %v3653_v20, %s3353_s8 }
  0xc2   : > { %v3898_v33 = vsel %vm1595_vm2, %v1589_v13, %v2825_v63  ;;  %v3901_v9 = vsel %vm1595_vm2, %v1590_v14, %v2826_v19  ;;  %3108 = vrot.lane.b32.xlu0 %v3548_v26, %s3352_s5 }
  0xc3   : > { %4541 = vst [vmem:[#allocation3_spill] sm:$0xff] %v3898_v33  ;;  %4542 = vst [vmem:[#allocation4_spill] sm:$0xff] %v3901_v9  ;;  %v3914_v20 = vsel %vm1595_vm2, %v1587_v39, %v2820_v18  ;;  %v3917_v49 = vsel %vm1595_vm2, %v1588_v31, %v2821_v5  ;;  %v2834_v12 = vpop.permute.xlu1 %2833  ;;  %v3127_v9 = vpack.i.bf16 %v2511_v27, %v2510_v1 }
  0xc4   : > { %4543 = vst [vmem:[#allocation5_spill] sm:$0xff] %v3914_v20  ;;  %4544 = vst [vmem:[#allocation6_spill] sm:$0xff] %v3917_v49  ;;  %v2836_v13 = vunpack.i.h.bf16 %v2834_v12  ;;  %v2835_v63 = vunpack.i.l.bf16 %v2834_v12  ;;  %v2829_v14 = vpop.permute.xlu0 %2828  ;;  %v1591_v33 = vsel %vm1562_vm1, %v3908_v7, %v2750_v38  ;;  %v1592_v39 = vsel %vm1562_vm1, %v3911_v0, %v2751_v23 }
  0xc5   : > { %v2831_v19 = vunpack.i.h.bf16 %v2829_v14  ;;  %v2830_v28 = vunpack.i.l.bf16 %v2829_v14  ;;  %3123 = vrot.lane.b32.xlu1 %v3468_v35, %s3354_s9  ;;  %v2760_v20 = vunpack.i.l.bf16 %v3785_v55 }
  0xc6   : > { %v3927_v31 = vsel %vm1595_vm2, %v3775_v53, %v2835_v63  ;;  %v3931_v5 = vsel %vm1595_vm2, %v3779_v8, %v2836_v13  ;;  %3118 = vrot.lane.b32.xlu0 %v3673_v30, %s3353_s8  ;;  %v3142_v53 = vpack.i.bf16 %v269_v11, %v268_v6  ;;  %v2418_v8 = vld [vmem:[%s3405_s22 + $0x121] sm:$0xff]  ;;  %v2419_v30 = vld [vmem:[%s3405_s22 + $0x129] sm:$0xff] }
  0xc7   : > { %4545 = vst [vmem:[#allocation7_spill] sm:$0xff] %v3927_v31  ;;  %4546 = vst [vmem:[#allocation8_spill] sm:$0xff] %v3931_v5  ;;  %v3936_v35 = vsel %vm1595_vm2, %v1591_v33, %v2830_v28  ;;  %v3939_v18 = vsel %vm1595_vm2, %v1592_v39, %v2831_v19  ;;  %v3941_v23 = vpop.permute.xlu1 %2843  ;;  %v3152_v27 = vpack.i.bf16 %v2419_v30, %v2418_v8  ;;  %v2448_v13 = vld [vmem:[%s3405_s22 + $0x10a] sm:$0xff]  ;;  %v2514_v8 = vld [vmem:[%s3405_s22 + $0x139] sm:$0xff]  ;;  %v2765_v31 = vunpack.i.l.bf16 %v3783_v54 }
  0xc8   : > { %4547 = vst [vmem:[#allocation9_spill] sm:$0xff] %v3936_v35  ;;  %4548 = vst [vmem:[#allocation10_spill] sm:$0xff] %v3939_v18  ;;  %v3943_v38 = vpop.permute.xlu0 %2838  ;;  %v2515_v30 = vld [vmem:[%s3405_s22 + $0x141] sm:$0xff]  ;;  %v2454_v35 = vld [vmem:[%s3405_s22 + $0x152] sm:$0xff] }
  0xc9   : > { %3133 = vrot.lane.b32.xlu1 %v3548_v26, %s3355_s10  ;;  %v2449_v26 = vld [vmem:[%s3405_s22 + $0x112] sm:$0xff]  ;;  %v2455_v5 = vld [vmem:[%s3405_s22 + $0x15a] sm:$0xff] }
  0xca   : > { %3128 = vrot.lane.b32.xlu0 %v3127_v9, %s3354_s9  ;;  %v3157_v11 = vpack.i.bf16 %v2449_v26, %v2448_v13  ;;  %v4049_v49 = vpack.i.bf16 %v2455_v5, %v2454_v35 }
  0xcb   : > { %v3950_v1 = vpop.permute.xlu1 %2853 }
  0xcc   : > { %v3952_v33 = vpop.permute.xlu0 %2848 }
  0xcd   : > { %3143 = vrot.lane.b32.xlu1 %v3142_v53, %s3350_s25 }
  0xce   : > { %3138 = vrot.lane.b32.xlu0 %v3544_v25, %s3355_s10  ;;  %v3971_v25 = vpack.i.bf16 %v3861_v4, %v3858_v24 }
  0xcf   : > { %v3957_v12 = vpop.permute.xlu1 %2863 }
  0xd0   : > { %v3961_v6 = vpop.permute.xlu0 %2858 }
  0xd1   : > { %3153 = vrot.lane.b32.xlu1 %v3152_v27, %s3351_s28 }
  0xd2   : > { %3148 = vrot.lane.b32.xlu0 %v3127_v9, %s3351_s28 }
  0xd3   : > { %v2874_v63 = vpop.permute.xlu1 %2873 }
  0xd4   : > { %v2876_v14 = vunpack.i.h.bf16 %v2874_v63  ;;  %v2875_v19 = vunpack.i.l.bf16 %v2874_v63  ;;  %v3965_v28 = vpop.permute.xlu0 %2868 }
  0xd5   : > { %3163 = vrot.lane.b32.xlu1 %v3558_v34, %s3352_s5 }
  0xd6   : > { %v3975_v39 = vsel %vm1628_vm3, %v3816_v29, %v2875_v19  ;;  %v3979_v9 = vsel %vm1628_vm3, %v3819_v21, %v2876_v14  ;;  %3158 = vrot.lane.b32.xlu0 %v3157_v11, %s3352_s5  ;;  %v3986_v29 = vpack.i.bf16 %v2515_v30, %v2514_v8  ;;  %v2546_v14 = vld [vmem:[%s3405_s22 + $0x13a] sm:$0xff]  ;;  %v2547_v19 = vld [vmem:[%s3405_s22 + $0x142] sm:$0xff]  ;;  %v2545_v30 = vld [vmem:[%s3405_s22 + $0x12a] sm:$0xff] }
  0xd7   : > { %v2884_v13 = vpop.permute.xlu1 %2883 }
  0xd8   : > { %v2886_v34 = vunpack.i.h.bf16 %v2884_v13  ;;  %v2885_v24 = vunpack.i.l.bf16 %v2884_v13  ;;  %v2879_v4 = vpop.permute.xlu0 %2878 }
  0xd9   : > { %v2881_v26 = vunpack.i.h.bf16 %v2879_v4  ;;  %v2880_v63 = vunpack.i.l.bf16 %v2879_v4  ;;  %3173 = vrot.lane.b32.xlu1 %v3971_v25, %s3353_s8  ;;  %v4013_v4 = vpack.i.bf16 %v2547_v19, %v2546_v14  ;;  %v2681_v14 = vunpack.i.h.bf16 %v3716_v52 }
  0xda   : > { %v3990_v21 = vsel %vm1628_vm3, %v3838_v16, %v2885_v24  ;;  %v3994_v11 = vsel %vm1628_vm3, %v3841_v32, %v2886_v34  ;;  %3168 = vrot.lane.b32.xlu0 %v3142_v53, %s3353_s8  ;;  %v2544_v32 = vld [vmem:[%s3405_s22 + $0x122] sm:$0xff]  ;;  %v2680_v19 = vunpack.i.l.bf16 %v3716_v52  ;;  %v2766_v52 = vunpack.i.h.bf16 %v3783_v54 }
  0xdb   : > { %v4001_v13 = vsel %vm1628_vm3, %v3850_v2, %v2880_v63  ;;  %v4005_v8 = vsel %vm1628_vm3, %v3853_v37, %v2881_v26  ;;  %v4007_v16 = vpop.permute.xlu1 %2893  ;;  %v3187_v2 = vpack.i.bf16 %v2545_v30, %v2544_v32  ;;  %v2422_v37 = vld [vmem:[%s3405_s22 + $0x151] sm:$0xff]  ;;  %v2423_v26 = vld [vmem:[%s3405_s22 + $0x159] sm:$0xff]  ;;  %v245_v30 = vld [vmem:[%s3405_s22 + $0x8] sm:$0xff]  ;;  %v2846_v54 = vunpack.i.h.bf16 %v3941_v23 }
  0xdc   : > { %v2889_v34 = vpop.permute.xlu0 %2888  ;;  %v244_v32 = vld [vmem:[%s3405_s22] sm:$0xff] }
  0xdd   : > { %v2891_v24 = vunpack.i.h.bf16 %v2889_v34  ;;  %v2890_v53 = vunpack.i.l.bf16 %v2889_v34  ;;  %3183 = vrot.lane.b32.xlu1 %v3986_v29, %s3354_s9 }
  0xde   : > { %3178 = vrot.lane.b32.xlu0 %v3152_v27, %s3354_s9 }
  0xdf   : > { %v4020_v63 = vsel %vm1628_vm3, %v3882_v40, %v2890_v53  ;;  %v4024_v18 = vsel %vm1628_vm3, %v3885_v15, %v2891_v24  ;;  %v4026_v34 = vpop.permute.xlu1 %2903  ;;  %v2686_v40 = vunpack.i.h.bf16 %v3723_v58  ;;  %v2685_v53 = vunpack.i.l.bf16 %v3723_v58 }
  0xe0   : > { %4549 = vst [vmem:[#allocation11_spill] sm:$0xff] %v4024_v18  ;;  %v4032_v27 = vpop.permute.xlu0 %2898  ;;  %v4042_v15 = vpack.i.bf16 %v3911_v0, %v3908_v7  ;;  %v4044_v24 = vpack.i.bf16 %v2423_v26, %v2422_v37  ;;  %v2761_v58 = vunpack.i.h.bf16 %v3785_v55  ;;  %v4055_v7 = vpack.i.bf16 %v3767_v47, %v3764_v46 }
  0xe1   : > { %3193 = vrot.lane.b32.xlu1 %v4013_v4, %s3355_s10  ;;  %v1563_v0 = vsel %vm1562_vm1, %v244_v32, %v2680_v19  ;;  %v1564_v37 = vsel %vm1562_vm1, %v245_v30, %v2681_v14  ;;  %v1565_v35 = vsel %vm1562_vm1, %v3574_v44, %v2685_v53  ;;  %v1566_v55 = vsel %vm1562_vm1, %v3577_v45, %v2686_v40 }
  0xe2   : > { %3188 = vrot.lane.b32.xlu0 %v3187_v2, %s3355_s10  ;;  %v2845_v2 = vunpack.i.l.bf16 %v3941_v23  ;;  %v2841_v26 = vunpack.i.h.bf16 %v3943_v38  ;;  %v2840_v46 = vunpack.i.l.bf16 %v3943_v38  ;;  %v1598_v47 = vsel %vm1595_vm2, %v1565_v35, %v2765_v31 }
  0xe3   : > { %v2914_v18 = vpop.permute.xlu1 %2913  ;;  %v1599_v14 = vsel %vm1595_vm2, %v1566_v55, %v2766_v52  ;;  %v2896_v23 = vunpack.i.h.bf16 %v4007_v16  ;;  %v2895_v19 = vunpack.i.l.bf16 %v4007_v16  ;;  %v1596_v44 = vsel %vm1595_vm2, %v1563_v0, %v2760_v20 }
  0xe4   : > { %v2909_v5 = vpop.permute.xlu0 %2908  ;;  %v1597_v45 = vsel %vm1595_vm2, %v1564_v37, %v2761_v58  ;;  %v2906_v38 = vunpack.i.h.bf16 %v4026_v34  ;;  %v2905_v32 = vunpack.i.l.bf16 %v4026_v34  ;;  %v1631_v31 = vsel %vm1628_vm3, %v1598_v47, %v2845_v2 }
  0xe5   : > { %3203 = vrot.lane.b32.xlu1 %v4042_v15, %s3350_s25  ;;  %v1632_v40 = vsel %vm1628_vm3, %v1599_v14, %v2846_v54  ;;  %v2916_v53 = vunpack.i.h.bf16 %v2914_v18  ;;  %v2915_v52 = vunpack.i.l.bf16 %v2914_v18  ;;  %v1629_v35 = vsel %vm1628_vm3, %v1596_v44, %v2840_v46 }
  0xe6   : > { %3198 = vrot.lane.b32.xlu0 %v3971_v25, %s3350_s25  ;;  %v1630_v25 = vsel %vm1628_vm3, %v1597_v45, %v2841_v26  ;;  %v1662_v58 = vsel %vm1661_vm4, %v1629_v35, %v2895_v19  ;;  %v2901_v0 = vunpack.i.h.bf16 %v4032_v27  ;;  %v2900_v37 = vunpack.i.l.bf16 %v4032_v27 }
  0xe7   : > { %v2924_v30 = vpop.permute.xlu1 %2923  ;;  %v1663_v34 = vsel %vm1661_vm4, %v1630_v25, %v2896_v23  ;;  %v1695_v18 = vsel %vm1694_vm5, %v1662_v58, %v2905_v32  ;;  %v2911_v2 = vunpack.i.h.bf16 %v2909_v5  ;;  %v2910_v26 = vunpack.i.l.bf16 %v2909_v5 }
  0xe8   : > { %v2919_v16 = vpop.permute.xlu0 %2918  ;;  %v2926_v55 = vunpack.i.h.bf16 %v2924_v30  ;;  %v2925_v20 = vunpack.i.l.bf16 %v2924_v30  ;;  %v1696_v54 = vsel %vm1694_vm5, %v1663_v34, %v2906_v38  ;;  %v1728_v47 = vsel %vm1727_vm6, %v1695_v18, %v2915_v52  ;;  %v2518_v38 = vld [vmem:[%s3405_s22 + $0x169] sm:$0xff]  ;;  %v2519_v30 = vld [vmem:[%s3405_s22 + $0x171] sm:$0xff] }
  0xe9   : > { %3213 = vrot.lane.b32.xlu1 %v4044_v24, %s3351_s28  ;;  %v1729_v14 = vsel %vm1727_vm6, %v1696_v54, %v2916_v53  ;;  %v2921_v27 = vunpack.i.h.bf16 %v2919_v16  ;;  %v2920_v45 = vunpack.i.l.bf16 %v2919_v16  ;;  %v1664_v16 = vsel %vm1661_vm4, %v1631_v31, %v2900_v37 }
  0xea   : > { %3208 = vrot.lane.b32.xlu0 %v3986_v29, %s3351_s28  ;;  %v1761_v29 = vsel %vm1760_vm7, %v1728_v47, %v2925_v20  ;;  %v1762_v32 = vsel %vm1760_vm7, %v1729_v14, %v2926_v55  ;;  %v1665_v25 = vsel %vm1661_vm4, %v1632_v40, %v2901_v0  ;;  %v1697_v20 = vsel %vm1694_vm5, %v1664_v16, %v2910_v26  ;;  %v2550_v26 = vld [vmem:[%s3405_s22 + $0x16a] sm:$0xff] }
  0xeb   : > { %v2934_v46 = vpop.permute.xlu1 %2933  ;;  %v1698_v34 = vsel %vm1694_vm5, %v1665_v25, %v2911_v2  ;;  %v1730_v54 = vsel %vm1727_vm6, %v1697_v20, %v2920_v45  ;;  %v2691_v45 = vunpack.i.h.bf16 %v3714_v3  ;;  %v2776_v16 = vunpack.i.h.bf16 %v3791_v22 }
  0xec   : > { %v2936_v23 = vunpack.i.h.bf16 %v2934_v46  ;;  %v2935_v19 = vunpack.i.l.bf16 %v2934_v46  ;;  %v2929_v44 = vpop.permute.xlu0 %2928  ;;  %v1731_v31 = vsel %vm1727_vm6, %v1698_v34, %v2921_v27  ;;  %v2551_v46 = vld [vmem:[%s3405_s22 + $0x172] sm:$0xff]  ;;  %v2426_v27 = vld [vmem:[%s3405_s22 + $0x181] sm:$0xff]  ;;  %v2775_v25 = vunpack.i.l.bf16 %v3791_v22 }
  0xed   : > { %3223 = vrot.lane.b32.xlu1 %v4049_v49, %s3352_s5  ;;  %v2931_v5 = vunpack.i.h.bf16 %v2929_v44  ;;  %v2930_v35 = vunpack.i.l.bf16 %v2929_v44  ;;  %v2395_v44 = vld [vmem:[%s3405_s22 + $0x188] sm:$0xff]  ;;  %v1568_v22 = vsel %vm1562_vm1, %v3571_v43, %v2691_v45 }
  0xee   : > { %3218 = vrot.lane.b32.xlu0 %v4013_v4, %s3352_s5  ;;  %v1794_v53 = vsel %vm1793_vm8, %v1761_v29, %v2935_v19  ;;  %v1795_v52 = vsel %vm1793_vm8, %v1762_v32, %v2936_v23  ;;  %v4111_v4 = vpack.i.bf16 %v2519_v30, %v2518_v38  ;;  %v2394_v19 = vld [vmem:[%s3405_s22 + $0x180] sm:$0xff]  ;;  %v2690_v29 = vunpack.i.l.bf16 %v3714_v3  ;;  %v2427_v30 = vld [vmem:[%s3405_s22 + $0x189] sm:$0xff] }
  0xef   : > { %v4107_v58 = vpop.permute.xlu1 %2943  ;;  %v1826_v55 = vpack.c.bf16 %v1795_v52, %v1794_v53  ;;  %v1763_v37 = vsel %vm1760_vm7, %v1730_v54, %v2930_v35  ;;  %v1764_v2 = vsel %vm1760_vm7, %v1731_v31, %v2931_v5  ;;  %v2459_v5 = vld [vmem:[%s3405_s22 + $0x18a] sm:$0xff]  ;;  %v2696_v35 = vunpack.i.h.bf16 %v3721_v10 }
  0xf0   : > { %v2939_v18 = vpop.permute.xlu0 %2938  ;;  %v2695_v53 = vunpack.i.l.bf16 %v3721_v10  ;;  %v4142_v52 = vpack.i.bf16 %v2551_v46, %v2550_v26  ;;  %v4149_v3 = vpack.i.bf16 %v2395_v44, %v2394_v19  ;;  %v2770_v10 = vunpack.i.l.bf16 %v3793_v56 }
  0xf1   : > { %v2941_v40 = vunpack.i.h.bf16 %v2939_v18  ;;  %v2940_v0 = vunpack.i.l.bf16 %v2939_v18  ;;  %3233 = vrot.lane.b32.xlu1 %v4055_v7, %s3353_s8  ;;  %2604 = vmatprep.mubr.msk.bf16.mxu0 %vm1869_vm9, %v1826_v55  ;;  %v2771_v55 = vunpack.i.h.bf16 %v3793_v56  ;;  %v4153_v34 = vpack.i.bf16 %v2427_v30, %v2426_v27 }
  0xf2   : > { %3228 = vrot.lane.b32.xlu0 %v4042_v15, %s3353_s8  ;;  %v2458_v15 = vld [vmem:[%s3405_s22 + $0x182] sm:$0xff]  ;;  %v1567_v54 = vsel %vm1562_vm1, %v3568_v42, %v2690_v29  ;;  %v2855_v31 = vunpack.i.l.bf16 %v3950_v1  ;;  %v1570_v56 = vsel %vm1562_vm1, %v3591_v51, %v2696_v35  ;;  %v2945_v26 = vunpack.i.l.bf16 %v4107_v58 }
  0xf3   : > { %v1796_v47 = vsel %vm1793_vm8, %v1763_v37, %v2940_v0  ;;  %v1797_v14 = vsel %vm1793_vm8, %v1764_v2, %v2941_v40  ;;  %v4126_v23 = vpop.permute.xlu1 %2953  ;;  %v4155_v18 = vpack.i.bf16 %v2459_v5, %v2458_v15  ;;  %v1569_v0 = vsel %vm1562_vm1, %v3588_v50, %v2695_v53 }
  0xf4   : > { %v1827_v32 = vpack.c.bf16 %v1797_v14, %v1796_v47  ;;  %v4133_v38 = vpop.permute.xlu0 %2948  ;;  %v2851_v37 = vunpack.i.h.bf16 %v3952_v33  ;;  %v2850_v2 = vunpack.i.l.bf16 %v3952_v33  ;;  %v1602_v42 = vsel %vm1595_vm2, %v1569_v0, %v2775_v25 }
  0xf5   : > { %3243 = vrot.lane.b32.xlu1 %v4111_v4, %s3354_s9  ;;  %v1603_v43 = vsel %vm1595_vm2, %v1570_v56, %v2776_v16  ;;  %v1600_v50 = vsel %vm1595_vm2, %v1567_v54, %v2770_v10  ;;  %v1601_v51 = vsel %vm1595_vm2, %v1568_v22, %v2771_v55  ;;  %v2956_v33 = vunpack.i.h.bf16 %v4126_v23  ;;  %v2490_v56 = vld [vmem:[%s3405_s22 + $0x198] sm:$0xff] }
  0xf6   : > { %3238 = vrot.lane.b32.xlu0 %v4044_v24, %s3354_s9  ;;  %2605 = vmatmul.mubr.msk.bf16.vlgmr.msra.gmra.mxu0 %vm1869_vm9, %v1827_v32  ;;  %v2856_v24 = vunpack.i.h.bf16 %v3950_v1  ;;  %v2946_v1 = vunpack.i.h.bf16 %v4107_v58  ;;  %v2955_v46 = vunpack.i.l.bf16 %v4126_v23  ;;  %v1635_v14 = vsel %vm1628_vm3, %v1602_v42, %v2855_v31 }
  0xf7   : > { %v2964_v20 = vpop.permute.xlu1 %2963  ;;  %v1633_v58 = vsel %vm1628_vm3, %v1600_v50, %v2850_v2  ;;  %v2951_v15 = vunpack.i.h.bf16 %v4133_v38  ;;  %v2950_v5 = vunpack.i.l.bf16 %v4133_v38 }
  0xf8   : > { %v2959_v40 = vpop.permute.xlu0 %2958  ;;  %v1636_v19 = vsel %vm1628_vm3, %v1603_v43, %v2856_v24  ;;  %v2966_v44 = vunpack.i.h.bf16 %v2964_v20  ;;  %v2965_v27 = vunpack.i.l.bf16 %v2964_v20  ;;  %v1666_v30 = vsel %vm1661_vm4, %v1633_v58, %v2945_v26 }
  0xf9   : > { %3253 = vrot.lane.b32.xlu1 %v4142_v52, %s3355_s10  ;;  %v1699_v35 = vsel %vm1694_vm5, %v1666_v30, %v2955_v46  ;;  %v2961_v16 = vunpack.i.h.bf16 %v2959_v40  ;;  %v2960_v25 = vunpack.i.l.bf16 %v2959_v40  ;;  %v1669_v26 = vsel %vm1661_vm4, %v1636_v19, %v2951_v15 }
  0xfa   : > { %3248 = vrot.lane.b32.xlu0 %v4049_v49, %s3355_s10  ;;  %v1634_v49 = vsel %vm1628_vm3, %v1601_v51, %v2851_v37  ;;  %v1732_v10 = vsel %vm1727_vm6, %v1699_v35, %v2965_v27  ;;  %v2491_v37 = vld [vmem:[%s3405_s22 + $0x1a0] sm:$0xff]  ;;  %v2706_v15 = vunpack.i.h.bf16 %v3729_v59 }
  0xfb   : > { %v2974_v47 = vpop.permute.xlu1 %2973  ;;  %v1667_v23 = vsel %vm1661_vm4, %v1634_v49, %v2946_v1  ;;  %v1668_v1 = vsel %vm1661_vm4, %v1635_v14, %v2950_v5  ;;  %v1702_v46 = vsel %vm1694_vm5, %v1669_v26, %v2961_v16  ;;  %v2522_v49 = vld [vmem:[%s3405_s22 + $0x199] sm:$0xff]  ;;  %v2705_v5 = vunpack.i.l.bf16 %v3729_v59 }
  0xfc   : > { %v2969_v45 = vpop.permute.xlu0 %2968  ;;  %v2976_v29 = vunpack.i.h.bf16 %v2974_v47  ;;  %v2975_v32 = vunpack.i.l.bf16 %v2974_v47  ;;  %v1700_v53 = vsel %vm1694_vm5, %v1667_v23, %v2956_v33  ;;  %v1701_v33 = vsel %vm1694_vm5, %v1668_v1, %v2960_v25  ;;  %v2554_v16 = vld [vmem:[%s3405_s22 + $0x19a] sm:$0xff]  ;;  %v2555_v25 = vld [vmem:[%s3405_s22 + $0x1a2] sm:$0xff] }
  0xfd   : > { %3263 = vrot.lane.b32.xlu1 %v4149_v3, %s3350_s25  ;;  %v1733_v20 = vsel %vm1727_vm6, %v1700_v53, %v2966_v44  ;;  %v2971_v31 = vunpack.i.h.bf16 %v2969_v45  ;;  %v2970_v0 = vunpack.i.l.bf16 %v2969_v45  ;;  %v3292_v44 = vpack.i.bf16 %v2491_v37, %v2490_v56  ;;  %v3321_v37 = vld [vmem:[%s3405_s22 + $0x68] sm:$0xff] }
  0xfe   : > { %3258 = vrot.lane.b32.xlu0 %v4055_v7, %s3350_s25  ;;  %v1765_v38 = vsel %vm1760_vm7, %v1732_v10, %v2975_v32  ;;  %v1766_v7 = vsel %vm1760_vm7, %v1733_v20, %v2976_v29  ;;  %v2523_v29 = vld [vmem:[%s3405_s22 + $0x1a1] sm:$0xff]  ;;  %v2786_v20 = vunpack.i.h.bf16 %v3799_v61  ;;  %v2781_v59 = vunpack.i.h.bf16 %v3801_v62 }
  0xff   : > { %v2984_v55 = vpop.permute.xlu1 %2983  ;;  %v1734_v27 = vsel %vm1727_vm6, %v1701_v33, %v2970_v0  ;;  %v1735_v45 = vsel %vm1727_vm6, %v1702_v46, %v2971_v31  ;;  %v3302_v10 = vpack.i.bf16 %v2523_v29, %v2522_v49  ;;  %v2866_v31 = vunpack.i.h.bf16 %v3957_v12 }
 0x100   : > { %v2986_v54 = vunpack.i.h.bf16 %v2984_v55  ;;  %v2985_v22 = vunpack.i.l.bf16 %v2984_v55  ;;  %v2979_v24 = vpop.permute.xlu0 %2978  ;;  %v2701_v55 = vunpack.i.h.bf16 %v3731_v36 }
 0x101   : > { %3273 = vrot.lane.b32.xlu1 %v4153_v34, %s3351_s28  ;;  %v2981_v42 = vunpack.i.h.bf16 %v2979_v24  ;;  %v2980_v43 = vunpack.i.l.bf16 %v2979_v24 }
 0x102   : > { %v1798_v40 = vsel %vm1793_vm8, %v1765_v38, %v2985_v22  ;;  %v1799_v2 = vsel %vm1793_vm8, %v1766_v7, %v2986_v54  ;;  %3268 = vrot.lane.b32.xlu0 %v4111_v4, %s3351_s28  ;;  %v2785_v54 = vunpack.i.l.bf16 %v3799_v61  ;;  %v2780_v22 = vunpack.i.l.bf16 %v3801_v62 }
 0x103   : > { %v1828_v50 = vpack.c.bf16 %v1799_v2, %v1798_v40  ;;  %v4209_v51 = vpop.permute.xlu1 %2993  ;;  %v1767_v19 = vsel %vm1760_vm7, %v1734_v27, %v2980_v43  ;;  %v1768_v58 = vsel %vm1760_vm7, %v1735_v45, %v2981_v42  ;;  %v1573_v38 = vsel %vm1562_vm1, %v3602_v57, %v2705_v5 }
 0x104   : > { %v2989_v47 = vpop.permute.xlu0 %2988  ;;  %v1574_v7 = vsel %vm1562_vm1, %v3605_v60, %v2706_v15  ;;  %v2865_v61 = vunpack.i.l.bf16 %v3957_v12  ;;  %v1572_v40 = vsel %vm1562_vm1, %v3321_v37, %v2701_v55  ;;  %v2861_v62 = vunpack.i.h.bf16 %v3961_v6 }
 0x105   : > { %v2991_v4 = vunpack.i.h.bf16 %v2989_v47  ;;  %v2990_v14 = vunpack.i.l.bf16 %v2989_v47  ;;  %3283 = vrot.lane.b32.xlu1 %v4155_v18, %s3352_s5  ;;  %2608 = vmatprep.mubr.msk.bf16.mxu0 %vm1869_vm9, %v1828_v50  ;;  %v2860_v2 = vunpack.i.l.bf16 %v3961_v6  ;;  %v1606_v57 = vsel %vm1595_vm2, %v1573_v38, %v2785_v54 }
 0x106   : > { %3278 = vrot.lane.b32.xlu0 %v4142_v52, %s3352_s5  ;;  %v2700_v52 = vunpack.i.l.bf16 %v3731_v36  ;;  %v3312_v36 = vpack.i.bf16 %v2555_v25, %v2554_v16  ;;  %v1607_v60 = vsel %vm1595_vm2, %v1574_v7, %v2786_v20  ;;  %v2996_v42 = vunpack.i.h.bf16 %v4209_v51 }
 0x107   : > { %v1800_v32 = vsel %vm1793_vm8, %v1767_v19, %v2990_v14  ;;  %v1801_v30 = vsel %vm1793_vm8, %v1768_v58, %v2991_v4  ;;  %v3004_v23 = vpop.permute.xlu1 %3003  ;;  %v2995_v12 = vunpack.i.l.bf16 %v4209_v51  ;;  %v1605_v1 = vsel %vm1595_vm2, %v1572_v40, %v2781_v59 }
 0x108   : > { %v1829_v35 = vpack.c.bf16 %v1801_v30, %v1800_v32  ;;  %v4228_v53 = vpop.permute.xlu0 %2998  ;;  %v3006_v26 = vunpack.i.h.bf16 %v3004_v23  ;;  %v3005_v50 = vunpack.i.l.bf16 %v3004_v23  ;;  %v1639_v33 = vsel %vm1628_vm3, %v1606_v57, %v2865_v61 }
 0x109   : > { %3293 = vrot.lane.b32.xlu1 %v3292_v44, %s3353_s8  ;;  %v1640_v46 = vsel %vm1628_vm3, %v1607_v60, %v2866_v31  ;;  %v1638_v51 = vsel %vm1628_vm3, %v1605_v1, %v2861_v62  ;;  %v3001_v58 = vunpack.i.h.bf16 %v4228_v53  ;;  %v3000_v49 = vunpack.i.l.bf16 %v4228_v53  ;;  %v4550_v1 = vld [vmem:[#allocation2_spill] sm:$0xff] }
 0x10a   : > { %3288 = vrot.lane.b32.xlu0 %v4149_v3, %s3353_s8  ;;  %2609 = vmatmul.mubr.msk.bf16.gmra.mxu0 %vm1869_vm9, %v1829_v35  ;;  %v3320_v3 = vld [vmem:[%s3405_s22 + $0x60] sm:$0xff]  ;;  %v1671_v19 = vsel %vm1661_vm4, %v1638_v51, %v2996_v42 }
 0x10b   : > { %v3014_v24 = vpop.permute.xlu1 %3013  ;;  %v1571_v56 = vsel %vm1562_vm1, %v3320_v3, %v2700_v52  ;;  %v1704_v32 = vsel %vm1694_vm5, %v1671_v19, %v3006_v26  ;;  %v2711_v26 = vunpack.i.h.bf16 %v4550_v1 }
 0x10c   : > { %v3009_v0 = vpop.permute.xlu0 %3008  ;;  %v1604_v43 = vsel %vm1595_vm2, %v1571_v56, %v2780_v22  ;;  %v3016_v47 = vunpack.i.h.bf16 %v3014_v24  ;;  %v3015_v44 = vunpack.i.l.bf16 %v3014_v24  ;;  %v1672_v24 = vsel %vm1661_vm4, %v1639_v33, %v3000_v49 }
 0x10d   : > { %3303 = vrot.lane.b32.xlu1 %v3302_v10, %s3354_s9  ;;  %v1637_v45 = vsel %vm1628_vm3, %v1604_v43, %v2860_v2  ;;  %v3011_v30 = vunpack.i.h.bf16 %v3009_v0  ;;  %v3010_v23 = vunpack.i.l.bf16 %v3009_v0  ;;  %v2791_v33 = vunpack.i.h.bf16 %v3807_v41 }
 0x10e   : > { %3298 = vrot.lane.b32.xlu0 %v4153_v34, %s3354_s9  ;;  %v1670_v14 = vsel %vm1661_vm4, %v1637_v45, %v2995_v12  ;;  %v1737_v35 = vsel %vm1727_vm6, %v1704_v32, %v3016_v47 }
 0x10f   : > { %v3024_v6 = vpop.permute.xlu1 %3023  ;;  %v1703_v29 = vsel %vm1694_vm5, %v1670_v14, %v3005_v50  ;;  %v1705_v31 = vsel %vm1694_vm5, %v1672_v24, %v3010_v23  ;;  %v2710_v50 = vunpack.i.l.bf16 %v4550_v1  ;;  %v3323_v14 = vld [vmem:[%s3405_s22 + $0x98] sm:$0xff] }
 0x110   : > { %v3019_v27 = vpop.permute.xlu0 %3018  ;;  %v3026_v4 = vunpack.i.h.bf16 %v3024_v6  ;;  %v3025_v34 = vunpack.i.l.bf16 %v3024_v6  ;;  %v1736_v5 = vsel %vm1727_vm6, %v1703_v29, %v3015_v44  ;;  %v2871_v44 = vunpack.i.h.bf16 %v3965_v28 }
 0x111   : > { %3313 = vrot.lane.b32.xlu1 %v3312_v36, %s3355_s10  ;;  %v3021_v10 = vunpack.i.h.bf16 %v3019_v27  ;;  %v1673_v36 = vsel %vm1661_vm4, %v1640_v46, %v3001_v58  ;;  %v2790_v46 = vunpack.i.l.bf16 %v3807_v41  ;;  %v1576_v19 = vsel %vm1562_vm1, %v3323_v14, %v2711_v26 }
 0x112   : > { %3308 = vrot.lane.b32.xlu0 %v4155_v18, %s3355_s10  ;;  %v1769_v52 = vsel %vm1760_vm7, %v1736_v5, %v3025_v34  ;;  %v1770_v53 = vsel %vm1760_vm7, %v1737_v35, %v3026_v4  ;;  %v3020_v18 = vunpack.i.l.bf16 %v3019_v27  ;;  %v1706_v61 = vsel %vm1694_vm5, %v1673_v36, %v3011_v30  ;;  %v3322_v4 = vld [vmem:[%s3405_s22 + $0x90] sm:$0xff] }
 0x113   : > { %v3034_v15 = vpop.permute.xlu1 %3033  ;;  %v1739_v56 = vsel %vm1727_vm6, %v1706_v61, %v3021_v10  ;;  %v2870_v27 = vunpack.i.l.bf16 %v3965_v28  ;;  %v1575_v34 = vsel %vm1562_vm1, %v3322_v4, %v2710_v50  ;;  %v1609_v41 = vsel %vm1595_vm2, %v1576_v19, %v2791_v33 }
 0x114   : > { %v3036_v16 = vunpack.i.h.bf16 %v3034_v15  ;;  %v3035_v25 = vunpack.i.l.bf16 %v3034_v15  ;;  %v3029_v55 = vpop.permute.xlu0 %3028  ;;  %v1738_v3 = vsel %vm1727_vm6, %v1705_v31, %v3020_v18  ;;  %v1608_v32 = vsel %vm1595_vm2, %v1575_v34, %v2790_v46 }
 0x115   : > { %v3031_v59 = vunpack.i.h.bf16 %v3029_v55  ;;  %v3030_v22 = vunpack.i.l.bf16 %v3029_v55  ;;  %v1641_v28 = vsel %vm1628_vm3, %v1608_v32, %v2870_v27  ;;  %v1642_v5 = vsel %vm1628_vm3, %v1609_v41, %v2871_v44 }
 0x116   : > { %v1802_v20 = vsel %vm1793_vm8, %v1769_v52, %v3035_v25  ;;  %v1803_v54 = vsel %vm1793_vm8, %v1770_v53, %v3036_v16 }
 0x117   : > { %v1830_v38 = vpack.c.bf16 %v1803_v54, %v1802_v20  ;;  %v3044_v7 = vpop.permute.xlu1 %3043  ;;  %v1771_v62 = vsel %vm1760_vm7, %v1738_v3, %v3030_v22  ;;  %v1772_v2 = vsel %vm1760_vm7, %v1739_v56, %v3031_v59 }
 0x118   : > { %v3039_v0 = vpop.permute.xlu0 %3038  ;;  %v3046_v45 = vunpack.i.h.bf16 %v3044_v7  ;;  %v3045_v51 = vunpack.i.l.bf16 %v3044_v7 }
 0x119   : > { %v3041_v37 = vunpack.i.h.bf16 %v3039_v0  ;;  %v3040_v40 = vunpack.i.l.bf16 %v3039_v0  ;;  %2612 = vmatprep.mubr.msk.bf16.mxu0 %vm1869_vm9, %v1830_v38 }
 0x11a   : > { %v1674_v25 = vsel %vm1661_vm4, %v1641_v28, %v3045_v51  ;;  %v1675_v55 = vsel %vm1661_vm4, %v1642_v5, %v3046_v45 }
 0x11b   : > { %v1804_v57 = vsel %vm1793_vm8, %v1771_v62, %v3040_v40  ;;  %v1805_v60 = vsel %vm1793_vm8, %v1772_v2, %v3041_v37  ;;  %v3054_v42 = vpop.permute.xlu1 %3053 }
 0x11c   : > { %v1831_v12 = vpack.c.bf16 %v1805_v60, %v1804_v57  ;;  %v3049_v43 = vpop.permute.xlu0 %3048  ;;  %v3056_v58 = vunpack.i.h.bf16 %v3054_v42  ;;  %v3055_v49 = vunpack.i.l.bf16 %v3054_v42 }
 0x11d   : > { %v3051_v52 = vunpack.i.h.bf16 %v3049_v43  ;;  %v3050_v53 = vunpack.i.l.bf16 %v3049_v43 }
 0x11e   : > { %2613 = vmatmul.mubr.msk.bf16.gmra.mxu0 %vm1869_vm9, %v1831_v12  ;;  %v1707_v10 = vsel %vm1694_vm5, %v1674_v25, %v3055_v49  ;;  %v1708_v18 = vsel %vm1694_vm5, %v1675_v55, %v3056_v58 }
 0x11f   : > { %v3064_v6 = vpop.permute.xlu1 %3063  ;;  %v1676_v2 = vsel %vm1661_vm4, %v3975_v39, %v3050_v53  ;;  %v1677_v57 = vsel %vm1661_vm4, %v3979_v9, %v3051_v52 }
 0x120   : > { %v3059_v47 = vpop.permute.xlu0 %3058  ;;  %v3066_v30 = vunpack.i.h.bf16 %v3064_v6  ;;  %v3065_v23 = vunpack.i.l.bf16 %v3064_v6 }
 0x121   : > { %v3061_v20 = vunpack.i.h.bf16 %v3059_v47  ;;  %v3060_v54 = vunpack.i.l.bf16 %v3059_v47 }
 0x122   : > { %v1740_v22 = vsel %vm1727_vm6, %v1707_v10, %v3065_v23  ;;  %v1741_v24 = vsel %vm1727_vm6, %v1708_v18, %v3066_v30 }
 0x123   : > { %v3074_v29 = vpop.permute.xlu1 %3073  ;;  %v1709_v12 = vsel %vm1694_vm5, %v1676_v2, %v3060_v54  ;;  %v1710_v43 = vsel %vm1694_vm5, %v1677_v57, %v3061_v20 }
 0x124   : > { %v3069_v15 = vpop.permute.xlu0 %3068  ;;  %v3076_v35 = vunpack.i.h.bf16 %v3074_v29  ;;  %v3075_v16 = vunpack.i.l.bf16 %v3074_v29 }
 0x125   : > { %v3071_v0 = vunpack.i.h.bf16 %v3069_v15  ;;  %v3070_v3 = vunpack.i.l.bf16 %v3069_v15 }
 0x126   : > { %v1773_v31 = vsel %vm1760_vm7, %v1740_v22, %v3075_v16  ;;  %v1774_v61 = vsel %vm1760_vm7, %v1741_v24, %v3076_v35 }
 0x127   : > { %v3084_v59 = vpop.permute.xlu1 %3083  ;;  %v1742_v26 = vsel %vm1727_vm6, %v1709_v12, %v3070_v3  ;;  %v1743_v50 = vsel %vm1727_vm6, %v1710_v43, %v3071_v0 }
 0x128   : > { %v3086_v36 = vunpack.i.h.bf16 %v3084_v59  ;;  %v3085_v38 = vunpack.i.l.bf16 %v3084_v59  ;;  %v3079_v7 = vpop.permute.xlu0 %3078 }
 0x129   : > { %v3081_v40 = vunpack.i.h.bf16 %v3079_v7  ;;  %v3080_v62 = vunpack.i.l.bf16 %v3079_v7 }
 0x12a   : > { %v1806_v56 = vsel %vm1793_vm8, %v1773_v31, %v3085_v38  ;;  %v1807_v37 = vsel %vm1793_vm8, %v1774_v61, %v3086_v36 }
 0x12b   : > { %v1832_v60 = vpack.c.bf16 %v1807_v37, %v1806_v56  ;;  %v3094_v42 = vpop.permute.xlu1 %3093  ;;  %v1775_v39 = vsel %vm1760_vm7, %v1742_v26, %v3080_v62  ;;  %v1776_v46 = vsel %vm1760_vm7, %v1743_v50, %v3081_v40 }
 0x12c   : > { %v3089_v1 = vpop.permute.xlu0 %3088  ;;  %v3096_v34 = vunpack.i.h.bf16 %v3094_v42  ;;  %v3095_v14 = vunpack.i.l.bf16 %v3094_v42 }
 0x12d   : > { %v3091_v6 = vunpack.i.h.bf16 %v3089_v1  ;;  %v3090_v33 = vunpack.i.l.bf16 %v3089_v1  ;;  %2616 = vmatprep.mubr.msk.bf16.mxu0 %vm1869_vm9, %v1832_v60 }
 0x12e   : > { %v1678_v15 = vsel %vm1661_vm4, %v4001_v13, %v3095_v14  ;;  %v1679_v28 = vsel %vm1661_vm4, %v4005_v8, %v3096_v34 }
 0x12f   : > { %v1808_v9 = vsel %vm1793_vm8, %v1775_v39, %v3090_v33  ;;  %v1809_v47 = vsel %vm1793_vm8, %v1776_v46, %v3091_v6  ;;  %v3104_v44 = vpop.permute.xlu1 %3103 }
 0x130   : > { %v1833_v27 = vpack.c.bf16 %v1809_v47, %v1808_v9  ;;  %v3099_v45 = vpop.permute.xlu0 %3098  ;;  %v3106_v19 = vunpack.i.h.bf16 %v3104_v44  ;;  %v3105_v58 = vunpack.i.l.bf16 %v3104_v44 }
 0x131   : > { %v3101_v5 = vunpack.i.h.bf16 %v3099_v45  ;;  %v3100_v35 = vunpack.i.l.bf16 %v3099_v45 }
 0x132   : > { %2617 = vmatmul.mubr.msk.bf16.gmra.mxu0 %vm1869_vm9, %v1833_v27  ;;  %v1711_v16 = vsel %vm1694_vm5, %v1678_v15, %v3105_v58  ;;  %v1712_v25 = vsel %vm1694_vm5, %v1679_v28, %v3106_v19 }
 0x133   : > { %v3114_v51 = vpop.permute.xlu1 %3113  ;;  %v1680_v61 = vsel %vm1661_vm4, %v3990_v21, %v3100_v35  ;;  %v1681_v0 = vsel %vm1661_vm4, %v3994_v11, %v3101_v5  ;;  %v4551_v35 = vld [vmem:[#allocation11_spill] sm:$0xff] }
 0x134   : > { %v3109_v4 = vpop.permute.xlu0 %3108  ;;  %v3116_v29 = vunpack.i.h.bf16 %v3114_v51  ;;  %v3115_v32 = vunpack.i.l.bf16 %v3114_v51 }
 0x135   : > { %v3111_v55 = vunpack.i.h.bf16 %v3109_v4  ;;  %v3110_v52 = vunpack.i.l.bf16 %v3109_v4 }
 0x136   : > { %v1744_v10 = vsel %vm1727_vm6, %v1711_v16, %v3115_v32  ;;  %v1745_v18 = vsel %vm1727_vm6, %v1712_v25, %v3116_v29 }
 0x137   : > { %v3124_v49 = vpop.permute.xlu1 %3123  ;;  %v1713_v37 = vsel %vm1694_vm5, %v1680_v61, %v3110_v52  ;;  %v1714_v40 = vsel %vm1694_vm5, %v1681_v0, %v3111_v55 }
 0x138   : > { %v3119_v41 = vpop.permute.xlu0 %3118  ;;  %v3126_v30 = vunpack.i.h.bf16 %v3124_v49  ;;  %v3125_v23 = vunpack.i.l.bf16 %v3124_v49 }
 0x139   : > { %v3121_v13 = vunpack.i.h.bf16 %v3119_v41  ;;  %v3120_v22 = vunpack.i.l.bf16 %v3119_v41 }
 0x13a   : > { %v1777_v8 = vsel %vm1760_vm7, %v1744_v10, %v3125_v23  ;;  %v1778_v24 = vsel %vm1760_vm7, %v1745_v18, %v3126_v30 }
 0x13b   : > { %v3134_v53 = vpop.permute.xlu1 %3133  ;;  %v1746_v2 = vsel %vm1727_vm6, %v1713_v37, %v3120_v22  ;;  %v1747_v57 = vsel %vm1727_vm6, %v1714_v40, %v3121_v13 }
 0x13c   : > { %v3136_v20 = vunpack.i.h.bf16 %v3134_v53  ;;  %v3135_v54 = vunpack.i.l.bf16 %v3134_v53  ;;  %v3129_v59 = vpop.permute.xlu0 %3128 }
 0x13d   : > { %v3131_v36 = vunpack.i.h.bf16 %v3129_v59  ;;  %v3130_v38 = vunpack.i.l.bf16 %v3129_v59 }
 0x13e   : > { %v1810_v7 = vsel %vm1793_vm8, %v1777_v8, %v3135_v54  ;;  %v1811_v31 = vsel %vm1793_vm8, %v1778_v24, %v3136_v20 }
 0x13f   : > { %v3144_v3 = vpop.permute.xlu1 %3143  ;;  %v1834_v56 = vpack.c.bf16 %v1811_v31, %v1810_v7  ;;  %v1779_v21 = vsel %vm1760_vm7, %v1746_v2, %v3130_v38  ;;  %v1780_v12 = vsel %vm1760_vm7, %v1747_v57, %v3131_v36 }
 0x140   : > { %v3139_v62 = vpop.permute.xlu0 %3138  ;;  %v3146_v39 = vunpack.i.h.bf16 %v3144_v3  ;;  %v3145_v46 = vunpack.i.l.bf16 %v3144_v3 }
 0x141   : > { %v3141_v60 = vunpack.i.h.bf16 %v3139_v62  ;;  %v3140_v42 = vunpack.i.l.bf16 %v3139_v62  ;;  %2620 = vmatprep.mubr.msk.bf16.mxu1 %vm1869_vm9, %v1834_v56 }
 0x142   : > { %v1651_v4 = vsel %vm1628_vm3, %v3874_v48, %v3145_v46  ;;  %v1652_v34 = vsel %vm1628_vm3, %v3877_v17, %v3146_v39 }
 0x143   : > { %v1812_v11 = vsel %vm1793_vm8, %v1779_v21, %v3140_v42  ;;  %v1813_v43 = vsel %vm1793_vm8, %v1780_v12, %v3141_v60  ;;  %v3154_v1 = vpop.permute.xlu1 %3153 }
 0x144   : > { %v1835_v26 = vpack.c.bf16 %v1813_v43, %v1812_v11  ;;  %v3149_v50 = vpop.permute.xlu0 %3148  ;;  %v3156_v47 = vunpack.i.h.bf16 %v3154_v1  ;;  %v3155_v44 = vunpack.i.l.bf16 %v3154_v1 }
 0x145   : > { %v3151_v45 = vunpack.i.h.bf16 %v3149_v50  ;;  %v3150_v51 = vunpack.i.l.bf16 %v3149_v50 }
 0x146   : > { %2621 = vmatmul.mubr.msk.bf16.vlgmr.msra.gmra.mxu1 %vm1869_vm9, %v1835_v26  ;;  %v1684_v30 = vsel %vm1661_vm4, %v1651_v4, %v3155_v44  ;;  %v1685_v23 = vsel %vm1661_vm4, %v1652_v34, %v3156_v47  ;;  %v4552_v47 = vld [vmem:[#allocation3_spill] sm:$0xff]  ;;  %v4554_v34 = vld [vmem:[#allocation5_spill] sm:$0xff] }
 0x147   : > { %v3164_v6 = vpop.permute.xlu1 %3163  ;;  %v1682_v48 = vsel %vm1661_vm4, %v4020_v63, %v3150_v51  ;;  %v1683_v17 = vsel %vm1661_vm4, %v4551_v35, %v3151_v45 }
 0x148   : > { %v3159_v33 = vpop.permute.xlu0 %3158  ;;  %v3166_v14 = vunpack.i.h.bf16 %v3164_v6  ;;  %v3165_v19 = vunpack.i.l.bf16 %v3164_v6 }
 0x149   : > { %v3161_v58 = vunpack.i.h.bf16 %v3159_v33  ;;  %v3160_v49 = vunpack.i.l.bf16 %v3159_v33 }
 0x14a   : > { %v1717_v55 = vsel %vm1694_vm5, %v1684_v30, %v3165_v19  ;;  %v1718_v52 = vsel %vm1694_vm5, %v1685_v23, %v3166_v14  ;;  %v4555_v19 = vld [vmem:[#allocation6_spill] sm:$0xff] }
 0x14b   : > { %v3174_v9 = vpop.permute.xlu1 %3173  ;;  %v1715_v18 = vsel %vm1694_vm5, %v1682_v48, %v3160_v49  ;;  %v1716_v20 = vsel %vm1694_vm5, %v1683_v17, %v3161_v58 }
 0x14c   : > { %v3169_v27 = vpop.permute.xlu0 %3168  ;;  %v3176_v29 = vunpack.i.h.bf16 %v3174_v9  ;;  %v3175_v32 = vunpack.i.l.bf16 %v3174_v9 }
 0x14d   : > { %v3171_v15 = vunpack.i.h.bf16 %v3169_v27  ;;  %v3170_v28 = vunpack.i.l.bf16 %v3169_v27  ;;  %v4553_v27 = vld [vmem:[#allocation4_spill] sm:$0xff] }
 0x14e   : > { %v1750_v54 = vsel %vm1727_vm6, %v1717_v55, %v3175_v32  ;;  %v1751_v59 = vsel %vm1727_vm6, %v1718_v52, %v3176_v29 }
 0x14f   : > { %v3184_v41 = vpop.permute.xlu1 %3183  ;;  %v1748_v13 = vsel %vm1727_vm6, %v1715_v18, %v3170_v28  ;;  %v1749_v22 = vsel %vm1727_vm6, %v1716_v20, %v3171_v15 }
 0x150   : > { %v3179_v5 = vpop.permute.xlu0 %3178  ;;  %v3186_v16 = vunpack.i.h.bf16 %v3184_v41  ;;  %v3185_v25 = vunpack.i.l.bf16 %v3184_v41 }
 0x151   : > { %v3181_v53 = vunpack.i.h.bf16 %v3179_v5  ;;  %v3180_v10 = vunpack.i.l.bf16 %v3179_v5 }
 0x152   : > { %v1783_v38 = vsel %vm1760_vm7, %v1750_v54, %v3185_v25  ;;  %v1784_v7 = vsel %vm1760_vm7, %v1751_v59, %v3186_v16 }
 0x153   : > { %v3194_v63 = vpop.permute.xlu1 %3193  ;;  %v1781_v0 = vsel %vm1760_vm7, %v1748_v13, %v3180_v10  ;;  %v1782_v3 = vsel %vm1760_vm7, %v1749_v22, %v3181_v53 }
 0x154   : > { %v3196_v8 = vunpack.i.h.bf16 %v3194_v63  ;;  %v3195_v24 = vunpack.i.l.bf16 %v3194_v63  ;;  %v3189_v36 = vpop.permute.xlu0 %3188 }
 0x155   : > { %v3191_v31 = vunpack.i.h.bf16 %v3189_v36  ;;  %v3190_v61 = vunpack.i.l.bf16 %v3189_v36 }
 0x156   : > { %v1816_v56 = vsel %vm1793_vm8, %v1783_v38, %v3195_v24  ;;  %v1817_v37 = vsel %vm1793_vm8, %v1784_v7, %v3196_v8 }
 0x157   : > { %v1837_v40 = vpack.c.bf16 %v1817_v37, %v1816_v56  ;;  %v1814_v62 = vsel %vm1793_vm8, %v1781_v0, %v3190_v61  ;;  %v1815_v2 = vsel %vm1793_vm8, %v1782_v3, %v3191_v31  ;;  %v3204_v57 = vpop.permute.xlu1 %3203 }
 0x158   : > { %v1836_v60 = vpack.c.bf16 %v1815_v2, %v1814_v62  ;;  %v3199_v42 = vpop.permute.xlu0 %3198  ;;  %v3206_v1 = vunpack.i.h.bf16 %v3204_v57  ;;  %v3205_v26 = vunpack.i.l.bf16 %v3204_v57 }
 0x159   : > { %v3201_v50 = vunpack.i.h.bf16 %v3199_v42  ;;  %v3200_v6 = vunpack.i.l.bf16 %v3199_v42 }
 0x15a   : > { %2624 = vmatprep.mubr.msk.bf16.mxu1 %vm1869_vm9, %v1836_v60  ;;  %v1655_v44 = vsel %vm1628_vm3, %v4552_v47, %v3205_v26  ;;  %v1656_v45 = vsel %vm1628_vm3, %v4553_v27, %v3206_v1  ;;  %v4556_v27 = vld [vmem:[#allocation7_spill] sm:$0xff] }
 0x15b   : > { %2625 = vmatmul.mubr.msk.bf16.gmra.mxu1 %vm1869_vm9, %v1837_v40  ;;  %v3214_v21 = vpop.permute.xlu1 %3213  ;;  %v1653_v14 = vsel %vm1628_vm3, %v4554_v34, %v3200_v6  ;;  %v1654_v58 = vsel %vm1628_vm3, %v4555_v19, %v3201_v50  ;;  %v4558_v19 = vld [vmem:[#allocation9_spill] sm:$0xff] }
 0x15c   : > { %v3209_v12 = vpop.permute.xlu0 %3208  ;;  %v3216_v39 = vunpack.i.h.bf16 %v3214_v21  ;;  %v3215_v46 = vunpack.i.l.bf16 %v3214_v21 }
 0x15d   : > { %v3211_v51 = vunpack.i.h.bf16 %v3209_v12  ;;  %v3210_v4 = vunpack.i.l.bf16 %v3209_v12 }
 0x15e   : > { %v1688_v28 = vsel %vm1661_vm4, %v1655_v44, %v3215_v46  ;;  %v1689_v5 = vsel %vm1661_vm4, %v1656_v45, %v3216_v39 }
 0x15f   : > { %v3224_v11 = vpop.permute.xlu1 %3223  ;;  %v1686_v16 = vsel %vm1661_vm4, %v1653_v14, %v3210_v4  ;;  %v1687_v25 = vsel %vm1661_vm4, %v1654_v58, %v3211_v51  ;;  %v4557_v51 = vld [vmem:[#allocation8_spill] sm:$0xff] }
 0x160   : > { %v3219_v43 = vpop.permute.xlu0 %3218  ;;  %v3226_v49 = vunpack.i.h.bf16 %v3224_v11  ;;  %v3225_v29 = vunpack.i.l.bf16 %v3224_v11 }
 0x161   : > { %v3221_v32 = vunpack.i.h.bf16 %v3219_v43  ;;  %v3220_v41 = vunpack.i.l.bf16 %v3219_v43 }
 0x162   : > { %v1721_v53 = vsel %vm1694_vm5, %v1688_v28, %v3225_v29  ;;  %v1722_v10 = vsel %vm1694_vm5, %v1689_v5, %v3226_v49  ;;  %v4559_v49 = vld [vmem:[#allocation10_spill] sm:$0xff] }
 0x163   : > { %v3234_v33 = vpop.permute.xlu1 %3233  ;;  %v1719_v54 = vsel %vm1694_vm5, %v1686_v16, %v3220_v41  ;;  %v1720_v59 = vsel %vm1694_vm5, %v1687_v25, %v3221_v32 }
 0x164   : > { %v3229_v9 = vpop.permute.xlu0 %3228  ;;  %v3236_v30 = vunpack.i.h.bf16 %v3234_v33  ;;  %v3235_v23 = vunpack.i.l.bf16 %v3234_v33 }
 0x165   : > { %v3231_v48 = vunpack.i.h.bf16 %v3229_v9  ;;  %v3230_v35 = vunpack.i.l.bf16 %v3229_v9 }
 0x166   : > { %v1754_v63 = vsel %vm1727_vm6, %v1721_v53, %v3235_v23  ;;  %v1755_v13 = vsel %vm1727_vm6, %v1722_v10, %v3236_v30 }
 0x167   : > { %v3244_v15 = vpop.permute.xlu1 %3243  ;;  %v1752_v8 = vsel %vm1727_vm6, %v1719_v54, %v3230_v35  ;;  %v1753_v24 = vsel %vm1727_vm6, %v1720_v59, %v3231_v48 }
 0x168   : > { %v3239_v17 = vpop.permute.xlu0 %3238  ;;  %v3246_v55 = vunpack.i.h.bf16 %v3244_v15  ;;  %v3245_v52 = vunpack.i.l.bf16 %v3244_v15 }
 0x169   : > { %v3241_v18 = vunpack.i.h.bf16 %v3239_v17  ;;  %v3240_v20 = vunpack.i.l.bf16 %v3239_v17 }
 0x16a   : > { %v1787_v31 = vsel %vm1760_vm7, %v1754_v63, %v3245_v52  ;;  %v1788_v61 = vsel %vm1760_vm7, %v1755_v13, %v3246_v55 }
 0x16b   : > { %v3254_v22 = vpop.permute.xlu1 %3253  ;;  %v1785_v56 = vsel %vm1760_vm7, %v1752_v8, %v3240_v20  ;;  %v1786_v37 = vsel %vm1760_vm7, %v1753_v24, %v3241_v18 }
 0x16c   : > { %v3256_v36 = vunpack.i.h.bf16 %v3254_v22  ;;  %v3255_v38 = vunpack.i.l.bf16 %v3254_v22  ;;  %v3249_v7 = vpop.permute.xlu0 %3248 }
 0x16d   : > { %v3251_v0 = vunpack.i.h.bf16 %v3249_v7  ;;  %v3250_v3 = vunpack.i.l.bf16 %v3249_v7 }
 0x16e   : > { %v1820_v40 = vsel %vm1793_vm8, %v1787_v31, %v3255_v38  ;;  %v1821_v62 = vsel %vm1793_vm8, %v1788_v61, %v3256_v36 }
 0x16f   : > { %v1839_v2 = vpack.c.bf16 %v1821_v62, %v1820_v40  ;;  %v1818_v57 = vsel %vm1793_vm8, %v1785_v56, %v3250_v3  ;;  %v1819_v60 = vsel %vm1793_vm8, %v1786_v37, %v3251_v0  ;;  %v3264_v42 = vpop.permute.xlu1 %3263 }
 0x170   : > { %v1838_v21 = vpack.c.bf16 %v1819_v60, %v1818_v57  ;;  %v3259_v12 = vpop.permute.xlu0 %3258  ;;  %v3266_v50 = vunpack.i.h.bf16 %v3264_v42  ;;  %v3265_v6 = vunpack.i.l.bf16 %v3264_v42 }
 0x171   : > { %v3261_v33 = vunpack.i.h.bf16 %v3259_v12  ;;  %v3260_v39 = vunpack.i.l.bf16 %v3259_v12 }
 0x172   : > { %2628 = vmatprep.mubr.msk.bf16.mxu1 %vm1869_vm9, %v1838_v21  ;;  %v1659_v45 = vsel %vm1628_vm3, %v4556_v27, %v3265_v6  ;;  %v1660_v4 = vsel %vm1628_vm3, %v4557_v51, %v3266_v50 }
 0x173   : > { %2629 = vmatmul.mubr.msk.bf16.gmra.mxu1 %vm1869_vm9, %v1839_v2  ;;  %v3274_v11 = vpop.permute.xlu1 %3273  ;;  %v1657_v58 = vsel %vm1628_vm3, %v4558_v19, %v3260_v39  ;;  %v1658_v29 = vsel %vm1628_vm3, %v4559_v49, %v3261_v33 }
 0x174   : > { %v3269_v43 = vpop.permute.xlu0 %3268  ;;  %v3276_v9 = vunpack.i.h.bf16 %v3274_v11  ;;  %v3275_v47 = vunpack.i.l.bf16 %v3274_v11  ;;  %v4450_v11 = vld [vmem:[%s4536_s2] ss:$0 sm:$0xff] }
 0x175   : > { %v3271_v34 = vunpack.i.h.bf16 %v3269_v43  ;;  %v3270_v14 = vunpack.i.l.bf16 %v3269_v43 }
 0x176   : > { %v1692_v48 = vsel %vm1661_vm4, %v1659_v45, %v3275_v47  ;;  %v1693_v35 = vsel %vm1661_vm4, %v1660_v4, %v3276_v9 }
 0x177   : > { %v3284_v1 = vpop.permute.xlu1 %3283  ;;  %v1690_v55 = vsel %vm1661_vm4, %v1657_v58, %v3270_v14  ;;  %v1691_v52 = vsel %vm1661_vm4, %v1658_v29, %v3271_v34 }
 0x178   : > { %v3279_v26 = vpop.permute.xlu0 %3278  ;;  %v3286_v32 = vunpack.i.h.bf16 %v3284_v1  ;;  %v3285_v41 = vunpack.i.l.bf16 %v3284_v1 }
 0x179   : > { %v3281_v30 = vunpack.i.h.bf16 %v3279_v26  ;;  %v3280_v23 = vunpack.i.l.bf16 %v3279_v26 }
 0x17a   : > { %v1725_v18 = vsel %vm1694_vm5, %v1692_v48, %v3285_v41  ;;  %v1726_v20 = vsel %vm1694_vm5, %v1693_v35, %v3286_v32 }
 0x17b   : > { %v3294_v46 = vpop.permute.xlu1 %3293  ;;  %v1723_v63 = vsel %vm1694_vm5, %v1690_v55, %v3280_v23  ;;  %v1724_v13 = vsel %vm1694_vm5, %v1691_v52, %v3281_v30 }
 0x17c   : > { %v3289_v44 = vpop.permute.xlu0 %3288  ;;  %v3296_v15 = vunpack.i.h.bf16 %v3294_v46  ;;  %v3295_v28 = vunpack.i.l.bf16 %v3294_v46 }
 0x17d   : > { %v3291_v17 = vunpack.i.h.bf16 %v3289_v44  ;;  %v3290_v16 = vunpack.i.l.bf16 %v3289_v44 }
 0x17e   : > { %v1758_v22 = vsel %vm1727_vm6, %v1725_v18, %v3295_v28  ;;  %v1759_v8 = vsel %vm1727_vm6, %v1726_v20, %v3296_v15 }
 0x17f   : > { %v3304_v5 = vpop.permute.xlu1 %3303  ;;  %v1756_v36 = vsel %vm1727_vm6, %v1723_v63, %v3290_v16  ;;  %v1757_v38 = vsel %vm1727_vm6, %v1724_v13, %v3291_v17 }
 0x180   : > { %v3299_v25 = vpop.permute.xlu0 %3298  ;;  %v3306_v53 = vunpack.i.h.bf16 %v3304_v5  ;;  %v3305_v10 = vunpack.i.l.bf16 %v3304_v5 }
 0x181   : > { %v3301_v54 = vunpack.i.h.bf16 %v3299_v25  ;;  %v3300_v59 = vunpack.i.l.bf16 %v3299_v25 }
 0x182   : > { %v1791_v0 = vsel %vm1760_vm7, %v1758_v22, %v3305_v10  ;;  %v1792_v3 = vsel %vm1760_vm7, %v1759_v8, %v3306_v53 }
 0x183   : > { %v3314_v24 = vpop.permute.xlu1 %3313  ;;  %v1789_v40 = vsel %vm1760_vm7, %v1756_v36, %v3300_v59  ;;  %v1790_v62 = vsel %vm1760_vm7, %v1757_v38, %v3301_v54 }
 0x184   : > { %v3316_v7 = vunpack.i.h.bf16 %v3314_v24  ;;  %v3315_v31 = vunpack.i.l.bf16 %v3314_v24  ;;  %v3309_v61 = vpop.permute.xlu0 %3308 }
 0x185   : > { %v3311_v56 = vunpack.i.h.bf16 %v3309_v61  ;;  %v3310_v37 = vunpack.i.l.bf16 %v3309_v61 }
 0x186   : > { %v1824_v2 = vsel %vm1793_vm8, %v1791_v0, %v3315_v31  ;;  %v1825_v57 = vsel %vm1793_vm8, %v1792_v3, %v3316_v7 }
 0x187   : > { %v1841_v60 = vpack.c.bf16 %v1825_v57, %v1824_v2  ;;  %v1822_v42 = vsel %vm1793_vm8, %v1789_v40, %v3310_v37  ;;  %v1823_v21 = vsel %vm1793_vm8, %v1790_v62, %v3311_v56 }
 0x188   : > { %v1840_v12 = vpack.c.bf16 %v1823_v21, %v1822_v42 }
 0x18a   : > { %2632 = vmatprep.mubr.msk.bf16.mxu1 %vm1869_vm9, %v1840_v12 }
 0x18b   : > { %2633 = vmatmul.mubr.msk.bf16.gmra.mxu1 %vm1869_vm9, %v1841_v60 }
 0x1b6   : > { %v2606_v43 = vpop.f32.mrf.mxu0 }
 0x1b7   : > { %v1965_v1 = vadd.f32 %v2606_v43, %v4450_v11 }
 0x1b8   : > { %v1956_v26 = vpop.f32.mrf.mxu0 }
 0x1b9   : > { %2085 = vst [vmem:[%s4455_s20 + $0x10] sm:$0xff] %v1965_v1  ;;  %v1957_v50 = vadd.f32 %v4450_v11, %v1956_v26  ;;  %v2155_v27 = vmul.f32 %v1965_v1, %v1965_v1 }
 0x1ba   : > { %v2607_v6 = vpop.f32.mrf.mxu0 }
 0x1bb   : > { %2083 = vst [vmem:[%s4455_s20] sm:$0xff] %v1957_v50  ;;  %v1968_v33 = vadd.f32 %v2607_v6, %v4450_v11  ;;  %v2153_v9 = vmul.f32 %v1957_v50, %v1957_v50 }
 0x1bc   : > { %v1959_v39 = vpop.f32.mrf.mxu0 }
 0x1bd   : > { %2086 = vst [vmem:[%s4455_s20 + $0x18] sm:$0xff] %v1968_v33  ;;  %v1960_v46 = vadd.f32 %v4450_v11, %v1959_v39  ;;  %v2156_v4 = vmul.f32 %v1968_v33, %v1968_v33 }
 0x1bf   : > { %2084 = vst [vmem:[%s4455_s20 + $0x8] sm:$0xff] %v1960_v46  ;;  %v2115_v47 = vadd.f32 %v1960_v46, %v1957_v50  ;;  %v2154_v44 = vmul.f32 %v1960_v46, %v1960_v46 }
 0x1c1   : > { %v2116_v45 = vadd.f32 %v2115_v47, %v1965_v1  ;;  %v2185_v51 = vadd.f32 %v2154_v44, %v2153_v9 }
 0x1c3   : > { %v2186_v34 = vadd.f32 %v2185_v51, %v2155_v27  ;;  %v2117_v14 = vadd.f32 %v2116_v45, %v1968_v33 }
 0x1c5   : > { %v2187_v19 = vadd.f32 %v2186_v34, %v2156_v4 }
 0x1ca   : > { %v2610_v58 = vpop.f32.mrf.mxu0 }
 0x1cb   : > { %v1981_v49 = vadd.f32 %v2610_v58, %v4450_v11 }
 0x1cc   : > { %v1972_v29 = vpop.f32.mrf.mxu0 }
 0x1cd   : > { %2089 = vst [vmem:[%s4455_s20 + $0x30] sm:$0xff] %v1981_v49  ;;  %v1973_v32 = vadd.f32 %v4450_v11, %v1972_v29  ;;  %v2159_v16 = vmul.f32 %v1981_v49, %v1981_v49 }
 0x1ce   : > { %v2611_v41 = vpop.f32.mrf.mxu0 }
 0x1cf   : > { %2087 = vst [vmem:[%s4455_s20 + $0x20] sm:$0xff] %v1973_v32  ;;  %v2118_v30 = vadd.f32 %v2117_v14, %v1973_v32  ;;  %v2157_v23 = vmul.f32 %v1973_v32, %v1973_v32  ;;  %v1984_v15 = vadd.f32 %v2611_v41, %v4450_v11 }
 0x1d0   : > { %v1975_v28 = vpop.f32.mrf.mxu0 }
 0x1d1   : > { %v2188_v5 = vadd.f32 %v2187_v19, %v2157_v23  ;;  %2090 = vst [vmem:[%s4455_s20 + $0x38] sm:$0xff] %v1984_v15  ;;  %v1976_v48 = vadd.f32 %v4450_v11, %v1975_v28  ;;  %v2160_v52 = vmul.f32 %v1984_v15, %v1984_v15 }
 0x1d3   : > { %2088 = vst [vmem:[%s4455_s20 + $0x28] sm:$0xff] %v1976_v48  ;;  %v2119_v35 = vadd.f32 %v2118_v30, %v1976_v48  ;;  %v2158_v17 = vmul.f32 %v1976_v48, %v1976_v48 }
 0x1d5   : > { %v2120_v25 = vadd.f32 %v2119_v35, %v1981_v49  ;;  %v2189_v55 = vadd.f32 %v2188_v5, %v2158_v17 }
 0x1d7   : > { %v2190_v53 = vadd.f32 %v2189_v55, %v2159_v16  ;;  %v2121_v10 = vadd.f32 %v2120_v25, %v1984_v15 }
 0x1d9   : > { %v2191_v18 = vadd.f32 %v2190_v53, %v2160_v52 }
 0x1de   : > { %v2614_v20 = vpop.f32.mrf.mxu0 }
 0x1df   : > { %v1997_v54 = vadd.f32 %v2614_v20, %v4450_v11 }
 0x1e0   : > { %v1988_v59 = vpop.f32.mrf.mxu0 }
 0x1e1   : > { %2093 = vst [vmem:[%s4455_s20 + $0x50] sm:$0xff] %v1997_v54  ;;  %v1989_v63 = vadd.f32 %v4450_v11, %v1988_v59  ;;  %v2163_v0 = vmul.f32 %v1997_v54, %v1997_v54 }
 0x1e2   : > { %v2615_v13 = vpop.f32.mrf.mxu0 }
 0x1e3   : > { %2091 = vst [vmem:[%s4455_s20 + $0x40] sm:$0xff] %v1989_v63  ;;  %v2122_v22 = vadd.f32 %v2121_v10, %v1989_v63  ;;  %v2161_v8 = vmul.f32 %v1989_v63, %v1989_v63  ;;  %v2000_v24 = vadd.f32 %v2615_v13, %v4450_v11 }
 0x1e4   : > { %v1991_v36 = vpop.f32.mrf.mxu0 }
 0x1e5   : > { %v2192_v38 = vadd.f32 %v2191_v18, %v2161_v8  ;;  %2094 = vst [vmem:[%s4455_s20 + $0x58] sm:$0xff] %v2000_v24  ;;  %v1992_v7 = vadd.f32 %v4450_v11, %v1991_v36  ;;  %v2164_v37 = vmul.f32 %v2000_v24, %v2000_v24 }
 0x1e7   : > { %2092 = vst [vmem:[%s4455_s20 + $0x48] sm:$0xff] %v1992_v7  ;;  %v2123_v31 = vadd.f32 %v2122_v22, %v1992_v7  ;;  %v2162_v61 = vmul.f32 %v1992_v7, %v1992_v7 }
 0x1e9   : > { %v2124_v3 = vadd.f32 %v2123_v31, %v1997_v54  ;;  %v2193_v56 = vadd.f32 %v2192_v38, %v2162_v61 }
 0x1eb   : > { %v2194_v40 = vadd.f32 %v2193_v56, %v2163_v0  ;;  %v2125_v62 = vadd.f32 %v2124_v3, %v2000_v24 }
 0x1ed   : > { %v2195_v2 = vadd.f32 %v2194_v40, %v2164_v37 }
 0x1f2   : > { %v2618_v57 = vpop.f32.mrf.mxu0 }
 0x1f3   : > { %v2013_v60 = vadd.f32 %v2618_v57, %v4450_v11 }
 0x1f4   : > { %v2004_v42 = vpop.f32.mrf.mxu0 }
 0x1f5   : > { %2097 = vst [vmem:[%s4455_s20 + $0x70] sm:$0xff] %v2013_v60  ;;  %v2005_v21 = vadd.f32 %v4450_v11, %v2004_v42  ;;  %v2167_v9 = vmul.f32 %v2013_v60, %v2013_v60 }
 0x1f6   : > { %v2619_v12 = vpop.f32.mrf.mxu0 }
 0x1f7   : > { %2095 = vst [vmem:[%s4455_s20 + $0x60] sm:$0xff] %v2005_v21  ;;  %v2165_v43 = vmul.f32 %v2005_v21, %v2005_v21  ;;  %v2016_v1 = vadd.f32 %v2619_v12, %v4450_v11  ;;  %v2126_v50 = vadd.f32 %v2125_v62, %v2005_v21 }
 0x1f8   : > { %v2007_v26 = vpop.f32.mrf.mxu0 }
 0x1f9   : > { %2098 = vst [vmem:[%s4455_s20 + $0x78] sm:$0xff] %v2016_v1  ;;  %v2008_v6 = vadd.f32 %v4450_v11, %v2007_v26  ;;  %v2196_v33 = vadd.f32 %v2195_v2, %v2165_v43  ;;  %v2168_v27 = vmul.f32 %v2016_v1, %v2016_v1 }
 0x1fb   : > { %2096 = vst [vmem:[%s4455_s20 + $0x68] sm:$0xff] %v2008_v6  ;;  %v2127_v39 = vadd.f32 %v2126_v50, %v2008_v6  ;;  %v2166_v46 = vmul.f32 %v2008_v6, %v2008_v6 }
 0x1fd   : > { %v2128_v47 = vadd.f32 %v2127_v39, %v2013_v60  ;;  %v2197_v44 = vadd.f32 %v2196_v33, %v2166_v46 }
 0x1ff   : > { %v2198_v45 = vadd.f32 %v2197_v44, %v2167_v9  ;;  %v2129_v51 = vadd.f32 %v2128_v47, %v2016_v1 }
 0x201   : > { %v2199_v4 = vadd.f32 %v2198_v45, %v2168_v27 }
 0x206   : > { %v2622_v34 = vpop.f32.mrf.mxu1 }
 0x207   : > { %v2029_v14 = vadd.f32 %v2622_v34, %v4450_v11 }
 0x208   : > { %v2020_v19 = vpop.f32.mrf.mxu1 }
 0x209   : > { %2101 = vst [vmem:[%s4455_s20 + $0x90] sm:$0xff] %v2029_v14  ;;  %v2021_v58 = vadd.f32 %v4450_v11, %v2020_v19  ;;  %v2171_v20 = vmul.f32 %v2029_v14, %v2029_v14 }
 0x20a   : > { %v2623_v49 = vpop.f32.mrf.mxu1 }
 0x20b   : > { %2099 = vst [vmem:[%s4455_s20 + $0x80] sm:$0xff] %v2021_v58  ;;  %v2032_v29 = vadd.f32 %v2623_v49, %v4450_v11  ;;  %v2169_v16 = vmul.f32 %v2021_v58, %v2021_v58  ;;  %v2130_v25 = vadd.f32 %v2129_v51, %v2021_v58 }
 0x20c   : > { %v2023_v32 = vpop.f32.mrf.mxu1 }
 0x20d   : > { %2102 = vst [vmem:[%s4455_s20 + $0x98] sm:$0xff] %v2032_v29  ;;  %v2024_v41 = vadd.f32 %v4450_v11, %v2023_v32  ;;  %v2200_v52 = vadd.f32 %v2199_v4, %v2169_v16  ;;  %v2172_v24 = vmul.f32 %v2032_v29, %v2032_v29 }
 0x20f   : > { %2100 = vst [vmem:[%s4455_s20 + $0x88] sm:$0xff] %v2024_v41  ;;  %v2170_v55 = vmul.f32 %v2024_v41, %v2024_v41  ;;  %v2131_v53 = vadd.f32 %v2130_v25, %v2024_v41 }
 0x211   : > { %v2201_v10 = vadd.f32 %v2200_v52, %v2170_v55  ;;  %v2132_v54 = vadd.f32 %v2131_v53, %v2029_v14 }
 0x213   : > { %v2202_v13 = vadd.f32 %v2201_v10, %v2171_v20  ;;  %v2133_v36 = vadd.f32 %v2132_v54, %v2032_v29 }
 0x215   : > { %v2203_v0 = vadd.f32 %v2202_v13, %v2172_v24 }
 0x21b   : > { %v2626_v30 = vpop.f32.mrf.mxu1 }
 0x21c   : > { %v2045_v23 = vadd.f32 %v2626_v30, %v4450_v11 }
 0x21d   : > { %v2036_v15 = vpop.f32.mrf.mxu1 }
 0x21e   : > { %2105 = vst [vmem:[%s4455_s20 + $0xb0] sm:$0xff] %v2045_v23  ;;  %v2037_v28 = vadd.f32 %v4450_v11, %v2036_v15  ;;  %v2175_v2 = vmul.f32 %v2045_v23, %v2045_v23 }
 0x21f   : > { %v2627_v5 = vpop.f32.mrf.mxu1 }
 0x220   : > { %2103 = vst [vmem:[%s4455_s20 + $0xa0] sm:$0xff] %v2037_v28  ;;  %v2048_v48 = vadd.f32 %v2627_v5, %v4450_v11  ;;  %v2173_v38 = vmul.f32 %v2037_v28, %v2037_v28  ;;  %v2134_v61 = vadd.f32 %v2133_v36, %v2037_v28 }
 0x221   : > { %v2039_v35 = vpop.f32.mrf.mxu1 }
 0x222   : > { %2106 = vst [vmem:[%s4455_s20 + $0xb8] sm:$0xff] %v2048_v48  ;;  %v2040_v17 = vadd.f32 %v4450_v11, %v2039_v35  ;;  %v2204_v37 = vadd.f32 %v2203_v0, %v2173_v38  ;;  %v2176_v42 = vmul.f32 %v2048_v48, %v2048_v48 }
 0x224   : > { %2104 = vst [vmem:[%s4455_s20 + $0xa8] sm:$0xff] %v2040_v17  ;;  %v2174_v3 = vmul.f32 %v2040_v17, %v2040_v17  ;;  %v2135_v40 = vadd.f32 %v2134_v61, %v2040_v17 }
 0x226   : > { %v2205_v62 = vadd.f32 %v2204_v37, %v2174_v3  ;;  %v2136_v57 = vadd.f32 %v2135_v40, %v2045_v23 }
 0x228   : > { %v2206_v60 = vadd.f32 %v2205_v62, %v2175_v2  ;;  %v2137_v21 = vadd.f32 %v2136_v57, %v2048_v48 }
 0x22a   : > { %v2207_v1 = vadd.f32 %v2206_v60, %v2176_v42 }
 0x233   : > { %v2630_v18 = vpop.f32.mrf.mxu1 }
 0x234   : > { %v2061_v59 = vadd.f32 %v2630_v18, %v4450_v11 }
 0x235   : > { %v2052_v63 = vpop.f32.mrf.mxu1 }
 0x236   : > { %2109 = vst [vmem:[%s4455_s20 + $0xd0] sm:$0xff] %v2061_v59  ;;  %v2053_v22 = vadd.f32 %v4450_v11, %v2052_v63  ;;  %v2179_v46 = vmul.f32 %v2061_v59, %v2061_v59 }
 0x237   : > { %v2631_v8 = vpop.f32.mrf.mxu1 }
 0x238   : > { %2107 = vst [vmem:[%s4455_s20 + $0xc0] sm:$0xff] %v2053_v22  ;;  %v2064_v7 = vadd.f32 %v2631_v8, %v4450_v11  ;;  %v2177_v12 = vmul.f32 %v2053_v22, %v2053_v22  ;;  %v2138_v43 = vadd.f32 %v2137_v21, %v2053_v22 }
 0x239   : > { %v2055_v31 = vpop.f32.mrf.mxu1 }
 0x23a   : > { %2110 = vst [vmem:[%s4455_s20 + $0xd8] sm:$0xff] %v2064_v7  ;;  %v2056_v56 = vadd.f32 %v4450_v11, %v2055_v31  ;;  %v2208_v50 = vadd.f32 %v2207_v1, %v2177_v12  ;;  %v2180_v4 = vmul.f32 %v2064_v7, %v2064_v7 }
 0x23c   : > { %2108 = vst [vmem:[%s4455_s20 + $0xc8] sm:$0xff] %v2056_v56  ;;  %v2178_v26 = vmul.f32 %v2056_v56, %v2056_v56  ;;  %v2139_v6 = vadd.f32 %v2138_v43, %v2056_v56 }
 0x23e   : > { %v2209_v33 = vadd.f32 %v2208_v50, %v2178_v26  ;;  %v2140_v9 = vadd.f32 %v2139_v6, %v2061_v59 }
 0x240   : > { %v2210_v27 = vadd.f32 %v2209_v33, %v2179_v46  ;;  %v2141_v34 = vadd.f32 %v2140_v9, %v2064_v7 }
 0x242   : > { %v2211_v29 = vadd.f32 %v2210_v27, %v2180_v4 }
 0x24b   : > { %v2634_v39 = vpop.f32.mrf.mxu1 }
 0x24c   : > { %v2077_v47 = vadd.f32 %v2634_v39, %v4450_v11 }
 0x24d   : > { %v2068_v44 = vpop.f32.mrf.mxu1 }
 0x24e   : > { %2113 = vst [vmem:[%s4455_s20 + $0xf0] sm:$0xff] %v2077_v47  ;;  %v2069_v45 = vadd.f32 %v4450_v11, %v2068_v44  ;;  %v2183_v15 = vmul.f32 %v2077_v47, %v2077_v47 }
 0x24f   : > { %v2635_v51 = vpop.f32.mrf.mxu1 }
 0x250   : > { %2111 = vst [vmem:[%s4455_s20 + $0xe0] sm:$0xff] %v2069_v45  ;;  %v2181_v14 = vmul.f32 %v2069_v45, %v2069_v45  ;;  %v2080_v19 = vadd.f32 %v2635_v51, %v4450_v11  ;;  %v2142_v49 = vadd.f32 %v2141_v34, %v2069_v45 }
 0x251   : > { %v2071_v58 = vpop.f32.mrf.mxu1 }
 0x252   : > { %2114 = vst [vmem:[%s4455_s20 + $0xf8] sm:$0xff] %v2080_v19  ;;  %v2072_v32 = vadd.f32 %v4450_v11, %v2071_v58  ;;  %v2212_v41 = vadd.f32 %v2211_v29, %v2181_v14  ;;  %v2184_v48 = vmul.f32 %v2080_v19, %v2080_v19 }
 0x254   : > { %2112 = vst [vmem:[%s4455_s20 + $0xe8] sm:$0xff] %v2072_v32  ;;  %v2143_v30 = vadd.f32 %v2142_v49, %v2072_v32  ;;  %v2182_v23 = vmul.f32 %v2072_v32, %v2072_v32 }
 0x256   : > { %v2144_v28 = vadd.f32 %v2143_v30, %v2077_v47  ;;  %v2213_v5 = vadd.f32 %v2212_v41, %v2182_v23 }
 0x258   : > { %v2145_v35 = vadd.f32 %v2144_v28, %v2080_v19  ;;  %v2214_v17 = vadd.f32 %v2213_v5, %v2183_v15 }
 0x25a   : > { %v2146_v16 = vrot.slane %v2145_v35, 4  ;;  %v2215_v25 = vadd.f32 %v2214_v17, %v2184_v48 }
 0x25c   : > { %v2147_v55 = vadd.f32 %v2146_v16, %v2145_v35  ;;  %v2216_v52 = vrot.slane %v2215_v25, 4 }
 0x25e   : > { %v2148_v53 = vrot.slane %v2147_v55, 2  ;;  %v2217_v10 = vadd.f32 %v2216_v52, %v2215_v25 }
 0x260   : > { %v2149_v18 = vadd.f32 %v2148_v53, %v2147_v55  ;;  %v2218_v11 = vrot.slane %v2217_v10, 2 }
 0x262   : > { %v2150_v20 = vrot.slane %v2149_v18, 1  ;;  %v2219_v54 = vadd.f32 %v2218_v11, %v2217_v10 }
 0x264   : > { %v2151_v59 = vadd.f32 %v2150_v20, %v2149_v18  ;;  %v2220_v63 = vrot.slane %v2219_v54, 1 }
 0x266   : > { %2152 = vst [vmem:[%s239_s24] sm:$0x1] %v2151_v59  ;;  %v2221_v13 = vadd.f32 %v2220_v63, %v2219_v54 }
 0x268   : > { %2222 = vst [vmem:[%s239_s24 + $0x1] sm:$0x1] %v2221_v13 }
 0x269 PF: > { %s15_s17 = sadd.s32 1, %s3346_s17   ;;  %s4560_s15 = smov %s3342_s16 }
 0x26a   : > { %p12_p5 = scmp.ge.s32.totalorder %s15_s17, 4   ;;  %s4561_s16 = smov %s4563_s18 }
 0x26c   :  { %14 = sbr.rel (!%p12_p5) target bundleno = 2 (0x2), region = 77 }

// kernel: tps_forward.14
= control target key start
LH: loop header
LB: loop body
LE: loop exit
PB: predicated region body
PF: predicated region fallthrough
CT: control target
= control target key end

     0   :  { %s104_s0 = inlined_call_operand.vmem [shape: f32[32,128], index: 0, kind: input, shape index: {}]   ;;  %s105_s1 = inlined_call_operand.vmem [shape: f32[1,128], index: 1, kind: input, shape index: {}]   ;;  %s106_s2 = inlined_call_operand.vmem [shape: f32[1,128], index: 2, kind: input, shape index: {}]   ;;  %s107_s3 = inlined_call_operand.vmem [shape: f32[32,128], index: 3, kind: output, shape index: {}]  }
   0x1   :  { %v14_v0 = vld [vmem:[%s104_s0] sm:$0xff]  ;;  %v15_v4 = vld [vmem:[%s104_s0 + $0x8] sm:$0xff]  ;;  %v16_v5 = vld [vmem:[%s104_s0 + $0x10] sm:$0xff] }
   0x2   :  { %v52_v1 = vld [vmem:[%s105_s1] ss:$0 sm:$0xff]  ;;  %v17_v6 = vld [vmem:[%s104_s0 + $0x18] sm:$0xff] }
   0x3   :  { %v53_v2 = vld [vmem:[%s106_s2] ss:$0 sm:$0xff]  ;;  %v25_v3 = vmul.f32 %v52_v1, %v14_v0  ;;  %v26_v7 = vmul.f32 %v52_v1, %v15_v4  ;;  %v27_v8 = vmul.f32 %v52_v1, %v16_v5  ;;  %v28_v9 = vmul.f32 %v52_v1, %v17_v6 }
   0x5   :  { %v36_v10 = vadd.f32 %v53_v2, %v25_v3  ;;  %v37_v11 = vadd.f32 %v53_v2, %v26_v7  ;;  %v38_v12 = vadd.f32 %v53_v2, %v27_v8  ;;  %v39_v13 = vadd.f32 %v53_v2, %v28_v9 }
   0x7   :  { %v40_v14 = vmax.f32 %v36_v10, 0.0  ;;  %v41_v15 = vmax.f32 %v37_v11, 0.0  ;;  %v42_v16 = vmax.f32 %v38_v12, 0.0  ;;  %v43_v17 = vmax.f32 %v39_v13, 0.0 }
   0x9   :  { %44 = vst [vmem:[%s107_s3] sm:$0xff] %v40_v14  ;;  %45 = vst [vmem:[%s107_s3 + $0x8] sm:$0xff] %v41_v15 }
   0xa   :  { %46 = vst [vmem:[%s107_s3 + $0x10] sm:$0xff] %v42_v16  ;;  %47 = vst [vmem:[%s107_s3 + $0x18] sm:$0xff] %v43_v17 }

// kernel: tps_forward.13
= control target key start
LH: loop header
LB: loop body
LE: loop exit
PB: predicated region body
PF: predicated region fallthrough
CT: control target
= control target key end

     0   :  { %s1154_s15 = smov 0   ;;  %s1156_s16 = smov 0   ;;  %s1346_s0 = inlined_call_operand.vmem [shape: f32[2,6,10,32], index: 0, kind: input, shape index: {}]   ;;  %s1347_s1 = inlined_call_operand.vmem [shape: bf16[288,128], index: 1, kind: input, shape index: {}]   ;;  %s1348_s2 = inlined_call_operand.vmem [shape: f32[1,128], index: 2, kind: input, shape index: {}]   ;;  %s1349_s3 = inlined_call_operand.vmem [shape: f32[2,32,128], index: 3, kind: output, shape index: {0}]   ;;  %s1350_s4 = inlined_call_operand.vmem [shape: f32[2,1,2,128], index: 4, kind: output, shape index: {1}]  }
   0x1   :  { %s1158_s17 = smov 0  }
   0x2 LB: > { %s27_s18 = sadd.s32 1, %s1120_s16  ;;  %p903_p0 = scmp.ge.s32.totalorder %s1124_s17, 1  ;;  %s1124_s17 = sphi %s1158_s17, %s15_s17   ;;  %s1120_s16 = sphi %s1156_s16, %s1352_s16   ;;  %s1116_s15 = sphi %s1154_s15, %s1351_s15  }
   0x3   : > { %p29_p1 = scmp.ge.s32.totalorder %s27_s18, 2  ;;  %p181_p2 = scmp.lt.s32.totalorder %s1124_s17, 3 }
   0x5   : > { %s1354_s18 = smov (%p29_p1, %s27_s18), 0  ;;  %p182_p3 = pnand %p903_p0, %p181_p2 }
   0x6   : > { %p218_p4 = scmp.lt.s32.totalorder (!%p182_p3), %s1116_s15, 1  ;;  %s1126_s9 = smov (!%p182_p3), 64  }
   0x7   : > { %185 = sbr.rel (%p182_p3) target bundleno = 384 (0x180), region = 32  ;;  %s1127_s10 = smov (!%p182_p3), 32  }
   0xc   : > { %v1084_v0 = vld [vmem:[%s1347_s1 + $0x78] sm:$0xff]   ;;  %s1356_s15 = smov (!%p218_p4, %s1116_s15), 1  ;;  %v1086_v2 = vld [vmem:[%s1347_s1 + $0x70] sm:$0xff]   ;;  %v1088_v4 = vld [vmem:[%s1347_s1 + $0x68] sm:$0xff]   ;;  %vm382_vm0 = vcmask 261120   ;;  %vm387_vm1 = vcmask 523264  }
   0xd   : > { %v1085_v1 = vld [vmem:[%s1347_s1 + $0x38] sm:$0xff]   ;;  %956 = vmatprep.subr.bf16.mxu0 %v1084_v0  ;;  %s996_s25 = smul.u32 96, %s1356_s15  ;;  %v1087_v3 = vld [vmem:[%s1347_s1 + $0x30] sm:$0xff]   ;;  %v1089_v5 = vld [vmem:[%s1347_s1 + $0x28] sm:$0xff]   ;;  %vm392_vm2 = vcmask 785408   ;;  %s955_s20 = sshll.u32 %s1356_s15, 5 }
   0xe   : > { %957 = vmatpush3.bf16.msra.mxu0 %v1085_v1  ;;  %v1090_v21 = vld [vmem:[%s1347_s1 + $0x60] sm:$0xff]   ;;  %v1092_v25 = vld [vmem:[%s1347_s1 + $0x58] sm:$0xff]   ;;  %v1094_v29 = vld [vmem:[%s1347_s1 + $0x50] sm:$0xff]   ;;  %s1327_s23 = scalar_lea.vmem %s1349_s3, %s955_s20  ;;  %s907_s24 = sshll.u32 %s1356_s15, 1 }
   0xf   : > { %958 = vmatprep.subr.bf16.mxu0 %v1086_v2  ;;  %s1193_s6 = scalar_lea.vmem %s1346_s0, %s996_s25  ;;  %v1091_v22 = vld [vmem:[%s1347_s1 + $0x20] sm:$0xff]   ;;  %v1093_v28 = vld [vmem:[%s1347_s1 + $0x18] sm:$0xff]   ;;  %s1128_s25 = smov 96   ;;  %v1095_v33 = vld [vmem:[%s1347_s1 + $0x10] sm:$0xff]  }
  0x10   : > { %v1199_v6 = vld [vmem:[%s1193_s6 + $0x20] sm:$0xff]  ;;  %v1202_v7 = vld [vmem:[%s1193_s6 + $0x30] sm:$0xff]  ;;  %v1096_v34 = vld [vmem:[%s1347_s1 + $0x48] sm:$0xff]   ;;  %s239_s27 = scalar_lea.vmem %s1350_s4, %s907_s24 }
  0x11   : > { %v916_v8 = vld [vmem:[%s1193_s6 + $0x12] sm:$0xff]  ;;  %v1034_v9 = vpack.i.bf16 %v1202_v7, %v1199_v6  ;;  %v917_v10 = vld [vmem:[%s1193_s6 + $0x22] sm:$0xff] }
  0x12   : > { %v252_v11 = vld [vmem:[%s1193_s6 + $0x2] sm:$0xff]  ;;  %959 = vmatpush3.bf16.msra.mxu0 %v1087_v3  ;;  %v1024_v13 = vpack.i.bf16 %v917_v10, %v916_v8  ;;  %v1211_v14 = vld [vmem:[%s1193_s6 + $0x11] sm:$0xff] }
  0x13   : > { %v248_v12 = vld [vmem:[%s1193_s6 + $0x1] sm:$0xff]  ;;  %960 = vmatprep.subr.bf16.mxu0 %v1088_v4  ;;  %1035 = vrot.lane.b32.xlu1 %v1034_v9, %s1126_s9  ;;  %v1039_v15 = vpack.i.bf16 %v916_v8, %v252_v11  ;;  %v1217_v17 = vld [vmem:[%s1193_s6 + $0x10] sm:$0xff] }
  0x14   : > { %1025 = vrot.lane.b32.xlu0 %v1024_v13, %s1127_s10  ;;  %v1029_v16 = vpack.i.bf16 %v1211_v14, %v248_v12  ;;  %v1220_v18 = vld [vmem:[%s1193_s6 + $0x21] sm:$0xff]  ;;  %v1223_v19 = vld [vmem:[%s1193_s6 + $0x31] sm:$0xff]  ;;  %v1049_v24 = vpack.i.bf16 %v1199_v6, %v1217_v17 }
  0x15   : > { %v918_v20 = vld [vmem:[%s1193_s6 + $0x32] sm:$0xff]  ;;  %v1044_v26 = vpack.i.bf16 %v1223_v19, %v1220_v18  ;;  %v919_v27 = vld [vmem:[%s1193_s6 + $0x42] sm:$0xff] }
  0x16   : > { %961 = vmatpush3.bf16.msra.mxu0 %v1089_v5  ;;  %v411_v23 = vpack.c.bf16 %v918_v20, %v917_v10  ;;  %v922_v30 = vld [vmem:[%s1193_s6 + $0x40] sm:$0xff]  ;;  %v923_v31 = vld [vmem:[%s1193_s6 + $0x50] sm:$0xff]  ;;  %v1054_v32 = vpack.i.bf16 %v919_v27, %v918_v20  ;;  %v1099_v35 = vld [vmem:[%s1347_s1 + $0x88] sm:$0xff]   ;;  %v1069_v36 = vpack.i.bf16 %v918_v20, %v917_v10 }
  0x17   : > { %1040 = vrot.lane.b32.xlu1 %v1039_v15, %s1126_s9  ;;  %962 = vmatprep.subr.bf16.mxu0 %v1090_v21  ;;  %v1264_v37 = vld [vmem:[%s1193_s6 + $0x41] sm:$0xff]  ;;  %v1064_v38 = vpack.i.bf16 %v923_v31, %v922_v30  ;;  %v927_v40 = vld [vmem:[%s1193_s6 + $0x51] sm:$0xff]  ;;  %v1079_v44 = vpack.i.bf16 %v922_v30, %v1202_v7 }
  0x18   : > { %1030 = vrot.lane.b32.xlu0 %v1029_v16, %s1127_s10  ;;  %992 = vmatprep.mubr.msk.bf16.mxu1 %vm382_vm0, %v411_v23  ;;  %v1101_v39 = vld [vmem:[%s1347_s1 + $0x80] sm:$0xff]   ;;  %v1097_v41 = vld [vmem:[%s1347_s1 + $0x8] sm:$0xff]   ;;  %v931_v42 = vld [vmem:[%s1193_s6 + $0x52] sm:$0xff]  ;;  %v1074_v45 = vpack.i.bf16 %v927_v40, %v1264_v37 }
  0x19   : > { %988 = vmatprep.subr.bf16.mxu1 %v1099_v35  ;;  %v1098_v43 = vld [vmem:[%s1347_s1 + $0x40] sm:$0xff]   ;;  %v414_v46 = vpack.c.bf16 %v931_v42, %v919_v27 }
  0x1a   : > { %963 = vmatpush3.bf16.msra.mxu0 %v1091_v22  ;;  %989 = vmatpush3.bf16.msra.mxu1 %v1099_v35  ;;  %v1100_v47 = vld [vmem:[%s1347_s1] sm:$0xff]  }
  0x1b   : > { %964 = vmatprep.subr.bf16.mxu0 %v1092_v25  ;;  %1050 = vrot.lane.b32.xlu1 %v1049_v24, %s1128_s25  ;;  %v244_v54 = vld [vmem:[%s1193_s6] sm:$0xff] }
  0x1c   : > { %1045 = vrot.lane.b32.xlu0 %v1044_v26, %s1128_s25  ;;  %990 = vmatprep.subr.bf16.mxu1 %v1101_v39 }
  0x1e   : > { %965 = vmatpush3.bf16.msra.mxu0 %v1093_v28  ;;  %991 = vmatpush3.bf16.msra.mxu1 %v1101_v39 }
  0x1f   : > { %966 = vmatprep.subr.bf16.mxu0 %v1094_v29  ;;  %1060 = vrot.lane.b32.xlu1 %v1044_v26, %s1127_s10 }
  0x20   : > { %1055 = vrot.lane.b32.xlu0 %v1054_v32, %s1127_s10 }
  0x21   : > { %993 = vmatmul.mubr.msk.bf16.vlgmr.msra.gmra.mxu1 %vm382_vm0, %v414_v46 }
  0x22   : > { %967 = vmatpush3.bf16.msra.mxu0 %v1095_v33 }
  0x23   : > { %968 = vmatprep.subr.bf16.mxu0 %v1096_v34  ;;  %1070 = vrot.lane.b32.xlu1 %v1069_v36, %s1126_s9 }
  0x24   : > { %1065 = vrot.lane.b32.xlu0 %v1064_v38, %s1126_s9 }
  0x26   : > { %969 = vmatpush3.bf16.msra.mxu0 %v1097_v41 }
  0x27   : > { %970 = vmatprep.subr.bf16.mxu0 %v1098_v43  ;;  %1080 = vrot.lane.b32.xlu1 %v1079_v44, %s1128_s25 }
  0x28   : > { %1075 = vrot.lane.b32.xlu0 %v1074_v45, %s1128_s25 }
  0x2a   : > { %971 = vmatpush3.bf16.msra.mxu0 %v1100_v47 }
  0x85   : > { %v1036_v48 = vpop.permute.xlu1 %1035 }
  0x86   : > { %v1026_v49 = vpop.permute.xlu0 %1025  ;;  %v1038_v59 = vunpack.i.h.bf16 %v1036_v48  ;;  %v1037_v60 = vunpack.i.l.bf16 %v1036_v48 }
  0x87   : > { %v1028_v50 = vunpack.i.h.bf16 %v1026_v49  ;;  %v1027_v51 = vunpack.i.l.bf16 %v1026_v49 }
  0x89   : > { %v1041_v52 = vpop.permute.xlu1 %1040  ;;  %v397_v0 = vsel %vm382_vm0, %v1211_v14, %v1027_v51  ;;  %v398_v1 = vsel %vm382_vm0, %v1220_v18, %v1028_v50 }
  0x8a   : > { %v1031_v53 = vpop.permute.xlu0 %1030  ;;  %v1043_v55 = vunpack.i.h.bf16 %v1041_v52  ;;  %v1042_v56 = vunpack.i.l.bf16 %v1041_v52  ;;  %v401_v11 = vsel %vm387_vm1, %v397_v0, %v1037_v60  ;;  %v402_v12 = vsel %vm387_vm1, %v398_v1, %v1038_v59 }
  0x8b   : > { %v1033_v57 = vunpack.i.h.bf16 %v1031_v53  ;;  %v1032_v58 = vunpack.i.l.bf16 %v1031_v53  ;;  %v674_v52 = vlaneseq }
  0x8d   : > { %v383_v61 = vsel %vm382_vm0, %v244_v54, %v1032_v58  ;;  %v384_v62 = vsel %vm382_vm0, %v1217_v17, %v1033_v57  ;;  %v1051_v63 = vpop.permute.xlu1 %1050  ;;  %v932_v54 = vld [vmem:[%s1348_s2] ss:$0 sm:$0xff]  ;;  %v675_v57 = vshrl.u32 %v674_v52, 7 }
  0x8e   : > { %v1053_v2 = vunpack.i.h.bf16 %v1051_v63  ;;  %v1052_v3 = vunpack.i.l.bf16 %v1051_v63  ;;  %v1046_v4 = vpop.permute.xlu0 %1045  ;;  %v388_v9 = vsel %vm387_vm1, %v383_v61, %v1042_v56  ;;  %v389_v10 = vsel %vm387_vm1, %v384_v62, %v1043_v55 }
  0x8f   : > { %v1048_v5 = vunpack.i.h.bf16 %v1046_v4  ;;  %v1047_v8 = vunpack.i.l.bf16 %v1046_v4  ;;  %v676_v61 = vadd.s32 8, %v675_v57 }
  0x90   : > { %v393_v13 = vsel %vm392_vm2, %v388_v9, %v1052_v3  ;;  %v394_v14 = vsel %vm392_vm2, %v389_v10, %v1053_v2  ;;  %v677_v3 = vadd.s32 16, %v675_v57 }
  0x91   : > { %v1061_v15 = vpop.permute.xlu1 %1060  ;;  %v405_v16 = vsel %vm392_vm2, %v401_v11, %v1047_v8  ;;  %v406_v17 = vsel %vm392_vm2, %v402_v12, %v1048_v5  ;;  %v409_v18 = vpack.c.bf16 %v394_v14, %v393_v13  ;;  %v690_v2 = vand.u32 7, %v676_v61 }
  0x92   : > { %v1056_v20 = vpop.permute.xlu0 %1055  ;;  %v410_v21 = vpack.c.bf16 %v406_v17, %v405_v16  ;;  %v1063_v22 = vunpack.i.h.bf16 %v1061_v15  ;;  %v1062_v23 = vunpack.i.l.bf16 %v1061_v15  ;;  %v683_v5 = vand.u32 7, %v675_v57 }
  0x93   : > { %v1058_v25 = vunpack.i.h.bf16 %v1056_v20  ;;  %v1057_v26 = vunpack.i.l.bf16 %v1056_v20  ;;  %vm728_vm3 = vcmp.lt.s32.totalorder %v690_v2, 4  ;;  %v697_v10 = vand.u32 7, %v677_v3 }
  0x94   : > { %604 = vmatprep.mubr.bf16.mxu0 %v410_v21  ;;  %v385_v32 = vsel %vm382_vm0, %v1199_v6, %v1062_v23  ;;  %v386_v33 = vsel %vm382_vm0, %v1202_v7, %v1063_v22  ;;  %v678_v11 = vadd.s32 24, %v675_v57  ;;  %vm727_vm4 = vcmp.lt.s32.totalorder %v683_v5, 4 }
  0x95   : > { %605 = vmatmul.mubr.bf16.vlgmr.msra.gmra.mxu0 %v409_v18  ;;  %v1071_v24 = vpop.permute.xlu1 %1070  ;;  %v400_v35 = vsel %vm382_vm0, %v1264_v37, %v1058_v25  ;;  %v399_v36 = vsel %vm382_vm0, %v1223_v19, %v1057_v26  ;;  %vm729_vm5 = vcmp.lt.s32.totalorder %v697_v10, 4 }
  0x96   : > { %v1066_v27 = vpop.permute.xlu0 %1065  ;;  %v1073_v28 = vunpack.i.h.bf16 %v1071_v24  ;;  %v1072_v29 = vunpack.i.l.bf16 %v1071_v24  ;;  %v704_v17 = vand.u32 7, %v678_v11 }
  0x97   : > { %v1068_v30 = vunpack.i.h.bf16 %v1066_v27  ;;  %v1067_v31 = vunpack.i.l.bf16 %v1066_v27 }
  0x98   : > { %v390_v41 = vsel %vm387_vm1, %v385_v32, %v1072_v29  ;;  %v391_v42 = vsel %vm387_vm1, %v386_v33, %v1073_v28  ;;  %vm730_vm6 = vcmp.lt.s32.totalorder %v704_v17, 4 }
  0x99   : > { %v1081_v34 = vpop.permute.xlu1 %1080  ;;  %v403_v6 = vsel %vm387_vm1, %v399_v36, %v1067_v31  ;;  %v404_v7 = vsel %vm387_vm1, %v400_v35, %v1068_v30 }
  0x9a   : > { %v1083_v38 = vunpack.i.h.bf16 %v1081_v34  ;;  %v1082_v39 = vunpack.i.l.bf16 %v1081_v34  ;;  %v1076_v40 = vpop.permute.xlu0 %1075 }
  0x9b   : > { %v1078_v43 = vunpack.i.h.bf16 %v1076_v40  ;;  %v1077_v44 = vunpack.i.l.bf16 %v1076_v40 }
  0x9c   : > { %v395_v45 = vsel %vm392_vm2, %v390_v41, %v1082_v39  ;;  %v396_v37 = vsel %vm392_vm2, %v391_v42, %v1083_v38 }
  0x9d   : > { %v407_v19 = vsel %vm392_vm2, %v403_v6, %v1077_v44  ;;  %v408_v46 = vsel %vm392_vm2, %v404_v7, %v1078_v43  ;;  %v412_v47 = vpack.c.bf16 %v396_v37, %v395_v45 }
  0x9e   : > { %v413_v48 = vpack.c.bf16 %v408_v46, %v407_v19 }
  0xa0   : > { %612 = vmatprep.mubr.bf16.mxu0 %v413_v48 }
  0xa1   : > { %613 = vmatmul.mubr.bf16.gmra.mxu0 %v412_v47 }
  0xe1   : > { %v994_v49 = vpop.f32.mrf.mxu1 }
  0xe3   : > { %v655_v51 = vpop.f32.mrf.mxu1 }
  0xe5   : > { %v995_v58 = vpop.f32.mrf.mxu1 }
  0xe7   : > { %v658_v0 = vpop.f32.mrf.mxu1 }
 0x155   : > { %v972_v50 = vpop.f32.mrf.mxu0 }
 0x157   : > { %v973_v53 = vpop.f32.mrf.mxu0 }
 0x158   : > { %v974_v55 = vadd.f32 %v973_v53, %v972_v50 }
 0x159   : > { %v975_v56 = vpop.f32.mrf.mxu0 }
 0x15a   : > { %v607_v59 = vadd.f32 %v974_v55, %v932_v54 }
 0x15b   : > { %v976_v60 = vpop.f32.mrf.mxu0 }
 0x15c   : > { %v977_v62 = vadd.f32 %v976_v60, %v975_v56  ;;  %v656_v63 = vadd.f32 %v655_v51, %v607_v59 }
 0x15e   : > { %670 = vst [vmem:[%s1327_s23] sm:$0xff] %v656_v63  ;;  %v610_v1 = vadd.f32 %v977_v62, %v932_v54  ;;  %v739_v18 = vsel %vm727_vm4, %v656_v63, 0.0 }
 0x15f   : > { %v753_v25 = vmul.f32 %v739_v18, %v739_v18 }
 0x160   : > { %v659_v4 = vadd.f32 %v658_v0, %v610_v1 }
 0x161   : > { %v978_v8 = vpop.f32.mrf.mxu0 }
 0x162   : > { %671 = vst [vmem:[%s1327_s23 + $0x8] sm:$0xff] %v659_v4  ;;  %v740_v14 = vsel %vm728_vm3, %v659_v4, 0.0 }
 0x163   : > { %v979_v9 = vpop.f32.mrf.mxu0  ;;  %v754_v22 = vmul.f32 %v740_v14, %v740_v14  ;;  %v743_v26 = vadd.f32 %v740_v14, %v739_v18 }
 0x164   : > { %v980_v12 = vadd.f32 %v979_v9, %v978_v8 }
 0x165   : > { %v981_v13 = vpop.f32.mrf.mxu0  ;;  %v757_v29 = vadd.f32 %v754_v22, %v753_v25 }
 0x166   : > { %v615_v15 = vadd.f32 %v980_v12, %v932_v54 }
 0x167   : > { %v982_v16 = vpop.f32.mrf.mxu0 }
 0x168   : > { %v664_v20 = vadd.f32 %v994_v49, %v615_v15  ;;  %v983_v21 = vadd.f32 %v982_v16, %v981_v13 }
 0x16a   : > { %672 = vst [vmem:[%s1327_s23 + $0x10] sm:$0xff] %v664_v20  ;;  %v741_v23 = vsel %vm729_vm5, %v664_v20, 0.0  ;;  %v618_v24 = vadd.f32 %v983_v21, %v932_v54 }
 0x16b   : > { %v755_v27 = vmul.f32 %v741_v23, %v741_v23  ;;  %v744_v30 = vadd.f32 %v743_v26, %v741_v23 }
 0x16c   : > { %v667_v28 = vadd.f32 %v995_v58, %v618_v24 }
 0x16d   : > { %v758_v32 = vadd.f32 %v757_v29, %v755_v27 }
 0x16e   : > { %673 = vst [vmem:[%s1327_s23 + $0x18] sm:$0xff] %v667_v28  ;;  %v742_v31 = vsel %vm730_vm6, %v667_v28, 0.0 }
 0x16f   : > { %v745_v33 = vadd.f32 %v744_v30, %v742_v31  ;;  %v756_v34 = vmul.f32 %v742_v31, %v742_v31 }
 0x171   : > { %v746_v35 = vrot.slane %v745_v33, 4  ;;  %v759_v36 = vadd.f32 %v758_v32, %v756_v34 }
 0x173   : > { %v747_v38 = vadd.f32 %v746_v35, %v745_v33  ;;  %v760_v39 = vrot.slane %v759_v36, 4 }
 0x175   : > { %v748_v40 = vrot.slane %v747_v38, 2  ;;  %v761_v41 = vadd.f32 %v760_v39, %v759_v36 }
 0x177   : > { %v749_v42 = vadd.f32 %v748_v40, %v747_v38  ;;  %v762_v43 = vrot.slane %v761_v41, 2 }
 0x179   : > { %v750_v44 = vrot.slane %v749_v42, 1  ;;  %v763_v6 = vadd.f32 %v762_v43, %v761_v41 }
 0x17b   : > { %v751_v7 = vadd.f32 %v750_v44, %v749_v42  ;;  %v764_v45 = vrot.slane %v763_v6, 1 }
 0x17d   : > { %752 = vst [vmem:[%s239_s27] sm:$0x1] %v751_v7  ;;  %v765_v37 = vadd.f32 %v764_v45, %v763_v6 }
 0x17f   : > { %766 = vst [vmem:[%s239_s27 + $0x1] sm:$0x1] %v765_v37 }
 0x180 PF: > { %s15_s17 = sadd.s32 1, %s1124_s17   ;;  %s1351_s15 = smov %s1120_s16 }
 0x181   : > { %p12_p5 = scmp.ge.s32.totalorder %s15_s17, 4   ;;  %s1352_s16 = smov %s1354_s18 }
 0x183   :  { %14 = sbr.rel (!%p12_p5) target bundleno = 2 (0x2), region = 77 }

// kernel: tps_forward.16
= control target key start
LH: loop header
LB: loop body
LE: loop exit
PB: predicated region body
PF: predicated region fallthrough
CT: control target
= control target key end

     0   :  { %s71_s0 = inlined_call_operand.vmem [shape: f32[8,128], index: 0, kind: input, shape index: {}]   ;;  %s72_s1 = inlined_call_operand.vmem [shape: f32[1,128], index: 1, kind: input, shape index: {}]   ;;  %s73_s2 = inlined_call_operand.vmem [shape: f32[1,128], index: 2, kind: input, shape index: {}]   ;;  %s74_s3 = inlined_call_operand.vmem [shape: f32[8,128], index: 3, kind: output, shape index: {}]  }
   0x1   :  { %v14_v0 = vld [vmem:[%s71_s0] sm:$0xff] }
   0x2   :  { %v37_v1 = vld [vmem:[%s72_s1] ss:$0 sm:$0xff] }
   0x3   :  { %v38_v2 = vld [vmem:[%s73_s2] ss:$0 sm:$0xff]  ;;  %v22_v3 = vmul.f32 %v37_v1, %v14_v0 }
   0x5   :  { %v30_v4 = vadd.f32 %v38_v2, %v22_v3 }
   0x7   :  { %v31_v5 = vmax.f32 %v30_v4, 0.0 }
   0x9   :  { %32 = vst [vmem:[%s74_s3] sm:$0xff] %v31_v5 }

// kernel: custom-call.11
= control target key start
LH: loop header
LB: loop body
LE: loop exit
PB: predicated region body
PF: predicated region fallthrough
CT: control target
= control target key end

     0   :  { %5 = vsyncpa [#allocation4], 0  ;;  %s926_s0 = inlined_call_operand.vmem [shape: f32[23,23], index: 0, kind: input, shape index: {}]   ;;  %s927_s1 = inlined_call_operand.vmem [shape: f32[23,23], index: 1, kind: output, shape index: {0}]   ;;  %s928_s2 = inlined_call_operand.hbm [shape: s32[23], index: 2, kind: output, shape index: {1}]   ;;  %s929_s3 = inlined_call_operand.vmem [shape: s32[23], index: 3, kind: output, shape index: {2}]  }
   0x1   :  { %s19_s14 = scalar_lea.vmem %s926_s0, 16 }
   0x2   :  { %p493_p0 = scmp.gt.s32.totalorder %s926_s0, %s19_s14 }
   0x3   :  { %s786_s17 = smov (!%p493_p0), [#allocation0]   ;;  %s790_s20 = smov (!%p493_p0), %s926_s0  }
   0x4   :  { %494 = sbr.rel (%p493_p0) target bundleno = 17 (0x11), region = 161 }
   0x9 LB: > { %v53_v0 = vld [vmem:[%s792_s20] sm:$0xff]  ;;  %s55_s20 = scalar_lea.vmem %s792_s20, 8   ;;  %s792_s20 = sphi %s790_s20, %s55_s20   ;;  %s788_s17 = sphi %s786_s17, %s56_s17  }
   0xa   : > { %54 = vst [vmem:[%s788_s17] sm:$0xff] %v53_v0  ;;  %s56_s17 = scalar_lea.vmem %s788_s17, 8   ;;  %p50_p1 = scmp.gt.s32.totalorder %s55_s20, %s19_s14 }
   0xc   :  { %52 = sbr.rel (!%p50_p1) target bundleno = 9 (0x9), region = 167 }
  0x11 PF:  { %v69_v1 = vld [vmem:[#allocation0] sm:$0xff]  ;;  %v73_v2 = vld [vmem:[#allocation0 + $0x8] sm:$0xff]  ;;  %v77_v3 = vld [vmem:[#allocation0 + $0x10] sm:$0xff]  ;;  %v80_v4 = vlaneseq  ;;  %v810_v5 = vmov 0   ;;  %s794_s0 = smov 0  }
  0x12   :  { %70 = vst [vmem:[#allocation1] sm:$0xff] %v69_v1  ;;  %74 = vst [vmem:[#allocation1 + $0x8] sm:$0xff] %v73_v2 }
  0x13   :  { %78 = vst [vmem:[#allocation1 + $0x10] sm:$0xff] %v77_v3  ;;  %79 = vst [vmem:[#allocation2] sm:$0x1] %v810_v5  ;;  %v842_v6 = vshrl.u32 %v80_v4, 7 }
  0x14 LB: > { %s551_s21 = sshll.u32 %s796_s0, 3  ;;  %s88_s0 = sadd.s32 1, %s796_s0   ;;  %s796_s0 = sphi %s794_s0, %s88_s0  }
  0x15   : > { %v92_v7 = vstv %s551_s21  ;;  %s90_s22 = scalar_lea.vmem [#allocation7], %s551_s21  ;;  %p85_p2 = scmp.ge.s32.totalorder %s88_s0, 3  }
  0x16   : > { %v93_v8 = vadd.s32 %v92_v7, %v842_v6  ;;  %s845_s23 = smov (%p85_p2), 0  }
  0x17   :  { %87 = sbr.rel (!%p85_p2) target bundleno = 20 (0x14), region = 178 }
  0x18   : > { %94 = vst [vmem:[%s90_s22] sm:$0xff] %v93_v8 }
  0x1c LB: > { %v105_v9 = vld [vmem:[#allocation1] sm:$0xff]  ;;  %v117_v10 = vld [vmem:[#allocation1 + $0x8] sm:$0xff]  ;;  %v851_v11 = vadd.s32 8, %v842_v6  ;;  %v854_v12 = vadd.s32 16, %v842_v6  ;;  %v857_v14 = vstv %s800_s23  ;;  %v129_v16 = vld [vmem:[#allocation1 + $0x10] sm:$0xff]  ;;  %s175_s24 = ssub.s32 128, %s800_s23  ;;  %s800_s23 = sphi %s845_s23, %s100_s23  }
  0x1d   : > { %v106_v13 = vand.u32 2147483647, %v105_v9  ;;  %v118_v15 = vand.u32 2147483647, %v117_v10  ;;  %vm109_vm0 = vcmp.ge.s32.totalorder %v842_v6, %v857_v14  ;;  %v130_v19 = vand.u32 2147483647, %v129_v16 }
  0x1e   : > { %vm133_vm2 = vcmp.ge.s32.totalorder %v854_v12, %v857_v14  ;;  %vm134_vm3 = vcmp.lt.s32.totalorder %v854_v12, 23  ;;  %vm121_vm5 = vcmp.ge.s32.totalorder %v851_v11, %v857_v14  ;;  %v181_v52 = vand.u32 127, %v80_v4  ;;  %v184_v54 = vld [vmem:[#allocation2] ss:$0 sm:$0xff]  ;;  %s187_s25 = scalar_lea.vmem [#allocation1], %s800_s23  ;;  %s193_s27 = scalar_lea.vmem [#allocation7], %s800_s23 }
  0x1f   : > { %vm553_vm1 = vcmp.gt.f32.partialorder %v106_v13, -inf  ;;  %vm135_vm7 = vmand %vm133_vm2, %vm134_vm3  ;;  %v189_v55 = vld [vmem:[%s187_s25] ss:$0 sm:$0xff]  ;;  %s100_s23 = sadd.s32 1, %s800_s23  }
  0x20   : > { %vm113_vm4 = vmand %vm109_vm0, %vm553_vm1  ;;  %vm873_vm2 = vcmp.eq.s32.totalorder %v181_v52, %v857_v14  ;;  %v195_v56 = vld [vmem:[%s193_s27] ss:$0 sm:$0xff]  ;;  %p97_p3 = scmp.ge.s32.totalorder %s100_s23, 23  }
  0x21   : > { %v114_v17 = vsel %vm113_vm4, %v842_v6, %v857_v14  ;;  %v115_v18 = vsel %vm113_vm4, %v106_v13, -inf  ;;  %vm228_vm4 = vcmp.gt.s32.totalorder %v851_v11, %v857_v14  ;;  %s802_s5 = smov (%p97_p3), %s927_s1   ;;  %s806_s6 = smov (%p97_p3), [#allocation1]  }
  0x22   : > { %vm124_vm6 = vcmp.lt.f32.partialorder %v115_v18, %v118_v15 }
  0x23   : > { %vm125_vm8 = vmand %vm121_vm5, %vm124_vm6  ;;  %vm213_vm5 = vcmp.gt.s32.totalorder %v842_v6, %v857_v14  ;;  %vm243_vm6 = vcmp.gt.s32.totalorder %v854_v12, %v857_v14 }
  0x24   : > { %v126_v20 = vsel %vm125_vm8, %v851_v11, %v114_v17  ;;  %v127_v21 = vsel %vm125_vm8, %v118_v15, %v115_v18  ;;  %vm232_vm8 = vmand %vm228_vm4, %vm873_vm2 }
  0x25   : > { %vm136_vm9 = vcmp.lt.f32.partialorder %v127_v21, %v130_v19 }
  0x26   : > { %vm137_vm10 = vmand %vm135_vm7, %vm136_vm9 }
  0x27   : > { %v138_v22 = vsel %vm137_vm10, %v854_v12, %v126_v20  ;;  %v139_v23 = vsel %vm137_vm10, %v130_v19, %v127_v21  ;;  %vm217_vm9 = vmand %vm213_vm5, %vm873_vm2 }
  0x28   : > { %v140_v24 = vrot.slane %v139_v23, 1  ;;  %v141_v25 = vrot.slane %v138_v22, 1  ;;  %vm247_vm10 = vmand %vm243_vm6, %vm873_vm2 }
  0x2a   : > { %vm142_vm11 = vcmp.ge.f32.partialorder %v140_v24, %v139_v23  ;;  %v145_v26 = vrot.slane %v140_v24, 1  ;;  %v146_v27 = vrot.slane %v141_v25, 1 }
  0x2b   : > { %v143_v28 = vsel %vm142_vm11, %v140_v24, %v139_v23  ;;  %v144_v29 = vsel %vm142_vm11, %v141_v25, %v138_v22  ;;  %vm205_vm11 = vcmp.gt.s32.totalorder %v181_v52, %v857_v14 }
  0x2c   : > { %vm147_vm12 = vcmp.ge.f32.partialorder %v145_v26, %v143_v28  ;;  %v150_v30 = vrot.slane %v145_v26, 1  ;;  %v151_v31 = vrot.slane %v146_v27, 1 }
  0x2d   : > { %v148_v32 = vsel %vm147_vm12, %v145_v26, %v143_v28  ;;  %v149_v33 = vsel %vm147_vm12, %v146_v27, %v144_v29 }
  0x2e   : > { %vm152_vm13 = vcmp.ge.f32.partialorder %v150_v30, %v148_v32  ;;  %v155_v34 = vrot.slane %v150_v30, 1  ;;  %v156_v35 = vrot.slane %v151_v31, 1 }
  0x2f   : > { %v153_v36 = vsel %vm152_vm13, %v150_v30, %v148_v32  ;;  %v154_v37 = vsel %vm152_vm13, %v151_v31, %v149_v33 }
  0x30   : > { %vm157_vm14 = vcmp.ge.f32.partialorder %v155_v34, %v153_v36  ;;  %v160_v38 = vrot.slane %v155_v34, 1  ;;  %v161_v39 = vrot.slane %v156_v35, 1 }
  0x31   : > { %v158_v40 = vsel %vm157_vm14, %v155_v34, %v153_v36  ;;  %v159_v41 = vsel %vm157_vm14, %v156_v35, %v154_v37 }
  0x32   : > { %vm162_vm15 = vcmp.ge.f32.partialorder %v160_v38, %v158_v40  ;;  %v165_v42 = vrot.slane %v160_v38, 1  ;;  %v166_v43 = vrot.slane %v161_v39, 1 }
  0x33   : > { %v163_v44 = vsel %vm162_vm15, %v160_v38, %v158_v40  ;;  %v164_v45 = vsel %vm162_vm15, %v161_v39, %v159_v41 }
  0x34   : > { %vm167_vm0 = vcmp.ge.f32.partialorder %v165_v42, %v163_v44  ;;  %v170_v46 = vrot.slane %v165_v42, 1  ;;  %v171_v47 = vrot.slane %v166_v43, 1 }
  0x35   : > { %v168_v48 = vsel %vm167_vm0, %v165_v42, %v163_v44  ;;  %v169_v49 = vsel %vm167_vm0, %v166_v43, %v164_v45 }
  0x36   : > { %vm172_vm1 = vcmp.ge.f32.partialorder %v170_v46, %v168_v48 }
  0x37   : > { %v174_v50 = vsel %vm172_vm1, %v171_v47, %v169_v49 }
  0x38   : > { %176 = vrot.lane.b32.xlu0 %v174_v50, %s175_s24 }
  0xaa   : > { %v177_v51 = vpop.permute.xlu0 %176 }
  0xab   : > { %561 = vpush %v177_v51 }
  0xdc   : > { %s562_s26 = spop %561 }
  0xdd   : > { %v183_v57 = vstv %s562_s26  ;;  %s188_s28 = scalar_lea.vmem [#allocation1], %s562_s26  ;;  %s194_s29 = scalar_lea.vmem [#allocation7], %s562_s26 }
  0xde   : > { %v185_v58 = vsel %vm873_vm2, %v183_v57, %v184_v54  ;;  %v190_v59 = vld [vmem:[%s188_s28] ss:$0 sm:$0xff] }
  0xdf   : > { %v196_v60 = vld [vmem:[%s194_s29] ss:$0 sm:$0xff]  ;;  %186 = vst [vmem:[#allocation2] sm:$0x1] %v185_v58  ;;  %191 = vst [vmem:[%s188_s28] sm:$0x1] %v189_v55  ;;  %vm199_vm3 = vcmp.ne.f32.partialorder %v190_v59, 0.0 }
  0xe0   : > { %197 = vst [vmem:[%s194_s29] sm:$0x1] %v195_v56  ;;  %192 = vst [vmem:[%s187_s25] sm:$0x1] %v190_v59  ;;  %v206_v17 = vsel %vm205_vm11, %v190_v59, 0.0 }
  0xe1   : > { %198 = vst [vmem:[%s193_s27] sm:$0x1] %v196_v60  ;;  %vm200_vm7 = vmand %vm873_vm2, %vm199_vm3 }
  0xe2   : > { %v201_v61 = vsel %vm200_vm7, %v190_v59, 1.0 }
  0xe3   : > { %v229_v62 = vsel %vm228_vm4, %v201_v61, 1.0  ;;  %v214_v63 = vsel %vm213_vm5, %v201_v61, 1.0  ;;  %v244_v0 = vsel %vm243_vm6, %v201_v61, 1.0 }
  0xe4   : > { %694 = vrcp.f32 %v229_v62 }
  0xe5   : > { %696 = vrcp.f32 %v214_v63 }
  0xe6   : > { %698 = vrcp.f32 %v244_v0  ;;  %v309_v27 = vld [vmem:[#allocation2] sm:$0x1] (%p97_p3) }
  0xe7   : > { %v225_v2 = vld [vmem:[#allocation1 + $0x8] sm:$0xff]  ;;  %v210_v7 = vld [vmem:[#allocation1] sm:$0xff]  ;;  %v240_v10 = vld [vmem:[#allocation1 + $0x10] sm:$0xff]  ;;  %312 = vst [vmem:[#allocation3] sm:$0x1] (%p97_p3), %v309_v27 }
  0xe8   :  { %v254_v12 = vld [vmem:[#allocation7] sm:$0xff] (%p97_p3)  ;;  %v256_v14 = vld [vmem:[#allocation7 + $0x8] sm:$0xff] (%p97_p3)  ;;  %v258_v28 = vld [vmem:[#allocation7 + $0x10] sm:$0xff] (%p97_p3) }
  0xf1   : > { %v695_v1 = vpop.eup %694 }
  0xf2   : > { %v697_v3 = vpop.eup %696  ;;  %v231_v5 = vmul.f32 %v695_v1, %v225_v2 }
  0xf3   : > { %v699_v8 = vpop.eup %698  ;;  %v216_v9 = vmul.f32 %v697_v3, %v210_v7 }
  0xf4   : > { %v233_v13 = vsel %vm232_vm8, %v231_v5, 0.0  ;;  %v246_v15 = vmul.f32 %v699_v8, %v240_v10 }
  0xf5   : > { %234 = vadd.xlane.f32.xlu1 %v233_v13  ;;  %v218_v16 = vsel %vm217_vm9, %v216_v9, 0.0 }
  0xf6   : > { %219 = vadd.xlane.f32.xlu0 %v218_v16  ;;  %v248_v11 = vsel %vm247_vm10, %v246_v15, 0.0 }
  0xf9   : > { %249 = vadd.xlane.f32.xlu1 %v248_v11 }
 0x123   :  { %272 = vxpose.xlu0.b32.start [1/3] (short) (narrow) (%p97_p3), %v254_v12, 8 }
 0x127   :  { %273 = vxpose.xlu0.b32.cont [2/3] (short) (narrow) (%p97_p3), %v256_v14, 8 }
 0x12b   :  { %274 = vxpose.xlu0.b32.end [3/3] (short) (narrow) (%p97_p3), %v258_v28, 8 }
 0x17e   : > { %v235_v18 = vpop.xlane.xlu1 %234 }
 0x17f   : > { %v236_v19 = vmul.f32 %v235_v18, %v206_v17  ;;  %v220_v20 = vpop.xlane.xlu0 %219 }
 0x180   : > { %v221_v21 = vmul.f32 %v220_v20, %v206_v17 }
 0x181   : > { %v237_v22 = vsub.f32 %v231_v5, %v236_v19 }
 0x182   : > { %v222_v23 = vsub.f32 %v216_v9, %v221_v21  ;;  %v250_v24 = vpop.xlane.xlu1 %249 }
 0x183   : > { %238 = vst [vmem:[#allocation1 + $0x8] sm:$0xff] %v237_v22  ;;  %v251_v25 = vmul.f32 %v250_v24, %v206_v17 }
 0x184   : > { %223 = vst [vmem:[#allocation1] sm:$0xff] %v222_v23 }
 0x185   : > { %v252_v26 = vsub.f32 %v246_v15, %v251_v25 }
 0x187   : > { %253 = vst [vmem:[#allocation1 + $0x10] sm:$0xff] %v252_v26 }
 0x189   :  { %99 = sbr.rel (!%p97_p3) target bundleno = 28 (0x1c), region = 189 }
 0x19f   :  { %v288_v29 = vpop.trf.xlu0 }
 0x1a0   :  { %304 = vst [vmem:[#allocation5] sm:$0x1] %v288_v29 }
 0x1a7   :  { %v317_v30 = vld [vmem:[#allocation5] sm:$0x1] }
 0x1a8   :  { %320 = vst [vmem:[#allocation6] sm:$0x1] %v317_v30 }
 0x1a9 LB: > { %v368_v4 = vld [vmem:[%s808_s6] sm:$0xff]  ;;  %s370_s6 = scalar_lea.vmem %s808_s6, 8   ;;  %s808_s6 = sphi %s806_s6, %s370_s6   ;;  %s804_s5 = sphi %s802_s5, %s371_s5  }
 0x1aa   : > { %369 = vst [vmem:[%s804_s5] sm:$0xff] %v368_v4  ;;  %s371_s5 = scalar_lea.vmem %s804_s5, 8   ;;  %p365_p4 = scmp.gt.s32.totalorder %s370_s6, [#allocation1 + $0x10] }
 0x1ab   :  { %s811_s7 = smov (%p365_p4), [#allocation3]  }
 0x1ac   :  { %367 = sbr.rel (!%p365_p4) target bundleno = 425 (0x1a9), region = 211  ;;  %s389_s8 = sshll.u32 (%p365_p4), %s811_s7, 4  ;;  %s390_s8 = int_to_ptr.vmem [resolvable:$true] %s389_s8 }
 0x1ad   :  { %s700_s1 = scalar_lea.vmem (%p365_p4), %s390_s8, 16  ;;  %s704_s11 = scalar_lea.vmem (%p365_p4), %s390_s8, 32 }
 0x1ae   :  { %p701_p5 = scmp.ne.s32.totalorder (%p365_p4), %s390_s8, %s700_s1  ;;  %p705_p6 = scmp.lt.s32.totalorder (%p365_p4), %s390_s8, %s390_s8 }
 0x1af   :  { %v456_v6 = vld [vmem:[#allocation6] sm:$0x1] (%p365_p4)  ;;  %p706_p7 = scmp.lt.s32.totalorder (%p365_p4), %s704_s11, %s700_s1 }
 0x1b0   :  { %457 = vst [vmem:[%s929_s3] sm:$0x1] (%p365_p4), %v456_v6 }
 0x1b1   :  { %p707_p8 = por %p706_p7, %p705_p6 }
 0x1b3   :  { %p708_p9 = pnand %p707_p8, %p701_p5 }
 0x1b5   :  { %711 = shalt.err (!%p708_p9)
}
 0x1b6   :  { %392 = dma.vmem_to_hbm [thread:$0]  %s390_s8, 16, %s928_s2, [#allocation4]  }
 0x1b7   :  { %784 = dma.done.wait [#allocation4], 16  }
 0x1b8   :  { %785 = vsyncadd [#allocation4], 4294967280 }
 0x1b9   :  { %463 = vsyncpa [#allocation4], 1 }

// kernel: tps_forward.15
= control target key start
LH: loop header
LB: loop body
LE: loop exit
PB: predicated region body
PF: predicated region fallthrough
CT: control target
= control target key end

     0   :  { %s1182_s15 = smov 0   ;;  %s1184_s16 = smov 0   ;;  %s1381_s0 = inlined_call_operand.vmem [shape: f32[2,4,10,64], index: 0, kind: input, shape index: {}]   ;;  %s1382_s1 = inlined_call_operand.vmem [shape: bf16[576,128], index: 1, kind: input, shape index: {}]   ;;  %s1383_s2 = inlined_call_operand.vmem [shape: f32[1,128], index: 2, kind: input, shape index: {}]   ;;  %s1384_s3 = inlined_call_operand.vmem [shape: f32[2,16,128], index: 3, kind: output, shape index: {0}]   ;;  %s1385_s4 = inlined_call_operand.vmem [shape: f32[2,1,2,128], index: 4, kind: output, shape index: {1}]  }
   0x1   :  { %s1186_s17 = smov 0  }
   0x2 LB: > { %s27_s18 = sadd.s32 1, %s1148_s16  ;;  %p926_p0 = scmp.ge.s32.totalorder %s1152_s17, 1  ;;  %s1152_s17 = sphi %s1186_s17, %s15_s17   ;;  %s1148_s16 = sphi %s1184_s16, %s1387_s16   ;;  %s1144_s15 = sphi %s1182_s15, %s1386_s15  }
   0x3   : > { %p29_p1 = scmp.ge.s32.totalorder %s27_s18, 2  ;;  %p181_p2 = scmp.lt.s32.totalorder %s1152_s17, 3 }
   0x5   : > { %s1389_s18 = smov (%p29_p1, %s27_s18), 0  ;;  %p182_p3 = pnand %p926_p0, %p181_p2 }
   0x6   : > { %p218_p4 = scmp.lt.s32.totalorder (!%p182_p3), %s1144_s15, 1  ;;  %s1154_s9 = smov (!%p182_p3), 64  }
   0x7   : > { %185 = sbr.rel (%p182_p3) target bundleno = 375 (0x177), region = 32 }
   0xc   : > { %v1094_v0 = vld [vmem:[%s1382_s1 + $0x78] sm:$0xff]   ;;  %s1391_s15 = smov (!%p218_p4, %s1144_s15), 1  ;;  %v1097_v3 = vld [vmem:[%s1382_s1 + $0x70] sm:$0xff]   ;;  %v1101_v19 = vld [vmem:[%s1382_s1 + $0x68] sm:$0xff]   ;;  %v1155_v44 = vmov 0.0   ;;  %vm300_vm0 = vcmask 523264  }
   0xd   : > { %v1095_v1 = vld [vmem:[%s1382_s1 + $0x38] sm:$0xff]   ;;  %986 = vmatprep.subr.bf16.mxu0 %v1094_v0  ;;  %s984_s25 = sshll.u32 %s1391_s15, 6  ;;  %v1099_v15 = vld [vmem:[%s1382_s1 + $0x30] sm:$0xff]   ;;  %v1103_v21 = vld [vmem:[%s1382_s1 + $0x28] sm:$0xff]   ;;  %vm1156_vm1 = vmmov 0   ;;  %s985_s8 = sshll.u32 %s1391_s15, 4 }
   0xe   : > { %v1096_v2 = vld [vmem:[%s1382_s1 + $0xf8] sm:$0xff]   ;;  %987 = vmatpush3.bf16.msra.mxu0 %v1095_v1  ;;  %s1218_s30 = scalar_lea.vmem %s1381_s0, %s984_s25  ;;  %v1100_v17 = vld [vmem:[%s1382_s1 + $0xf0] sm:$0xff]   ;;  %v1104_v22 = vld [vmem:[%s1382_s1 + $0xe8] sm:$0xff]   ;;  %s231_s11 = scalar_lea.vmem %s1384_s3, %s985_s8 }
   0xf   : > { %1008 = vmatprep.subr.bf16.mxu1 %v1096_v2  ;;  %v1098_v4 = vld [vmem:[%s1382_s1 + $0xb8] sm:$0xff]   ;;  %v1224_v5 = vld [vmem:[%s1218_s30 + $0x10] sm:$0xff]  ;;  %v1227_v6 = vld [vmem:[%s1218_s30 + $0x20] sm:$0xff]  ;;  %988 = vmatprep.subr.bf16.mxu0 %v1097_v3  ;;  %s931_s12 = sshll.u32 %s1391_s15, 1 }
  0x10   : > { %v1230_v7 = vld [vmem:[%s1218_s30 + $0x21] sm:$0xff]  ;;  %v1074_v8 = vpack.i.bf16 %v1227_v6, %v1224_v5  ;;  %v941_v9 = vld [vmem:[%s1218_s30 + $0x31] sm:$0xff]  ;;  %1009 = vmatpush3.bf16.msra.mxu1 %v1098_v4  ;;  %s239_s19 = scalar_lea.vmem %s1385_s4, %s931_s12 }
  0x11   : > { %v246_v10 = vld [vmem:[%s1218_s30 + $0x1] sm:$0xff]  ;;  %v1237_v11 = vld [vmem:[%s1218_s30 + $0x11] sm:$0xff]  ;;  %v1084_v12 = vpack.i.bf16 %v941_v9, %v1230_v7  ;;  %1010 = vmatprep.subr.bf16.mxu1 %v1100_v17 }
  0x12   : > { %v1241_v13 = vld [vmem:[%s1218_s30 + $0x12] sm:$0xff]  ;;  %v1244_v14 = vld [vmem:[%s1218_s30 + $0x22] sm:$0xff]  ;;  %1075 = vrot.lane.b32.xlu0 %v1074_v8, %s1154_s9  ;;  %v1079_v16 = vpack.i.bf16 %v1237_v11, %v246_v10  ;;  %989 = vmatpush3.bf16.msra.mxu0 %v1099_v15 }
  0x13   : > { %1085 = vrot.lane.b32.xlu1 %v1084_v12, %s1154_s9  ;;  %v1089_v18 = vpack.i.bf16 %v1244_v14, %v1241_v13  ;;  %v1102_v20 = vld [vmem:[%s1382_s1 + $0xb0] sm:$0xff]   ;;  %990 = vmatprep.subr.bf16.mxu0 %v1101_v19  ;;  %v1105_v23 = vld [vmem:[%s1382_s1 + $0x60] sm:$0xff]   ;;  %v1106_v24 = vld [vmem:[%s1382_s1 + $0xa8] sm:$0xff]   ;;  %v737_v19 = vlaneseq }
  0x14   : > { %1011 = vmatpush3.bf16.msra.mxu1 %v1102_v20  ;;  %v1107_v25 = vld [vmem:[%s1382_s1 + $0x20] sm:$0xff]   ;;  %v1109_v27 = vld [vmem:[%s1382_s1 + $0x58] sm:$0xff]   ;;  %v1113_v31 = vld [vmem:[%s1382_s1 + $0x50] sm:$0xff]  }
  0x15   : > { %1012 = vmatprep.subr.bf16.mxu1 %v1104_v22  ;;  %v1108_v26 = vld [vmem:[%s1382_s1 + $0xe0] sm:$0xff]   ;;  %v1111_v29 = vld [vmem:[%s1382_s1 + $0x18] sm:$0xff]   ;;  %v1115_v33 = vld [vmem:[%s1382_s1 + $0x10] sm:$0xff]  }
  0x16   : > { %1080 = vrot.lane.b32.xlu0 %v1079_v16, %s1154_s9  ;;  %991 = vmatpush3.bf16.msra.mxu0 %v1103_v21  ;;  %v1110_v28 = vld [vmem:[%s1382_s1 + $0xa0] sm:$0xff]   ;;  %v1112_v30 = vld [vmem:[%s1382_s1 + $0xd8] sm:$0xff]   ;;  %v1116_v34 = vld [vmem:[%s1382_s1 + $0xd0] sm:$0xff]  }
  0x17   : > { %1090 = vrot.lane.b32.xlu1 %v1089_v18, %s1154_s9  ;;  %992 = vmatprep.subr.bf16.mxu0 %v1105_v23  ;;  %v1114_v32 = vld [vmem:[%s1382_s1 + $0x98] sm:$0xff]   ;;  %v1117_v35 = vld [vmem:[%s1382_s1 + $0x48] sm:$0xff]   ;;  %v1118_v36 = vld [vmem:[%s1382_s1 + $0x90] sm:$0xff]  }
  0x18   : > { %1013 = vmatpush3.bf16.msra.mxu1 %v1106_v24  ;;  %v1119_v37 = vld [vmem:[%s1382_s1 + $0x8] sm:$0xff]   ;;  %v1121_v39 = vld [vmem:[%s1382_s1 + $0x40] sm:$0xff]   ;;  %v943_v45 = vld [vmem:[%s1218_s30 + $0x32] sm:$0xff]  ;;  %v738_v24 = vshrl.u32 %v737_v19, 7 }
  0x19   : > { %1014 = vmatprep.subr.bf16.mxu1 %v1108_v26  ;;  %v1120_v38 = vld [vmem:[%s1382_s1 + $0xc8] sm:$0xff]   ;;  %v1123_v41 = vld [vmem:[%s1382_s1] sm:$0xff]   ;;  %v313_v46 = vpack.c.bf16 %v943_v45, %v1244_v14  ;;  %v939_v52 = vld [vmem:[%s1218_s30 + $0x30] sm:$0xff] }
  0x1a   : > { %993 = vmatpush3.bf16.msra.mxu0 %v1107_v25  ;;  %v1122_v40 = vld [vmem:[%s1382_s1 + $0x88] sm:$0xff]   ;;  %v1124_v42 = vld [vmem:[%s1382_s1 + $0xc0] sm:$0xff]   ;;  %v1126_v9 = vld [vmem:[%s1382_s1 + $0x118] sm:$0xff]  }
  0x1b   : > { %994 = vmatprep.subr.bf16.mxu0 %v1109_v27  ;;  %v1125_v43 = vld [vmem:[%s1382_s1 + $0x80] sm:$0xff]   ;;  %v1128_v14 = vld [vmem:[%s1382_s1 + $0x108] sm:$0xff]  }
  0x1c   : > { %1015 = vmatpush3.bf16.msra.mxu1 %v1110_v28  ;;  %v248_v48 = vld [vmem:[%s1218_s30 + $0x2] sm:$0xff]  ;;  %v944_v21 = vld [vmem:[%s1383_s2] ss:$0 sm:$0xff] }
  0x1d   : > { %1016 = vmatprep.subr.bf16.mxu1 %v1112_v30  ;;  %v244_v59 = vld [vmem:[%s1218_s30] sm:$0xff]  ;;  %v744_v30 = vand.u32 7, %v738_v24 }
  0x1e   : > { %995 = vmatpush3.bf16.msra.mxu0 %v1111_v29  ;;  %v739_v29 = vadd.s32 8, %v738_v24 }
  0x1f   : > { %996 = vmatprep.subr.bf16.mxu0 %v1113_v31  ;;  %vm764_vm2 = vcmp.lt.s32.totalorder %v744_v30, 2 }
  0x20   : > { %1017 = vmatpush3.bf16.msra.mxu1 %v1114_v32 }
  0x21   : > { %1018 = vmatprep.subr.bf16.mxu1 %v1116_v34 }
  0x22   : > { %997 = vmatpush3.bf16.msra.mxu0 %v1115_v33 }
  0x23   : > { %998 = vmatprep.subr.bf16.mxu0 %v1117_v35  ;;  %v751_v35 = vand.u32 7, %v739_v29 }
  0x24   : > { %1019 = vmatpush3.bf16.msra.mxu1 %v1118_v36 }
  0x25   : > { %1020 = vmatprep.subr.bf16.mxu1 %v1120_v38  ;;  %vm765_vm3 = vcmp.lt.s32.totalorder %v751_v35, 2 }
  0x26   : > { %999 = vmatpush3.bf16.msra.mxu0 %v1119_v37 }
  0x27   : > { %1000 = vmatprep.subr.bf16.mxu0 %v1121_v39 }
  0x28   : > { %1021 = vmatpush3.bf16.msra.mxu1 %v1122_v40 }
  0x29   : > { %1022 = vmatprep.subr.bf16.mxu1 %v1124_v42 }
  0x2a   : > { %1001 = vmatpush3.bf16.msra.mxu0 %v1123_v41 }
  0x2b   : > { %1035 = vmatprep.subr.bf16.mxu0 %v1155_v44 }
  0x2c   : > { %1023 = vmatpush3.bf16.msra.mxu1 %v1125_v43 }
  0x84   : > { %v1076_v47 = vpop.permute.xlu0 %1075 }
  0x85   : > { %v1078_v49 = vunpack.i.h.bf16 %v1076_v47  ;;  %v1077_v50 = vunpack.i.l.bf16 %v1076_v47  ;;  %v1086_v51 = vpop.permute.xlu1 %1085 }
  0x86   : > { %v1088_v53 = vunpack.i.h.bf16 %v1086_v51  ;;  %v1087_v54 = vunpack.i.l.bf16 %v1086_v51 }
  0x87   : > { %v303_v55 = vsel %vm300_vm0, %v248_v48, %v1077_v50  ;;  %v304_v56 = vsel %vm300_vm0, %v1241_v13, %v1078_v49 }
  0x88   : > { %v1081_v57 = vpop.permute.xlu0 %1080  ;;  %v310_v58 = vpack.c.bf16 %v304_v56, %v303_v55  ;;  %v307_v60 = vsel %vm300_vm0, %v1227_v6, %v1087_v54  ;;  %v308_v61 = vsel %vm300_vm0, %v939_v52, %v1088_v53 }
  0x89   : > { %v1083_v62 = vunpack.i.h.bf16 %v1081_v57  ;;  %v1082_v63 = vunpack.i.l.bf16 %v1081_v57  ;;  %v1091_v0 = vpop.permute.xlu1 %1090  ;;  %v312_v1 = vpack.c.bf16 %v308_v61, %v307_v60 }
  0x8a   : > { %v1093_v2 = vunpack.i.h.bf16 %v1091_v0  ;;  %v1092_v3 = vunpack.i.l.bf16 %v1091_v0  ;;  %644 = vmatprep.mubr.bf16.mxu0 %v310_v58 }
  0x8b   : > { %v301_v4 = vsel %vm300_vm0, %v244_v59, %v1082_v63  ;;  %v302_v8 = vsel %vm300_vm0, %v1224_v5, %v1083_v62  ;;  %685 = vmatprep.mubr.bf16.mxu1 %v312_v1  ;;  %v1127_v5 = vld [vmem:[%s1382_s1 + $0x110] sm:$0xff]  }
  0x8c   : > { %v309_v6 = vpack.c.bf16 %v302_v8, %v301_v4  ;;  %v305_v10 = vsel %vm300_vm0, %v1237_v11, %v1092_v3  ;;  %v306_v12 = vsel %vm300_vm0, %v1230_v7, %v1093_v2  ;;  %v1129_v7 = vld [vmem:[%s1382_s1 + $0x100] sm:$0xff]  }
  0x8d   : > { %v311_v13 = vpack.c.bf16 %v306_v12, %v305_v10 }
  0x8e   : > { %645 = vmatmul.mubr.bf16.vlgmr.msra.gmra.mxu0 %v309_v6 }
  0x8f   : > { %1036 = vmatpush3.bf16.msra.mxu0 %v1126_v9  ;;  %686 = vmatmul.mubr.bf16.vlgmr.msra.gmra.mxu1 %v311_v13 }
  0x90   : > { %1037 = vmatprep.subr.bf16.mxu0 %v1155_v44  ;;  %1043 = vmatprep.mubr.msk.bf16.mxu0 %vm1156_vm1, %v1155_v44 }
  0x93   : > { %1038 = vmatpush3.bf16.msra.mxu0 %v1127_v5 }
  0x94   : > { %1039 = vmatprep.subr.bf16.mxu0 %v1155_v44 }
  0x97   : > { %1040 = vmatpush3.bf16.msra.mxu0 %v1128_v14 }
  0x98   : > { %1041 = vmatprep.subr.bf16.mxu0 %v1155_v44 }
  0x9b   : > { %1042 = vmatpush3.bf16.msra.mxu0 %v1129_v7 }
  0x9e   : > { %1044 = vmatmul.mubr.msk.bf16.vlgmr.msra.gmra.mxu0 %vm300_vm0, %v313_v46 }
 0x14e   : > { %v1002_v11 = vpop.f32.mrf.mxu0 }
 0x14f   : > { %v1024_v15 = vpop.f32.mrf.mxu1 }
 0x150   : > { %v1003_v16 = vpop.f32.mrf.mxu0 }
 0x151   : > { %v1025_v18 = vpop.f32.mrf.mxu1  ;;  %v1004_v20 = vadd.f32 %v1003_v16, %v1002_v11 }
 0x152   : > { %v1005_v17 = vpop.f32.mrf.mxu0  ;;  %v1026_v26 = vadd.f32 %v1025_v18, %v1024_v15 }
 0x153   : > { %v1027_v23 = vpop.f32.mrf.mxu1  ;;  %v647_v25 = vadd.f32 %v1004_v20, %v944_v21 }
 0x154   : > { %v1006_v22 = vpop.f32.mrf.mxu0 }
 0x155   : > { %v1007_v27 = vadd.f32 %v1006_v22, %v1005_v17  ;;  %v1028_v28 = vpop.f32.mrf.mxu1  ;;  %v688_v33 = vadd.f32 %v1026_v26, %v647_v25 }
 0x156   : > { %v1029_v32 = vadd.f32 %v1028_v28, %v1027_v23 }
 0x157   : > { %v650_v31 = vadd.f32 %v1007_v27, %v944_v21 }
 0x159   : > { %v691_v38 = vadd.f32 %v1029_v32, %v650_v31 }
 0x15e   : > { %v728_v34 = vpop.f32.mrf.mxu0 }
 0x15f   : > { %v729_v36 = vadd.f32 %v728_v34, %v688_v33 }
 0x160   : > { %v1045_v37 = vpop.f32.mrf.mxu0 }
 0x161   : > { %735 = vst [vmem:[%s231_s11] sm:$0xff] %v729_v36  ;;  %v770_v40 = vsel %vm764_vm2, %v729_v36, 0.0 }
 0x162   : > { %v731_v39 = vpop.f32.mrf.mxu0  ;;  %v780_v44 = vmul.f32 %v770_v40, %v770_v40 }
 0x163   : > { %v732_v41 = vadd.f32 %v731_v39, %v691_v38 }
 0x164   : > { %v1046_v42 = vpop.f32.mrf.mxu0 }
 0x165   : > { %736 = vst [vmem:[%s231_s11 + $0x8] sm:$0xff] %v732_v41  ;;  %v771_v43 = vsel %vm765_vm3, %v732_v41, 0.0 }
 0x166   : > { %v772_v45 = vadd.f32 %v771_v43, %v770_v40  ;;  %v781_v46 = vmul.f32 %v771_v43, %v771_v43 }
 0x168   : > { %v773_v47 = vrot.slane %v772_v45, 4  ;;  %v782_v48 = vadd.f32 %v781_v46, %v780_v44 }
 0x16a   : > { %v774_v49 = vadd.f32 %v773_v47, %v772_v45  ;;  %v783_v50 = vrot.slane %v782_v48, 4 }
 0x16c   : > { %v775_v51 = vrot.slane %v774_v49, 2  ;;  %v784_v52 = vadd.f32 %v783_v50, %v782_v48 }
 0x16e   : > { %v776_v53 = vadd.f32 %v775_v51, %v774_v49  ;;  %v785_v54 = vrot.slane %v784_v52, 2 }
 0x170   : > { %v777_v55 = vrot.slane %v776_v53, 1  ;;  %v786_v56 = vadd.f32 %v785_v54, %v784_v52 }
 0x172   : > { %v778_v57 = vadd.f32 %v777_v55, %v776_v53  ;;  %v787_v58 = vrot.slane %v786_v56, 1 }
 0x174   : > { %779 = vst [vmem:[%s239_s19] sm:$0x1] %v778_v57  ;;  %v788_v59 = vadd.f32 %v787_v58, %v786_v56 }
 0x176   : > { %789 = vst [vmem:[%s239_s19 + $0x1] sm:$0x1] %v788_v59 }
 0x177 PF: > { %s15_s17 = sadd.s32 1, %s1152_s17   ;;  %s1386_s15 = smov %s1148_s16 }
 0x178   : > { %p12_p5 = scmp.ge.s32.totalorder %s15_s17, 4   ;;  %s1387_s16 = smov %s1389_s18 }
 0x17a   :  { %14 = sbr.rel (!%p12_p5) target bundleno = 2 (0x2), region = 77 }

// kernel: custom-call.13
= control target key start
LH: loop header
LB: loop body
LE: loop exit
PB: predicated region body
PF: predicated region fallthrough
CT: control target
= control target key end

     0   :  { %v43_v0 = vlaneseq  ;;  %v499_v9 = vmov -1.0   ;;  %v500_v53 = vmov 0.0   ;;  %s603_s0 = inlined_call_operand.vmem [shape: f32[1,23,23], index: 0, kind: input, shape index: {}]   ;;  %s604_s1 = inlined_call_operand.vmem [shape: f32[1,23,23], index: 1, kind: output, shape index: {}]  }
   0x1   :  { %v34_v1 = vld [vmem:[%s603_s0] sm:$0xff]  ;;  %v36_v36 = vld [vmem:[%s603_s0 + $0x8] sm:$0xff] }
   0x2   :  { %v514_v2 = vand.u32 127, %v43_v0  ;;  %v516_v3 = vshrl.u32 %v43_v0, 7 }
   0x4   :  { %vm49_vm0 = vcmp.eq.s32.totalorder %v516_v3, %v514_v2  ;;  %vm45_vm1 = vcmp.lt.s32.totalorder %v514_v2, 23  ;;  %vm54_vm2 = vcmp.ge.s32.totalorder %v516_v3, %v514_v2  ;;  %vm100_vm4 = vcmp.eq.s32.totalorder %v514_v2, 0 }
   0x5   :  { %v51_v4 = vsel %vm49_vm0, %v34_v1, 0.0  ;;  %vm55_vm3 = vmand %vm54_vm2, %vm45_vm1  ;;  %vm97_vm5 = vcmp.eq.s32.totalorder %v514_v2, %v516_v3  ;;  %v101_v10 = vsel %vm100_vm4, 1.0, %v499_v9  ;;  %vm122_vm6 = vcmp.eq.s32.totalorder %v514_v2, 1 }
   0x6   :  { %52 = vadd.xlane.f32.xlu0 %v51_v4  ;;  %v56_v6 = vsel %vm55_vm3, %v34_v1, 0.0  ;;  %v102_v11 = vsel %vm97_vm5, %v101_v10, 0.0  ;;  %vm132_vm7 = vcmp.eq.s32.totalorder %v514_v2, 2  ;;  %vm142_vm8 = vcmp.eq.s32.totalorder %v514_v2, 3 }
   0x7   :  { %vm152_vm9 = vcmp.eq.s32.totalorder %v514_v2, 4  ;;  %v64_v31 = vadd.s32 8, %v516_v3  ;;  %vm162_vm11 = vcmp.eq.s32.totalorder %v514_v2, 5  ;;  %vm172_vm14 = vcmp.eq.s32.totalorder %v514_v2, 6 }
   0x8   :  { %vm182_vm0 = vcmp.eq.s32.totalorder %v514_v2, 7  ;;  %vm192_vm2 = vcmp.eq.s32.totalorder %v514_v2, 8  ;;  %vm206_vm3 = vcmp.eq.s32.totalorder %v514_v2, 9  ;;  %vm220_vm4 = vcmp.eq.s32.totalorder %v514_v2, 10 }
   0x9   :  { %vm65_vm10 = vcmp.eq.s32.totalorder %v64_v31, %v514_v2  ;;  %vm70_vm12 = vcmp.ge.s32.totalorder %v64_v31, %v514_v2  ;;  %vm108_vm15 = vcmp.eq.s32.totalorder %v514_v2, %v64_v31  ;;  %vm234_vm5 = vcmp.eq.s32.totalorder %v514_v2, 11 }
   0xa   :  { %v67_v37 = vsel %vm65_vm10, %v36_v36, 0.0  ;;  %vm71_vm13 = vmand %vm70_vm12, %vm45_vm1  ;;  %v109_v54 = vsel %vm108_vm15, -1.0, %v500_v53  ;;  %vm290_vm12 = vcmp.eq.s32.totalorder %v514_v2, 15  ;;  %vm340_vm15 = vcmp.eq.s32.totalorder %v514_v2, 18 }
   0xb   :  { %v72_v44 = vsel %vm71_vm13, %v36_v36, 0.0 }
  0x8f   :  { %v520_v5 = vpop.xlane.xlu0 %52 }
  0x90   :  { %493 = vrcp.f32 %v520_v5 }
  0x9d   :  { %v528_v7 = vpop.eup %493 }
  0x9e   :  { %v58_v8 = vmul.f32 %v528_v7, %v56_v6 }
  0xa0   :  { %59 = vst [vmem:[#allocation2] sm:$0xff] %v58_v8 }
  0xa7   :  { %v118_v12 = vld [vmem:[#allocation2 + $0x1] ss:$0 sm:$0xff]  ;;  %v128_v15 = vld [vmem:[#allocation2 + $0x2] ss:$0 sm:$0xff]  ;;  %v138_v20 = vld [vmem:[#allocation2 + $0x3] ss:$0 sm:$0xff] }
  0xa8   :  { %v119_v13 = vxor.u32 2147483648, %v118_v12  ;;  %v129_v17 = vxor.u32 2147483648, %v128_v15  ;;  %v139_v22 = vxor.u32 2147483648, %v138_v20  ;;  %v148_v25 = vld [vmem:[#allocation2 + $0x4] ss:$0 sm:$0xff] }
  0xa9   :  { %v149_v27 = vxor.u32 2147483648, %v148_v25  ;;  %v158_v30 = vld [vmem:[#allocation2 + $0x5] ss:$0 sm:$0xff]  ;;  %v168_v38 = vld [vmem:[#allocation2 + $0x6] ss:$0 sm:$0xff] }
  0xaa   :  { %v123_v14 = vmul.f32 %v119_v13, %v102_v11  ;;  %v159_v33 = vxor.u32 2147483648, %v158_v30  ;;  %v169_v40 = vxor.u32 2147483648, %v168_v38  ;;  %v178_v47 = vld [vmem:[#allocation2 + $0x7] ss:$0 sm:$0xff] }
  0xab   :  { %v179_v50 = vxor.u32 2147483648, %v178_v47  ;;  %v80_v47 = vadd.s32 16, %v516_v3 }
  0xac   :  { %124 = vadd.xlane.f32.xlu0 %v123_v14 }
  0xad   :  { %vm86_vm10 = vcmp.ge.s32.totalorder %v80_v47, %v514_v2  ;;  %vm115_vm13 = vcmp.eq.s32.totalorder %v514_v2, %v80_v47 }
 0x135   :  { %v125_v16 = vpop.xlane.xlu0 %124 }
 0x136   :  { %v126_v18 = vsel %vm122_vm6, %v125_v16, %v102_v11  ;;  %vm248_vm6 = vcmp.eq.s32.totalorder %v514_v2, 12 }
 0x137   :  { %v133_v19 = vmul.f32 %v129_v17, %v126_v18 }
 0x139   :  { %134 = vadd.xlane.f32.xlu1 %v133_v19 }
 0x1c2   :  { %v135_v21 = vpop.xlane.xlu1 %134 }
 0x1c3   :  { %v136_v23 = vsel %vm132_vm7, %v135_v21, %v126_v18  ;;  %vm262_vm7 = vcmp.eq.s32.totalorder %v514_v2, 13 }
 0x1c4   :  { %v143_v24 = vmul.f32 %v139_v22, %v136_v23 }
 0x1c6   :  { %144 = vadd.xlane.f32.xlu1 %v143_v24 }
 0x24f   :  { %v145_v26 = vpop.xlane.xlu1 %144 }
 0x250   :  { %v146_v28 = vsel %vm142_vm8, %v145_v26, %v136_v23  ;;  %vm81_vm8 = vcmp.eq.s32.totalorder %v80_v47, %v514_v2 }
 0x251   :  { %v153_v29 = vmul.f32 %v149_v27, %v146_v28 }
 0x253   :  { %154 = vadd.xlane.f32.xlu0 %v153_v29 }
 0x2dc   :  { %v155_v32 = vpop.xlane.xlu0 %154 }
 0x2dd   :  { %v156_v34 = vsel %vm152_vm9, %v155_v32, %v146_v28  ;;  %vm276_vm9 = vcmp.eq.s32.totalorder %v514_v2, 14 }
 0x2de   :  { %v163_v35 = vmul.f32 %v159_v33, %v156_v34 }
 0x2e0   :  { %164 = vadd.xlane.f32.xlu1 %v163_v35 }
 0x2e4   :  { %68 = vadd.xlane.f32.xlu1 %v67_v37 }
 0x369   :  { %v165_v39 = vpop.xlane.xlu1 %164 }
 0x36a   :  { %v166_v41 = vsel %vm162_vm11, %v165_v39, %v156_v34  ;;  %vm87_vm11 = vmand %vm86_vm10, %vm45_vm1  ;;  %vm304_vm1 = vcmp.eq.s32.totalorder %v514_v2, 16 }
 0x36b   :  { %v173_v42 = vmul.f32 %v169_v40, %v166_v41 }
 0x36d   :  { %174 = vadd.xlane.f32.xlu0 %v173_v42  ;;  %v544_v43 = vpop.xlane.xlu1 %68 }
 0x36e   :  { %495 = vrcp.f32 %v544_v43 }
 0x37b   :  { %v550_v45 = vpop.eup %495 }
 0x37c   :  { %v74_v46 = vmul.f32 %v550_v45, %v72_v44 }
 0x37e   :  { %75 = vst [vmem:[#allocation2 + $0x8] sm:$0xff] %v74_v46 }
 0x385   :  { %v188_v48 = vld [vmem:[#allocation2 + $0x8] ss:$0 sm:$0xff]  ;;  %v202_v59 = vld [vmem:[#allocation2 + $0x9] ss:$0 sm:$0xff]  ;;  %v216_v6 = vld [vmem:[#allocation2 + $0xa] ss:$0 sm:$0xff] }
 0x386   :  { %v189_v51 = vxor.u32 2147483648, %v188_v48  ;;  %v203_v62 = vxor.u32 2147483648, %v202_v59  ;;  %v217_v10 = vxor.u32 2147483648, %v216_v6  ;;  %v230_v15 = vld [vmem:[#allocation2 + $0xb] ss:$0 sm:$0xff] }
 0x387   :  { %v231_v18 = vxor.u32 2147483648, %v230_v15  ;;  %v244_v23 = vld [vmem:[#allocation2 + $0xc] ss:$0 sm:$0xff]  ;;  %v258_v31 = vld [vmem:[#allocation2 + $0xd] ss:$0 sm:$0xff] }
 0x388   :  { %v197_v56 = vmul.f32 %v189_v51, %v109_v54  ;;  %v245_v26 = vxor.u32 2147483648, %v244_v23  ;;  %v259_v34 = vxor.u32 2147483648, %v258_v31  ;;  %v272_v39 = vld [vmem:[#allocation2 + $0xe] ss:$0 sm:$0xff] }
 0x389   :  { %v273_v42 = vxor.u32 2147483648, %v272_v39 }
 0x3f6   :  { %v175_v49 = vpop.xlane.xlu0 %174 }
 0x3f7   :  { %v176_v52 = vsel %vm172_vm14, %v175_v49, %v166_v41  ;;  %vm322_vm14 = vcmp.eq.s32.totalorder %v514_v2, 17 }
 0x3f8   :  { %v183_v55 = vmul.f32 %v179_v50, %v176_v52 }
 0x3fa   :  { %184 = vadd.xlane.f32.xlu0 %v183_v55  ;;  %v286_v55 = vld [vmem:[#allocation2 + $0xf] ss:$0 sm:$0xff] }
 0x3fe   :  { %198 = vadd.xlane.f32.xlu0 %v197_v56 }
 0x483   :  { %v185_v57 = vpop.xlane.xlu0 %184 }
 0x484   :  { %v186_v58 = vsel %vm182_vm0, %v185_v57, %v176_v52  ;;  %v287_v57 = vxor.u32 2147483648, %v286_v55  ;;  %vm358_vm0 = vcmp.eq.s32.totalorder %v514_v2, 19 }
 0x485   :  { %v193_v60 = vmul.f32 %v189_v51, %v186_v58  ;;  %v38_v51 = vld [vmem:[%s603_s0 + $0x10] sm:$0xff] }
 0x487   :  { %v199_v61 = vpop.xlane.xlu0 %198  ;;  %194 = vadd.xlane.f32.xlu1 %v193_v60 }
 0x488   :  { %v200_v63 = vsel %vm192_vm2, %v199_v61, %v109_v54  ;;  %v83_v54 = vsel %vm81_vm8, %v38_v51, 0.0 }
 0x489   :  { %v211_v0 = vmul.f32 %v203_v62, %v200_v63 }
 0x48b   :  { %212 = vadd.xlane.f32.xlu0 %v211_v0 }
 0x510   :  { %v195_v1 = vpop.xlane.xlu1 %194 }
 0x511   :  { %v196_v4 = vsel %vm192_vm2, %v195_v1, %v186_v58  ;;  %vm376_vm2 = vcmp.eq.s32.totalorder %v514_v2, 20 }
 0x512   :  { %v207_v8 = vmul.f32 %v203_v62, %v196_v4  ;;  %v88_v62 = vsel %vm87_vm11, %v38_v51, 0.0 }
 0x514   :  { %v213_v9 = vpop.xlane.xlu0 %212  ;;  %208 = vadd.xlane.f32.xlu1 %v207_v8 }
 0x515   :  { %v214_v11 = vsel %vm206_vm3, %v213_v9, %v200_v63 }
 0x516   :  { %v225_v12 = vmul.f32 %v217_v10, %v214_v11 }
 0x518   :  { %226 = vadd.xlane.f32.xlu0 %v225_v12 }
 0x59d   :  { %v209_v13 = vpop.xlane.xlu1 %208 }
 0x59e   :  { %v210_v14 = vsel %vm206_vm3, %v209_v13, %v196_v4  ;;  %v116_v13 = vsel %vm115_vm13, -1.0, %v500_v53  ;;  %vm394_vm3 = vcmp.eq.s32.totalorder %v514_v2, 21 }
 0x59f   :  { %v221_v16 = vmul.f32 %v217_v10, %v210_v14 }
 0x5a1   :  { %v227_v17 = vpop.xlane.xlu0 %226  ;;  %222 = vadd.xlane.f32.xlu1 %v221_v16 }
 0x5a2   :  { %v228_v19 = vsel %vm220_vm4, %v227_v17, %v214_v11 }
 0x5a3   :  { %v239_v20 = vmul.f32 %v231_v18, %v228_v19 }
 0x5a5   :  { %240 = vadd.xlane.f32.xlu0 %v239_v20 }
 0x62a   :  { %v223_v21 = vpop.xlane.xlu1 %222 }
 0x62b   :  { %v224_v22 = vsel %vm220_vm4, %v223_v21, %v210_v14  ;;  %vm412_vm4 = vcmp.eq.s32.totalorder %v514_v2, 22 }
 0x62c   :  { %v235_v24 = vmul.f32 %v231_v18, %v224_v22 }
 0x62e   :  { %v241_v25 = vpop.xlane.xlu0 %240  ;;  %236 = vadd.xlane.f32.xlu1 %v235_v24 }
 0x62f   :  { %v242_v27 = vsel %vm234_vm5, %v241_v25, %v228_v19 }
 0x630   :  { %v253_v28 = vmul.f32 %v245_v26, %v242_v27 }
 0x632   :  { %254 = vadd.xlane.f32.xlu0 %v253_v28 }
 0x6b7   :  { %v237_v29 = vpop.xlane.xlu1 %236 }
 0x6b8   :  { %v238_v30 = vsel %vm234_vm5, %v237_v29, %v224_v22  ;;  %vm432_vm5 = vweird.f32 %v544_v43 }
 0x6b9   :  { %v249_v32 = vmul.f32 %v245_v26, %v238_v30 }
 0x6bb   :  { %v255_v33 = vpop.xlane.xlu0 %254  ;;  %250 = vadd.xlane.f32.xlu1 %v249_v32 }
 0x6bc   :  { %v256_v35 = vsel %vm248_vm6, %v255_v33, %v242_v27 }
 0x6bd   :  { %v267_v36 = vmul.f32 %v259_v34, %v256_v35 }
 0x6bf   :  { %268 = vadd.xlane.f32.xlu0 %v267_v36 }
 0x744   :  { %v251_v37 = vpop.xlane.xlu1 %250 }
 0x745   :  { %v252_v38 = vsel %vm248_vm6, %v251_v37, %v238_v30  ;;  %vm427_vm6 = vweird.f32 %v520_v5 }
 0x746   :  { %v263_v40 = vmul.f32 %v259_v34, %v252_v38 }
 0x748   :  { %v269_v41 = vpop.xlane.xlu0 %268  ;;  %264 = vadd.xlane.f32.xlu1 %v263_v40 }
 0x749   :  { %v270_v44 = vsel %vm262_vm7, %v269_v41, %v256_v35 }
 0x74a   :  { %v281_v46 = vmul.f32 %v273_v42, %v270_v44 }
 0x74c   :  { %282 = vadd.xlane.f32.xlu0 %v281_v46 }
 0x7d1   :  { %v265_v48 = vpop.xlane.xlu1 %264 }
 0x7d2   :  { %v266_v49 = vsel %vm262_vm7, %v265_v48, %v252_v38 }
 0x7d3   :  { %v277_v50 = vmul.f32 %v273_v42, %v266_v49 }
 0x7d5   :  { %v283_v52 = vpop.xlane.xlu0 %282  ;;  %278 = vadd.xlane.f32.xlu1 %v277_v50 }
 0x7d6   :  { %v284_v56 = vsel %vm276_vm9, %v283_v52, %v270_v44 }
 0x7d7   :  { %v295_v58 = vmul.f32 %v287_v57, %v284_v56 }
 0x7d9   :  { %84 = vadd.xlane.f32.xlu1 %v83_v54 }
 0x7dd   :  { %296 = vadd.xlane.f32.xlu1 %v295_v58 }
 0x85e   :  { %v279_v3 = vpop.xlane.xlu1 %278 }
 0x85f   :  { %v280_v59 = vsel %vm276_vm9, %v279_v3, %v266_v49 }
 0x860   :  { %v291_v60 = vmul.f32 %v287_v57, %v280_v59 }
 0x862   :  { %292 = vadd.xlane.f32.xlu0 %v291_v60  ;;  %v569_v61 = vpop.xlane.xlu1 %84 }
 0x863   :  { %497 = vrcp.f32 %v569_v61  ;;  %vm438_vm7 = vweird.f32 %v569_v61 }
 0x866   :  { %v297_v1 = vpop.xlane.xlu1 %296 }
 0x867   :  { %v298_v8 = vsel %vm290_vm12, %v297_v1, %v284_v56 }
 0x870   :  { %v575_v63 = vpop.eup %497 }
 0x871   :  { %v90_v0 = vmul.f32 %v575_v63, %v88_v62 }
 0x873   :  { %91 = vst [vmem:[#allocation2 + $0x10] sm:$0xff] %v90_v0 }
 0x87a   :  { %v300_v4 = vld [vmem:[#allocation2 + $0x10] ss:$0 sm:$0xff]  ;;  %v318_v15 = vld [vmem:[#allocation2 + $0x11] ss:$0 sm:$0xff]  ;;  %v336_v53 = vld [vmem:[#allocation2 + $0x12] ss:$0 sm:$0xff] }
 0x87b   :  { %v301_v6 = vxor.u32 2147483648, %v300_v4  ;;  %v319_v17 = vxor.u32 2147483648, %v318_v15  ;;  %v337_v27 = vxor.u32 2147483648, %v336_v53  ;;  %v354_v36 = vld [vmem:[#allocation2 + $0x13] ss:$0 sm:$0xff] }
 0x87c   :  { %v355_v38 = vxor.u32 2147483648, %v354_v36  ;;  %v372_v49 = vld [vmem:[#allocation2 + $0x14] ss:$0 sm:$0xff]  ;;  %v390_v60 = vld [vmem:[#allocation2 + $0x15] ss:$0 sm:$0xff] }
 0x87d   :  { %v309_v9 = vmul.f32 %v301_v6, %v298_v8  ;;  %v313_v14 = vmul.f32 %v301_v6, %v116_v13  ;;  %v373_v51 = vxor.u32 2147483648, %v372_v49  ;;  %v391_v0 = vxor.u32 2147483648, %v390_v60 }
 0x87f   :  { %310 = vadd.xlane.f32.xlu1 %v309_v9 }
 0x8eb   :  { %v293_v10 = vpop.xlane.xlu0 %292 }
 0x8ec   :  { %v294_v11 = vsel %vm290_vm12, %v293_v10, %v280_v59 }
 0x8ed   :  { %v305_v12 = vmul.f32 %v301_v6, %v294_v11 }
 0x8ef   :  { %306 = vadd.xlane.f32.xlu0 %v305_v12 }
 0x8f3   :  { %314 = vadd.xlane.f32.xlu0 %v313_v14 }
 0x908   :  { %v311_v16 = vpop.xlane.xlu1 %310 }
 0x909   :  { %v312_v18 = vsel %vm304_vm1, %v311_v16, %v298_v8 }
 0x90a   :  { %v327_v19 = vmul.f32 %v319_v17, %v312_v18 }
 0x90c   :  { %328 = vadd.xlane.f32.xlu0 %v327_v19 }
 0x978   :  { %v307_v20 = vpop.xlane.xlu0 %306 }
 0x979   :  { %v308_v21 = vsel %vm304_vm1, %v307_v20, %v294_v11 }
 0x97a   :  { %v323_v22 = vmul.f32 %v319_v17, %v308_v21 }
 0x97c   :  { %v315_v23 = vpop.xlane.xlu0 %314  ;;  %324 = vadd.xlane.f32.xlu1 %v323_v22 }
 0x97d   :  { %v316_v24 = vsel %vm304_vm1, %v315_v23, %v116_v13  ;;  %v408_v13 = vld [vmem:[#allocation2 + $0x16] ss:$0 sm:$0xff] }
 0x97e   :  { %v331_v25 = vmul.f32 %v319_v17, %v316_v24  ;;  %v409_v15 = vxor.u32 2147483648, %v408_v13 }
 0x980   :  { %332 = vadd.xlane.f32.xlu1 %v331_v25 }
 0x995   :  { %v329_v26 = vpop.xlane.xlu0 %328 }
 0x996   :  { %v330_v28 = vsel %vm322_vm14, %v329_v26, %v312_v18 }
 0x997   :  { %v345_v29 = vmul.f32 %v337_v27, %v330_v28 }
 0x999   :  { %346 = vadd.xlane.f32.xlu1 %v345_v29 }
 0xa05   :  { %v325_v30 = vpop.xlane.xlu1 %324 }
 0xa06   :  { %v326_v31 = vsel %vm322_vm14, %v325_v30, %v308_v21 }
 0xa07   :  { %v341_v32 = vmul.f32 %v337_v27, %v326_v31 }
 0xa09   :  { %342 = vadd.xlane.f32.xlu0 %v341_v32  ;;  %v333_v33 = vpop.xlane.xlu1 %332 }
 0xa0a   :  { %v334_v34 = vsel %vm322_vm14, %v333_v33, %v316_v24 }
 0xa0b   :  { %v349_v35 = vmul.f32 %v337_v27, %v334_v34 }
 0xa0d   :  { %350 = vadd.xlane.f32.xlu0 %v349_v35 }
 0xa22   :  { %v347_v37 = vpop.xlane.xlu1 %346 }
 0xa23   :  { %v348_v39 = vsel %vm340_vm15, %v347_v37, %v330_v28 }
 0xa24   :  { %v363_v40 = vmul.f32 %v355_v38, %v348_v39 }
 0xa26   :  { %364 = vadd.xlane.f32.xlu0 %v363_v40 }
 0xa92   :  { %v343_v41 = vpop.xlane.xlu0 %342 }
 0xa93   :  { %v344_v42 = vsel %vm340_vm15, %v343_v41, %v326_v31 }
 0xa94   :  { %v359_v44 = vmul.f32 %v355_v38, %v344_v42 }
 0xa96   :  { %360 = vadd.xlane.f32.xlu1 %v359_v44  ;;  %v351_v46 = vpop.xlane.xlu0 %350 }
 0xa97   :  { %v352_v47 = vsel %vm340_vm15, %v351_v46, %v334_v34 }
 0xa98   :  { %v367_v48 = vmul.f32 %v355_v38, %v352_v47 }
 0xa9a   :  { %368 = vadd.xlane.f32.xlu1 %v367_v48 }
 0xaaf   :  { %v365_v50 = vpop.xlane.xlu0 %364 }
 0xab0   :  { %v366_v52 = vsel %vm358_vm0, %v365_v50, %v348_v39 }
 0xab1   :  { %v381_v54 = vmul.f32 %v373_v51, %v366_v52 }
 0xab3   :  { %382 = vadd.xlane.f32.xlu1 %v381_v54 }
 0xb1f   :  { %v361_v55 = vpop.xlane.xlu1 %360 }
 0xb20   :  { %v362_v56 = vsel %vm358_vm0, %v361_v55, %v344_v42 }
 0xb21   :  { %v377_v57 = vmul.f32 %v373_v51, %v362_v56 }
 0xb23   :  { %378 = vadd.xlane.f32.xlu0 %v377_v57  ;;  %v369_v58 = vpop.xlane.xlu1 %368 }
 0xb24   :  { %v370_v3 = vsel %vm358_vm0, %v369_v58, %v352_v47 }
 0xb25   :  { %v385_v59 = vmul.f32 %v373_v51, %v370_v3 }
 0xb27   :  { %386 = vadd.xlane.f32.xlu0 %v385_v59 }
 0xb3c   :  { %v383_v62 = vpop.xlane.xlu1 %382 }
 0xb3d   :  { %v384_v1 = vsel %vm376_vm2, %v383_v62, %v366_v52 }
 0xb3e   :  { %v399_v4 = vmul.f32 %v391_v0, %v384_v1 }
 0xb40   :  { %400 = vadd.xlane.f32.xlu0 %v399_v4 }
 0xbac   :  { %v379_v6 = vpop.xlane.xlu0 %378 }
 0xbad   :  { %v380_v8 = vsel %vm376_vm2, %v379_v6, %v362_v56 }
 0xbae   :  { %v395_v9 = vmul.f32 %v391_v0, %v380_v8 }
 0xbb0   :  { %396 = vadd.xlane.f32.xlu1 %v395_v9  ;;  %v387_v10 = vpop.xlane.xlu0 %386 }
 0xbb1   :  { %v388_v11 = vsel %vm376_vm2, %v387_v10, %v370_v3 }
 0xbb2   :  { %v403_v12 = vmul.f32 %v391_v0, %v388_v11 }
 0xbb4   :  { %404 = vadd.xlane.f32.xlu1 %v403_v12 }
 0xbc9   :  { %v401_v14 = vpop.xlane.xlu0 %400 }
 0xbca   :  { %v402_v16 = vsel %vm394_vm3, %v401_v14, %v384_v1 }
 0xbcb   :  { %v417_v17 = vmul.f32 %v409_v15, %v402_v16 }
 0xbcd   :  { %418 = vadd.xlane.f32.xlu1 %v417_v17 }
 0xc39   :  { %v397_v18 = vpop.xlane.xlu1 %396 }
 0xc3a   :  { %v398_v19 = vsel %vm394_vm3, %v397_v18, %v380_v8 }
 0xc3b   :  { %v413_v20 = vmul.f32 %v409_v15, %v398_v19 }
 0xc3d   :  { %414 = vadd.xlane.f32.xlu0 %v413_v20  ;;  %v405_v21 = vpop.xlane.xlu1 %404 }
 0xc3e   :  { %v406_v22 = vsel %vm394_vm3, %v405_v21, %v388_v11 }
 0xc3f   :  { %v421_v23 = vmul.f32 %v409_v15, %v406_v22 }
 0xc41   :  { %422 = vadd.xlane.f32.xlu0 %v421_v23 }
 0xc56   :  { %v419_v24 = vpop.xlane.xlu1 %418 }
 0xc57   :  { %v420_v25 = vsel %vm412_vm4, %v419_v24, %v402_v16 }
 0xc58   :  { %v431_v53 = vmul.f32 %v550_v45, %v420_v25 }
 0xc5a   :  { %v433_v26 = vsel %vm432_vm5, %v420_v25, %v431_v53 }
 0xc5b   :  { %477 = vst [vmem:[%s604_s1 + $0x8] sm:$0xff] %v433_v26 }
 0xcc6   :  { %v415_v27 = vpop.xlane.xlu0 %414 }
 0xcc7   :  { %v416_v28 = vsel %vm412_vm4, %v415_v27, %v398_v19 }
 0xcc8   :  { %v426_v29 = vmul.f32 %v528_v7, %v416_v28 }
 0xcca   :  { %v428_v30 = vsel %vm427_vm6, %v416_v28, %v426_v29  ;;  %v423_v31 = vpop.xlane.xlu0 %422 }
 0xccb   :  { %475 = vst [vmem:[%s604_s1] sm:$0xff] %v428_v30  ;;  %v424_v2 = vsel %vm412_vm4, %v423_v31, %v406_v22 }
 0xccc   :  { %v437_v43 = vmul.f32 %v575_v63, %v424_v2 }
 0xcce   :  { %v439_v45 = vsel %vm438_vm7, %v424_v2, %v437_v43 }
 0xccf   :  { %479 = vst [vmem:[%s604_s1 + $0x10] sm:$0xff] %v439_v45 }

// kernel: custom-call.12
= control target key start
LH: loop header
LB: loop body
LE: loop exit
PB: predicated region body
PF: predicated region fallthrough
CT: control target
= control target key end

     0   :  { %v43_v0 = vlaneseq  ;;  %v506_v10 = vmov -1.0   ;;  %v507_v43 = vmov 0.0   ;;  %s686_s0 = inlined_call_operand.vmem [shape: f32[1,23,23], index: 0, kind: input, shape index: {}]   ;;  %s687_s1 = inlined_call_operand.vmem [shape: f32[1,23,23], index: 1, kind: output, shape index: {}]  }
   0x1   :  { %v38_v3 = vld [vmem:[%s686_s0 + $0x10] sm:$0xff]  ;;  %v36_v32 = vld [vmem:[%s686_s0 + $0x8] sm:$0xff] }
   0x2   :  { %v518_v1 = vand.u32 127, %v43_v0  ;;  %v520_v2 = vshrl.u32 %v43_v0, 7 }
   0x4   :  { %vm45_vm0 = vcmp.lt.s32.totalorder %v518_v1, 23  ;;  %v80_v4 = vadd.s32 16, %v520_v2  ;;  %vm114_vm4 = vcmp.eq.s32.totalorder %v518_v1, 22  ;;  %vm122_vm6 = vcmp.eq.s32.totalorder %v518_v1, 21 }
   0x5   :  { %v115_v11 = vsel %vm114_vm4, 1.0, %v506_v10  ;;  %vm132_vm7 = vcmp.eq.s32.totalorder %v518_v1, 20  ;;  %vm142_vm8 = vcmp.eq.s32.totalorder %v518_v1, 19  ;;  %v64_v27 = vadd.s32 8, %v520_v2 }
   0x6   :  { %vm81_vm1 = vcmp.eq.s32.totalorder %v80_v4, %v518_v1  ;;  %vm86_vm2 = vcmp.le.s32.totalorder %v80_v4, %v518_v1  ;;  %vm111_vm5 = vcmp.eq.s32.totalorder %v518_v1, %v80_v4  ;;  %vm152_vm10 = vcmp.eq.s32.totalorder %v518_v1, 18 }
   0x7   :  { %v83_v5 = vsel %vm81_vm1, %v38_v3, 0.0  ;;  %vm87_vm3 = vmand %vm86_vm2, %vm45_vm0  ;;  %v116_v12 = vsel %vm111_vm5, %v115_v11, 0.0  ;;  %vm65_vm9 = vcmp.eq.s32.totalorder %v64_v27, %v518_v1  ;;  %vm70_vm11 = vcmp.le.s32.totalorder %v64_v27, %v518_v1 }
   0x8   :  { %v88_v6 = vsel %vm87_vm3, %v38_v3, 0.0  ;;  %84 = vadd.xlane.f32.xlu0 %v83_v5  ;;  %v67_v33 = vsel %vm65_vm9, %v36_v32, 0.0  ;;  %vm71_vm12 = vmand %vm70_vm11, %vm45_vm0  ;;  %vm104_vm13 = vcmp.eq.s32.totalorder %v518_v1, %v64_v27  ;;  %vm162_vm14 = vcmp.eq.s32.totalorder %v518_v1, 17 }
   0x9   :  { %v72_v40 = vsel %vm71_vm12, %v36_v32, 0.0  ;;  %v105_v44 = vsel %vm104_vm13, -1.0, %v507_v43  ;;  %vm182_vm15 = vcmp.eq.s32.totalorder %v518_v1, 15  ;;  %vm172_vm1 = vcmp.eq.s32.totalorder %v518_v1, 16 }
   0xa   :  { %vm196_vm2 = vcmp.eq.s32.totalorder %v518_v1, 14  ;;  %vm210_vm3 = vcmp.eq.s32.totalorder %v518_v1, 13  ;;  %vm224_vm4 = vcmp.eq.s32.totalorder %v518_v1, 12  ;;  %vm238_vm5 = vcmp.eq.s32.totalorder %v518_v1, 11 }
   0xb   :  { %vm97_vm11 = vcmp.eq.s32.totalorder %v518_v1, %v520_v2  ;;  %vm294_vm12 = vcmp.eq.s32.totalorder %v518_v1, 7  ;;  %vm312_vm13 = vcmp.eq.s32.totalorder %v518_v1, 6 }
  0x91   :  { %v531_v7 = vpop.xlane.xlu0 %84 }
  0x92   :  { %500 = vrcp.f32 %v531_v7 }
  0x9f   :  { %v534_v8 = vpop.eup %500 }
  0xa0   :  { %v90_v9 = vmul.f32 %v534_v8, %v88_v6 }
  0xa2   :  { %91 = vst [vmem:[#allocation2 + $0x10] sm:$0xff] %v90_v9 }
  0xa9   :  { %v118_v13 = vld [vmem:[#allocation2 + $0x15] ss:$0 sm:$0xff]  ;;  %v128_v16 = vld [vmem:[#allocation2 + $0x14] ss:$0 sm:$0xff]  ;;  %v138_v21 = vld [vmem:[#allocation2 + $0x13] ss:$0 sm:$0xff] }
  0xaa   :  { %v119_v14 = vxor.u32 2147483648, %v118_v13  ;;  %v129_v18 = vxor.u32 2147483648, %v128_v16  ;;  %v139_v23 = vxor.u32 2147483648, %v138_v21  ;;  %v148_v26 = vld [vmem:[#allocation2 + $0x12] ss:$0 sm:$0xff] }
  0xab   :  { %v149_v29 = vxor.u32 2147483648, %v148_v26  ;;  %v158_v34 = vld [vmem:[#allocation2 + $0x11] ss:$0 sm:$0xff]  ;;  %v168_v48 = vld [vmem:[#allocation2 + $0x10] ss:$0 sm:$0xff] }
  0xac   :  { %v123_v15 = vmul.f32 %v119_v14, %v116_v12  ;;  %v159_v36 = vxor.u32 2147483648, %v158_v34  ;;  %v169_v50 = vxor.u32 2147483648, %v168_v48 }
  0xae   :  { %124 = vadd.xlane.f32.xlu0 %v123_v15 }
 0x137   :  { %v125_v17 = vpop.xlane.xlu0 %124 }
 0x138   :  { %v126_v19 = vsel %vm122_vm6, %v125_v17, %v116_v12  ;;  %vm252_vm6 = vcmp.eq.s32.totalorder %v518_v1, 10 }
 0x139   :  { %v133_v20 = vmul.f32 %v129_v18, %v126_v19 }
 0x13b   :  { %134 = vadd.xlane.f32.xlu1 %v133_v20 }
 0x1c4   :  { %v135_v22 = vpop.xlane.xlu1 %134 }
 0x1c5   :  { %v136_v24 = vsel %vm132_vm7, %v135_v22, %v126_v19  ;;  %vm49_vm7 = vcmp.eq.s32.totalorder %v520_v2, %v518_v1 }
 0x1c6   :  { %v143_v25 = vmul.f32 %v139_v23, %v136_v24 }
 0x1c8   :  { %144 = vadd.xlane.f32.xlu1 %v143_v25 }
 0x251   :  { %v145_v28 = vpop.xlane.xlu1 %144 }
 0x252   :  { %v146_v30 = vsel %vm142_vm8, %v145_v28, %v136_v24  ;;  %vm54_vm8 = vcmp.le.s32.totalorder %v520_v2, %v518_v1 }
 0x253   :  { %v153_v31 = vmul.f32 %v149_v29, %v146_v30  ;;  %vm55_vm9 = vmand %vm54_vm8, %vm45_vm0  ;;  %vm280_vm0 = vcmp.eq.s32.totalorder %v518_v1, 8 }
 0x255   :  { %154 = vadd.xlane.f32.xlu0 %v153_v31 }
 0x259   :  { %68 = vadd.xlane.f32.xlu0 %v67_v33 }
 0x2de   :  { %v155_v35 = vpop.xlane.xlu0 %154 }
 0x2df   :  { %v156_v37 = vsel %vm152_vm10, %v155_v35, %v146_v30  ;;  %vm266_vm10 = vcmp.eq.s32.totalorder %v518_v1, 9 }
 0x2e0   :  { %v163_v38 = vmul.f32 %v159_v36, %v156_v37 }
 0x2e2   :  { %164 = vadd.xlane.f32.xlu1 %v163_v38  ;;  %v548_v39 = vpop.xlane.xlu0 %68  ;;  %v34_v38 = vld [vmem:[%s686_s0] sm:$0xff] }
 0x2e3   :  { %502 = vrcp.f32 %v548_v39  ;;  %v56_v48 = vsel %vm55_vm9, %v34_v38, 0.0 }
 0x2f0   :  { %v554_v41 = vpop.eup %502 }
 0x2f1   :  { %v74_v42 = vmul.f32 %v554_v41, %v72_v40  ;;  %v51_v40 = vsel %vm49_vm7, %v34_v38, 0.0  ;;  %vm445_vm7 = vweird.f32 %v531_v7 }
 0x2f3   :  { %75 = vst [vmem:[#allocation2 + $0x8] sm:$0xff] %v74_v42 }
 0x2fa   :  { %v178_v45 = vld [vmem:[#allocation2 + $0xf] ss:$0 sm:$0xff]  ;;  %v192_v53 = vld [vmem:[#allocation2 + $0xe] ss:$0 sm:$0xff]  ;;  %v206_v61 = vld [vmem:[#allocation2 + $0xd] ss:$0 sm:$0xff] }
 0x2fb   :  { %v179_v46 = vxor.u32 2147483648, %v178_v45  ;;  %v193_v54 = vxor.u32 2147483648, %v192_v53  ;;  %v207_v63 = vxor.u32 2147483648, %v206_v61  ;;  %v220_v9 = vld [vmem:[#allocation2 + $0xc] ss:$0 sm:$0xff] }
 0x2fc   :  { %v221_v11 = vxor.u32 2147483648, %v220_v9  ;;  %v234_v17 = vld [vmem:[#allocation2 + $0xb] ss:$0 sm:$0xff]  ;;  %v248_v25 = vld [vmem:[#allocation2 + $0xa] ss:$0 sm:$0xff] }
 0x2fd   :  { %v183_v47 = vmul.f32 %v179_v46, %v105_v44  ;;  %v235_v19 = vxor.u32 2147483648, %v234_v17  ;;  %v249_v27 = vxor.u32 2147483648, %v248_v25  ;;  %v262_v33 = vld [vmem:[#allocation2 + $0x9] ss:$0 sm:$0xff]  ;;  %v276_v53 = vld [vmem:[#allocation2 + $0x8] ss:$0 sm:$0xff] }
 0x2fe   :  { %v263_v35 = vxor.u32 2147483648, %v262_v33 }
 0x2ff   :  { %184 = vadd.xlane.f32.xlu0 %v183_v47 }
 0x36b   :  { %v165_v49 = vpop.xlane.xlu1 %164 }
 0x36c   :  { %v166_v51 = vsel %vm162_vm14, %v165_v49, %v156_v37  ;;  %vm330_vm14 = vcmp.eq.s32.totalorder %v518_v1, 5 }
 0x36d   :  { %v173_v52 = vmul.f32 %v169_v50, %v166_v51 }
 0x36f   :  { %174 = vadd.xlane.f32.xlu1 %v173_v52 }
 0x388   :  { %v185_v55 = vpop.xlane.xlu0 %184 }
 0x389   :  { %v186_v56 = vsel %vm182_vm15, %v185_v55, %v105_v44 }
 0x38a   :  { %v197_v57 = vmul.f32 %v193_v54, %v186_v56 }
 0x38c   :  { %198 = vadd.xlane.f32.xlu0 %v197_v57  ;;  %v277_v57 = vxor.u32 2147483648, %v276_v53 }
 0x3f8   :  { %v175_v58 = vpop.xlane.xlu1 %174 }
 0x3f9   :  { %v176_v59 = vsel %vm172_vm1, %v175_v58, %v166_v51  ;;  %vm366_vm1 = vcmp.eq.s32.totalorder %v518_v1, 3 }
 0x3fa   :  { %v187_v60 = vmul.f32 %v179_v46, %v176_v59 }
 0x3fc   :  { %188 = vadd.xlane.f32.xlu1 %v187_v60 }
 0x415   :  { %v199_v62 = vpop.xlane.xlu0 %198 }
 0x416   :  { %v200_v0 = vsel %vm196_vm2, %v199_v62, %v186_v56 }
 0x417   :  { %v211_v3 = vmul.f32 %v207_v63, %v200_v0 }
 0x419   :  { %212 = vadd.xlane.f32.xlu0 %v211_v3 }
 0x485   :  { %v189_v4 = vpop.xlane.xlu1 %188 }
 0x486   :  { %v190_v5 = vsel %vm182_vm15, %v189_v4, %v176_v59  ;;  %v98_v59 = vsel %vm97_vm11, -1.0, %v507_v43  ;;  %vm348_vm15 = vcmp.eq.s32.totalorder %v518_v1, 4 }
 0x487   :  { %v201_v6 = vmul.f32 %v193_v54, %v190_v5 }
 0x489   :  { %202 = vadd.xlane.f32.xlu1 %v201_v6 }
 0x4a2   :  { %v213_v10 = vpop.xlane.xlu0 %212 }
 0x4a3   :  { %v214_v12 = vsel %vm210_vm3, %v213_v10, %v200_v0 }
 0x4a4   :  { %v225_v13 = vmul.f32 %v221_v11, %v214_v12 }
 0x4a6   :  { %226 = vadd.xlane.f32.xlu0 %v225_v13 }
 0x512   :  { %v203_v14 = vpop.xlane.xlu1 %202 }
 0x513   :  { %v204_v15 = vsel %vm196_vm2, %v203_v14, %v190_v5  ;;  %vm384_vm2 = vcmp.eq.s32.totalorder %v518_v1, 2 }
 0x514   :  { %v215_v16 = vmul.f32 %v207_v63, %v204_v15 }
 0x516   :  { %216 = vadd.xlane.f32.xlu1 %v215_v16 }
 0x52f   :  { %v227_v18 = vpop.xlane.xlu0 %226 }
 0x530   :  { %v228_v20 = vsel %vm224_vm4, %v227_v18, %v214_v12 }
 0x531   :  { %v239_v21 = vmul.f32 %v235_v19, %v228_v20 }
 0x533   :  { %240 = vadd.xlane.f32.xlu0 %v239_v21 }
 0x59f   :  { %v217_v22 = vpop.xlane.xlu1 %216 }
 0x5a0   :  { %v218_v23 = vsel %vm210_vm3, %v217_v22, %v204_v15  ;;  %vm402_vm3 = vcmp.eq.s32.totalorder %v518_v1, 1 }
 0x5a1   :  { %v229_v24 = vmul.f32 %v221_v11, %v218_v23 }
 0x5a3   :  { %230 = vadd.xlane.f32.xlu1 %v229_v24 }
 0x5bc   :  { %v241_v26 = vpop.xlane.xlu0 %240 }
 0x5bd   :  { %v242_v28 = vsel %vm238_vm5, %v241_v26, %v228_v20 }
 0x5be   :  { %v253_v29 = vmul.f32 %v249_v27, %v242_v28 }
 0x5c0   :  { %254 = vadd.xlane.f32.xlu0 %v253_v29 }
 0x62c   :  { %v231_v30 = vpop.xlane.xlu1 %230 }
 0x62d   :  { %v232_v31 = vsel %vm224_vm4, %v231_v30, %v218_v23  ;;  %vm419_vm4 = vcmp.eq.s32.totalorder %v518_v1, 0 }
 0x62e   :  { %v243_v32 = vmul.f32 %v235_v19, %v232_v31 }
 0x630   :  { %244 = vadd.xlane.f32.xlu1 %v243_v32 }
 0x649   :  { %v255_v34 = vpop.xlane.xlu0 %254 }
 0x64a   :  { %v256_v36 = vsel %vm252_vm6, %v255_v34, %v242_v28 }
 0x64b   :  { %v267_v37 = vmul.f32 %v263_v35, %v256_v36 }
 0x64d   :  { %268 = vadd.xlane.f32.xlu0 %v267_v37 }
 0x651   :  { %52 = vadd.xlane.f32.xlu0 %v51_v40 }
 0x6b9   :  { %v245_v42 = vpop.xlane.xlu1 %244 }
 0x6ba   :  { %v246_v44 = vsel %vm238_vm5, %v245_v42, %v232_v31 }
 0x6bb   :  { %v257_v45 = vmul.f32 %v249_v27, %v246_v44 }
 0x6bd   :  { %258 = vadd.xlane.f32.xlu1 %v257_v45 }
 0x6d6   :  { %v269_v46 = vpop.xlane.xlu0 %268 }
 0x6d7   :  { %v270_v56 = vsel %vm266_vm10, %v269_v46, %v256_v36 }
 0x6d8   :  { %v281_v60 = vmul.f32 %v277_v57, %v270_v56 }
 0x6da   :  { %v594_v47 = vpop.xlane.xlu0 %52 }
 0x6db   :  { %504 = vrcp.f32 %v594_v47  ;;  %vm434_vm5 = vweird.f32 %v594_v47 }
 0x6e8   :  { %v601_v49 = vpop.eup %504 }
 0x6e9   :  { %v58_v50 = vmul.f32 %v601_v49, %v56_v48 }
 0x6eb   :  { %59 = vst [vmem:[#allocation2] sm:$0xff] %v58_v50 }
 0x6f2   :  { %v290_v54 = vld [vmem:[#allocation2 + $0x7] ss:$0 sm:$0xff]  ;;  %v308_v2 = vld [vmem:[#allocation2 + $0x6] ss:$0 sm:$0xff]  ;;  %v326_v16 = vld [vmem:[#allocation2 + $0x5] ss:$0 sm:$0xff] }
 0x6f3   :  { %v291_v58 = vxor.u32 2147483648, %v290_v54  ;;  %v309_v6 = vxor.u32 2147483648, %v308_v2  ;;  %v327_v19 = vxor.u32 2147483648, %v326_v16  ;;  %v344_v27 = vld [vmem:[#allocation2 + $0x4] ss:$0 sm:$0xff] }
 0x6f4   :  { %v345_v30 = vxor.u32 2147483648, %v344_v27  ;;  %v362_v38 = vld [vmem:[#allocation2 + $0x3] ss:$0 sm:$0xff]  ;;  %v380_v54 = vld [vmem:[#allocation2 + $0x2] ss:$0 sm:$0xff] }
 0x6f5   :  { %v295_v61 = vmul.f32 %v291_v58, %v98_v59  ;;  %v398_v2 = vld [vmem:[#allocation2 + $0x1] ss:$0 sm:$0xff] }
 0x746   :  { %v259_v51 = vpop.xlane.xlu1 %258 }
 0x747   :  { %v260_v52 = vsel %vm252_vm6, %v259_v51, %v246_v44  ;;  %v363_v44 = vxor.u32 2147483648, %v362_v38  ;;  %vm439_vm6 = vweird.f32 %v548_v39 }
 0x748   :  { %v271_v55 = vmul.f32 %v263_v35, %v260_v52 }
 0x74a   :  { %272 = vadd.xlane.f32.xlu1 %v271_v55 }
 0x74e   :  { %282 = vadd.xlane.f32.xlu1 %v281_v60 }
 0x752   :  { %296 = vadd.xlane.f32.xlu1 %v295_v61 }
 0x7d3   :  { %v273_v62 = vpop.xlane.xlu1 %272 }
 0x7d4   :  { %v274_v63 = vsel %vm266_vm10, %v273_v62, %v260_v52 }
 0x7d5   :  { %v285_v0 = vmul.f32 %v277_v57, %v274_v63  ;;  %v381_v57 = vxor.u32 2147483648, %v380_v54 }
 0x7d7   :  { %v283_v3 = vpop.xlane.xlu1 %282  ;;  %286 = vadd.xlane.f32.xlu0 %v285_v0 }
 0x7d8   :  { %v284_v4 = vsel %vm280_vm0, %v283_v3, %v270_v56 }
 0x7d9   :  { %v299_v5 = vmul.f32 %v291_v58, %v284_v4 }
 0x7db   :  { %300 = vadd.xlane.f32.xlu0 %v299_v5  ;;  %v297_v43 = vpop.xlane.xlu1 %296  ;;  %v399_v5 = vxor.u32 2147483648, %v398_v2 }
 0x7dc   :  { %v298_v9 = vsel %vm294_vm12, %v297_v43, %v98_v59 }
 0x7dd   :  { %v313_v10 = vmul.f32 %v309_v6, %v298_v9 }
 0x7df   :  { %314 = vadd.xlane.f32.xlu0 %v313_v10 }
 0x860   :  { %v287_v11 = vpop.xlane.xlu0 %286 }
 0x861   :  { %v288_v12 = vsel %vm280_vm0, %v287_v11, %v274_v63 }
 0x862   :  { %v303_v13 = vmul.f32 %v291_v58, %v288_v12 }
 0x864   :  { %304 = vadd.xlane.f32.xlu1 %v303_v13  ;;  %v301_v14 = vpop.xlane.xlu0 %300 }
 0x865   :  { %v302_v15 = vsel %vm294_vm12, %v301_v14, %v284_v4  ;;  %v415_v14 = vld [vmem:[#allocation2] ss:$0 sm:$0xff] }
 0x866   :  { %v317_v17 = vmul.f32 %v309_v6, %v302_v15 }
 0x868   :  { %318 = vadd.xlane.f32.xlu1 %v317_v17  ;;  %v315_v18 = vpop.xlane.xlu0 %314  ;;  %v416_v17 = vxor.u32 2147483648, %v415_v14 }
 0x869   :  { %v316_v20 = vsel %vm312_vm13, %v315_v18, %v298_v9 }
 0x86a   :  { %v331_v21 = vmul.f32 %v327_v19, %v316_v20 }
 0x86c   :  { %332 = vadd.xlane.f32.xlu1 %v331_v21 }
 0x8ed   :  { %v305_v22 = vpop.xlane.xlu1 %304 }
 0x8ee   :  { %v306_v23 = vsel %vm294_vm12, %v305_v22, %v288_v12 }
 0x8ef   :  { %v321_v24 = vmul.f32 %v309_v6, %v306_v23 }
 0x8f1   :  { %322 = vadd.xlane.f32.xlu0 %v321_v24  ;;  %v319_v25 = vpop.xlane.xlu1 %318 }
 0x8f2   :  { %v320_v26 = vsel %vm312_vm13, %v319_v25, %v302_v15 }
 0x8f3   :  { %v335_v28 = vmul.f32 %v327_v19, %v320_v26 }
 0x8f5   :  { %336 = vadd.xlane.f32.xlu0 %v335_v28  ;;  %v333_v29 = vpop.xlane.xlu1 %332 }
 0x8f6   :  { %v334_v31 = vsel %vm330_vm14, %v333_v29, %v316_v20 }
 0x8f7   :  { %v349_v32 = vmul.f32 %v345_v30, %v334_v31 }
 0x8f9   :  { %350 = vadd.xlane.f32.xlu0 %v349_v32 }
 0x97a   :  { %v323_v33 = vpop.xlane.xlu0 %322 }
 0x97b   :  { %v324_v34 = vsel %vm312_vm13, %v323_v33, %v306_v23 }
 0x97c   :  { %v339_v35 = vmul.f32 %v327_v19, %v324_v34 }
 0x97e   :  { %340 = vadd.xlane.f32.xlu1 %v339_v35  ;;  %v337_v36 = vpop.xlane.xlu0 %336 }
 0x97f   :  { %v338_v37 = vsel %vm330_vm14, %v337_v36, %v320_v26 }
 0x980   :  { %v353_v40 = vmul.f32 %v345_v30, %v338_v37 }
 0x982   :  { %354 = vadd.xlane.f32.xlu1 %v353_v40  ;;  %v351_v42 = vpop.xlane.xlu0 %350 }
 0x983   :  { %v352_v45 = vsel %vm348_vm15, %v351_v42, %v334_v31 }
 0x984   :  { %v367_v46 = vmul.f32 %v363_v44, %v352_v45 }
 0x986   :  { %368 = vadd.xlane.f32.xlu1 %v367_v46 }
 0xa07   :  { %v341_v48 = vpop.xlane.xlu1 %340 }
 0xa08   :  { %v342_v50 = vsel %vm330_vm14, %v341_v48, %v324_v34 }
 0xa09   :  { %v357_v51 = vmul.f32 %v345_v30, %v342_v50 }
 0xa0b   :  { %358 = vadd.xlane.f32.xlu0 %v357_v51  ;;  %v355_v52 = vpop.xlane.xlu1 %354 }
 0xa0c   :  { %v356_v53 = vsel %vm348_vm15, %v355_v52, %v338_v37 }
 0xa0d   :  { %v371_v55 = vmul.f32 %v363_v44, %v356_v53 }
 0xa0f   :  { %372 = vadd.xlane.f32.xlu0 %v371_v55  ;;  %v369_v56 = vpop.xlane.xlu1 %368 }
 0xa10   :  { %v370_v58 = vsel %vm366_vm1, %v369_v56, %v352_v45 }
 0xa11   :  { %v385_v59 = vmul.f32 %v381_v57, %v370_v58 }
 0xa13   :  { %386 = vadd.xlane.f32.xlu0 %v385_v59 }
 0xa94   :  { %v359_v60 = vpop.xlane.xlu0 %358 }
 0xa95   :  { %v360_v61 = vsel %vm348_vm15, %v359_v60, %v342_v50 }
 0xa96   :  { %v375_v62 = vmul.f32 %v363_v44, %v360_v61 }
 0xa98   :  { %376 = vadd.xlane.f32.xlu1 %v375_v62  ;;  %v373_v63 = vpop.xlane.xlu0 %372 }
 0xa99   :  { %v374_v0 = vsel %vm366_vm1, %v373_v63, %v356_v53 }
 0xa9a   :  { %v389_v3 = vmul.f32 %v381_v57, %v374_v0 }
 0xa9c   :  { %390 = vadd.xlane.f32.xlu1 %v389_v3  ;;  %v387_v4 = vpop.xlane.xlu0 %386 }
 0xa9d   :  { %v388_v6 = vsel %vm384_vm2, %v387_v4, %v370_v58 }
 0xa9e   :  { %v403_v43 = vmul.f32 %v399_v5, %v388_v6 }
 0xaa0   :  { %404 = vadd.xlane.f32.xlu1 %v403_v43 }
 0xb21   :  { %v377_v9 = vpop.xlane.xlu1 %376 }
 0xb22   :  { %v378_v10 = vsel %vm366_vm1, %v377_v9, %v360_v61 }
 0xb23   :  { %v393_v11 = vmul.f32 %v381_v57, %v378_v10 }
 0xb25   :  { %394 = vadd.xlane.f32.xlu0 %v393_v11  ;;  %v391_v12 = vpop.xlane.xlu1 %390 }
 0xb26   :  { %v392_v13 = vsel %vm384_vm2, %v391_v12, %v374_v0 }
 0xb27   :  { %v407_v15 = vmul.f32 %v399_v5, %v392_v13 }
 0xb29   :  { %408 = vadd.xlane.f32.xlu0 %v407_v15  ;;  %v405_v16 = vpop.xlane.xlu1 %404 }
 0xb2a   :  { %v406_v18 = vsel %vm402_vm3, %v405_v16, %v388_v6 }
 0xb2b   :  { %v420_v19 = vmul.f32 %v416_v17, %v406_v18 }
 0xb2d   :  { %421 = vadd.xlane.f32.xlu0 %v420_v19 }
 0xbae   :  { %v395_v20 = vpop.xlane.xlu0 %394 }
 0xbaf   :  { %v396_v21 = vsel %vm384_vm2, %v395_v20, %v378_v10 }
 0xbb0   :  { %v411_v22 = vmul.f32 %v399_v5, %v396_v21 }
 0xbb2   :  { %412 = vadd.xlane.f32.xlu1 %v411_v22  ;;  %v409_v23 = vpop.xlane.xlu0 %408 }
 0xbb3   :  { %v410_v24 = vsel %vm402_vm3, %v409_v23, %v392_v13 }
 0xbb4   :  { %v424_v25 = vmul.f32 %v416_v17, %v410_v24 }
 0xbb6   :  { %425 = vadd.xlane.f32.xlu1 %v424_v25  ;;  %v422_v26 = vpop.xlane.xlu0 %421 }
 0xbb7   :  { %v423_v27 = vsel %vm419_vm4, %v422_v26, %v406_v18 }
 0xbb8   :  { %v433_v28 = vmul.f32 %v601_v49, %v423_v27 }
 0xbba   :  { %v435_v29 = vsel %vm434_vm5, %v423_v27, %v433_v28 }
 0xbbb   :  { %482 = vst [vmem:[%s687_s1] sm:$0xff] %v435_v29 }
 0xc3b   :  { %v413_v30 = vpop.xlane.xlu1 %412 }
 0xc3c   :  { %v414_v31 = vsel %vm402_vm3, %v413_v30, %v396_v21 }
 0xc3d   :  { %v428_v32 = vmul.f32 %v416_v17, %v414_v31 }
 0xc3f   :  { %429 = vadd.xlane.f32.xlu0 %v428_v32  ;;  %v426_v33 = vpop.xlane.xlu1 %425 }
 0xc40   :  { %v427_v34 = vsel %vm419_vm4, %v426_v33, %v410_v24 }
 0xc41   :  { %v438_v35 = vmul.f32 %v554_v41, %v427_v34 }
 0xc43   :  { %v440_v47 = vsel %vm439_vm6, %v427_v34, %v438_v35 }
 0xc44   :  { %484 = vst [vmem:[%s687_s1 + $0x8] sm:$0xff] %v440_v47 }
 0xcc8   :  { %v430_v49 = vpop.xlane.xlu0 %429 }
 0xcc9   :  { %v431_v36 = vsel %vm419_vm4, %v430_v49, %v414_v31 }
 0xcca   :  { %v444_v37 = vmul.f32 %v534_v8, %v431_v36 }
 0xccc   :  { %v446_v38 = vsel %vm445_vm7, %v431_v36, %v444_v37 }
 0xccd   :  { %486 = vst [vmem:[%s687_s1 + $0x10] sm:$0xff] %v446_v38 }

// kernel: tps_forward.17
= control target key start
LH: loop header
LB: loop body
LE: loop exit
PB: predicated region body
PF: predicated region fallthrough
CT: control target
= control target key end

     0   :  { %s545_s18 = smov 0   ;;  %s582_s0 = inlined_call_operand.vmem [shape: f32[2,4,256], index: 0, kind: input, shape index: {}]   ;;  %s583_s1 = inlined_call_operand.vmem [shape: f32[2,4,256], index: 1, kind: input, shape index: {}]   ;;  %s584_s2 = inlined_call_operand.vmem [shape: f32[2,4,256], index: 2, kind: input, shape index: {}]   ;;  %s585_s3 = inlined_call_operand.vmem [shape: f32[2,4,256], index: 3, kind: input, shape index: {}]   ;;  %s586_s4 = inlined_call_operand.vmem [shape: f32[2,4,256], index: 4, kind: input, shape index: {}]   ;;  %s587_s5 = inlined_call_operand.vmem [shape: f32[2,4,256], index: 5, kind: output, shape index: {}]  }
   0x1 LB: > { %s471_s19 = sadd.s32 4294967295, %s513_s18   ;;  %p475_p0 = scmp.ge.s32.totalorder %s513_s18, 1  ;;  %s513_s18 = sphi %s545_s18, %s15_s18  }
   0x2   : > { %p227_p1 = scmp.lt.s32.totalorder %s513_s18, 3 }
   0x4   : > { %p228_p2 = pnand %p475_p0, %p227_p1 }
   0x5   : > { %p275_p3 = scmp.lt.s32.totalorder (!%p228_p2), %s471_s19, 1 }
   0x6   : > { %231 = sbr.rel (%p228_p2) target bundleno = 30 (0x1e), region = 40 }
   0xb   : > { %v308_v0 = vlaneseq  ;;  %s589_s19 = smov (!%p275_p3, %s471_s19), 1 }
   0xc   : > { %s553_s20 = sshll.u32 %s589_s19, 3 }
   0xd   : > { %v309_v1 = vshrl.u32 %v308_v0, 7  ;;  %s279_s23 = scalar_lea.vmem %s582_s0, %s553_s20  ;;  %s284_s26 = scalar_lea.vmem %s583_s1, %s553_s20 }
   0xe   : > { %s299_s29 = scalar_lea.vmem %s586_s4, %s553_s20  ;;  %s289_s7 = scalar_lea.vmem %s584_s2, %s553_s20  ;;  %v305_v12 = vld [vmem:[%s279_s23] sm:$0xff] }
   0xf   : > { %v310_v2 = vsub.s32 0, %v309_v1  ;;  %v314_v3 = vsub.s32 1, %v309_v1  ;;  %v306_v4 = vld [vmem:[%s299_s29] ss:$4 sm:$0x3]  ;;  %s294_s10 = scalar_lea.vmem %s585_s3, %s553_s20  ;;  %s304_s13 = scalar_lea.vmem %s587_s5, %s553_s20 }
  0x10   : > { %v488_v5 = vld [vmem:[%s299_s29 + $0x1] ss:$4 sm:$0x3]  ;;  %v489_v10 = vld [vmem:[%s299_s29 + $0x2] ss:$4 sm:$0x3] }
  0x11   : > { %v311_v6 = vrot.slane %v306_v4, %v310_v2  ;;  %v315_v7 = vrot.slane %v306_v4, %v314_v3  ;;  %v326_v8 = vrot.slane %v488_v5, %v310_v2  ;;  %v330_v9 = vrot.slane %v488_v5, %v314_v3  ;;  %v490_v11 = vld [vmem:[%s299_s29 + $0x3] ss:$4 sm:$0x3] }
  0x12   : > { %v319_v13 = vld [vmem:[%s284_s26] sm:$0xff]  ;;  %v342_v14 = vrot.slane %v489_v10, %v310_v2  ;;  %v346_v15 = vrot.slane %v489_v10, %v314_v3  ;;  %v358_v16 = vrot.slane %v490_v11, %v310_v2  ;;  %v362_v17 = vrot.slane %v490_v11, %v314_v3 }
  0x13   : > { %v316_v18 = vcombine.low %v311_v6, %v315_v7  ;;  %v331_v19 = vcombine.low %v326_v8, %v330_v9  ;;  %v335_v20 = vld [vmem:[%s289_s7] sm:$0xff] }
  0x14   : > { %v347_v21 = vcombine.low %v342_v14, %v346_v15  ;;  %v351_v22 = vld [vmem:[%s294_s10] sm:$0xff]  ;;  %v363_v23 = vcombine.low %v358_v16, %v362_v17 }
  0x15   : > { %v318_v24 = vmul.f32 %v316_v18, %v305_v12  ;;  %v333_v25 = vmul.f32 %v331_v19, %v319_v13 }
  0x16   : > { %v349_v26 = vmul.f32 %v347_v21, %v335_v20  ;;  %v365_v28 = vmul.f32 %v363_v23, %v351_v22 }
  0x17   : > { %v334_v27 = vadd.f32 %v333_v25, %v318_v24 }
  0x19   : > { %v350_v29 = vadd.f32 %v349_v26, %v334_v27 }
  0x1b   : > { %v366_v30 = vadd.f32 %v365_v28, %v350_v29 }
  0x1d   : > { %367 = vst [vmem:[%s304_s13] sm:$0xff] %v366_v30 }
  0x1e PF: > { %s15_s18 = sadd.s32 1, %s513_s18  }
  0x1f   : > { %p12_p4 = scmp.ge.s32.totalorder %s15_s18, 4  }
  0x21   :  { %14 = sbr.rel (!%p12_p4) target bundleno = 1 (0x1), region = 85 }

</bundles_post_ra>
